<compile_context>
chip_gen: v5e
topology: v5e:2x2
jax: 0.10.0
libtpu: 0.0.40
codegen_flags: <defaults>
</compile_context>

<pallas_src>
import functools

import jax
import jax.numpy as jnp
from jax.experimental import pallas as pl
from jax.experimental.pallas import tpu as pltpu

CHANNEL_SIZE = 3
EPS = 1e-5  # PyTorch InstanceNorm2d default
VMEM_LIMIT = 32 * 1024 * 1024  # safe on v5e/v6e/v7x


def _round_up(x, m):
    return (x + m - 1) // m * m


# --------------------------- tiled matmul kernel ---------------------------

def _matmul_bias_kernel(a_ref, b_ref, bias_ref, o_ref, acc_ref, *, activation):
    k = pl.program_id(2)

    @pl.when(k == 0)
    def _():
        acc_ref[...] = jnp.zeros_like(acc_ref)

    acc_ref[...] += jnp.dot(a_ref[...], b_ref[...],
                            preferred_element_type=jnp.float32)

    @pl.when(k == pl.num_programs(2) - 1)
    def _():
        y = acc_ref[...] + bias_ref[...]
        if activation == "tanh":
            y = jnp.tanh(y)
        o_ref[...] = y.astype(o_ref.dtype)


def matmul_bias(a, b, bias, activation=None, tm=256, tn=128, tk_max=2048):
    """out[:M,:N] = act(a @ b + bias); bf16 operands, f32 accumulate.

    M/K/N are padded so every block is (8,128)-aligned and the output is
    lane-dense (N padded to a multiple of 128)."""
    M, K = a.shape
    _, N = b.shape

    Mp = _round_up(M, 8)
    tm_eff = min(tm, Mp)
    Mp = _round_up(Mp, tm_eff)

    Np = _round_up(N, tn)
    tn_eff = min(tn, Np)

    Kp = _round_up(K, 128)
    num_k = -(-Kp // tk_max)
    tk = _round_up(-(-Kp // num_k), 128)
    Kp = num_k * tk

    a_p = jnp.pad(a.astype(jnp.bfloat16), ((0, Mp - M), (0, Kp - K)))
    b_p = jnp.pad(b.astype(jnp.bfloat16), ((0, Kp - K), (0, Np - N)))
    bias_p = jnp.pad(bias.astype(jnp.float32).reshape(1, N),
                     ((0, 0), (0, Np - N)))

    grid = (Mp // tm_eff, Np // tn_eff, num_k)

    out = pl.pallas_call(
        functools.partial(_matmul_bias_kernel, activation=activation),
        out_shape=jax.ShapeDtypeStruct((Mp, Np), jnp.float32),
        grid_spec=pltpu.PrefetchScalarGridSpec(
            num_scalar_prefetch=0,
            grid=grid,
            in_specs=[
                pl.BlockSpec((tm_eff, tk), lambda i, j, k: (i, k)),
                pl.BlockSpec((tk, tn_eff), lambda i, j, k: (k, j)),
                pl.BlockSpec((1, tn_eff), lambda i, j, k: (0, j)),
            ],
            out_specs=pl.BlockSpec((tm_eff, tn_eff), lambda i, j, k: (i, j)),
            scratch_shapes=[pltpu.VMEM((tm_eff, tn_eff), jnp.float32)],
        ),
        compiler_params=pltpu.CompilerParams(
            dimension_semantics=("parallel", "parallel", "arbitrary"),
            vmem_limit_bytes=VMEM_LIMIT,
        ),
    )(a_p, b_p, bias_p)
    return out[:M, :N]


# ----------------------- instance norm (fused epilogue) ---------------------

def _instance_norm_kernel(x_ref, g_ref, b_ref, *rest, relu, has_residual):
    if has_residual:
        res_ref, o_ref = rest
    else:
        (o_ref,) = rest
    x = x_ref[...]                                    # (1, HW, C), f32
    mean = jnp.mean(x, axis=1, keepdims=True)
    xc = x - mean
    var = jnp.mean(xc * xc, axis=1, keepdims=True)    # biased var (PyTorch)
    y = xc * jax.lax.rsqrt(var + EPS) * g_ref[...] + b_ref[...]
    if has_residual:
        y = y + res_ref[...]
    if relu:
        y = jnp.maximum(y, 0.0)
    o_ref[...] = y


def instance_norm_nhwc(x, gamma, beta, relu=True, residual=None):
    """Instance norm over spatial dims of an NHWC tensor, optionally fused
    with a residual add (+ ReLU). Channels live on lanes; stats in f32."""
    N, H, W, C = x.shape
    HW = H * W
    x2 = x.reshape(N, HW, C)
    g = gamma.reshape(1, C).astype(jnp.float32)
    b = beta.reshape(1, C).astype(jnp.float32)

    in_specs = [
        pl.BlockSpec((1, HW, C), lambda n: (n, 0, 0)),
        pl.BlockSpec((1, C), lambda n: (0, 0)),
        pl.BlockSpec((1, C), lambda n: (0, 0)),
    ]
    args = [x2, g, b]
    has_res = residual is not None
    if has_res:
        in_specs.append(pl.BlockSpec((1, HW, C), lambda n: (n, 0, 0)))
        args.append(residual.reshape(N, HW, C))

    out = pl.pallas_call(
        functools.partial(_instance_norm_kernel, relu=relu,
                          has_residual=has_res),
        out_shape=jax.ShapeDtypeStruct((N, HW, C), jnp.float32),
        grid_spec=pltpu.PrefetchScalarGridSpec(
            num_scalar_prefetch=0,
            grid=(N,),
            in_specs=in_specs,
            out_specs=pl.BlockSpec((1, HW, C), lambda n: (n, 0, 0)),
        ),
        compiler_params=pltpu.CompilerParams(
            dimension_semantics=("parallel",),
            vmem_limit_bytes=VMEM_LIMIT,
        ),
    )(*args)
    return out.reshape(N, H, W, C)


# ------------------------------ conv glue (JAX) -----------------------------

def _im2col_nhwc(x_pad, kh, kw, stride):
    # x_pad: (N, Hp, Wp, C) -> (N*Ho*Wo, kh*kw*C), tap-major then channel.
    N, Hp, Wp, C = x_pad.shape
    Ho = (Hp - kh) // stride + 1
    Wo = (Wp - kw) // stride + 1
    cols = []
    for i in range(kh):
        for j in range(kw):
            cols.append(
                x_pad[:, i:i + stride * Ho:stride, j:j + stride * Wo:stride, :])
    patches = jnp.stack(cols, axis=3)                 # (N, Ho, Wo, kh*kw, C)
    patches = patches.reshape(N * Ho * Wo, kh * kw * C)
    return patches, Ho, Wo


def conv2d_nhwc(x, w, b, stride=1, padding=0, pad_mode="constant",
                activation=None):
    # x: (N, H, W, Cin);  w: (Cout, Cin, kh, kw)  (PyTorch layout)
    cout, cin, kh, kw = w.shape
    if padding > 0:
        x = jnp.pad(x, ((0, 0), (padding, padding), (padding, padding), (0, 0)),
                    mode=pad_mode)
    N = x.shape[0]
    patches, Ho, Wo = _im2col_nhwc(x, kh, kw, stride)
    wmat = w.transpose(2, 3, 1, 0).reshape(kh * kw * cin, cout)
    out = matmul_bias(patches, wmat, b, activation=activation)
    return out.reshape(N, Ho, Wo, cout)


def conv_transpose2d_nhwc(x, w_t, b):
    """ConvTranspose2d(k=3, s=2, p=1, output_padding=1) via sub-pixel phase
    decomposition (no zero-insertion): 4 small stride-1 convs, interleaved."""
    cin, cout, kh, kw = w_t.shape
    assert (kh, kw) == (3, 3)
    N, H, W, _ = x.shape
    M = N * H * W

    wc = jnp.flip(w_t, axis=(2, 3))                   # w_conv[dy,dx] = w_t[2-dy,2-dx]
    xp = jnp.pad(x, ((0, 0), (0, 1), (0, 1), (0, 0)))  # one zero row/col after
    x00 = xp[:, :H, :W, :]
    x01 = xp[:, :H, 1:W + 1, :]
    x10 = xp[:, 1:H + 1, :W, :]
    x11 = xp[:, 1:H + 1, 1:W + 1, :]

    def phase(xs_list, taps):
        a = jnp.concatenate([xs.reshape(M, cin) for xs in xs_list], axis=1)
        wmat = jnp.concatenate([wc[:, :, dy, dx] for (dy, dx) in taps], axis=0)
        return matmul_bias(a, wmat, b).reshape(N, H, W, cout)

    y_ee = phase([x00], [(1, 1)])
    y_eo = phase([x00, x01], [(1, 0), (1, 2)])
    y_oe = phase([x00, x10], [(0, 1), (2, 1)])
    y_oo = phase([x00, x01, x10, x11], [(0, 0), (0, 2), (2, 0), (2, 2)])

    row_e = jnp.stack([y_ee, y_eo], axis=3)           # (N,H,W,2[pc],Cout)
    row_o = jnp.stack([y_oe, y_oo], axis=3)
    p = jnp.stack([row_e, row_o], axis=3)             # (N,H,W,2[pr],2[pc],Cout)
    out = p.transpose(0, 1, 3, 2, 4, 5).reshape(N, 2 * H, 2 * W, cout)
    return out


# ------------------------- parameters & forward ----------------------------

def init_params(key, first_kernels=32, residual_num=6):
    fk = first_kernels

    def conv_init(k, cout, cin, ksz):
        wk, bk = jax.random.split(k)
        fan_in = cin * ksz * ksz
        w = jax.random.normal(wk, (cout, cin, ksz, ksz), jnp.float32) / jnp.sqrt(fan_in)
        b = 0.01 * jax.random.normal(bk, (cout,), jnp.float32)
        return w, b

    def convt_init(k, cin, cout, ksz):
        wk, bk = jax.random.split(k)
        fan_in = cin * ksz * ksz
        w = jax.random.normal(wk, (cin, cout, ksz, ksz), jnp.float32) / jnp.sqrt(fan_in)
        b = 0.01 * jax.random.normal(bk, (cout,), jnp.float32)
        return w, b

    def norm_init(c):
        # PyTorch InstanceNorm2d(affine=True) default init: gamma=1, beta=0
        return jnp.ones((c,), jnp.float32), jnp.zeros((c,), jnp.float32)

    keys = iter(jax.random.split(key, 8 + 4 * residual_num))
    params = {
        "conv_down": (*conv_init(next(keys), fk, CHANNEL_SIZE, 7), *norm_init(fk)),
        "down1": (*conv_init(next(keys), fk * 2, fk, 3), *norm_init(fk * 2)),
        "down2": (*conv_init(next(keys), fk * 4, fk * 2, 3), *norm_init(fk * 4)),
    }
    res = []
    for _ in range(residual_num):
        c = fk * 4
        res.append({
            "conv1": conv_init(next(keys), c, c, 3), "norm1": norm_init(c),
            "conv2": conv_init(next(keys), c, c, 3), "norm2": norm_init(c),
        })
    params["residual"] = res
    params["up1"] = (*convt_init(next(keys), fk * 4, fk * 2, 3), *norm_init(fk * 2))
    params["up2"] = (*convt_init(next(keys), fk * 2, fk, 3), *norm_init(fk))
    params["conv_up"] = conv_init(next(keys), CHANNEL_SIZE, fk, 7)
    return params


def g128_forward(params, x_nchw):
    x = x_nchw.transpose(0, 2, 3, 1)                  # NHWC everywhere inside

    # conv_down: ReflectionPad2d(3) + Conv7x7 + IN + ReLU
    w, b, g, be = params["conv_down"]
    act = conv2d_nhwc(x, w, b, stride=1, padding=3, pad_mode="reflect")
    act = instance_norm_nhwc(act, g, be, relu=True)

    # down1 / down2: Conv3x3 stride 2 pad 1 + IN + ReLU
    w, b, g, be = params["down1"]
    act = conv2d_nhwc(act, w, b, stride=2, padding=1)
    act = instance_norm_nhwc(act, g, be, relu=True)

    w, b, g, be = params["down2"]
    act = conv2d_nhwc(act, w, b, stride=2, padding=1)
    act = instance_norm_nhwc(act, g, be, relu=True)

    # residual blocks: relu(block(act) + act)  (add+relu fused into 2nd IN)
    for blk in params["residual"]:
        (w1, b1), (g1, be1) = blk["conv1"], blk["norm1"]
        (w2, b2), (g2, be2) = blk["conv2"], blk["norm2"]
        h = conv2d_nhwc(act, w1, b1, stride=1, padding=1, pad_mode="reflect")
        h = instance_norm_nhwc(h, g1, be1, relu=True)
        h = conv2d_nhwc(h, w2, b2, stride=1, padding=1, pad_mode="reflect")
        act = instance_norm_nhwc(h, g2, be2, relu=True, residual=act)

    # up1 / up2: ConvTranspose3x3 s2 p1 op1 (sub-pixel) + IN + ReLU
    w, b, g, be = params["up1"]
    act = conv_transpose2d_nhwc(act, w, b)
    act = instance_norm_nhwc(act, g, be, relu=True)

    w, b, g, be = params["up2"]
    act = conv_transpose2d_nhwc(act, w, b)
    act = instance_norm_nhwc(act, g, be, relu=True)

    # conv_up: ReflectionPad2d(3) + Conv7x7 + Tanh (tanh fused in matmul finalize)
    w, b = params["conv_up"]
    act = conv2d_nhwc(act, w, b, stride=1, padding=3, pad_mode="reflect",
                      activation="tanh")
    return act.transpose(0, 3, 1, 2)                  # back to NCHW


if __name__ == "__main__":
    key = jax.random.PRNGKey(0)
    pkey, xkey = jax.random.split(key)

    # module defaults: first_kernels=32, residual_num=6; small 16x16 input
    params = init_params(pkey, first_kernels=32, residual_num=6)
    x = jax.random.normal(xkey, (2, CHANNEL_SIZE, 16, 16), jnp.float32)

    out = jax.jit(g128_forward)(params, x)
    out = jax.block_until_ready(out)
    assert out.shape == (2, CHANNEL_SIZE, 16, 16), out.shape
    assert out.dtype == jnp.float32
    assert bool(jnp.isfinite(out).all())
    print("KERNEL_OK")
</pallas_src>

<mosaic_0001>
module attributes {stable_mosaic.version = 11 : i64} {
  func.func @_instance_norm_kernel(%arg0: i32, %arg1: memref<1x256x32xf32, #tpu.memory_space<vmem>>, %arg2: memref<1x32xf32, #tpu.memory_space<vmem>>, %arg3: memref<1x32xf32, #tpu.memory_space<vmem>>, %arg4: memref<1x256x32xf32, #tpu.memory_space<vmem>>) attributes {dimension_semantics = [#tpu.dimension_semantics<parallel>], iteration_bounds = array<i64: 2>, scalar_prefetch = 0 : i64, scratch_operands = 0 : i64, tpu.core_type = #tpu.core_type<tc>, window_params = [{transform_indices = @transform_0, window_bounds = array<i64: 1, 256, 32>}, {pipeline_mode = #tpu.pipeline_mode<synchronous>, transform_indices = @transform_1, window_bounds = array<i64: 1, 32>}, {pipeline_mode = #tpu.pipeline_mode<synchronous>, transform_indices = @transform_2, window_bounds = array<i64: 1, 32>}, {transform_indices = @transform_3, window_bounds = array<i64: 1, 256, 32>}]} {
    %c0 = arith.constant 0 : index
    %c0_0 = arith.constant 0 : index
    %c0_1 = arith.constant 0 : index
    %0 = vector.load %arg1[%c0, %c0_0, %c0_1] : memref<1x256x32xf32, #tpu.memory_space<vmem>>, vector<1x256x32xf32>
    %cst = arith.constant dense<0.000000e+00> : vector<1x32xf32>
    %1 = vector.multi_reduction <add>, %0, %cst [1] : vector<1x256x32xf32> to vector<1x32xf32>
    %2 = vector.shape_cast %1 : vector<1x32xf32> to vector<1x1x32xf32>
    %cst_2 = arith.constant 2.560000e+02 : f32
    %3 = vector.broadcast %cst_2 : f32 to vector<1x1x32xf32>
    %4 = arith.divf %2, %3 : vector<1x1x32xf32>
    %5 = vector.broadcast %4 : vector<1x1x32xf32> to vector<1x256x32xf32>
    %6 = arith.subf %0, %5 : vector<1x256x32xf32>
    %7 = arith.mulf %6, %6 : vector<1x256x32xf32>
    %cst_3 = arith.constant dense<0.000000e+00> : vector<1x32xf32>
    %8 = vector.multi_reduction <add>, %7, %cst_3 [1] : vector<1x256x32xf32> to vector<1x32xf32>
    %9 = vector.shape_cast %8 : vector<1x32xf32> to vector<1x1x32xf32>
    %cst_4 = arith.constant 2.560000e+02 : f32
    %10 = vector.broadcast %cst_4 : f32 to vector<1x1x32xf32>
    %11 = arith.divf %9, %10 : vector<1x1x32xf32>
    %cst_5 = arith.constant 9.99999974E-6 : f32
    %12 = vector.broadcast %cst_5 : f32 to vector<1x1x32xf32>
    %13 = arith.addf %11, %12 : vector<1x1x32xf32>
    %14 = math.rsqrt %13 : vector<1x1x32xf32>
    %15 = vector.broadcast %14 : vector<1x1x32xf32> to vector<1x256x32xf32>
    %16 = arith.mulf %6, %15 : vector<1x256x32xf32>
    %c0_6 = arith.constant 0 : index
    %c0_7 = arith.constant 0 : index
    %17 = vector.load %arg2[%c0_6, %c0_7] : memref<1x32xf32, #tpu.memory_space<vmem>>, vector<1x32xf32>
    %18 = vector.shape_cast %17 : vector<1x32xf32> to vector<1x1x32xf32>
    %19 = vector.broadcast %18 : vector<1x1x32xf32> to vector<1x256x32xf32>
    %20 = arith.mulf %16, %19 : vector<1x256x32xf32>
    %c0_8 = arith.constant 0 : index
    %c0_9 = arith.constant 0 : index
    %21 = vector.load %arg3[%c0_8, %c0_9] : memref<1x32xf32, #tpu.memory_space<vmem>>, vector<1x32xf32>
    %22 = vector.shape_cast %21 : vector<1x32xf32> to vector<1x1x32xf32>
    %23 = vector.broadcast %22 : vector<1x1x32xf32> to vector<1x256x32xf32>
    %24 = arith.addf %20, %23 : vector<1x256x32xf32>
    %cst_10 = arith.constant 0.000000e+00 : f32
    %25 = vector.broadcast %cst_10 : f32 to vector<1x256x32xf32>
    %26 = arith.maximumf %24, %25 : vector<1x256x32xf32>
    %c0_11 = arith.constant 0 : index
    %c0_12 = arith.constant 0 : index
    %c0_13 = arith.constant 0 : index
    %27 = vector.load %arg4[%c0_11, %c0_12, %c0_13] : memref<1x256x32xf32, #tpu.memory_space<vmem>>, vector<1x256x32xf32>
    tpu.vector_store %arg4[%c0_11, %c0_12, %c0_13], %26 {strides = array<i32>} : memref<1x256x32xf32, #tpu.memory_space<vmem>>, vector<1x256x32xf32>,
    return
  }
  func.func @transform_0(%arg0: i32) -> (i32, i32, i32) {
    %c0_i32 = arith.constant 0 : i32
    %c0_i32_0 = arith.constant 0 : i32
    %c0_i32_1 = arith.constant 0 : i32
    return %arg0, %c0_i32, %c0_i32_0 : i32, i32, i32
  }
  func.func @transform_1(%arg0: i32) -> (i32, i32) {
    %c0_i32 = arith.constant 0 : i32
    %c0_i32_0 = arith.constant 0 : i32
    %c0_i32_1 = arith.constant 0 : i32
    return %c0_i32, %c0_i32_0 : i32, i32
  }
  func.func @transform_2(%arg0: i32) -> (i32, i32) {
    %c0_i32 = arith.constant 0 : i32
    %c0_i32_0 = arith.constant 0 : i32
    %c0_i32_1 = arith.constant 0 : i32
    return %c0_i32, %c0_i32_0 : i32, i32
  }
  func.func @transform_3(%arg0: i32) -> (i32, i32, i32) {
    %c0_i32 = arith.constant 0 : i32
    %c0_i32_0 = arith.constant 0 : i32
    %c0_i32_1 = arith.constant 0 : i32
    return %arg0, %c0_i32, %c0_i32_0 : i32, i32, i32
  }
}

module attributes {stable_mosaic.version = 11 : i64} {
  func.func @_matmul_bias_kernel(%arg0: i32, %arg1: i32, %arg2: i32, %arg3: memref<256x256xbf16, #tpu.memory_space<vmem>>, %arg4: memref<256x128xbf16, #tpu.memory_space<vmem>>, %arg5: memref<1x128xf32, #tpu.memory_space<vmem>>, %arg6: memref<256x128xf32, #tpu.memory_space<vmem>>, %arg7: memref<256x128xf32, #tpu.memory_space<vmem>>) attributes {dimension_semantics = [#tpu.dimension_semantics<parallel>, #tpu.dimension_semantics<parallel>, #tpu.dimension_semantics<arbitrary>], iteration_bounds = array<i64: 2, 1, 1>, scalar_prefetch = 0 : i64, scratch_operands = 1 : i64, tpu.core_type = #tpu.core_type<tc>, window_params = [{transform_indices = @transform_0, window_bounds = array<i64: 256, 256>}, {transform_indices = @transform_1, window_bounds = array<i64: 256, 128>}, {transform_indices = @transform_2, window_bounds = array<i64: 1, 128>}, {transform_indices = @transform_3, window_bounds = array<i64: 256, 128>}]} {
    %c0_i32 = arith.constant 0 : i32
    %0 = arith.cmpi eq, %arg2, %c0_i32 : i32
    %1 = arith.extui %0 : i1 to i32
    %c0_i32_0 = arith.constant 0 : i32
    %2 = arith.cmpi ne, %1, %c0_i32_0 : i32
    scf.if %2 {
      %cst_10 = arith.constant 0.000000e+00 : f32
      %12 = vector.broadcast %cst_10 : f32 to vector<256x128xf32>
      %c0_11 = arith.constant 0 : index
      %c0_12 = arith.constant 0 : index
      %13 = vector.load %arg7[%c0_11, %c0_12] : memref<256x128xf32, #tpu.memory_space<vmem>>, vector<256x128xf32>
      tpu.vector_store %arg7[%c0_11, %c0_12], %12 {strides = array<i32>} : memref<256x128xf32, #tpu.memory_space<vmem>>, vector<256x128xf32>,
    } else {
    }
    %c0 = arith.constant 0 : index
    %c0_1 = arith.constant 0 : index
    %3 = vector.load %arg7[%c0, %c0_1] : memref<256x128xf32, #tpu.memory_space<vmem>>, vector<256x128xf32>
    %c0_2 = arith.constant 0 : index
    %c0_3 = arith.constant 0 : index
    %4 = vector.load %arg3[%c0_2, %c0_3] : memref<256x256xbf16, #tpu.memory_space<vmem>>, vector<256x256xbf16>
    %c0_4 = arith.constant 0 : index
    %c0_5 = arith.constant 0 : index
    %5 = vector.load %arg4[%c0_4, %c0_5] : memref<256x128xbf16, #tpu.memory_space<vmem>>, vector<256x128xbf16>
    %cst = arith.constant dense<0.000000e+00> : vector<256x128xf32>
    %6 = tpu.matmul %4, %5, %cst {dimension_numbers = #tpu.dot_dimension_numbers<[1], [0], [0], [1], [0, 0, 1, 1], [], []>} : vector<256x256xbf16>, vector<256x128xbf16>, vector<256x128xf32> -> vector<256x128xf32>
    %7 = arith.addf %3, %6 : vector<256x128xf32>
    %c0_6 = arith.constant 0 : index
    %c0_7 = arith.constant 0 : index
    %8 = vector.load %arg7[%c0_6, %c0_7] : memref<256x128xf32, #tpu.memory_space<vmem>>, vector<256x128xf32>
    tpu.vector_store %arg7[%c0_6, %c0_7], %7 {strides = array<i32>} : memref<256x128xf32, #tpu.memory_space<vmem>>, vector<256x128xf32>,
    %c0_i32_8 = arith.constant 0 : i32
    %9 = arith.cmpi eq, %arg2, %c0_i32_8 : i32
    %10 = arith.extui %9 : i1 to i32
    %c0_i32_9 = arith.constant 0 : i32
    %11 = arith.cmpi ne, %10, %c0_i32_9 : i32
    scf.if %11 {
      %c0_10 = arith.constant 0 : index
      %c0_11 = arith.constant 0 : index
      %12 = vector.load %arg7[%c0_10, %c0_11] : memref<256x128xf32, #tpu.memory_space<vmem>>, vector<256x128xf32>
      %c0_12 = arith.constant 0 : index
      %c0_13 = arith.constant 0 : index
      %13 = vector.load %arg5[%c0_12, %c0_13] : memref<1x128xf32, #tpu.memory_space<vmem>>, vector<1x128xf32>
      %14 = vector.broadcast %13 : vector<1x128xf32> to vector<256x128xf32>
      %15 = arith.addf %12, %14 : vector<256x128xf32>
      %c0_14 = arith.constant 0 : index
      %c0_15 = arith.constant 0 : index
      %16 = vector.load %arg6[%c0_14, %c0_15] : memref<256x128xf32, #tpu.memory_space<vmem>>, vector<256x128xf32>
      tpu.vector_store %arg6[%c0_14, %c0_15], %15 {strides = array<i32>} : memref<256x128xf32, #tpu.memory_space<vmem>>, vector<256x128xf32>,
    } else {
    }
    return
  }
  func.func @transform_0(%arg0: i32, %arg1: i32, %arg2: i32) -> (i32, i32) {
    %c0_i32 = arith.constant 0 : i32
    return %arg0, %arg2 : i32, i32
  }
  func.func @transform_1(%arg0: i32, %arg1: i32, %arg2: i32) -> (i32, i32) {
    %c0_i32 = arith.constant 0 : i32
    return %arg2, %arg1 : i32, i32
  }
  func.func @transform_2(%arg0: i32, %arg1: i32, %arg2: i32) -> (i32, i32) {
    %c0_i32 = arith.constant 0 : i32
    %c0_i32_0 = arith.constant 0 : i32
    return %c0_i32, %arg1 : i32, i32
  }
  func.func @transform_3(%arg0: i32, %arg1: i32, %arg2: i32) -> (i32, i32) {
    %c0_i32 = arith.constant 0 : i32
    return %arg0, %arg1 : i32, i32
  }
}

module attributes {stable_mosaic.version = 11 : i64} {
  func.func @_matmul_bias_kernel(%arg0: i32, %arg1: i32, %arg2: i32, %arg3: memref<128x384xbf16, #tpu.memory_space<vmem>>, %arg4: memref<384x128xbf16, #tpu.memory_space<vmem>>, %arg5: memref<1x128xf32, #tpu.memory_space<vmem>>, %arg6: memref<128x128xf32, #tpu.memory_space<vmem>>, %arg7: memref<128x128xf32, #tpu.memory_space<vmem>>) attributes {dimension_semantics = [#tpu.dimension_semantics<parallel>, #tpu.dimension_semantics<parallel>, #tpu.dimension_semantics<arbitrary>], iteration_bounds = array<i64: 1, 1, 1>, scalar_prefetch = 0 : i64, scratch_operands = 1 : i64, tpu.core_type = #tpu.core_type<tc>, window_params = [{transform_indices = @transform_0, window_bounds = array<i64: 128, 384>}, {transform_indices = @transform_1, window_bounds = array<i64: 384, 128>}, {transform_indices = @transform_2, window_bounds = array<i64: 1, 128>}, {transform_indices = @transform_3, window_bounds = array<i64: 128, 128>}]} {
    %c0_i32 = arith.constant 0 : i32
    %0 = arith.cmpi eq, %arg2, %c0_i32 : i32
    %1 = arith.extui %0 : i1 to i32
    %c0_i32_0 = arith.constant 0 : i32
    %2 = arith.cmpi ne, %1, %c0_i32_0 : i32
    scf.if %2 {
      %cst_10 = arith.constant 0.000000e+00 : f32
      %12 = vector.broadcast %cst_10 : f32 to vector<128x128xf32>
      %c0_11 = arith.constant 0 : index
      %c0_12 = arith.constant 0 : index
      %13 = vector.load %arg7[%c0_11, %c0_12] : memref<128x128xf32, #tpu.memory_space<vmem>>, vector<128x128xf32>
      tpu.vector_store %arg7[%c0_11, %c0_12], %12 {strides = array<i32>} : memref<128x128xf32, #tpu.memory_space<vmem>>, vector<128x128xf32>,
    } else {
    }
    %c0 = arith.constant 0 : index
    %c0_1 = arith.constant 0 : index
    %3 = vector.load %arg7[%c0, %c0_1] : memref<128x128xf32, #tpu.memory_space<vmem>>, vector<128x128xf32>
    %c0_2 = arith.constant 0 : index
    %c0_3 = arith.constant 0 : index
    %4 = vector.load %arg3[%c0_2, %c0_3] : memref<128x384xbf16, #tpu.memory_space<vmem>>, vector<128x384xbf16>
    %c0_4 = arith.constant 0 : index
    %c0_5 = arith.constant 0 : index
    %5 = vector.load %arg4[%c0_4, %c0_5] : memref<384x128xbf16, #tpu.memory_space<vmem>>, vector<384x128xbf16>
    %cst = arith.constant dense<0.000000e+00> : vector<128x128xf32>
    %6 = tpu.matmul %4, %5, %cst {dimension_numbers = #tpu.dot_dimension_numbers<[1], [0], [0], [1], [0, 0, 1, 1], [], []>} : vector<128x384xbf16>, vector<384x128xbf16>, vector<128x128xf32> -> vector<128x128xf32>
    %7 = arith.addf %3, %6 : vector<128x128xf32>
    %c0_6 = arith.constant 0 : index
    %c0_7 = arith.constant 0 : index
    %8 = vector.load %arg7[%c0_6, %c0_7] : memref<128x128xf32, #tpu.memory_space<vmem>>, vector<128x128xf32>
    tpu.vector_store %arg7[%c0_6, %c0_7], %7 {strides = array<i32>} : memref<128x128xf32, #tpu.memory_space<vmem>>, vector<128x128xf32>,
    %c0_i32_8 = arith.constant 0 : i32
    %9 = arith.cmpi eq, %arg2, %c0_i32_8 : i32
    %10 = arith.extui %9 : i1 to i32
    %c0_i32_9 = arith.constant 0 : i32
    %11 = arith.cmpi ne, %10, %c0_i32_9 : i32
    scf.if %11 {
      %c0_10 = arith.constant 0 : index
      %c0_11 = arith.constant 0 : index
      %12 = vector.load %arg7[%c0_10, %c0_11] : memref<128x128xf32, #tpu.memory_space<vmem>>, vector<128x128xf32>
      %c0_12 = arith.constant 0 : index
      %c0_13 = arith.constant 0 : index
      %13 = vector.load %arg5[%c0_12, %c0_13] : memref<1x128xf32, #tpu.memory_space<vmem>>, vector<1x128xf32>
      %14 = vector.broadcast %13 : vector<1x128xf32> to vector<128x128xf32>
      %15 = arith.addf %12, %14 : vector<128x128xf32>
      %c0_14 = arith.constant 0 : index
      %c0_15 = arith.constant 0 : index
      %16 = vector.load %arg6[%c0_14, %c0_15] : memref<128x128xf32, #tpu.memory_space<vmem>>, vector<128x128xf32>
      tpu.vector_store %arg6[%c0_14, %c0_15], %15 {strides = array<i32>} : memref<128x128xf32, #tpu.memory_space<vmem>>, vector<128x128xf32>,
    } else {
    }
    return
  }
  func.func @transform_0(%arg0: i32, %arg1: i32, %arg2: i32) -> (i32, i32) {
    %c0_i32 = arith.constant 0 : i32
    return %arg0, %arg2 : i32, i32
  }
  func.func @transform_1(%arg0: i32, %arg1: i32, %arg2: i32) -> (i32, i32) {
    %c0_i32 = arith.constant 0 : i32
    return %arg2, %arg1 : i32, i32
  }
  func.func @transform_2(%arg0: i32, %arg1: i32, %arg2: i32) -> (i32, i32) {
    %c0_i32 = arith.constant 0 : i32
    %c0_i32_0 = arith.constant 0 : i32
    return %c0_i32, %arg1 : i32, i32
  }
  func.func @transform_3(%arg0: i32, %arg1: i32, %arg2: i32) -> (i32, i32) {
    %c0_i32 = arith.constant 0 : i32
    return %arg0, %arg1 : i32, i32
  }
}

module attributes {stable_mosaic.version = 11 : i64} {
  func.func @_instance_norm_kernel(%arg0: i32, %arg1: memref<1x64x64xf32, #tpu.memory_space<vmem>>, %arg2: memref<1x64xf32, #tpu.memory_space<vmem>>, %arg3: memref<1x64xf32, #tpu.memory_space<vmem>>, %arg4: memref<1x64x64xf32, #tpu.memory_space<vmem>>) attributes {dimension_semantics = [#tpu.dimension_semantics<parallel>], iteration_bounds = array<i64: 2>, scalar_prefetch = 0 : i64, scratch_operands = 0 : i64, tpu.core_type = #tpu.core_type<tc>, window_params = [{transform_indices = @transform_0, window_bounds = array<i64: 1, 64, 64>}, {pipeline_mode = #tpu.pipeline_mode<synchronous>, transform_indices = @transform_1, window_bounds = array<i64: 1, 64>}, {pipeline_mode = #tpu.pipeline_mode<synchronous>, transform_indices = @transform_2, window_bounds = array<i64: 1, 64>}, {transform_indices = @transform_3, window_bounds = array<i64: 1, 64, 64>}]} {
    %c0 = arith.constant 0 : index
    %c0_0 = arith.constant 0 : index
    %c0_1 = arith.constant 0 : index
    %0 = vector.load %arg1[%c0, %c0_0, %c0_1] : memref<1x64x64xf32, #tpu.memory_space<vmem>>, vector<1x64x64xf32>
    %cst = arith.constant dense<0.000000e+00> : vector<1x64xf32>
    %1 = vector.multi_reduction <add>, %0, %cst [1] : vector<1x64x64xf32> to vector<1x64xf32>
    %2 = vector.shape_cast %1 : vector<1x64xf32> to vector<1x1x64xf32>
    %cst_2 = arith.constant 6.400000e+01 : f32
    %3 = vector.broadcast %cst_2 : f32 to vector<1x1x64xf32>
    %4 = arith.divf %2, %3 : vector<1x1x64xf32>
    %5 = vector.broadcast %4 : vector<1x1x64xf32> to vector<1x64x64xf32>
    %6 = arith.subf %0, %5 : vector<1x64x64xf32>
    %7 = arith.mulf %6, %6 : vector<1x64x64xf32>
    %cst_3 = arith.constant dense<0.000000e+00> : vector<1x64xf32>
    %8 = vector.multi_reduction <add>, %7, %cst_3 [1] : vector<1x64x64xf32> to vector<1x64xf32>
    %9 = vector.shape_cast %8 : vector<1x64xf32> to vector<1x1x64xf32>
    %cst_4 = arith.constant 6.400000e+01 : f32
    %10 = vector.broadcast %cst_4 : f32 to vector<1x1x64xf32>
    %11 = arith.divf %9, %10 : vector<1x1x64xf32>
    %cst_5 = arith.constant 9.99999974E-6 : f32
    %12 = vector.broadcast %cst_5 : f32 to vector<1x1x64xf32>
    %13 = arith.addf %11, %12 : vector<1x1x64xf32>
    %14 = math.rsqrt %13 : vector<1x1x64xf32>
    %15 = vector.broadcast %14 : vector<1x1x64xf32> to vector<1x64x64xf32>
    %16 = arith.mulf %6, %15 : vector<1x64x64xf32>
    %c0_6 = arith.constant 0 : index
    %c0_7 = arith.constant 0 : index
    %17 = vector.load %arg2[%c0_6, %c0_7] : memref<1x64xf32, #tpu.memory_space<vmem>>, vector<1x64xf32>
    %18 = vector.shape_cast %17 : vector<1x64xf32> to vector<1x1x64xf32>
    %19 = vector.broadcast %18 : vector<1x1x64xf32> to vector<1x64x64xf32>
    %20 = arith.mulf %16, %19 : vector<1x64x64xf32>
    %c0_8 = arith.constant 0 : index
    %c0_9 = arith.constant 0 : index
    %21 = vector.load %arg3[%c0_8, %c0_9] : memref<1x64xf32, #tpu.memory_space<vmem>>, vector<1x64xf32>
    %22 = vector.shape_cast %21 : vector<1x64xf32> to vector<1x1x64xf32>
    %23 = vector.broadcast %22 : vector<1x1x64xf32> to vector<1x64x64xf32>
    %24 = arith.addf %20, %23 : vector<1x64x64xf32>
    %cst_10 = arith.constant 0.000000e+00 : f32
    %25 = vector.broadcast %cst_10 : f32 to vector<1x64x64xf32>
    %26 = arith.maximumf %24, %25 : vector<1x64x64xf32>
    %c0_11 = arith.constant 0 : index
    %c0_12 = arith.constant 0 : index
    %c0_13 = arith.constant 0 : index
    %27 = vector.load %arg4[%c0_11, %c0_12, %c0_13] : memref<1x64x64xf32, #tpu.memory_space<vmem>>, vector<1x64x64xf32>
    tpu.vector_store %arg4[%c0_11, %c0_12, %c0_13], %26 {strides = array<i32>} : memref<1x64x64xf32, #tpu.memory_space<vmem>>, vector<1x64x64xf32>,
    return
  }
  func.func @transform_0(%arg0: i32) -> (i32, i32, i32) {
    %c0_i32 = arith.constant 0 : i32
    %c0_i32_0 = arith.constant 0 : i32
    %c0_i32_1 = arith.constant 0 : i32
    return %arg0, %c0_i32, %c0_i32_0 : i32, i32, i32
  }
  func.func @transform_1(%arg0: i32) -> (i32, i32) {
    %c0_i32 = arith.constant 0 : i32
    %c0_i32_0 = arith.constant 0 : i32
    %c0_i32_1 = arith.constant 0 : i32
    return %c0_i32, %c0_i32_0 : i32, i32
  }
  func.func @transform_2(%arg0: i32) -> (i32, i32) {
    %c0_i32 = arith.constant 0 : i32
    %c0_i32_0 = arith.constant 0 : i32
    %c0_i32_1 = arith.constant 0 : i32
    return %c0_i32, %c0_i32_0 : i32, i32
  }
  func.func @transform_3(%arg0: i32) -> (i32, i32, i32) {
    %c0_i32 = arith.constant 0 : i32
    %c0_i32_0 = arith.constant 0 : i32
    %c0_i32_1 = arith.constant 0 : i32
    return %arg0, %c0_i32, %c0_i32_0 : i32, i32, i32
  }
}

module attributes {stable_mosaic.version = 11 : i64} {
  func.func @_matmul_bias_kernel(%arg0: i32, %arg1: i32, %arg2: i32, %arg3: memref<32x640xbf16, #tpu.memory_space<vmem>>, %arg4: memref<640x128xbf16, #tpu.memory_space<vmem>>, %arg5: memref<1x128xf32, #tpu.memory_space<vmem>>, %arg6: memref<32x128xf32, #tpu.memory_space<vmem>>, %arg7: memref<32x128xf32, #tpu.memory_space<vmem>>) attributes {dimension_semantics = [#tpu.dimension_semantics<parallel>, #tpu.dimension_semantics<parallel>, #tpu.dimension_semantics<arbitrary>], iteration_bounds = array<i64: 1, 1, 1>, scalar_prefetch = 0 : i64, scratch_operands = 1 : i64, tpu.core_type = #tpu.core_type<tc>, window_params = [{transform_indices = @transform_0, window_bounds = array<i64: 32, 640>}, {transform_indices = @transform_1, window_bounds = array<i64: 640, 128>}, {transform_indices = @transform_2, window_bounds = array<i64: 1, 128>}, {transform_indices = @transform_3, window_bounds = array<i64: 32, 128>}]} {
    %c0_i32 = arith.constant 0 : i32
    %0 = arith.cmpi eq, %arg2, %c0_i32 : i32
    %1 = arith.extui %0 : i1 to i32
    %c0_i32_0 = arith.constant 0 : i32
    %2 = arith.cmpi ne, %1, %c0_i32_0 : i32
    scf.if %2 {
      %cst_10 = arith.constant 0.000000e+00 : f32
      %12 = vector.broadcast %cst_10 : f32 to vector<32x128xf32>
      %c0_11 = arith.constant 0 : index
      %c0_12 = arith.constant 0 : index
      %13 = vector.load %arg7[%c0_11, %c0_12] : memref<32x128xf32, #tpu.memory_space<vmem>>, vector<32x128xf32>
      tpu.vector_store %arg7[%c0_11, %c0_12], %12 {strides = array<i32>} : memref<32x128xf32, #tpu.memory_space<vmem>>, vector<32x128xf32>,
    } else {
    }
    %c0 = arith.constant 0 : index
    %c0_1 = arith.constant 0 : index
    %3 = vector.load %arg7[%c0, %c0_1] : memref<32x128xf32, #tpu.memory_space<vmem>>, vector<32x128xf32>
    %c0_2 = arith.constant 0 : index
    %c0_3 = arith.constant 0 : index
    %4 = vector.load %arg3[%c0_2, %c0_3] : memref<32x640xbf16, #tpu.memory_space<vmem>>, vector<32x640xbf16>
    %c0_4 = arith.constant 0 : index
    %c0_5 = arith.constant 0 : index
    %5 = vector.load %arg4[%c0_4, %c0_5] : memref<640x128xbf16, #tpu.memory_space<vmem>>, vector<640x128xbf16>
    %cst = arith.constant dense<0.000000e+00> : vector<32x128xf32>
    %6 = tpu.matmul %4, %5, %cst {dimension_numbers = #tpu.dot_dimension_numbers<[1], [0], [0], [1], [0, 0, 1, 1], [], []>} : vector<32x640xbf16>, vector<640x128xbf16>, vector<32x128xf32> -> vector<32x128xf32>
    %7 = arith.addf %3, %6 : vector<32x128xf32>
    %c0_6 = arith.constant 0 : index
    %c0_7 = arith.constant 0 : index
    %8 = vector.load %arg7[%c0_6, %c0_7] : memref<32x128xf32, #tpu.memory_space<vmem>>, vector<32x128xf32>
    tpu.vector_store %arg7[%c0_6, %c0_7], %7 {strides = array<i32>} : memref<32x128xf32, #tpu.memory_space<vmem>>, vector<32x128xf32>,
    %c0_i32_8 = arith.constant 0 : i32
    %9 = arith.cmpi eq, %arg2, %c0_i32_8 : i32
    %10 = arith.extui %9 : i1 to i32
    %c0_i32_9 = arith.constant 0 : i32
    %11 = arith.cmpi ne, %10, %c0_i32_9 : i32
    scf.if %11 {
      %c0_10 = arith.constant 0 : index
      %c0_11 = arith.constant 0 : index
      %12 = vector.load %arg7[%c0_10, %c0_11] : memref<32x128xf32, #tpu.memory_space<vmem>>, vector<32x128xf32>
      %c0_12 = arith.constant 0 : index
      %c0_13 = arith.constant 0 : index
      %13 = vector.load %arg5[%c0_12, %c0_13] : memref<1x128xf32, #tpu.memory_space<vmem>>, vector<1x128xf32>
      %14 = vector.broadcast %13 : vector<1x128xf32> to vector<32x128xf32>
      %15 = arith.addf %12, %14 : vector<32x128xf32>
      %c0_14 = arith.constant 0 : index
      %c0_15 = arith.constant 0 : index
      %16 = vector.load %arg6[%c0_14, %c0_15] : memref<32x128xf32, #tpu.memory_space<vmem>>, vector<32x128xf32>
      tpu.vector_store %arg6[%c0_14, %c0_15], %15 {strides = array<i32>} : memref<32x128xf32, #tpu.memory_space<vmem>>, vector<32x128xf32>,
    } else {
    }
    return
  }
  func.func @transform_0(%arg0: i32, %arg1: i32, %arg2: i32) -> (i32, i32) {
    %c0_i32 = arith.constant 0 : i32
    return %arg0, %arg2 : i32, i32
  }
  func.func @transform_1(%arg0: i32, %arg1: i32, %arg2: i32) -> (i32, i32) {
    %c0_i32 = arith.constant 0 : i32
    return %arg2, %arg1 : i32, i32
  }
  func.func @transform_2(%arg0: i32, %arg1: i32, %arg2: i32) -> (i32, i32) {
    %c0_i32 = arith.constant 0 : i32
    %c0_i32_0 = arith.constant 0 : i32
    return %c0_i32, %arg1 : i32, i32
  }
  func.func @transform_3(%arg0: i32, %arg1: i32, %arg2: i32) -> (i32, i32) {
    %c0_i32 = arith.constant 0 : i32
    return %arg0, %arg1 : i32, i32
  }
}

module attributes {stable_mosaic.version = 11 : i64} {
  func.func @_instance_norm_kernel(%arg0: i32, %arg1: memref<1x16x128xf32, #tpu.memory_space<vmem>>, %arg2: memref<1x128xf32, #tpu.memory_space<vmem>>, %arg3: memref<1x128xf32, #tpu.memory_space<vmem>>, %arg4: memref<1x16x128xf32, #tpu.memory_space<vmem>>) attributes {dimension_semantics = [#tpu.dimension_semantics<parallel>], iteration_bounds = array<i64: 2>, scalar_prefetch = 0 : i64, scratch_operands = 0 : i64, tpu.core_type = #tpu.core_type<tc>, window_params = [{transform_indices = @transform_0, window_bounds = array<i64: 1, 16, 128>}, {pipeline_mode = #tpu.pipeline_mode<synchronous>, transform_indices = @transform_1, window_bounds = array<i64: 1, 128>}, {pipeline_mode = #tpu.pipeline_mode<synchronous>, transform_indices = @transform_2, window_bounds = array<i64: 1, 128>}, {transform_indices = @transform_3, window_bounds = array<i64: 1, 16, 128>}]} {
    %c0 = arith.constant 0 : index
    %c0_0 = arith.constant 0 : index
    %c0_1 = arith.constant 0 : index
    %0 = vector.load %arg1[%c0, %c0_0, %c0_1] : memref<1x16x128xf32, #tpu.memory_space<vmem>>, vector<1x16x128xf32>
    %cst = arith.constant dense<0.000000e+00> : vector<1x128xf32>
    %1 = vector.multi_reduction <add>, %0, %cst [1] : vector<1x16x128xf32> to vector<1x128xf32>
    %2 = vector.shape_cast %1 : vector<1x128xf32> to vector<1x1x128xf32>
    %cst_2 = arith.constant 1.600000e+01 : f32
    %3 = vector.broadcast %cst_2 : f32 to vector<1x1x128xf32>
    %4 = arith.divf %2, %3 : vector<1x1x128xf32>
    %5 = vector.broadcast %4 : vector<1x1x128xf32> to vector<1x16x128xf32>
    %6 = arith.subf %0, %5 : vector<1x16x128xf32>
    %7 = arith.mulf %6, %6 : vector<1x16x128xf32>
    %cst_3 = arith.constant dense<0.000000e+00> : vector<1x128xf32>
    %8 = vector.multi_reduction <add>, %7, %cst_3 [1] : vector<1x16x128xf32> to vector<1x128xf32>
    %9 = vector.shape_cast %8 : vector<1x128xf32> to vector<1x1x128xf32>
    %cst_4 = arith.constant 1.600000e+01 : f32
    %10 = vector.broadcast %cst_4 : f32 to vector<1x1x128xf32>
    %11 = arith.divf %9, %10 : vector<1x1x128xf32>
    %cst_5 = arith.constant 9.99999974E-6 : f32
    %12 = vector.broadcast %cst_5 : f32 to vector<1x1x128xf32>
    %13 = arith.addf %11, %12 : vector<1x1x128xf32>
    %14 = math.rsqrt %13 : vector<1x1x128xf32>
    %15 = vector.broadcast %14 : vector<1x1x128xf32> to vector<1x16x128xf32>
    %16 = arith.mulf %6, %15 : vector<1x16x128xf32>
    %c0_6 = arith.constant 0 : index
    %c0_7 = arith.constant 0 : index
    %17 = vector.load %arg2[%c0_6, %c0_7] : memref<1x128xf32, #tpu.memory_space<vmem>>, vector<1x128xf32>
    %18 = vector.shape_cast %17 : vector<1x128xf32> to vector<1x1x128xf32>
    %19 = vector.broadcast %18 : vector<1x1x128xf32> to vector<1x16x128xf32>
    %20 = arith.mulf %16, %19 : vector<1x16x128xf32>
    %c0_8 = arith.constant 0 : index
    %c0_9 = arith.constant 0 : index
    %21 = vector.load %arg3[%c0_8, %c0_9] : memref<1x128xf32, #tpu.memory_space<vmem>>, vector<1x128xf32>
    %22 = vector.shape_cast %21 : vector<1x128xf32> to vector<1x1x128xf32>
    %23 = vector.broadcast %22 : vector<1x1x128xf32> to vector<1x16x128xf32>
    %24 = arith.addf %20, %23 : vector<1x16x128xf32>
    %cst_10 = arith.constant 0.000000e+00 : f32
    %25 = vector.broadcast %cst_10 : f32 to vector<1x16x128xf32>
    %26 = arith.maximumf %24, %25 : vector<1x16x128xf32>
    %c0_11 = arith.constant 0 : index
    %c0_12 = arith.constant 0 : index
    %c0_13 = arith.constant 0 : index
    %27 = vector.load %arg4[%c0_11, %c0_12, %c0_13] : memref<1x16x128xf32, #tpu.memory_space<vmem>>, vector<1x16x128xf32>
    tpu.vector_store %arg4[%c0_11, %c0_12, %c0_13], %26 {strides = array<i32>} : memref<1x16x128xf32, #tpu.memory_space<vmem>>, vector<1x16x128xf32>,
    return
  }
  func.func @transform_0(%arg0: i32) -> (i32, i32, i32) {
    %c0_i32 = arith.constant 0 : i32
    %c0_i32_0 = arith.constant 0 : i32
    %c0_i32_1 = arith.constant 0 : i32
    return %arg0, %c0_i32, %c0_i32_0 : i32, i32, i32
  }
  func.func @transform_1(%arg0: i32) -> (i32, i32) {
    %c0_i32 = arith.constant 0 : i32
    %c0_i32_0 = arith.constant 0 : i32
    %c0_i32_1 = arith.constant 0 : i32
    return %c0_i32, %c0_i32_0 : i32, i32
  }
  func.func @transform_2(%arg0: i32) -> (i32, i32) {
    %c0_i32 = arith.constant 0 : i32
    %c0_i32_0 = arith.constant 0 : i32
    %c0_i32_1 = arith.constant 0 : i32
    return %c0_i32, %c0_i32_0 : i32, i32
  }
  func.func @transform_3(%arg0: i32) -> (i32, i32, i32) {
    %c0_i32 = arith.constant 0 : i32
    %c0_i32_0 = arith.constant 0 : i32
    %c0_i32_1 = arith.constant 0 : i32
    return %arg0, %c0_i32, %c0_i32_0 : i32, i32, i32
  }
}

module attributes {stable_mosaic.version = 11 : i64} {
  func.func @_matmul_bias_kernel(%arg0: i32, %arg1: i32, %arg2: i32, %arg3: memref<32x1152xbf16, #tpu.memory_space<vmem>>, %arg4: memref<1152x128xbf16, #tpu.memory_space<vmem>>, %arg5: memref<1x128xf32, #tpu.memory_space<vmem>>, %arg6: memref<32x128xf32, #tpu.memory_space<vmem>>, %arg7: memref<32x128xf32, #tpu.memory_space<vmem>>) attributes {dimension_semantics = [#tpu.dimension_semantics<parallel>, #tpu.dimension_semantics<parallel>, #tpu.dimension_semantics<arbitrary>], iteration_bounds = array<i64: 1, 1, 1>, scalar_prefetch = 0 : i64, scratch_operands = 1 : i64, tpu.core_type = #tpu.core_type<tc>, window_params = [{transform_indices = @transform_0, window_bounds = array<i64: 32, 1152>}, {transform_indices = @transform_1, window_bounds = array<i64: 1152, 128>}, {transform_indices = @transform_2, window_bounds = array<i64: 1, 128>}, {transform_indices = @transform_3, window_bounds = array<i64: 32, 128>}]} {
    %c0_i32 = arith.constant 0 : i32
    %0 = arith.cmpi eq, %arg2, %c0_i32 : i32
    %1 = arith.extui %0 : i1 to i32
    %c0_i32_0 = arith.constant 0 : i32
    %2 = arith.cmpi ne, %1, %c0_i32_0 : i32
    scf.if %2 {
      %cst_10 = arith.constant 0.000000e+00 : f32
      %12 = vector.broadcast %cst_10 : f32 to vector<32x128xf32>
      %c0_11 = arith.constant 0 : index
      %c0_12 = arith.constant 0 : index
      %13 = vector.load %arg7[%c0_11, %c0_12] : memref<32x128xf32, #tpu.memory_space<vmem>>, vector<32x128xf32>
      tpu.vector_store %arg7[%c0_11, %c0_12], %12 {strides = array<i32>} : memref<32x128xf32, #tpu.memory_space<vmem>>, vector<32x128xf32>,
    } else {
    }
    %c0 = arith.constant 0 : index
    %c0_1 = arith.constant 0 : index
    %3 = vector.load %arg7[%c0, %c0_1] : memref<32x128xf32, #tpu.memory_space<vmem>>, vector<32x128xf32>
    %c0_2 = arith.constant 0 : index
    %c0_3 = arith.constant 0 : index
    %4 = vector.load %arg3[%c0_2, %c0_3] : memref<32x1152xbf16, #tpu.memory_space<vmem>>, vector<32x1152xbf16>
    %c0_4 = arith.constant 0 : index
    %c0_5 = arith.constant 0 : index
    %5 = vector.load %arg4[%c0_4, %c0_5] : memref<1152x128xbf16, #tpu.memory_space<vmem>>, vector<1152x128xbf16>
    %cst = arith.constant dense<0.000000e+00> : vector<32x128xf32>
    %6 = tpu.matmul %4, %5, %cst {dimension_numbers = #tpu.dot_dimension_numbers<[1], [0], [0], [1], [0, 0, 1, 1], [], []>} : vector<32x1152xbf16>, vector<1152x128xbf16>, vector<32x128xf32> -> vector<32x128xf32>
    %7 = arith.addf %3, %6 : vector<32x128xf32>
    %c0_6 = arith.constant 0 : index
    %c0_7 = arith.constant 0 : index
    %8 = vector.load %arg7[%c0_6, %c0_7] : memref<32x128xf32, #tpu.memory_space<vmem>>, vector<32x128xf32>
    tpu.vector_store %arg7[%c0_6, %c0_7], %7 {strides = array<i32>} : memref<32x128xf32, #tpu.memory_space<vmem>>, vector<32x128xf32>,
    %c0_i32_8 = arith.constant 0 : i32
    %9 = arith.cmpi eq, %arg2, %c0_i32_8 : i32
    %10 = arith.extui %9 : i1 to i32
    %c0_i32_9 = arith.constant 0 : i32
    %11 = arith.cmpi ne, %10, %c0_i32_9 : i32
    scf.if %11 {
      %c0_10 = arith.constant 0 : index
      %c0_11 = arith.constant 0 : index
      %12 = vector.load %arg7[%c0_10, %c0_11] : memref<32x128xf32, #tpu.memory_space<vmem>>, vector<32x128xf32>
      %c0_12 = arith.constant 0 : index
      %c0_13 = arith.constant 0 : index
      %13 = vector.load %arg5[%c0_12, %c0_13] : memref<1x128xf32, #tpu.memory_space<vmem>>, vector<1x128xf32>
      %14 = vector.broadcast %13 : vector<1x128xf32> to vector<32x128xf32>
      %15 = arith.addf %12, %14 : vector<32x128xf32>
      %c0_14 = arith.constant 0 : index
      %c0_15 = arith.constant 0 : index
      %16 = vector.load %arg6[%c0_14, %c0_15] : memref<32x128xf32, #tpu.memory_space<vmem>>, vector<32x128xf32>
      tpu.vector_store %arg6[%c0_14, %c0_15], %15 {strides = array<i32>} : memref<32x128xf32, #tpu.memory_space<vmem>>, vector<32x128xf32>,
    } else {
    }
    return
  }
  func.func @transform_0(%arg0: i32, %arg1: i32, %arg2: i32) -> (i32, i32) {
    %c0_i32 = arith.constant 0 : i32
    return %arg0, %arg2 : i32, i32
  }
  func.func @transform_1(%arg0: i32, %arg1: i32, %arg2: i32) -> (i32, i32) {
    %c0_i32 = arith.constant 0 : i32
    return %arg2, %arg1 : i32, i32
  }
  func.func @transform_2(%arg0: i32, %arg1: i32, %arg2: i32) -> (i32, i32) {
    %c0_i32 = arith.constant 0 : i32
    %c0_i32_0 = arith.constant 0 : i32
    return %c0_i32, %arg1 : i32, i32
  }
  func.func @transform_3(%arg0: i32, %arg1: i32, %arg2: i32) -> (i32, i32) {
    %c0_i32 = arith.constant 0 : i32
    return %arg0, %arg1 : i32, i32
  }
}

module attributes {stable_mosaic.version = 11 : i64} {
  func.func @_instance_norm_kernel(%arg0: i32, %arg1: memref<1x16x128xf32, #tpu.memory_space<vmem>>, %arg2: memref<1x128xf32, #tpu.memory_space<vmem>>, %arg3: memref<1x128xf32, #tpu.memory_space<vmem>>, %arg4: memref<1x16x128xf32, #tpu.memory_space<vmem>>, %arg5: memref<1x16x128xf32, #tpu.memory_space<vmem>>) attributes {dimension_semantics = [#tpu.dimension_semantics<parallel>], iteration_bounds = array<i64: 2>, scalar_prefetch = 0 : i64, scratch_operands = 0 : i64, tpu.core_type = #tpu.core_type<tc>, window_params = [{transform_indices = @transform_0, window_bounds = array<i64: 1, 16, 128>}, {pipeline_mode = #tpu.pipeline_mode<synchronous>, transform_indices = @transform_1, window_bounds = array<i64: 1, 128>}, {pipeline_mode = #tpu.pipeline_mode<synchronous>, transform_indices = @transform_2, window_bounds = array<i64: 1, 128>}, {transform_indices = @transform_3, window_bounds = array<i64: 1, 16, 128>}, {transform_indices = @transform_4, window_bounds = array<i64: 1, 16, 128>}]} {
    %c0 = arith.constant 0 : index
    %c0_0 = arith.constant 0 : index
    %c0_1 = arith.constant 0 : index
    %0 = vector.load %arg1[%c0, %c0_0, %c0_1] : memref<1x16x128xf32, #tpu.memory_space<vmem>>, vector<1x16x128xf32>
    %cst = arith.constant dense<0.000000e+00> : vector<1x128xf32>
    %1 = vector.multi_reduction <add>, %0, %cst [1] : vector<1x16x128xf32> to vector<1x128xf32>
    %2 = vector.shape_cast %1 : vector<1x128xf32> to vector<1x1x128xf32>
    %cst_2 = arith.constant 1.600000e+01 : f32
    %3 = vector.broadcast %cst_2 : f32 to vector<1x1x128xf32>
    %4 = arith.divf %2, %3 : vector<1x1x128xf32>
    %5 = vector.broadcast %4 : vector<1x1x128xf32> to vector<1x16x128xf32>
    %6 = arith.subf %0, %5 : vector<1x16x128xf32>
    %7 = arith.mulf %6, %6 : vector<1x16x128xf32>
    %cst_3 = arith.constant dense<0.000000e+00> : vector<1x128xf32>
    %8 = vector.multi_reduction <add>, %7, %cst_3 [1] : vector<1x16x128xf32> to vector<1x128xf32>
    %9 = vector.shape_cast %8 : vector<1x128xf32> to vector<1x1x128xf32>
    %cst_4 = arith.constant 1.600000e+01 : f32
    %10 = vector.broadcast %cst_4 : f32 to vector<1x1x128xf32>
    %11 = arith.divf %9, %10 : vector<1x1x128xf32>
    %cst_5 = arith.constant 9.99999974E-6 : f32
    %12 = vector.broadcast %cst_5 : f32 to vector<1x1x128xf32>
    %13 = arith.addf %11, %12 : vector<1x1x128xf32>
    %14 = math.rsqrt %13 : vector<1x1x128xf32>
    %15 = vector.broadcast %14 : vector<1x1x128xf32> to vector<1x16x128xf32>
    %16 = arith.mulf %6, %15 : vector<1x16x128xf32>
    %c0_6 = arith.constant 0 : index
    %c0_7 = arith.constant 0 : index
    %17 = vector.load %arg2[%c0_6, %c0_7] : memref<1x128xf32, #tpu.memory_space<vmem>>, vector<1x128xf32>
    %18 = vector.shape_cast %17 : vector<1x128xf32> to vector<1x1x128xf32>
    %19 = vector.broadcast %18 : vector<1x1x128xf32> to vector<1x16x128xf32>
    %20 = arith.mulf %16, %19 : vector<1x16x128xf32>
    %c0_8 = arith.constant 0 : index
    %c0_9 = arith.constant 0 : index
    %21 = vector.load %arg3[%c0_8, %c0_9] : memref<1x128xf32, #tpu.memory_space<vmem>>, vector<1x128xf32>
    %22 = vector.shape_cast %21 : vector<1x128xf32> to vector<1x1x128xf32>
    %23 = vector.broadcast %22 : vector<1x1x128xf32> to vector<1x16x128xf32>
    %24 = arith.addf %20, %23 : vector<1x16x128xf32>
    %c0_10 = arith.constant 0 : index
    %c0_11 = arith.constant 0 : index
    %c0_12 = arith.constant 0 : index
    %25 = vector.load %arg4[%c0_10, %c0_11, %c0_12] : memref<1x16x128xf32, #tpu.memory_space<vmem>>, vector<1x16x128xf32>
    %26 = arith.addf %24, %25 : vector<1x16x128xf32>
    %cst_13 = arith.constant 0.000000e+00 : f32
    %27 = vector.broadcast %cst_13 : f32 to vector<1x16x128xf32>
    %28 = arith.maximumf %26, %27 : vector<1x16x128xf32>
    %c0_14 = arith.constant 0 : index
    %c0_15 = arith.constant 0 : index
    %c0_16 = arith.constant 0 : index
    %29 = vector.load %arg5[%c0_14, %c0_15, %c0_16] : memref<1x16x128xf32, #tpu.memory_space<vmem>>, vector<1x16x128xf32>
    tpu.vector_store %arg5[%c0_14, %c0_15, %c0_16], %28 {strides = array<i32>} : memref<1x16x128xf32, #tpu.memory_space<vmem>>, vector<1x16x128xf32>,
    return
  }
  func.func @transform_0(%arg0: i32) -> (i32, i32, i32) {
    %c0_i32 = arith.constant 0 : i32
    %c0_i32_0 = arith.constant 0 : i32
    %c0_i32_1 = arith.constant 0 : i32
    return %arg0, %c0_i32, %c0_i32_0 : i32, i32, i32
  }
  func.func @transform_1(%arg0: i32) -> (i32, i32) {
    %c0_i32 = arith.constant 0 : i32
    %c0_i32_0 = arith.constant 0 : i32
    %c0_i32_1 = arith.constant 0 : i32
    return %c0_i32, %c0_i32_0 : i32, i32
  }
  func.func @transform_2(%arg0: i32) -> (i32, i32) {
    %c0_i32 = arith.constant 0 : i32
    %c0_i32_0 = arith.constant 0 : i32
    %c0_i32_1 = arith.constant 0 : i32
    return %c0_i32, %c0_i32_0 : i32, i32
  }
  func.func @transform_3(%arg0: i32) -> (i32, i32, i32) {
    %c0_i32 = arith.constant 0 : i32
    %c0_i32_0 = arith.constant 0 : i32
    %c0_i32_1 = arith.constant 0 : i32
    return %arg0, %c0_i32, %c0_i32_0 : i32, i32, i32
  }
  func.func @transform_4(%arg0: i32) -> (i32, i32, i32) {
    %c0_i32 = arith.constant 0 : i32
    %c0_i32_0 = arith.constant 0 : i32
    %c0_i32_1 = arith.constant 0 : i32
    return %arg0, %c0_i32, %c0_i32_0 : i32, i32, i32
  }
}

module attributes {stable_mosaic.version = 11 : i64} {
  func.func @_matmul_bias_kernel(%arg0: i32, %arg1: i32, %arg2: i32, %arg3: memref<32x256xbf16, #tpu.memory_space<vmem>>, %arg4: memref<256x128xbf16, #tpu.memory_space<vmem>>, %arg5: memref<1x128xf32, #tpu.memory_space<vmem>>, %arg6: memref<32x128xf32, #tpu.memory_space<vmem>>, %arg7: memref<32x128xf32, #tpu.memory_space<vmem>>) attributes {dimension_semantics = [#tpu.dimension_semantics<parallel>, #tpu.dimension_semantics<parallel>, #tpu.dimension_semantics<arbitrary>], iteration_bounds = array<i64: 1, 1, 1>, scalar_prefetch = 0 : i64, scratch_operands = 1 : i64, tpu.core_type = #tpu.core_type<tc>, window_params = [{transform_indices = @transform_0, window_bounds = array<i64: 32, 256>}, {transform_indices = @transform_1, window_bounds = array<i64: 256, 128>}, {transform_indices = @transform_2, window_bounds = array<i64: 1, 128>}, {transform_indices = @transform_3, window_bounds = array<i64: 32, 128>}]} {
    %c0_i32 = arith.constant 0 : i32
    %0 = arith.cmpi eq, %arg2, %c0_i32 : i32
    %1 = arith.extui %0 : i1 to i32
    %c0_i32_0 = arith.constant 0 : i32
    %2 = arith.cmpi ne, %1, %c0_i32_0 : i32
    scf.if %2 {
      %cst_10 = arith.constant 0.000000e+00 : f32
      %12 = vector.broadcast %cst_10 : f32 to vector<32x128xf32>
      %c0_11 = arith.constant 0 : index
      %c0_12 = arith.constant 0 : index
      %13 = vector.load %arg7[%c0_11, %c0_12] : memref<32x128xf32, #tpu.memory_space<vmem>>, vector<32x128xf32>
      tpu.vector_store %arg7[%c0_11, %c0_12], %12 {strides = array<i32>} : memref<32x128xf32, #tpu.memory_space<vmem>>, vector<32x128xf32>,
    } else {
    }
    %c0 = arith.constant 0 : index
    %c0_1 = arith.constant 0 : index
    %3 = vector.load %arg7[%c0, %c0_1] : memref<32x128xf32, #tpu.memory_space<vmem>>, vector<32x128xf32>
    %c0_2 = arith.constant 0 : index
    %c0_3 = arith.constant 0 : index
    %4 = vector.load %arg3[%c0_2, %c0_3] : memref<32x256xbf16, #tpu.memory_space<vmem>>, vector<32x256xbf16>
    %c0_4 = arith.constant 0 : index
    %c0_5 = arith.constant 0 : index
    %5 = vector.load %arg4[%c0_4, %c0_5] : memref<256x128xbf16, #tpu.memory_space<vmem>>, vector<256x128xbf16>
    %cst = arith.constant dense<0.000000e+00> : vector<32x128xf32>
    %6 = tpu.matmul %4, %5, %cst {dimension_numbers = #tpu.dot_dimension_numbers<[1], [0], [0], [1], [0, 0, 1, 1], [], []>} : vector<32x256xbf16>, vector<256x128xbf16>, vector<32x128xf32> -> vector<32x128xf32>
    %7 = arith.addf %3, %6 : vector<32x128xf32>
    %c0_6 = arith.constant 0 : index
    %c0_7 = arith.constant 0 : index
    %8 = vector.load %arg7[%c0_6, %c0_7] : memref<32x128xf32, #tpu.memory_space<vmem>>, vector<32x128xf32>
    tpu.vector_store %arg7[%c0_6, %c0_7], %7 {strides = array<i32>} : memref<32x128xf32, #tpu.memory_space<vmem>>, vector<32x128xf32>,
    %c0_i32_8 = arith.constant 0 : i32
    %9 = arith.cmpi eq, %arg2, %c0_i32_8 : i32
    %10 = arith.extui %9 : i1 to i32
    %c0_i32_9 = arith.constant 0 : i32
    %11 = arith.cmpi ne, %10, %c0_i32_9 : i32
    scf.if %11 {
      %c0_10 = arith.constant 0 : index
      %c0_11 = arith.constant 0 : index
      %12 = vector.load %arg7[%c0_10, %c0_11] : memref<32x128xf32, #tpu.memory_space<vmem>>, vector<32x128xf32>
      %c0_12 = arith.constant 0 : index
      %c0_13 = arith.constant 0 : index
      %13 = vector.load %arg5[%c0_12, %c0_13] : memref<1x128xf32, #tpu.memory_space<vmem>>, vector<1x128xf32>
      %14 = vector.broadcast %13 : vector<1x128xf32> to vector<32x128xf32>
      %15 = arith.addf %12, %14 : vector<32x128xf32>
      %c0_14 = arith.constant 0 : index
      %c0_15 = arith.constant 0 : index
      %16 = vector.load %arg6[%c0_14, %c0_15] : memref<32x128xf32, #tpu.memory_space<vmem>>, vector<32x128xf32>
      tpu.vector_store %arg6[%c0_14, %c0_15], %15 {strides = array<i32>} : memref<32x128xf32, #tpu.memory_space<vmem>>, vector<32x128xf32>,
    } else {
    }
    return
  }
  func.func @transform_0(%arg0: i32, %arg1: i32, %arg2: i32) -> (i32, i32) {
    %c0_i32 = arith.constant 0 : i32
    return %arg0, %arg2 : i32, i32
  }
  func.func @transform_1(%arg0: i32, %arg1: i32, %arg2: i32) -> (i32, i32) {
    %c0_i32 = arith.constant 0 : i32
    return %arg2, %arg1 : i32, i32
  }
  func.func @transform_2(%arg0: i32, %arg1: i32, %arg2: i32) -> (i32, i32) {
    %c0_i32 = arith.constant 0 : i32
    %c0_i32_0 = arith.constant 0 : i32
    return %c0_i32, %arg1 : i32, i32
  }
  func.func @transform_3(%arg0: i32, %arg1: i32, %arg2: i32) -> (i32, i32) {
    %c0_i32 = arith.constant 0 : i32
    return %arg0, %arg1 : i32, i32
  }
}

module attributes {stable_mosaic.version = 11 : i64} {
  func.func @_matmul_bias_kernel(%arg0: i32, %arg1: i32, %arg2: i32, %arg3: memref<32x128xbf16, #tpu.memory_space<vmem>>, %arg4: memref<128x128xbf16, #tpu.memory_space<vmem>>, %arg5: memref<1x128xf32, #tpu.memory_space<vmem>>, %arg6: memref<32x128xf32, #tpu.memory_space<vmem>>, %arg7: memref<32x128xf32, #tpu.memory_space<vmem>>) attributes {dimension_semantics = [#tpu.dimension_semantics<parallel>, #tpu.dimension_semantics<parallel>, #tpu.dimension_semantics<arbitrary>], iteration_bounds = array<i64: 1, 1, 1>, scalar_prefetch = 0 : i64, scratch_operands = 1 : i64, tpu.core_type = #tpu.core_type<tc>, window_params = [{transform_indices = @transform_0, window_bounds = array<i64: 32, 128>}, {transform_indices = @transform_1, window_bounds = array<i64: 128, 128>}, {transform_indices = @transform_2, window_bounds = array<i64: 1, 128>}, {transform_indices = @transform_3, window_bounds = array<i64: 32, 128>}]} {
    %c0_i32 = arith.constant 0 : i32
    %0 = arith.cmpi eq, %arg2, %c0_i32 : i32
    %1 = arith.extui %0 : i1 to i32
    %c0_i32_0 = arith.constant 0 : i32
    %2 = arith.cmpi ne, %1, %c0_i32_0 : i32
    scf.if %2 {
      %cst_10 = arith.constant 0.000000e+00 : f32
      %12 = vector.broadcast %cst_10 : f32 to vector<32x128xf32>
      %c0_11 = arith.constant 0 : index
      %c0_12 = arith.constant 0 : index
      %13 = vector.load %arg7[%c0_11, %c0_12] : memref<32x128xf32, #tpu.memory_space<vmem>>, vector<32x128xf32>
      tpu.vector_store %arg7[%c0_11, %c0_12], %12 {strides = array<i32>} : memref<32x128xf32, #tpu.memory_space<vmem>>, vector<32x128xf32>,
    } else {
    }
    %c0 = arith.constant 0 : index
    %c0_1 = arith.constant 0 : index
    %3 = vector.load %arg7[%c0, %c0_1] : memref<32x128xf32, #tpu.memory_space<vmem>>, vector<32x128xf32>
    %c0_2 = arith.constant 0 : index
    %c0_3 = arith.constant 0 : index
    %4 = vector.load %arg3[%c0_2, %c0_3] : memref<32x128xbf16, #tpu.memory_space<vmem>>, vector<32x128xbf16>
    %c0_4 = arith.constant 0 : index
    %c0_5 = arith.constant 0 : index
    %5 = vector.load %arg4[%c0_4, %c0_5] : memref<128x128xbf16, #tpu.memory_space<vmem>>, vector<128x128xbf16>
    %cst = arith.constant dense<0.000000e+00> : vector<32x128xf32>
    %6 = tpu.matmul %4, %5, %cst {dimension_numbers = #tpu.dot_dimension_numbers<[1], [0], [0], [1], [0, 0, 1, 1], [], []>} : vector<32x128xbf16>, vector<128x128xbf16>, vector<32x128xf32> -> vector<32x128xf32>
    %7 = arith.addf %3, %6 : vector<32x128xf32>
    %c0_6 = arith.constant 0 : index
    %c0_7 = arith.constant 0 : index
    %8 = vector.load %arg7[%c0_6, %c0_7] : memref<32x128xf32, #tpu.memory_space<vmem>>, vector<32x128xf32>
    tpu.vector_store %arg7[%c0_6, %c0_7], %7 {strides = array<i32>} : memref<32x128xf32, #tpu.memory_space<vmem>>, vector<32x128xf32>,
    %c0_i32_8 = arith.constant 0 : i32
    %9 = arith.cmpi eq, %arg2, %c0_i32_8 : i32
    %10 = arith.extui %9 : i1 to i32
    %c0_i32_9 = arith.constant 0 : i32
    %11 = arith.cmpi ne, %10, %c0_i32_9 : i32
    scf.if %11 {
      %c0_10 = arith.constant 0 : index
      %c0_11 = arith.constant 0 : index
      %12 = vector.load %arg7[%c0_10, %c0_11] : memref<32x128xf32, #tpu.memory_space<vmem>>, vector<32x128xf32>
      %c0_12 = arith.constant 0 : index
      %c0_13 = arith.constant 0 : index
      %13 = vector.load %arg5[%c0_12, %c0_13] : memref<1x128xf32, #tpu.memory_space<vmem>>, vector<1x128xf32>
      %14 = vector.broadcast %13 : vector<1x128xf32> to vector<32x128xf32>
      %15 = arith.addf %12, %14 : vector<32x128xf32>
      %c0_14 = arith.constant 0 : index
      %c0_15 = arith.constant 0 : index
      %16 = vector.load %arg6[%c0_14, %c0_15] : memref<32x128xf32, #tpu.memory_space<vmem>>, vector<32x128xf32>
      tpu.vector_store %arg6[%c0_14, %c0_15], %15 {strides = array<i32>} : memref<32x128xf32, #tpu.memory_space<vmem>>, vector<32x128xf32>,
    } else {
    }
    return
  }
  func.func @transform_0(%arg0: i32, %arg1: i32, %arg2: i32) -> (i32, i32) {
    %c0_i32 = arith.constant 0 : i32
    return %arg0, %arg2 : i32, i32
  }
  func.func @transform_1(%arg0: i32, %arg1: i32, %arg2: i32) -> (i32, i32) {
    %c0_i32 = arith.constant 0 : i32
    return %arg2, %arg1 : i32, i32
  }
  func.func @transform_2(%arg0: i32, %arg1: i32, %arg2: i32) -> (i32, i32) {
    %c0_i32 = arith.constant 0 : i32
    %c0_i32_0 = arith.constant 0 : i32
    return %c0_i32, %arg1 : i32, i32
  }
  func.func @transform_3(%arg0: i32, %arg1: i32, %arg2: i32) -> (i32, i32) {
    %c0_i32 = arith.constant 0 : i32
    return %arg0, %arg1 : i32, i32
  }
}

module attributes {stable_mosaic.version = 11 : i64} {
  func.func @_matmul_bias_kernel(%arg0: i32, %arg1: i32, %arg2: i32, %arg3: memref<32x512xbf16, #tpu.memory_space<vmem>>, %arg4: memref<512x128xbf16, #tpu.memory_space<vmem>>, %arg5: memref<1x128xf32, #tpu.memory_space<vmem>>, %arg6: memref<32x128xf32, #tpu.memory_space<vmem>>, %arg7: memref<32x128xf32, #tpu.memory_space<vmem>>) attributes {dimension_semantics = [#tpu.dimension_semantics<parallel>, #tpu.dimension_semantics<parallel>, #tpu.dimension_semantics<arbitrary>], iteration_bounds = array<i64: 1, 1, 1>, scalar_prefetch = 0 : i64, scratch_operands = 1 : i64, tpu.core_type = #tpu.core_type<tc>, window_params = [{transform_indices = @transform_0, window_bounds = array<i64: 32, 512>}, {transform_indices = @transform_1, window_bounds = array<i64: 512, 128>}, {transform_indices = @transform_2, window_bounds = array<i64: 1, 128>}, {transform_indices = @transform_3, window_bounds = array<i64: 32, 128>}]} {
    %c0_i32 = arith.constant 0 : i32
    %0 = arith.cmpi eq, %arg2, %c0_i32 : i32
    %1 = arith.extui %0 : i1 to i32
    %c0_i32_0 = arith.constant 0 : i32
    %2 = arith.cmpi ne, %1, %c0_i32_0 : i32
    scf.if %2 {
      %cst_10 = arith.constant 0.000000e+00 : f32
      %12 = vector.broadcast %cst_10 : f32 to vector<32x128xf32>
      %c0_11 = arith.constant 0 : index
      %c0_12 = arith.constant 0 : index
      %13 = vector.load %arg7[%c0_11, %c0_12] : memref<32x128xf32, #tpu.memory_space<vmem>>, vector<32x128xf32>
      tpu.vector_store %arg7[%c0_11, %c0_12], %12 {strides = array<i32>} : memref<32x128xf32, #tpu.memory_space<vmem>>, vector<32x128xf32>,
    } else {
    }
    %c0 = arith.constant 0 : index
    %c0_1 = arith.constant 0 : index
    %3 = vector.load %arg7[%c0, %c0_1] : memref<32x128xf32, #tpu.memory_space<vmem>>, vector<32x128xf32>
    %c0_2 = arith.constant 0 : index
    %c0_3 = arith.constant 0 : index
    %4 = vector.load %arg3[%c0_2, %c0_3] : memref<32x512xbf16, #tpu.memory_space<vmem>>, vector<32x512xbf16>
    %c0_4 = arith.constant 0 : index
    %c0_5 = arith.constant 0 : index
    %5 = vector.load %arg4[%c0_4, %c0_5] : memref<512x128xbf16, #tpu.memory_space<vmem>>, vector<512x128xbf16>
    %cst = arith.constant dense<0.000000e+00> : vector<32x128xf32>
    %6 = tpu.matmul %4, %5, %cst {dimension_numbers = #tpu.dot_dimension_numbers<[1], [0], [0], [1], [0, 0, 1, 1], [], []>} : vector<32x512xbf16>, vector<512x128xbf16>, vector<32x128xf32> -> vector<32x128xf32>
    %7 = arith.addf %3, %6 : vector<32x128xf32>
    %c0_6 = arith.constant 0 : index
    %c0_7 = arith.constant 0 : index
    %8 = vector.load %arg7[%c0_6, %c0_7] : memref<32x128xf32, #tpu.memory_space<vmem>>, vector<32x128xf32>
    tpu.vector_store %arg7[%c0_6, %c0_7], %7 {strides = array<i32>} : memref<32x128xf32, #tpu.memory_space<vmem>>, vector<32x128xf32>,
    %c0_i32_8 = arith.constant 0 : i32
    %9 = arith.cmpi eq, %arg2, %c0_i32_8 : i32
    %10 = arith.extui %9 : i1 to i32
    %c0_i32_9 = arith.constant 0 : i32
    %11 = arith.cmpi ne, %10, %c0_i32_9 : i32
    scf.if %11 {
      %c0_10 = arith.constant 0 : index
      %c0_11 = arith.constant 0 : index
      %12 = vector.load %arg7[%c0_10, %c0_11] : memref<32x128xf32, #tpu.memory_space<vmem>>, vector<32x128xf32>
      %c0_12 = arith.constant 0 : index
      %c0_13 = arith.constant 0 : index
      %13 = vector.load %arg5[%c0_12, %c0_13] : memref<1x128xf32, #tpu.memory_space<vmem>>, vector<1x128xf32>
      %14 = vector.broadcast %13 : vector<1x128xf32> to vector<32x128xf32>
      %15 = arith.addf %12, %14 : vector<32x128xf32>
      %c0_14 = arith.constant 0 : index
      %c0_15 = arith.constant 0 : index
      %16 = vector.load %arg6[%c0_14, %c0_15] : memref<32x128xf32, #tpu.memory_space<vmem>>, vector<32x128xf32>
      tpu.vector_store %arg6[%c0_14, %c0_15], %15 {strides = array<i32>} : memref<32x128xf32, #tpu.memory_space<vmem>>, vector<32x128xf32>,
    } else {
    }
    return
  }
  func.func @transform_0(%arg0: i32, %arg1: i32, %arg2: i32) -> (i32, i32) {
    %c0_i32 = arith.constant 0 : i32
    return %arg0, %arg2 : i32, i32
  }
  func.func @transform_1(%arg0: i32, %arg1: i32, %arg2: i32) -> (i32, i32) {
    %c0_i32 = arith.constant 0 : i32
    return %arg2, %arg1 : i32, i32
  }
  func.func @transform_2(%arg0: i32, %arg1: i32, %arg2: i32) -> (i32, i32) {
    %c0_i32 = arith.constant 0 : i32
    %c0_i32_0 = arith.constant 0 : i32
    return %c0_i32, %arg1 : i32, i32
  }
  func.func @transform_3(%arg0: i32, %arg1: i32, %arg2: i32) -> (i32, i32) {
    %c0_i32 = arith.constant 0 : i32
    return %arg0, %arg1 : i32, i32
  }
}

module attributes {stable_mosaic.version = 11 : i64} {
  func.func @_matmul_bias_kernel(%arg0: i32, %arg1: i32, %arg2: i32, %arg3: memref<128x128xbf16, #tpu.memory_space<vmem>>, %arg4: memref<128x128xbf16, #tpu.memory_space<vmem>>, %arg5: memref<1x128xf32, #tpu.memory_space<vmem>>, %arg6: memref<128x128xf32, #tpu.memory_space<vmem>>, %arg7: memref<128x128xf32, #tpu.memory_space<vmem>>) attributes {dimension_semantics = [#tpu.dimension_semantics<parallel>, #tpu.dimension_semantics<parallel>, #tpu.dimension_semantics<arbitrary>], iteration_bounds = array<i64: 1, 1, 1>, scalar_prefetch = 0 : i64, scratch_operands = 1 : i64, tpu.core_type = #tpu.core_type<tc>, window_params = [{transform_indices = @transform_0, window_bounds = array<i64: 128, 128>}, {transform_indices = @transform_1, window_bounds = array<i64: 128, 128>}, {transform_indices = @transform_2, window_bounds = array<i64: 1, 128>}, {transform_indices = @transform_3, window_bounds = array<i64: 128, 128>}]} {
    %c0_i32 = arith.constant 0 : i32
    %0 = arith.cmpi eq, %arg2, %c0_i32 : i32
    %1 = arith.extui %0 : i1 to i32
    %c0_i32_0 = arith.constant 0 : i32
    %2 = arith.cmpi ne, %1, %c0_i32_0 : i32
    scf.if %2 {
      %cst_10 = arith.constant 0.000000e+00 : f32
      %12 = vector.broadcast %cst_10 : f32 to vector<128x128xf32>
      %c0_11 = arith.constant 0 : index
      %c0_12 = arith.constant 0 : index
      %13 = vector.load %arg7[%c0_11, %c0_12] : memref<128x128xf32, #tpu.memory_space<vmem>>, vector<128x128xf32>
      tpu.vector_store %arg7[%c0_11, %c0_12], %12 {strides = array<i32>} : memref<128x128xf32, #tpu.memory_space<vmem>>, vector<128x128xf32>,
    } else {
    }
    %c0 = arith.constant 0 : index
    %c0_1 = arith.constant 0 : index
    %3 = vector.load %arg7[%c0, %c0_1] : memref<128x128xf32, #tpu.memory_space<vmem>>, vector<128x128xf32>
    %c0_2 = arith.constant 0 : index
    %c0_3 = arith.constant 0 : index
    %4 = vector.load %arg3[%c0_2, %c0_3] : memref<128x128xbf16, #tpu.memory_space<vmem>>, vector<128x128xbf16>
    %c0_4 = arith.constant 0 : index
    %c0_5 = arith.constant 0 : index
    %5 = vector.load %arg4[%c0_4, %c0_5] : memref<128x128xbf16, #tpu.memory_space<vmem>>, vector<128x128xbf16>
    %cst = arith.constant dense<0.000000e+00> : vector<128x128xf32>
    %6 = tpu.matmul %4, %5, %cst {dimension_numbers = #tpu.dot_dimension_numbers<[1], [0], [0], [1], [0, 0, 1, 1], [], []>} : vector<128x128xbf16>, vector<128x128xbf16>, vector<128x128xf32> -> vector<128x128xf32>
    %7 = arith.addf %3, %6 : vector<128x128xf32>
    %c0_6 = arith.constant 0 : index
    %c0_7 = arith.constant 0 : index
    %8 = vector.load %arg7[%c0_6, %c0_7] : memref<128x128xf32, #tpu.memory_space<vmem>>, vector<128x128xf32>
    tpu.vector_store %arg7[%c0_6, %c0_7], %7 {strides = array<i32>} : memref<128x128xf32, #tpu.memory_space<vmem>>, vector<128x128xf32>,
    %c0_i32_8 = arith.constant 0 : i32
    %9 = arith.cmpi eq, %arg2, %c0_i32_8 : i32
    %10 = arith.extui %9 : i1 to i32
    %c0_i32_9 = arith.constant 0 : i32
    %11 = arith.cmpi ne, %10, %c0_i32_9 : i32
    scf.if %11 {
      %c0_10 = arith.constant 0 : index
      %c0_11 = arith.constant 0 : index
      %12 = vector.load %arg7[%c0_10, %c0_11] : memref<128x128xf32, #tpu.memory_space<vmem>>, vector<128x128xf32>
      %c0_12 = arith.constant 0 : index
      %c0_13 = arith.constant 0 : index
      %13 = vector.load %arg5[%c0_12, %c0_13] : memref<1x128xf32, #tpu.memory_space<vmem>>, vector<1x128xf32>
      %14 = vector.broadcast %13 : vector<1x128xf32> to vector<128x128xf32>
      %15 = arith.addf %12, %14 : vector<128x128xf32>
      %c0_14 = arith.constant 0 : index
      %c0_15 = arith.constant 0 : index
      %16 = vector.load %arg6[%c0_14, %c0_15] : memref<128x128xf32, #tpu.memory_space<vmem>>, vector<128x128xf32>
      tpu.vector_store %arg6[%c0_14, %c0_15], %15 {strides = array<i32>} : memref<128x128xf32, #tpu.memory_space<vmem>>, vector<128x128xf32>,
    } else {
    }
    return
  }
  func.func @transform_0(%arg0: i32, %arg1: i32, %arg2: i32) -> (i32, i32) {
    %c0_i32 = arith.constant 0 : i32
    return %arg0, %arg2 : i32, i32
  }
  func.func @transform_1(%arg0: i32, %arg1: i32, %arg2: i32) -> (i32, i32) {
    %c0_i32 = arith.constant 0 : i32
    return %arg2, %arg1 : i32, i32
  }
  func.func @transform_2(%arg0: i32, %arg1: i32, %arg2: i32) -> (i32, i32) {
    %c0_i32 = arith.constant 0 : i32
    %c0_i32_0 = arith.constant 0 : i32
    return %c0_i32, %arg1 : i32, i32
  }
  func.func @transform_3(%arg0: i32, %arg1: i32, %arg2: i32) -> (i32, i32) {
    %c0_i32 = arith.constant 0 : i32
    return %arg0, %arg1 : i32, i32
  }
}

module attributes {stable_mosaic.version = 11 : i64} {
  func.func @_matmul_bias_kernel(%arg0: i32, %arg1: i32, %arg2: i32, %arg3: memref<128x256xbf16, #tpu.memory_space<vmem>>, %arg4: memref<256x128xbf16, #tpu.memory_space<vmem>>, %arg5: memref<1x128xf32, #tpu.memory_space<vmem>>, %arg6: memref<128x128xf32, #tpu.memory_space<vmem>>, %arg7: memref<128x128xf32, #tpu.memory_space<vmem>>) attributes {dimension_semantics = [#tpu.dimension_semantics<parallel>, #tpu.dimension_semantics<parallel>, #tpu.dimension_semantics<arbitrary>], iteration_bounds = array<i64: 1, 1, 1>, scalar_prefetch = 0 : i64, scratch_operands = 1 : i64, tpu.core_type = #tpu.core_type<tc>, window_params = [{transform_indices = @transform_0, window_bounds = array<i64: 128, 256>}, {transform_indices = @transform_1, window_bounds = array<i64: 256, 128>}, {transform_indices = @transform_2, window_bounds = array<i64: 1, 128>}, {transform_indices = @transform_3, window_bounds = array<i64: 128, 128>}]} {
    %c0_i32 = arith.constant 0 : i32
    %0 = arith.cmpi eq, %arg2, %c0_i32 : i32
    %1 = arith.extui %0 : i1 to i32
    %c0_i32_0 = arith.constant 0 : i32
    %2 = arith.cmpi ne, %1, %c0_i32_0 : i32
    scf.if %2 {
      %cst_10 = arith.constant 0.000000e+00 : f32
      %12 = vector.broadcast %cst_10 : f32 to vector<128x128xf32>
      %c0_11 = arith.constant 0 : index
      %c0_12 = arith.constant 0 : index
      %13 = vector.load %arg7[%c0_11, %c0_12] : memref<128x128xf32, #tpu.memory_space<vmem>>, vector<128x128xf32>
      tpu.vector_store %arg7[%c0_11, %c0_12], %12 {strides = array<i32>} : memref<128x128xf32, #tpu.memory_space<vmem>>, vector<128x128xf32>,
    } else {
    }
    %c0 = arith.constant 0 : index
    %c0_1 = arith.constant 0 : index
    %3 = vector.load %arg7[%c0, %c0_1] : memref<128x128xf32, #tpu.memory_space<vmem>>, vector<128x128xf32>
    %c0_2 = arith.constant 0 : index
    %c0_3 = arith.constant 0 : index
    %4 = vector.load %arg3[%c0_2, %c0_3] : memref<128x256xbf16, #tpu.memory_space<vmem>>, vector<128x256xbf16>
    %c0_4 = arith.constant 0 : index
    %c0_5 = arith.constant 0 : index
    %5 = vector.load %arg4[%c0_4, %c0_5] : memref<256x128xbf16, #tpu.memory_space<vmem>>, vector<256x128xbf16>
    %cst = arith.constant dense<0.000000e+00> : vector<128x128xf32>
    %6 = tpu.matmul %4, %5, %cst {dimension_numbers = #tpu.dot_dimension_numbers<[1], [0], [0], [1], [0, 0, 1, 1], [], []>} : vector<128x256xbf16>, vector<256x128xbf16>, vector<128x128xf32> -> vector<128x128xf32>
    %7 = arith.addf %3, %6 : vector<128x128xf32>
    %c0_6 = arith.constant 0 : index
    %c0_7 = arith.constant 0 : index
    %8 = vector.load %arg7[%c0_6, %c0_7] : memref<128x128xf32, #tpu.memory_space<vmem>>, vector<128x128xf32>
    tpu.vector_store %arg7[%c0_6, %c0_7], %7 {strides = array<i32>} : memref<128x128xf32, #tpu.memory_space<vmem>>, vector<128x128xf32>,
    %c0_i32_8 = arith.constant 0 : i32
    %9 = arith.cmpi eq, %arg2, %c0_i32_8 : i32
    %10 = arith.extui %9 : i1 to i32
    %c0_i32_9 = arith.constant 0 : i32
    %11 = arith.cmpi ne, %10, %c0_i32_9 : i32
    scf.if %11 {
      %c0_10 = arith.constant 0 : index
      %c0_11 = arith.constant 0 : index
      %12 = vector.load %arg7[%c0_10, %c0_11] : memref<128x128xf32, #tpu.memory_space<vmem>>, vector<128x128xf32>
      %c0_12 = arith.constant 0 : index
      %c0_13 = arith.constant 0 : index
      %13 = vector.load %arg5[%c0_12, %c0_13] : memref<1x128xf32, #tpu.memory_space<vmem>>, vector<1x128xf32>
      %14 = vector.broadcast %13 : vector<1x128xf32> to vector<128x128xf32>
      %15 = arith.addf %12, %14 : vector<128x128xf32>
      %c0_14 = arith.constant 0 : index
      %c0_15 = arith.constant 0 : index
      %16 = vector.load %arg6[%c0_14, %c0_15] : memref<128x128xf32, #tpu.memory_space<vmem>>, vector<128x128xf32>
      tpu.vector_store %arg6[%c0_14, %c0_15], %15 {strides = array<i32>} : memref<128x128xf32, #tpu.memory_space<vmem>>, vector<128x128xf32>,
    } else {
    }
    return
  }
  func.func @transform_0(%arg0: i32, %arg1: i32, %arg2: i32) -> (i32, i32) {
    %c0_i32 = arith.constant 0 : i32
    return %arg0, %arg2 : i32, i32
  }
  func.func @transform_1(%arg0: i32, %arg1: i32, %arg2: i32) -> (i32, i32) {
    %c0_i32 = arith.constant 0 : i32
    return %arg2, %arg1 : i32, i32
  }
  func.func @transform_2(%arg0: i32, %arg1: i32, %arg2: i32) -> (i32, i32) {
    %c0_i32 = arith.constant 0 : i32
    %c0_i32_0 = arith.constant 0 : i32
    return %c0_i32, %arg1 : i32, i32
  }
  func.func @transform_3(%arg0: i32, %arg1: i32, %arg2: i32) -> (i32, i32) {
    %c0_i32 = arith.constant 0 : i32
    return %arg0, %arg1 : i32, i32
  }
}

module attributes {stable_mosaic.version = 11 : i64} {
  func.func @_matmul_bias_kernel(%arg0: i32, %arg1: i32, %arg2: i32, %arg3: memref<256x1664xbf16, #tpu.memory_space<vmem>>, %arg4: memref<1664x128xbf16, #tpu.memory_space<vmem>>, %arg5: memref<1x128xf32, #tpu.memory_space<vmem>>, %arg6: memref<256x128xf32, #tpu.memory_space<vmem>>, %arg7: memref<256x128xf32, #tpu.memory_space<vmem>>) attributes {dimension_semantics = [#tpu.dimension_semantics<parallel>, #tpu.dimension_semantics<parallel>, #tpu.dimension_semantics<arbitrary>], iteration_bounds = array<i64: 2, 1, 1>, scalar_prefetch = 0 : i64, scratch_operands = 1 : i64, tpu.core_type = #tpu.core_type<tc>, window_params = [{transform_indices = @transform_0, window_bounds = array<i64: 256, 1664>}, {transform_indices = @transform_1, window_bounds = array<i64: 1664, 128>}, {transform_indices = @transform_2, window_bounds = array<i64: 1, 128>}, {transform_indices = @transform_3, window_bounds = array<i64: 256, 128>}]} {
    %c0_i32 = arith.constant 0 : i32
    %0 = arith.cmpi eq, %arg2, %c0_i32 : i32
    %1 = arith.extui %0 : i1 to i32
    %c0_i32_0 = arith.constant 0 : i32
    %2 = arith.cmpi ne, %1, %c0_i32_0 : i32
    scf.if %2 {
      %cst_10 = arith.constant 0.000000e+00 : f32
      %12 = vector.broadcast %cst_10 : f32 to vector<256x128xf32>
      %c0_11 = arith.constant 0 : index
      %c0_12 = arith.constant 0 : index
      %13 = vector.load %arg7[%c0_11, %c0_12] : memref<256x128xf32, #tpu.memory_space<vmem>>, vector<256x128xf32>
      tpu.vector_store %arg7[%c0_11, %c0_12], %12 {strides = array<i32>} : memref<256x128xf32, #tpu.memory_space<vmem>>, vector<256x128xf32>,
    } else {
    }
    %c0 = arith.constant 0 : index
    %c0_1 = arith.constant 0 : index
    %3 = vector.load %arg7[%c0, %c0_1] : memref<256x128xf32, #tpu.memory_space<vmem>>, vector<256x128xf32>
    %c0_2 = arith.constant 0 : index
    %c0_3 = arith.constant 0 : index
    %4 = vector.load %arg3[%c0_2, %c0_3] : memref<256x1664xbf16, #tpu.memory_space<vmem>>, vector<256x1664xbf16>
    %c0_4 = arith.constant 0 : index
    %c0_5 = arith.constant 0 : index
    %5 = vector.load %arg4[%c0_4, %c0_5] : memref<1664x128xbf16, #tpu.memory_space<vmem>>, vector<1664x128xbf16>
    %cst = arith.constant dense<0.000000e+00> : vector<256x128xf32>
    %6 = tpu.matmul %4, %5, %cst {dimension_numbers = #tpu.dot_dimension_numbers<[1], [0], [0], [1], [0, 0, 1, 1], [], []>} : vector<256x1664xbf16>, vector<1664x128xbf16>, vector<256x128xf32> -> vector<256x128xf32>
    %7 = arith.addf %3, %6 : vector<256x128xf32>
    %c0_6 = arith.constant 0 : index
    %c0_7 = arith.constant 0 : index
    %8 = vector.load %arg7[%c0_6, %c0_7] : memref<256x128xf32, #tpu.memory_space<vmem>>, vector<256x128xf32>
    tpu.vector_store %arg7[%c0_6, %c0_7], %7 {strides = array<i32>} : memref<256x128xf32, #tpu.memory_space<vmem>>, vector<256x128xf32>,
    %c0_i32_8 = arith.constant 0 : i32
    %9 = arith.cmpi eq, %arg2, %c0_i32_8 : i32
    %10 = arith.extui %9 : i1 to i32
    %c0_i32_9 = arith.constant 0 : i32
    %11 = arith.cmpi ne, %10, %c0_i32_9 : i32
    scf.if %11 {
      %c0_10 = arith.constant 0 : index
      %c0_11 = arith.constant 0 : index
      %12 = vector.load %arg7[%c0_10, %c0_11] : memref<256x128xf32, #tpu.memory_space<vmem>>, vector<256x128xf32>
      %c0_12 = arith.constant 0 : index
      %c0_13 = arith.constant 0 : index
      %13 = vector.load %arg5[%c0_12, %c0_13] : memref<1x128xf32, #tpu.memory_space<vmem>>, vector<1x128xf32>
      %14 = vector.broadcast %13 : vector<1x128xf32> to vector<256x128xf32>
      %15 = arith.addf %12, %14 : vector<256x128xf32>
      %16 = math.tanh %15 : vector<256x128xf32>
      %c0_14 = arith.constant 0 : index
      %c0_15 = arith.constant 0 : index
      %17 = vector.load %arg6[%c0_14, %c0_15] : memref<256x128xf32, #tpu.memory_space<vmem>>, vector<256x128xf32>
      tpu.vector_store %arg6[%c0_14, %c0_15], %16 {strides = array<i32>} : memref<256x128xf32, #tpu.memory_space<vmem>>, vector<256x128xf32>,
    } else {
    }
    return
  }
  func.func @transform_0(%arg0: i32, %arg1: i32, %arg2: i32) -> (i32, i32) {
    %c0_i32 = arith.constant 0 : i32
    return %arg0, %arg2 : i32, i32
  }
  func.func @transform_1(%arg0: i32, %arg1: i32, %arg2: i32) -> (i32, i32) {
    %c0_i32 = arith.constant 0 : i32
    return %arg2, %arg1 : i32, i32
  }
  func.func @transform_2(%arg0: i32, %arg1: i32, %arg2: i32) -> (i32, i32) {
    %c0_i32 = arith.constant 0 : i32
    %c0_i32_0 = arith.constant 0 : i32
    return %c0_i32, %arg1 : i32, i32
  }
  func.func @transform_3(%arg0: i32, %arg1: i32, %arg2: i32) -> (i32, i32) {
    %c0_i32 = arith.constant 0 : i32
    return %arg0, %arg1 : i32, i32
  }
}

</mosaic_0001>

<bundles_post_ra>
// kernel: g128_forward.42
= control target key start
LH: loop header
LB: loop body
LE: loop exit
PB: predicated region body
PF: predicated region fallthrough
CT: control target
= control target key end

     0   :  { %s706_s12 = smov 0   ;;  %s1328_s0 = inlined_call_operand.vmem [shape: f32[2,256,32], index: 0, kind: input, shape index: {}]   ;;  %s1329_s1 = inlined_call_operand.vmem [shape: f32[1,32], index: 1, kind: input, shape index: {}]   ;;  %s1330_s2 = inlined_call_operand.vmem [shape: f32[1,32], index: 2, kind: input, shape index: {}]   ;;  %s1331_s3 = inlined_call_operand.vmem [shape: f32[2,256,32], index: 3, kind: output, shape index: {}]  }
   0x1 LB: > { %s649_s13 = sadd.s32 4294967295, %s683_s12   ;;  %p653_p0 = scmp.ge.s32.totalorder %s683_s12, 1  ;;  %s683_s12 = sphi %s706_s12, %s13_s12  }
   0x2   : > { %p137_p1 = scmp.lt.s32.totalorder %s683_s12, 3 }
   0x4   : > { %p138_p2 = pnand %p653_p0, %p137_p1 }
   0x5   : > { %p161_p3 = scmp.lt.s32.totalorder (!%p138_p2), %s649_s13, 1 }
   0x6   : > { %141 = sbr.rel (%p138_p2) target bundleno = 233 (0xe9), region = 32 }
   0xb   : > { %s1333_s13 = smov (!%p161_p3, %s649_s13), 1  ;;  %vm203_vm0 = vcmask 261120  }
   0xc   : > { %s660_s14 = sshll.u32 %s1333_s13, 8 }
   0xd   : > { %s722_s17 = scalar_lea.vmem %s1328_s0, %s660_s14  ;;  %s1159_s24 = scalar_lea.vmem %s1331_s3, %s660_s14 }
   0xe   : > { %v725_v0 = vld [vmem:[%s722_s17] sm:$0xff]  ;;  %v728_v1 = vld [vmem:[%s722_s17 + $0x8] sm:$0xff]  ;;  %v731_v2 = vld [vmem:[%s722_s17 + $0x10] sm:$0xff] }
   0xf   : > { %v734_v3 = vld [vmem:[%s722_s17 + $0x18] sm:$0xff]  ;;  %v204_v4 = vsel %vm203_vm0, %v725_v0, 0.0  ;;  %v205_v5 = vsel %vm203_vm0, %v728_v1, 0.0  ;;  %v207_v6 = vsel %vm203_vm0, %v731_v2, 0.0  ;;  %v743_v7 = vld [vmem:[%s722_s17 + $0x20] sm:$0xff]  ;;  %v748_v10 = vld [vmem:[%s722_s17 + $0x28] sm:$0xff] }
  0x10   : > { %v206_v8 = vadd.f32 %v205_v5, %v204_v4  ;;  %v209_v9 = vsel %vm203_vm0, %v734_v3, 0.0  ;;  %v211_v12 = vsel %vm203_vm0, %v743_v7, 0.0  ;;  %v753_v13 = vld [vmem:[%s722_s17 + $0x30] sm:$0xff]  ;;  %v213_v15 = vsel %vm203_vm0, %v748_v10, 0.0  ;;  %v758_v16 = vld [vmem:[%s722_s17 + $0x38] sm:$0xff]  ;;  %v763_v19 = vld [vmem:[%s722_s17 + $0x40] sm:$0xff] }
  0x11   : > { %v215_v18 = vsel %vm203_vm0, %v753_v13, 0.0  ;;  %v217_v21 = vsel %vm203_vm0, %v758_v16, 0.0  ;;  %v768_v22 = vld [vmem:[%s722_s17 + $0x48] sm:$0xff]  ;;  %v219_v24 = vsel %vm203_vm0, %v763_v19, 0.0  ;;  %v773_v25 = vld [vmem:[%s722_s17 + $0x50] sm:$0xff]  ;;  %v778_v28 = vld [vmem:[%s722_s17 + $0x58] sm:$0xff] }
  0x12   : > { %v208_v11 = vadd.f32 %v207_v6, %v206_v8  ;;  %v221_v27 = vsel %vm203_vm0, %v768_v22, 0.0  ;;  %v223_v30 = vsel %vm203_vm0, %v773_v25, 0.0  ;;  %v783_v31 = vld [vmem:[%s722_s17 + $0x60] sm:$0xff]  ;;  %v225_v33 = vsel %vm203_vm0, %v778_v28, 0.0  ;;  %v788_v34 = vld [vmem:[%s722_s17 + $0x68] sm:$0xff]  ;;  %v793_v37 = vld [vmem:[%s722_s17 + $0x70] sm:$0xff] }
  0x13   : > { %v227_v36 = vsel %vm203_vm0, %v783_v31, 0.0  ;;  %v229_v39 = vsel %vm203_vm0, %v788_v34, 0.0  ;;  %v798_v40 = vld [vmem:[%s722_s17 + $0x78] sm:$0xff]  ;;  %v231_v42 = vsel %vm203_vm0, %v793_v37, 0.0  ;;  %v803_v43 = vld [vmem:[%s722_s17 + $0x80] sm:$0xff]  ;;  %v808_v46 = vld [vmem:[%s722_s17 + $0x88] sm:$0xff] }
  0x14   : > { %v210_v14 = vadd.f32 %v209_v9, %v208_v11  ;;  %v233_v45 = vsel %vm203_vm0, %v798_v40, 0.0  ;;  %v235_v48 = vsel %vm203_vm0, %v803_v43, 0.0  ;;  %v813_v49 = vld [vmem:[%s722_s17 + $0x90] sm:$0xff]  ;;  %v237_v51 = vsel %vm203_vm0, %v808_v46, 0.0  ;;  %v818_v52 = vld [vmem:[%s722_s17 + $0x98] sm:$0xff]  ;;  %v823_v55 = vld [vmem:[%s722_s17 + $0xa0] sm:$0xff] }
  0x15   : > { %v239_v54 = vsel %vm203_vm0, %v813_v49, 0.0  ;;  %v241_v57 = vsel %vm203_vm0, %v818_v52, 0.0  ;;  %v828_v58 = vld [vmem:[%s722_s17 + $0xa8] sm:$0xff]  ;;  %v243_v60 = vsel %vm203_vm0, %v823_v55, 0.0  ;;  %v833_v61 = vld [vmem:[%s722_s17 + $0xb0] sm:$0xff]  ;;  %v838_v4 = vld [vmem:[%s722_s17 + $0xb8] sm:$0xff] }
  0x16   : > { %v212_v17 = vadd.f32 %v211_v12, %v210_v14  ;;  %v245_v63 = vsel %vm203_vm0, %v828_v58, 0.0  ;;  %v247_v6 = vsel %vm203_vm0, %v833_v61, 0.0  ;;  %v843_v8 = vld [vmem:[%s722_s17 + $0xc0] sm:$0xff]  ;;  %v249_v11 = vsel %vm203_vm0, %v838_v4, 0.0  ;;  %v848_v12 = vld [vmem:[%s722_s17 + $0xc8] sm:$0xff] }
  0x18   : > { %v214_v20 = vadd.f32 %v213_v15, %v212_v17  ;;  %v251_v15 = vsel %vm203_vm0, %v843_v8, 0.0  ;;  %v853_v17 = vld [vmem:[%s722_s17 + $0xd0] sm:$0xff] }
  0x1a   : > { %v216_v23 = vadd.f32 %v215_v18, %v214_v20  ;;  %v253_v20 = vsel %vm203_vm0, %v848_v12, 0.0 }
  0x1c   : > { %v218_v26 = vadd.f32 %v217_v21, %v216_v23  ;;  %v858_v21 = vld [vmem:[%s722_s17 + $0xd8] sm:$0xff] }
  0x1e   : > { %v220_v29 = vadd.f32 %v219_v24, %v218_v26  ;;  %v255_v24 = vsel %vm203_vm0, %v853_v17, 0.0  ;;  %v863_v26 = vld [vmem:[%s722_s17 + $0xe0] sm:$0xff] }
  0x20   : > { %v222_v32 = vadd.f32 %v221_v27, %v220_v29  ;;  %v257_v29 = vsel %vm203_vm0, %v858_v21, 0.0 }
  0x22   : > { %v224_v35 = vadd.f32 %v223_v30, %v222_v32  ;;  %v868_v30 = vld [vmem:[%s722_s17 + $0xe8] sm:$0xff] }
  0x24   : > { %v226_v38 = vadd.f32 %v225_v33, %v224_v35  ;;  %v259_v33 = vsel %vm203_vm0, %v863_v26, 0.0  ;;  %v873_v35 = vld [vmem:[%s722_s17 + $0xf0] sm:$0xff] }
  0x26   : > { %v228_v41 = vadd.f32 %v227_v36, %v226_v38  ;;  %v685_v38 = vmov 256.0  }
  0x27   : > { %673 = vrcp.f32 %v685_v38 }
  0x28   : > { %v230_v44 = vadd.f32 %v229_v39, %v228_v41  ;;  %v261_v39 = vsel %vm203_vm0, %v868_v30, 0.0  ;;  %v878_v41 = vld [vmem:[%s722_s17 + $0xf8] sm:$0xff] }
  0x2a   : > { %v232_v47 = vadd.f32 %v231_v42, %v230_v44  ;;  %v263_v44 = vsel %vm203_vm0, %v873_v35, 0.0 }
  0x2c   : > { %v234_v50 = vadd.f32 %v233_v45, %v232_v47  ;;  %v265_v47 = vsel %vm203_vm0, %v878_v41, 0.0 }
  0x2e   : > { %v236_v53 = vadd.f32 %v235_v48, %v234_v50  ;;  %v674_v48 = vpop.eup %673 }
  0x2f   : > { %vm278_vm1 = vweird.f32 %v674_v48 }
  0x30   : > { %v238_v56 = vadd.f32 %v237_v51, %v236_v53  ;;  %v274_v53 = vmul.f32 256.0, %v674_v48 }
  0x32   : > { %v240_v59 = vadd.f32 %v239_v54, %v238_v56 }
  0x34   : > { %v242_v62 = vadd.f32 %v241_v57, %v240_v59  ;;  %v275_v57 = vsub.f32 1.0, %v274_v53 }
  0x36   : > { %v244_v5 = vadd.f32 %v243_v60, %v242_v62  ;;  %v276_v62 = vmul.f32 %v674_v48, %v275_v57 }
  0x38   : > { %v246_v9 = vadd.f32 %v245_v63, %v244_v5  ;;  %v277_v5 = vadd.f32 %v674_v48, %v276_v62 }
  0x3a   : > { %v248_v14 = vadd.f32 %v247_v6, %v246_v9  ;;  %v884_v9 = vsel %vm278_vm1, %v674_v48, %v277_v5 }
  0x3c   : > { %v250_v18 = vadd.f32 %v249_v11, %v248_v14 }
  0x3e   : > { %v252_v23 = vadd.f32 %v251_v15, %v250_v18 }
  0x40   : > { %v254_v27 = vadd.f32 %v253_v20, %v252_v23 }
  0x42   : > { %v256_v32 = vadd.f32 %v255_v24, %v254_v27 }
  0x44   : > { %v258_v36 = vadd.f32 %v257_v29, %v256_v32 }
  0x46   : > { %v260_v42 = vadd.f32 %v259_v33, %v258_v36 }
  0x48   : > { %v262_v45 = vadd.f32 %v261_v39, %v260_v42 }
  0x4a   : > { %v264_v50 = vadd.f32 %v263_v44, %v262_v45 }
  0x4c   : > { %v266_v51 = vadd.f32 %v265_v47, %v264_v50 }
  0x4e   : > { %v267_v54 = vrot.slane %v266_v51, 4 }
  0x50   : > { %v268_v56 = vadd.f32 %v267_v54, %v266_v51 }
  0x52   : > { %v269_v59 = vrot.slane %v268_v56, 2 }
  0x54   : > { %v270_v60 = vadd.f32 %v269_v59, %v268_v56 }
  0x56   : > { %v271_v63 = vrot.slane %v270_v60, 1 }
  0x58   : > { %v272_v6 = vadd.f32 %v271_v63, %v270_v60 }
  0x5a   : > { %v887_v11 = vmul.f32 %v884_v9, %v272_v6 }
  0x5c   : > { %v891_v14 = vsub.f32 %v725_v0, %v887_v11  ;;  %v895_v15 = vsub.f32 %v728_v1, %v887_v11  ;;  %v899_v18 = vsub.f32 %v731_v2, %v887_v11  ;;  %v903_v20 = vsub.f32 %v734_v3, %v887_v11 }
  0x5d   : > { %v907_v23 = vsub.f32 %v743_v7, %v887_v11  ;;  %v917_v2 = vsub.f32 %v748_v10, %v887_v11  ;;  %v923_v7 = vsub.f32 %v753_v13, %v887_v11  ;;  %v932_v10 = vsub.f32 %v758_v16, %v887_v11 }
  0x5e   : > { %v313_v0 = vmul.f32 %v891_v14, %v891_v14  ;;  %v314_v24 = vmul.f32 %v895_v15, %v895_v15  ;;  %v315_v1 = vmul.f32 %v899_v18, %v899_v18  ;;  %v316_v3 = vmul.f32 %v903_v20, %v903_v20 }
  0x5f   : > { %v317_v27 = vmul.f32 %v907_v23, %v907_v23  ;;  %v318_v38 = vmul.f32 %v917_v2, %v917_v2  ;;  %v939_v42 = vsub.f32 %v763_v19, %v887_v11  ;;  %v319_v44 = vmul.f32 %v923_v7, %v923_v7 }
  0x60   : > { %v345_v29 = vsel %vm203_vm0, %v313_v0, 0.0  ;;  %v346_v32 = vsel %vm203_vm0, %v314_v24, 0.0  ;;  %v348_v33 = vsel %vm203_vm0, %v315_v1, 0.0  ;;  %v350_v13 = vsel %vm203_vm0, %v316_v3, 0.0 }
  0x61   : > { %v347_v36 = vadd.f32 %v346_v32, %v345_v29  ;;  %v352_v45 = vsel %vm203_vm0, %v317_v27, 0.0  ;;  %v946_v16 = vsub.f32 %v768_v22, %v887_v11  ;;  %v320_v48 = vmul.f32 %v932_v10, %v932_v10 }
  0x62   : > { %v354_v50 = vsel %vm203_vm0, %v318_v38, 0.0  ;;  %v953_v19 = vsub.f32 %v773_v25, %v887_v11  ;;  %v321_v53 = vmul.f32 %v939_v42, %v939_v42  ;;  %v356_v54 = vsel %vm203_vm0, %v319_v44, 0.0 }
  0x63   : > { %v349_v39 = vadd.f32 %v348_v33, %v347_v36  ;;  %v960_v22 = vsub.f32 %v778_v28, %v887_v11  ;;  %v322_v57 = vmul.f32 %v946_v16, %v946_v16  ;;  %v358_v59 = vsel %vm203_vm0, %v320_v48, 0.0 }
  0x64   : > { %v967_v25 = vsub.f32 %v783_v31, %v887_v11  ;;  %v323_v62 = vmul.f32 %v953_v19, %v953_v19  ;;  %v360_v63 = vsel %vm203_vm0, %v321_v53, 0.0  ;;  %v974_v28 = vsub.f32 %v788_v34, %v887_v11 }
  0x65   : > { %v351_v47 = vadd.f32 %v350_v13, %v349_v39  ;;  %v324_v6 = vmul.f32 %v960_v22, %v960_v22  ;;  %v362_v0 = vsel %vm203_vm0, %v322_v57, 0.0  ;;  %v981_v31 = vsub.f32 %v793_v37, %v887_v11 }
  0x66   : > { %v325_v1 = vmul.f32 %v967_v25, %v967_v25  ;;  %v364_v3 = vsel %vm203_vm0, %v323_v62, 0.0  ;;  %v988_v34 = vsub.f32 %v798_v40, %v887_v11  ;;  %v326_v29 = vmul.f32 %v974_v28, %v974_v28 }
  0x67   : > { %v353_v51 = vadd.f32 %v352_v45, %v351_v47  ;;  %v366_v32 = vsel %vm203_vm0, %v324_v6, 0.0  ;;  %v995_v37 = vsub.f32 %v803_v43, %v887_v11  ;;  %v327_v36 = vmul.f32 %v981_v31, %v981_v31 }
  0x68   : > { %v368_v38 = vsel %vm203_vm0, %v325_v1, 0.0  ;;  %v1002_v40 = vsub.f32 %v808_v46, %v887_v11  ;;  %v328_v39 = vmul.f32 %v988_v34, %v988_v34  ;;  %v370_v44 = vsel %vm203_vm0, %v326_v29, 0.0 }
  0x69   : > { %v355_v56 = vadd.f32 %v354_v50, %v353_v51  ;;  %v1009_v43 = vsub.f32 %v813_v49, %v887_v11  ;;  %v329_v47 = vmul.f32 %v995_v37, %v995_v37  ;;  %v372_v48 = vsel %vm203_vm0, %v327_v36, 0.0 }
  0x6a   : > { %v1016_v46 = vsub.f32 %v818_v52, %v887_v11  ;;  %v330_v51 = vmul.f32 %v1002_v40, %v1002_v40  ;;  %v374_v53 = vsel %vm203_vm0, %v328_v39, 0.0  ;;  %v1023_v49 = vsub.f32 %v823_v55, %v887_v11 }
  0x6b   : > { %v357_v60 = vadd.f32 %v356_v54, %v355_v56  ;;  %v331_v56 = vmul.f32 %v1009_v43, %v1009_v43  ;;  %v376_v57 = vsel %vm203_vm0, %v329_v47, 0.0  ;;  %v1030_v52 = vsub.f32 %v828_v58, %v887_v11 }
  0x6c   : > { %v378_v62 = vsel %vm203_vm0, %v330_v51, 0.0  ;;  %v1037_v55 = vsub.f32 %v833_v61, %v887_v11  ;;  %v1044_v58 = vsub.f32 %v838_v4, %v887_v11  ;;  %v1051_v61 = vsub.f32 %v843_v8, %v887_v11 }
  0x6d   : > { %v359_v5 = vadd.f32 %v358_v59, %v357_v60  ;;  %v332_v60 = vmul.f32 %v1016_v46, %v1016_v46  ;;  %v380_v6 = vsel %vm203_vm0, %v331_v56, 0.0  ;;  %v1058_v4 = vsub.f32 %v848_v12, %v887_v11 }
  0x6e   : > { %v1065_v8 = vsub.f32 %v853_v17, %v887_v11  ;;  %v1072_v12 = vsub.f32 %v858_v21, %v887_v11  ;;  %v1079_v17 = vsub.f32 %v863_v26, %v887_v11  ;;  %v1086_v21 = vsub.f32 %v868_v30, %v887_v11 }
  0x6f   : > { %v361_v24 = vadd.f32 %v360_v63, %v359_v5  ;;  %v333_v5 = vmul.f32 %v1023_v49, %v1023_v49  ;;  %v382_v1 = vsel %vm203_vm0, %v332_v60, 0.0  ;;  %v1093_v26 = vsub.f32 %v873_v35, %v887_v11 }
  0x70   : > { %v1100_v30 = vsub.f32 %v878_v41, %v887_v11 }
  0x71   : > { %v363_v27 = vadd.f32 %v362_v0, %v361_v24  ;;  %v334_v24 = vmul.f32 %v1030_v52, %v1030_v52  ;;  %v384_v29 = vsel %vm203_vm0, %v333_v5, 0.0  ;;  %v343_v35 = vmul.f32 %v1093_v26, %v1093_v26 }
  0x73   : > { %v365_v33 = vadd.f32 %v364_v3, %v363_v27  ;;  %v335_v27 = vmul.f32 %v1037_v55, %v1037_v55  ;;  %v386_v36 = vsel %vm203_vm0, %v334_v24, 0.0  ;;  %v404_v41 = vsel %vm203_vm0, %v343_v35, 0.0 }
  0x75   : > { %v367_v13 = vadd.f32 %v366_v32, %v365_v33  ;;  %v336_v33 = vmul.f32 %v1044_v58, %v1044_v58  ;;  %v388_v39 = vsel %vm203_vm0, %v335_v27, 0.0 }
  0x77   : > { %v369_v45 = vadd.f32 %v368_v38, %v367_v13  ;;  %v337_v13 = vmul.f32 %v1051_v61, %v1051_v61  ;;  %v390_v47 = vsel %vm203_vm0, %v336_v33, 0.0 }
  0x79   : > { %v371_v50 = vadd.f32 %v370_v44, %v369_v45  ;;  %v338_v45 = vmul.f32 %v1058_v4, %v1058_v4  ;;  %v392_v51 = vsel %vm203_vm0, %v337_v13, 0.0 }
  0x7b   : > { %v373_v54 = vadd.f32 %v372_v48, %v371_v50  ;;  %v339_v50 = vmul.f32 %v1065_v8, %v1065_v8  ;;  %v394_v56 = vsel %vm203_vm0, %v338_v45, 0.0 }
  0x7d   : > { %v375_v59 = vadd.f32 %v374_v53, %v373_v54  ;;  %v340_v54 = vmul.f32 %v1072_v12, %v1072_v12  ;;  %v396_v60 = vsel %vm203_vm0, %v339_v50, 0.0 }
  0x7f   : > { %v377_v63 = vadd.f32 %v376_v57, %v375_v59  ;;  %v341_v59 = vmul.f32 %v1079_v17, %v1079_v17  ;;  %v398_v5 = vsel %vm203_vm0, %v340_v54, 0.0 }
  0x81   : > { %v379_v0 = vadd.f32 %v378_v62, %v377_v63  ;;  %v342_v63 = vmul.f32 %v1086_v21, %v1086_v21 }
  0x83   : > { %v381_v3 = vadd.f32 %v380_v6, %v379_v0  ;;  %v400_v0 = vsel %vm203_vm0, %v341_v59, 0.0  ;;  %v1117_v59 = vld [vmem:[%s1329_s1] ss:$0 sm:$0xff] }
  0x85   : > { %v383_v32 = vadd.f32 %v382_v1, %v381_v3  ;;  %v344_v1 = vmul.f32 %v1100_v30, %v1100_v30  ;;  %v402_v3 = vsel %vm203_vm0, %v342_v63, 0.0 }
  0x87   : > { %v385_v38 = vadd.f32 %v384_v29, %v383_v32  ;;  %v406_v29 = vsel %vm203_vm0, %v344_v1, 0.0 }
  0x89   : > { %v387_v44 = vadd.f32 %v386_v36, %v385_v38 }
  0x8b   : > { %v389_v48 = vadd.f32 %v388_v39, %v387_v44 }
  0x8d   : > { %v391_v53 = vadd.f32 %v390_v47, %v389_v48 }
  0x8f   : > { %v393_v57 = vadd.f32 %v392_v51, %v391_v53 }
  0x91   : > { %v395_v62 = vadd.f32 %v394_v56, %v393_v57 }
  0x93   : > { %v397_v6 = vadd.f32 %v396_v60, %v395_v62  ;;  %v1126_v62 = vld [vmem:[%s1330_s2] ss:$0 sm:$0xff] }
  0x95   : > { %v399_v24 = vadd.f32 %v398_v5, %v397_v6 }
  0x97   : > { %v401_v27 = vadd.f32 %v400_v0, %v399_v24 }
  0x99   : > { %v403_v11 = vadd.f32 %v402_v3, %v401_v27 }
  0x9b   : > { %v405_v32 = vadd.f32 %v404_v41, %v403_v11 }
  0x9d   : > { %v407_v33 = vadd.f32 %v406_v29, %v405_v32 }
  0x9f   : > { %v408_v36 = vrot.slane %v407_v33, 4 }
  0xa1   : > { %v409_v38 = vadd.f32 %v408_v36, %v407_v33 }
  0xa3   : > { %v410_v13 = vrot.slane %v409_v38, 2 }
  0xa5   : > { %v411_v39 = vadd.f32 %v410_v13, %v409_v38 }
  0xa7   : > { %v412_v44 = vrot.slane %v411_v39, 1 }
  0xa9   : > { %v413_v45 = vadd.f32 %v412_v44, %v411_v39 }
  0xab   : > { %v414_v47 = vmul.f32 %v413_v45, %v884_v9 }
  0xad   : > { %v415_v48 = vadd.f32 1e-05, %v414_v47 }
  0xaf   : > { %675 = vrsqrt.f32 %v415_v48  ;;  %vm422_vm2 = vweird.f32 %v415_v48 }
  0xb5   : > { %v676_v50 = vpop.eup %675 }
  0xb6   : > { %v417_v51 = vmul.f32 %v676_v50, %v415_v48  ;;  %vm423_vm3 = vweird.f32 %v676_v50 }
  0xb7   : > { %vm424_vm4 = vmor %vm422_vm2, %vm423_vm3 }
  0xb8   : > { %v418_v53 = vmul.f32 %v676_v50, %v417_v51 }
  0xba   : > { %v419_v54 = vmul.f32 0.5, %v418_v53 }
  0xbc   : > { %v420_v56 = vsub.f32 1.5, %v419_v54 }
  0xbe   : > { %v421_v57 = vmul.f32 %v676_v50, %v420_v56 }
  0xc0   : > { %v1119_v60 = vsel %vm424_vm4, %v676_v50, %v421_v57 }
  0xc1   : > { %v426_v9 = vmul.f32 %v1119_v60, %v891_v14  ;;  %v427_v63 = vmul.f32 %v1119_v60, %v895_v15  ;;  %v428_v5 = vmul.f32 %v1119_v60, %v899_v18  ;;  %v429_v6 = vmul.f32 %v1119_v60, %v903_v20 }
  0xc2   : > { %v430_v35 = vmul.f32 %v1119_v60, %v907_v23  ;;  %v431_v14 = vmul.f32 %v1119_v60, %v917_v2  ;;  %v432_v0 = vmul.f32 %v1119_v60, %v923_v7  ;;  %v433_v24 = vmul.f32 %v1119_v60, %v932_v10 }
  0xc3   : > { %v462_v15 = vmul.f32 %v1117_v59, %v426_v9  ;;  %v463_v18 = vmul.f32 %v1117_v59, %v427_v63  ;;  %v464_v1 = vmul.f32 %v1117_v59, %v428_v5  ;;  %v465_v20 = vmul.f32 %v1117_v59, %v429_v6 }
  0xc4   : > { %v466_v23 = vmul.f32 %v1117_v59, %v430_v35  ;;  %v467_v3 = vmul.f32 %v1117_v59, %v431_v14  ;;  %v468_v2 = vmul.f32 %v1117_v59, %v432_v0  ;;  %v469_v27 = vmul.f32 %v1117_v59, %v433_v24 }
  0xc5   : > { %v498_v7 = vadd.f32 %v1126_v62, %v462_v15  ;;  %v499_v10 = vadd.f32 %v1126_v62, %v463_v18  ;;  %v500_v41 = vadd.f32 %v1126_v62, %v464_v1  ;;  %v501_v11 = vadd.f32 %v1126_v62, %v465_v20 }
  0xc6   : > { %v502_v29 = vadd.f32 %v1126_v62, %v466_v23  ;;  %v503_v32 = vadd.f32 %v1126_v62, %v467_v3  ;;  %v504_v33 = vadd.f32 %v1126_v62, %v468_v2  ;;  %v505_v36 = vadd.f32 %v1126_v62, %v469_v27 }
  0xc7   : > { %v530_v38 = vmax.f32 %v498_v7, 0.0  ;;  %v531_v13 = vmax.f32 %v499_v10, 0.0  ;;  %v532_v39 = vmax.f32 %v500_v41, 0.0  ;;  %v533_v44 = vmax.f32 %v501_v11, 0.0 }
  0xc8   : > { %v534_v45 = vmax.f32 %v502_v29, 0.0  ;;  %v535_v47 = vmax.f32 %v503_v32, 0.0  ;;  %v536_v48 = vmax.f32 %v504_v33, 0.0  ;;  %v537_v50 = vmax.f32 %v505_v36, 0.0 }
  0xc9   : > { %562 = vst.msk [vmem:[%s1159_s24] sm:$0xff] %vm203_vm0, %v530_v38  ;;  %v434_v51 = vmul.f32 %v1119_v60, %v939_v42  ;;  %v435_v53 = vmul.f32 %v1119_v60, %v946_v16  ;;  %v436_v54 = vmul.f32 %v1119_v60, %v953_v19  ;;  %v437_v56 = vmul.f32 %v1119_v60, %v960_v22 }
  0xca   : > { %563 = vst.msk [vmem:[%s1159_s24 + $0x8] sm:$0xff] %vm203_vm0, %v531_v13  ;;  %v438_v57 = vmul.f32 %v1119_v60, %v967_v25  ;;  %v439_v9 = vmul.f32 %v1119_v60, %v974_v28  ;;  %v440_v42 = vmul.f32 %v1119_v60, %v981_v31  ;;  %v441_v16 = vmul.f32 %v1119_v60, %v988_v34 }
  0xcb   : > { %564 = vst.msk [vmem:[%s1159_s24 + $0x10] sm:$0xff] %vm203_vm0, %v532_v39  ;;  %v470_v19 = vmul.f32 %v1117_v59, %v434_v51  ;;  %v471_v22 = vmul.f32 %v1117_v59, %v435_v53  ;;  %v472_v63 = vmul.f32 %v1117_v59, %v436_v54  ;;  %v473_v25 = vmul.f32 %v1117_v59, %v437_v56 }
  0xcc   : > { %565 = vst.msk [vmem:[%s1159_s24 + $0x18] sm:$0xff] %vm203_vm0, %v533_v44  ;;  %v474_v28 = vmul.f32 %v1117_v59, %v438_v57  ;;  %v475_v31 = vmul.f32 %v1117_v59, %v439_v9  ;;  %v476_v34 = vmul.f32 %v1117_v59, %v440_v42  ;;  %v477_v5 = vmul.f32 %v1117_v59, %v441_v16 }
  0xcd   : > { %566 = vst.msk [vmem:[%s1159_s24 + $0x20] sm:$0xff] %vm203_vm0, %v534_v45  ;;  %v506_v6 = vadd.f32 %v1126_v62, %v470_v19  ;;  %v507_v35 = vadd.f32 %v1126_v62, %v471_v22  ;;  %v508_v14 = vadd.f32 %v1126_v62, %v472_v63  ;;  %v509_v0 = vadd.f32 %v1126_v62, %v473_v25 }
  0xce   : > { %567 = vst.msk [vmem:[%s1159_s24 + $0x28] sm:$0xff] %vm203_vm0, %v535_v47  ;;  %v510_v24 = vadd.f32 %v1126_v62, %v474_v28  ;;  %v511_v15 = vadd.f32 %v1126_v62, %v475_v31  ;;  %v512_v18 = vadd.f32 %v1126_v62, %v476_v34  ;;  %v513_v1 = vadd.f32 %v1126_v62, %v477_v5 }
  0xcf   : > { %568 = vst.msk [vmem:[%s1159_s24 + $0x30] sm:$0xff] %vm203_vm0, %v536_v48  ;;  %v538_v20 = vmax.f32 %v506_v6, 0.0  ;;  %v539_v23 = vmax.f32 %v507_v35, 0.0  ;;  %v540_v3 = vmax.f32 %v508_v14, 0.0  ;;  %v541_v2 = vmax.f32 %v509_v0, 0.0 }
  0xd0   : > { %569 = vst.msk [vmem:[%s1159_s24 + $0x38] sm:$0xff] %vm203_vm0, %v537_v50  ;;  %v542_v27 = vmax.f32 %v510_v24, 0.0  ;;  %v543_v7 = vmax.f32 %v511_v15, 0.0  ;;  %v544_v10 = vmax.f32 %v512_v18, 0.0  ;;  %v545_v41 = vmax.f32 %v513_v1, 0.0 }
  0xd1   : > { %570 = vst.msk [vmem:[%s1159_s24 + $0x40] sm:$0xff] %vm203_vm0, %v538_v20  ;;  %v442_v11 = vmul.f32 %v1119_v60, %v995_v37  ;;  %v443_v29 = vmul.f32 %v1119_v60, %v1002_v40  ;;  %v444_v32 = vmul.f32 %v1119_v60, %v1009_v43  ;;  %v445_v33 = vmul.f32 %v1119_v60, %v1016_v46 }
  0xd2   : > { %571 = vst.msk [vmem:[%s1159_s24 + $0x48] sm:$0xff] %vm203_vm0, %v539_v23  ;;  %v446_v36 = vmul.f32 %v1119_v60, %v1023_v49  ;;  %v447_v38 = vmul.f32 %v1119_v60, %v1030_v52  ;;  %v448_v37 = vmul.f32 %v1119_v60, %v1037_v55  ;;  %v449_v40 = vmul.f32 %v1119_v60, %v1044_v58 }
  0xd3   : > { %572 = vst.msk [vmem:[%s1159_s24 + $0x50] sm:$0xff] %vm203_vm0, %v540_v3  ;;  %v478_v43 = vmul.f32 %v1117_v59, %v442_v11  ;;  %v479_v46 = vmul.f32 %v1117_v59, %v443_v29  ;;  %v480_v13 = vmul.f32 %v1117_v59, %v444_v32  ;;  %v481_v49 = vmul.f32 %v1117_v59, %v445_v33 }
  0xd4   : > { %573 = vst.msk [vmem:[%s1159_s24 + $0x58] sm:$0xff] %vm203_vm0, %v541_v2  ;;  %v482_v52 = vmul.f32 %v1117_v59, %v446_v36  ;;  %v483_v55 = vmul.f32 %v1117_v59, %v447_v38  ;;  %v484_v58 = vmul.f32 %v1117_v59, %v448_v37  ;;  %v485_v39 = vmul.f32 %v1117_v59, %v449_v40 }
  0xd5   : > { %574 = vst.msk [vmem:[%s1159_s24 + $0x60] sm:$0xff] %vm203_vm0, %v542_v27  ;;  %v514_v44 = vadd.f32 %v1126_v62, %v478_v43  ;;  %v515_v45 = vadd.f32 %v1126_v62, %v479_v46  ;;  %v516_v47 = vadd.f32 %v1126_v62, %v480_v13  ;;  %v517_v48 = vadd.f32 %v1126_v62, %v481_v49 }
  0xd6   : > { %575 = vst.msk [vmem:[%s1159_s24 + $0x68] sm:$0xff] %vm203_vm0, %v543_v7  ;;  %v518_v50 = vadd.f32 %v1126_v62, %v482_v52  ;;  %v519_v51 = vadd.f32 %v1126_v62, %v483_v55  ;;  %v520_v53 = vadd.f32 %v1126_v62, %v484_v58  ;;  %v521_v54 = vadd.f32 %v1126_v62, %v485_v39 }
  0xd7   : > { %576 = vst.msk [vmem:[%s1159_s24 + $0x70] sm:$0xff] %vm203_vm0, %v544_v10  ;;  %v546_v56 = vmax.f32 %v514_v44, 0.0  ;;  %v547_v57 = vmax.f32 %v515_v45, 0.0  ;;  %v548_v9 = vmax.f32 %v516_v47, 0.0  ;;  %v549_v42 = vmax.f32 %v517_v48, 0.0 }
  0xd8   : > { %577 = vst.msk [vmem:[%s1159_s24 + $0x78] sm:$0xff] %vm203_vm0, %v545_v41  ;;  %v550_v16 = vmax.f32 %v518_v50, 0.0  ;;  %v551_v19 = vmax.f32 %v519_v51, 0.0  ;;  %v552_v22 = vmax.f32 %v520_v53, 0.0  ;;  %v553_v63 = vmax.f32 %v521_v54, 0.0 }
  0xd9   : > { %578 = vst.msk [vmem:[%s1159_s24 + $0x80] sm:$0xff] %vm203_vm0, %v546_v56  ;;  %v450_v25 = vmul.f32 %v1119_v60, %v1051_v61  ;;  %v451_v28 = vmul.f32 %v1119_v60, %v1058_v4  ;;  %v452_v31 = vmul.f32 %v1119_v60, %v1065_v8  ;;  %v453_v34 = vmul.f32 %v1119_v60, %v1072_v12 }
  0xda   : > { %579 = vst.msk [vmem:[%s1159_s24 + $0x88] sm:$0xff] %vm203_vm0, %v547_v57  ;;  %v454_v5 = vmul.f32 %v1119_v60, %v1079_v17  ;;  %v455_v6 = vmul.f32 %v1119_v60, %v1086_v21  ;;  %v456_v61 = vmul.f32 %v1119_v60, %v1093_v26  ;;  %v457_v4 = vmul.f32 %v1119_v60, %v1100_v30 }
  0xdb   : > { %580 = vst.msk [vmem:[%s1159_s24 + $0x90] sm:$0xff] %vm203_vm0, %v548_v9  ;;  %v486_v8 = vmul.f32 %v1117_v59, %v450_v25  ;;  %v487_v12 = vmul.f32 %v1117_v59, %v451_v28  ;;  %v488_v35 = vmul.f32 %v1117_v59, %v452_v31  ;;  %v489_v17 = vmul.f32 %v1117_v59, %v453_v34 }
  0xdc   : > { %581 = vst.msk [vmem:[%s1159_s24 + $0x98] sm:$0xff] %vm203_vm0, %v549_v42  ;;  %v490_v21 = vmul.f32 %v1117_v59, %v454_v5  ;;  %v491_v26 = vmul.f32 %v1117_v59, %v455_v6  ;;  %v492_v30 = vmul.f32 %v1117_v59, %v456_v61  ;;  %v493_v60 = vmul.f32 %v1117_v59, %v457_v4 }
  0xdd   : > { %582 = vst.msk [vmem:[%s1159_s24 + $0xa0] sm:$0xff] %vm203_vm0, %v550_v16  ;;  %v522_v14 = vadd.f32 %v1126_v62, %v486_v8  ;;  %v523_v0 = vadd.f32 %v1126_v62, %v487_v12  ;;  %v524_v24 = vadd.f32 %v1126_v62, %v488_v35  ;;  %v525_v15 = vadd.f32 %v1126_v62, %v489_v17 }
  0xde   : > { %583 = vst.msk [vmem:[%s1159_s24 + $0xa8] sm:$0xff] %vm203_vm0, %v551_v19  ;;  %v526_v18 = vadd.f32 %v1126_v62, %v490_v21  ;;  %v527_v59 = vadd.f32 %v1126_v62, %v491_v26  ;;  %v528_v3 = vadd.f32 %v1126_v62, %v492_v30  ;;  %v529_v27 = vadd.f32 %v1126_v62, %v493_v60 }
  0xdf   : > { %584 = vst.msk [vmem:[%s1159_s24 + $0xb0] sm:$0xff] %vm203_vm0, %v552_v22  ;;  %v554_v1 = vmax.f32 %v522_v14, 0.0  ;;  %v555_v20 = vmax.f32 %v523_v0, 0.0  ;;  %v556_v23 = vmax.f32 %v524_v24, 0.0  ;;  %v557_v2 = vmax.f32 %v525_v15, 0.0 }
  0xe0   : > { %585 = vst.msk [vmem:[%s1159_s24 + $0xb8] sm:$0xff] %vm203_vm0, %v553_v63  ;;  %v558_v7 = vmax.f32 %v526_v18, 0.0  ;;  %v559_v10 = vmax.f32 %v527_v59, 0.0  ;;  %v560_v41 = vmax.f32 %v528_v3, 0.0  ;;  %v561_v11 = vmax.f32 %v529_v27, 0.0 }
  0xe1   : > { %586 = vst.msk [vmem:[%s1159_s24 + $0xc0] sm:$0xff] %vm203_vm0, %v554_v1 }
  0xe2   : > { %587 = vst.msk [vmem:[%s1159_s24 + $0xc8] sm:$0xff] %vm203_vm0, %v555_v20 }
  0xe3   : > { %588 = vst.msk [vmem:[%s1159_s24 + $0xd0] sm:$0xff] %vm203_vm0, %v556_v23 }
  0xe4   : > { %589 = vst.msk [vmem:[%s1159_s24 + $0xd8] sm:$0xff] %vm203_vm0, %v557_v2 }
  0xe5   : > { %590 = vst.msk [vmem:[%s1159_s24 + $0xe0] sm:$0xff] %vm203_vm0, %v558_v7 }
  0xe6   : > { %591 = vst.msk [vmem:[%s1159_s24 + $0xe8] sm:$0xff] %vm203_vm0, %v559_v10 }
  0xe7   : > { %592 = vst.msk [vmem:[%s1159_s24 + $0xf0] sm:$0xff] %vm203_vm0, %v560_v41 }
  0xe8   : > { %593 = vst.msk [vmem:[%s1159_s24 + $0xf8] sm:$0xff] %vm203_vm0, %v561_v11 }
  0xe9 PF: > { %s13_s12 = sadd.s32 1, %s683_s12  }
  0xea   : > { %p10_p4 = scmp.ge.s32.totalorder %s13_s12, 4  }
  0xec   :  { %12 = sbr.rel (!%p10_p4) target bundleno = 1 (0x1), region = 62 }

// kernel: g128_forward.41
= control target key start
LH: loop header
LB: loop body
LE: loop exit
PB: predicated region body
PF: predicated region fallthrough
CT: control target
= control target key end

     0   :  { %s1454_s12 = smov 0   ;;  %s1456_s13 = smov 0   ;;  %s1682_s0 = inlined_call_operand.vmem [shape: bf16[512,256], index: 0, kind: input, shape index: {}]   ;;  %s1683_s1 = inlined_call_operand.vmem [shape: bf16[256,128], index: 1, kind: input, shape index: {}]   ;;  %s1684_s2 = inlined_call_operand.vmem [shape: f32[1,128], index: 2, kind: input, shape index: {}]   ;;  %s1685_s3 = inlined_call_operand.vmem [shape: f32[512,128], index: 3, kind: output, shape index: {}]  }
   0x1   :  { %s1458_s14 = smov 0  }
   0x2 LB: > { %s32_s15 = sadd.s32 1, %s1428_s13  ;;  %p1120_p0 = scmp.ge.s32.totalorder %s1432_s14, 1  ;;  %s1432_s14 = sphi %s1458_s14, %s13_s14   ;;  %s1428_s13 = sphi %s1456_s13, %s1687_s13   ;;  %s1424_s12 = sphi %s1454_s12, %s1686_s12  }
   0x3   : > { %p34_p1 = scmp.ge.s32.totalorder %s32_s15, 2  ;;  %p191_p2 = scmp.lt.s32.totalorder %s1432_s14, 3 }
   0x5   : > { %s1689_s15 = smov (%p34_p1, %s32_s15), 0  ;;  %p192_p3 = pnand %p1120_p0, %p191_p2 }
   0x6   : > { %s1121_s28 = sshll.u32 (!%p192_p3), %s1424_s12, 5 }
   0x7   : > { %195 = sbr.rel (%p192_p3) target bundleno = 302 (0x12e), region = 32  ;;  %p236_p4 = scmp.lt.s32.totalorder (!%p192_p3), %s1121_s28, 63 }
   0xc   : > { %v1360_v0 = vld [vmem:[%s1683_s1 + $0x38] sm:$0xff]  ;;  %v1359_v2 = vld [vmem:[%s1683_s1 + $0x30] sm:$0xff]  ;;  %v1358_v4 = vld [vmem:[%s1683_s1 + $0x28] sm:$0xff]  ;;  %s1691_s28 = smov (!%p236_p4, %s1121_s28), 63 }
   0xd   : > { %v1368_v1 = vld [vmem:[%s1683_s1 + $0x78] sm:$0xff]  ;;  %655 = vmatpush.bf16.msra.mxu0 %v1360_v0  ;;  %1369 = vmatpush.bf16.msra.mxu2 %v1360_v0  ;;  %v1367_v3 = vld [vmem:[%s1683_s1 + $0x70] sm:$0xff]  ;;  %v1366_v5 = vld [vmem:[%s1683_s1 + $0x68] sm:$0xff]  ;;  %s1320_s17 = sshll.u32 %s1691_s28, 3 }
   0xe   : > { %744 = vmatpush.bf16.msra.mxu1 %v1368_v1  ;;  %1377 = vmatpush.bf16.msra.mxu3 %v1368_v1  ;;  %v1357_v6 = vld [vmem:[%s1683_s1 + $0x20] sm:$0xff]  ;;  %v1356_v8 = vld [vmem:[%s1683_s1 + $0x18] sm:$0xff]  ;;  %v1355_v10 = vld [vmem:[%s1683_s1 + $0x10] sm:$0xff]  ;;  %s1522_s22 = scalar_lea.vmem %s1682_s0, %s1320_s17  ;;  %s1607_s7 = scalar_lea.vmem %s1685_s3, %s1320_s17 }
   0xf   : > { %v1365_v7 = vld [vmem:[%s1683_s1 + $0x60] sm:$0xff]  ;;  %v1364_v9 = vld [vmem:[%s1683_s1 + $0x58] sm:$0xff]  ;;  %v1363_v11 = vld [vmem:[%s1683_s1 + $0x50] sm:$0xff] }
  0x10   : > { %v1354_v12 = vld [vmem:[%s1683_s1 + $0x8] sm:$0xff]  ;;  %v1353_v14 = vld [vmem:[%s1683_s1] sm:$0xff]  ;;  %v1136_v28 = vld [vmem:[%s1522_s22 + $0x10] sm:$0xf] }
  0x11   : > { %656 = vmatpush.bf16.msra.mxu0 %v1359_v2  ;;  %1370 = vmatpush.bf16.msra.mxu2 %v1359_v2  ;;  %v1362_v13 = vld [vmem:[%s1683_s1 + $0x48] sm:$0xff]  ;;  %v1361_v15 = vld [vmem:[%s1683_s1 + $0x40] sm:$0xff]  ;;  %v1324_v29 = vld [vmem:[%s1522_s22 + $0x14] sm:$0xf0] }
  0x12   : > { %745 = vmatpush.bf16.msra.mxu1 %v1367_v3  ;;  %1378 = vmatpush.bf16.msra.mxu3 %v1367_v3  ;;  %v1128_v16 = vld [vmem:[%s1522_s22] sm:$0xf]  ;;  %v1322_v17 = vld [vmem:[%s1522_s22 + $0x4] sm:$0xf0]  ;;  %v1321_v20 = vld [vmem:[%s1522_s22 + $0x4] sm:$0xf]  ;;  %v1137_v36 = vor.u32 %v1324_v29, %v1136_v28 }
  0x13   : > { %v1192_v18 = vld [vmem:[%s1522_s22 + $0x80] sm:$0xf]  ;;  %v1338_v19 = vld [vmem:[%s1522_s22 + $0x84] sm:$0xf0]  ;;  %v1130_v21 = vld [vmem:[%s1522_s22 + $0x8] sm:$0xf0]  ;;  %v1129_v24 = vor.u32 %v1322_v17, %v1128_v16 }
  0x14   : > { %v1337_v22 = vld [vmem:[%s1522_s22 + $0x84] sm:$0xf]  ;;  %v1194_v23 = vld [vmem:[%s1522_s22 + $0x88] sm:$0xf0]  ;;  %v1193_v25 = vor.u32 %v1338_v19, %v1192_v18  ;;  %v1133_v26 = vor.u32 %v1321_v20, %v1130_v21  ;;  %v1200_v30 = vld [vmem:[%s1522_s22 + $0x90] sm:$0xf] }
  0x15   : > { %657 = vmatpush.bf16.msra.mxu0 %v1358_v4  ;;  %1371 = vmatpush.bf16.msra.mxu2 %v1358_v4  ;;  %v1197_v27 = vor.u32 %v1337_v22, %v1194_v23  ;;  %v1340_v31 = vld [vmem:[%s1522_s22 + $0x94] sm:$0xf0]  ;;  %v1323_v32 = vld [vmem:[%s1522_s22 + $0x14] sm:$0xf]  ;;  %v1138_v33 = vld [vmem:[%s1522_s22 + $0x18] sm:$0xf0] }
  0x16   : > { %746 = vmatpush.bf16.msra.mxu1 %v1366_v5  ;;  %1379 = vmatpush.bf16.msra.mxu3 %v1366_v5  ;;  %v1339_v34 = vld [vmem:[%s1522_s22 + $0x94] sm:$0xf]  ;;  %v1202_v35 = vld [vmem:[%s1522_s22 + $0x98] sm:$0xf0]  ;;  %v1201_v37 = vor.u32 %v1340_v31, %v1200_v30  ;;  %v1141_v38 = vor.u32 %v1323_v32, %v1138_v33  ;;  %v1144_v40 = vld [vmem:[%s1522_s22 + $0x20] sm:$0xf] }
  0x17   : > { %v1205_v39 = vor.u32 %v1339_v34, %v1202_v35  ;;  %v1326_v41 = vld [vmem:[%s1522_s22 + $0x24] sm:$0xf0]  ;;  %v1208_v42 = vld [vmem:[%s1522_s22 + $0xa0] sm:$0xf]  ;;  %v1325_v44 = vld [vmem:[%s1522_s22 + $0x24] sm:$0xf] }
  0x18   : > { %v1342_v43 = vld [vmem:[%s1522_s22 + $0xa4] sm:$0xf0]  ;;  %v1146_v45 = vld [vmem:[%s1522_s22 + $0x28] sm:$0xf0]  ;;  %v1341_v46 = vld [vmem:[%s1522_s22 + $0xa4] sm:$0xf]  ;;  %v1145_v48 = vor.u32 %v1326_v41, %v1144_v40 }
  0x19   : > { %658 = vmatpush.bf16.msra.mxu0 %v1357_v6  ;;  %1372 = vmatpush.bf16.msra.mxu2 %v1357_v6  ;;  %v1210_v47 = vld [vmem:[%s1522_s22 + $0xa8] sm:$0xf0]  ;;  %v1209_v49 = vor.u32 %v1342_v43, %v1208_v42  ;;  %v1149_v50 = vor.u32 %v1325_v44, %v1146_v45  ;;  %v1152_v52 = vld [vmem:[%s1522_s22 + $0x30] sm:$0xf]  ;;  %v1328_v53 = vld [vmem:[%s1522_s22 + $0x34] sm:$0xf0] }
  0x1a   : > { %747 = vmatpush.bf16.msra.mxu1 %v1365_v7  ;;  %1380 = vmatpush.bf16.msra.mxu3 %v1365_v7  ;;  %v1213_v51 = vor.u32 %v1341_v46, %v1210_v47  ;;  %v1216_v54 = vld [vmem:[%s1522_s22 + $0xb0] sm:$0xf]  ;;  %v1344_v55 = vld [vmem:[%s1522_s22 + $0xb4] sm:$0xf0]  ;;  %v1327_v56 = vld [vmem:[%s1522_s22 + $0x34] sm:$0xf]  ;;  %v1153_v60 = vor.u32 %v1328_v53, %v1152_v52 }
  0x1b   : > { %v1154_v57 = vld [vmem:[%s1522_s22 + $0x38] sm:$0xf0]  ;;  %v1343_v58 = vld [vmem:[%s1522_s22 + $0xb4] sm:$0xf]  ;;  %v1217_v61 = vor.u32 %v1344_v55, %v1216_v54  ;;  %v1160_v0 = vld [vmem:[%s1522_s22 + $0x40] sm:$0xf] }
  0x1c   : > { %v1218_v59 = vld [vmem:[%s1522_s22 + $0xb8] sm:$0xf0]  ;;  %v1157_v62 = vor.u32 %v1327_v56, %v1154_v57  ;;  %v1330_v1 = vld [vmem:[%s1522_s22 + $0x44] sm:$0xf0]  ;;  %v1224_v2 = vld [vmem:[%s1522_s22 + $0xc0] sm:$0xf] }
  0x1d   : > { %659 = vmatpush.bf16.msra.mxu0 %v1356_v8  ;;  %1373 = vmatpush.bf16.msra.mxu2 %v1356_v8  ;;  %v1221_v63 = vor.u32 %v1343_v58, %v1218_v59  ;;  %v1346_v3 = vld [vmem:[%s1522_s22 + $0xc4] sm:$0xf0]  ;;  %v1329_v4 = vld [vmem:[%s1522_s22 + $0x44] sm:$0xf]  ;;  %v1162_v5 = vld [vmem:[%s1522_s22 + $0x48] sm:$0xf0]  ;;  %v1161_v8 = vor.u32 %v1330_v1, %v1160_v0 }
  0x1e   : > { %748 = vmatpush.bf16.msra.mxu1 %v1364_v9  ;;  %1381 = vmatpush.bf16.msra.mxu3 %v1364_v9  ;;  %v1345_v6 = vld [vmem:[%s1522_s22 + $0xc4] sm:$0xf]  ;;  %v1226_v7 = vld [vmem:[%s1522_s22 + $0xc8] sm:$0xf0]  ;;  %v1225_v9 = vor.u32 %v1346_v3, %v1224_v2  ;;  %v1331_v16 = vld [vmem:[%s1522_s22 + $0x54] sm:$0xf] }
  0x1f   : > { %v1170_v17 = vld [vmem:[%s1522_s22 + $0x58] sm:$0xf0]  ;;  %v1347_v18 = vld [vmem:[%s1522_s22 + $0xd4] sm:$0xf]  ;;  %v1333_v28 = vld [vmem:[%s1522_s22 + $0x64] sm:$0xf] }
  0x20   : > { %v1234_v19 = vld [vmem:[%s1522_s22 + $0xd8] sm:$0xf0]  ;;  %v1173_v22 = vor.u32 %v1331_v16, %v1170_v17  ;;  %v1178_v29 = vld [vmem:[%s1522_s22 + $0x68] sm:$0xf0]  ;;  %v1349_v30 = vld [vmem:[%s1522_s22 + $0xe4] sm:$0xf] }
  0x21   : > { %660 = vmatpush.bf16.msra.mxu0 %v1355_v10  ;;  %1374 = vmatpush.bf16.msra.mxu2 %v1355_v10  ;;  %v1165_v10 = vor.u32 %v1329_v4, %v1162_v5  ;;  %v1237_v23 = vor.u32 %v1347_v18, %v1234_v19  ;;  %v1242_v31 = vld [vmem:[%s1522_s22 + $0xe8] sm:$0xf0]  ;;  %v1181_v34 = vor.u32 %v1333_v28, %v1178_v29  ;;  %v1335_v40 = vld [vmem:[%s1522_s22 + $0x74] sm:$0xf]  ;;  %v1186_v41 = vld [vmem:[%s1522_s22 + $0x78] sm:$0xf0] }
  0x22   : > { %749 = vmatpush.bf16.msra.mxu1 %v1363_v11  ;;  %1382 = vmatpush.bf16.msra.mxu3 %v1363_v11  ;;  %v1229_v11 = vor.u32 %v1345_v6, %v1226_v7  ;;  %v1245_v35 = vor.u32 %v1349_v30, %v1242_v31  ;;  %v1351_v42 = vld [vmem:[%s1522_s22 + $0xf4] sm:$0xf]  ;;  %v1250_v43 = vld [vmem:[%s1522_s22 + $0xf8] sm:$0xf0]  ;;  %v1189_v46 = vor.u32 %v1335_v40, %v1186_v41 }
  0x23   : > { %v1253_v47 = vor.u32 %v1351_v42, %v1250_v43 }
  0x25   : > { %661 = vmatpush.bf16.msra.mxu0 %v1354_v12  ;;  %1375 = vmatpush.bf16.msra.mxu2 %v1354_v12  ;;  %v1168_v12 = vld [vmem:[%s1522_s22 + $0x50] sm:$0xf] }
  0x26   : > { %750 = vmatpush.bf16.msra.mxu1 %v1362_v13  ;;  %1383 = vmatpush.bf16.msra.mxu3 %v1362_v13  ;;  %v1332_v13 = vld [vmem:[%s1522_s22 + $0x54] sm:$0xf0] }
  0x27   : > { %v1169_v20 = vor.u32 %v1332_v13, %v1168_v12 }
  0x29   : > { %662 = vmatpush.bf16.msra.mxu0 %v1353_v14  ;;  %1376 = vmatpush.bf16.msra.mxu2 %v1353_v14  ;;  %v1232_v14 = vld [vmem:[%s1522_s22 + $0xd0] sm:$0xf] }
  0x2a   : > { %751 = vmatpush.bf16.msra.mxu1 %v1361_v15  ;;  %1384 = vmatpush.bf16.msra.mxu3 %v1361_v15  ;;  %v1348_v15 = vld [vmem:[%s1522_s22 + $0xd4] sm:$0xf0] }
  0x2b   : > { %v1233_v21 = vor.u32 %v1348_v15, %v1232_v14 }
  0x2c   : > { %663 = vmatmul.bf16.vlgmr.msra.gmra.mxu0 %v1129_v24  ;;  %703 = vmatmul.bf16.vlgmr.msra.gmra.mxu2 %v1193_v25  ;;  %v1176_v24 = vld [vmem:[%s1522_s22 + $0x60] sm:$0xf]  ;;  %v1334_v25 = vld [vmem:[%s1522_s22 + $0x64] sm:$0xf0] }
  0x2d   : > { %752 = vmatmul.bf16.vlgmr.msra.gmra.mxu1 %v1133_v26  ;;  %792 = vmatmul.bf16.vlgmr.msra.gmra.mxu3 %v1197_v27  ;;  %v1240_v26 = vld [vmem:[%s1522_s22 + $0xe0] sm:$0xf]  ;;  %v1350_v27 = vld [vmem:[%s1522_s22 + $0xe4] sm:$0xf0]  ;;  %v1177_v32 = vor.u32 %v1334_v25, %v1176_v24 }
  0x2e   : > { %v1241_v33 = vor.u32 %v1350_v27, %v1240_v26 }
  0x3c   : > { %668 = vmatmul.bf16.gmra.mxu0 %v1137_v36  ;;  %708 = vmatmul.bf16.gmra.mxu2 %v1201_v37  ;;  %v1184_v36 = vld [vmem:[%s1522_s22 + $0x70] sm:$0xf]  ;;  %v1336_v37 = vld [vmem:[%s1522_s22 + $0x74] sm:$0xf0] }
  0x3d   : > { %757 = vmatmul.bf16.gmra.mxu1 %v1141_v38  ;;  %797 = vmatmul.bf16.gmra.mxu3 %v1205_v39  ;;  %v1248_v38 = vld [vmem:[%s1522_s22 + $0xf0] sm:$0xf]  ;;  %v1352_v39 = vld [vmem:[%s1522_s22 + $0xf4] sm:$0xf0]  ;;  %v1185_v44 = vor.u32 %v1336_v37, %v1184_v36 }
  0x3e   : > { %v1249_v45 = vor.u32 %v1352_v39, %v1248_v38 }
  0x4c   : > { %673 = vmatmul.bf16.gmra.mxu0 %v1145_v48  ;;  %713 = vmatmul.bf16.gmra.mxu2 %v1209_v49  ;;  %v1600_v49 = vld [vmem:[%s1684_s2] ss:$0 sm:$0xff] }
  0x4d   : > { %762 = vmatmul.bf16.gmra.mxu1 %v1149_v50  ;;  %802 = vmatmul.bf16.gmra.mxu3 %v1213_v51 }
  0x5c   : > { %678 = vmatmul.bf16.gmra.mxu0 %v1153_v60  ;;  %718 = vmatmul.bf16.gmra.mxu2 %v1217_v61 }
  0x5d   : > { %767 = vmatmul.bf16.gmra.mxu1 %v1157_v62  ;;  %807 = vmatmul.bf16.gmra.mxu3 %v1221_v63 }
  0x6c   : > { %683 = vmatmul.bf16.gmra.mxu0 %v1161_v8  ;;  %723 = vmatmul.bf16.gmra.mxu2 %v1225_v9 }
  0x6d   : > { %772 = vmatmul.bf16.gmra.mxu1 %v1165_v10  ;;  %812 = vmatmul.bf16.gmra.mxu3 %v1229_v11 }
  0x7c   : > { %688 = vmatmul.bf16.gmra.mxu0 %v1169_v20  ;;  %728 = vmatmul.bf16.gmra.mxu2 %v1233_v21 }
  0x7d   : > { %777 = vmatmul.bf16.gmra.mxu1 %v1173_v22  ;;  %817 = vmatmul.bf16.gmra.mxu3 %v1237_v23 }
  0x8c   : > { %693 = vmatmul.bf16.gmra.mxu0 %v1177_v32  ;;  %733 = vmatmul.bf16.gmra.mxu2 %v1241_v33 }
  0x8d   : > { %782 = vmatmul.bf16.gmra.mxu1 %v1181_v34  ;;  %822 = vmatmul.bf16.gmra.mxu3 %v1245_v35 }
  0x9c   : > { %698 = vmatmul.bf16.gmra.mxu0 %v1185_v44  ;;  %738 = vmatmul.bf16.gmra.mxu2 %v1249_v45 }
  0x9d   : > { %787 = vmatmul.bf16.gmra.mxu1 %v1189_v46  ;;  %827 = vmatmul.bf16.gmra.mxu3 %v1253_v47 }
  0xa9   : > { %v664_v48 = vpop.f32.mrf.mxu0 }
  0xaa   : > { %v753_v50 = vpop.f32.mrf.mxu1 }
  0xab   : > { %v754_v51 = vadd.f32 %v753_v50, %v664_v48 }
  0xad   : > { %v936_v52 = vadd.f32 %v1600_v49, %v754_v51 }
  0xaf   : > { %968 = vst [vmem:[%s1607_s7] sm:$0xff] %v936_v52  ;;  %v704_v53 = vpop.f32.mrf.mxu2 }
  0xb0   : > { %v793_v54 = vpop.f32.mrf.mxu3 }
  0xb1   : > { %v794_v55 = vadd.f32 %v793_v54, %v704_v53  ;;  %v666_v56 = vpop.f32.mrf.mxu0 }
  0xb2   : > { %v755_v57 = vpop.f32.mrf.mxu1 }
  0xb3   : > { %v952_v58 = vadd.f32 %v1600_v49, %v794_v55  ;;  %v756_v59 = vadd.f32 %v755_v57, %v666_v56 }
  0xb5   : > { %984 = vst [vmem:[%s1607_s7 + $0x80] sm:$0xff] %v952_v58  ;;  %v937_v60 = vadd.f32 %v1600_v49, %v756_v59 }
  0xb7   : > { %969 = vst [vmem:[%s1607_s7 + $0x8] sm:$0xff] %v937_v60  ;;  %v706_v61 = vpop.f32.mrf.mxu2 }
  0xb8   : > { %v795_v62 = vpop.f32.mrf.mxu3 }
  0xb9   : > { %v796_v63 = vadd.f32 %v795_v62, %v706_v61  ;;  %v669_v0 = vpop.f32.mrf.mxu0 }
  0xba   : > { %v758_v1 = vpop.f32.mrf.mxu1 }
  0xbb   : > { %v953_v2 = vadd.f32 %v1600_v49, %v796_v63  ;;  %v759_v3 = vadd.f32 %v758_v1, %v669_v0 }
  0xbd   : > { %985 = vst [vmem:[%s1607_s7 + $0x88] sm:$0xff] %v953_v2  ;;  %v938_v4 = vadd.f32 %v1600_v49, %v759_v3 }
  0xbf   : > { %970 = vst [vmem:[%s1607_s7 + $0x10] sm:$0xff] %v938_v4  ;;  %v709_v5 = vpop.f32.mrf.mxu2 }
  0xc0   : > { %v798_v6 = vpop.f32.mrf.mxu3 }
  0xc1   : > { %v799_v7 = vadd.f32 %v798_v6, %v709_v5  ;;  %v671_v8 = vpop.f32.mrf.mxu0 }
  0xc2   : > { %v760_v9 = vpop.f32.mrf.mxu1 }
  0xc3   : > { %v954_v10 = vadd.f32 %v1600_v49, %v799_v7  ;;  %v761_v11 = vadd.f32 %v760_v9, %v671_v8 }
  0xc5   : > { %986 = vst [vmem:[%s1607_s7 + $0x90] sm:$0xff] %v954_v10  ;;  %v939_v12 = vadd.f32 %v1600_v49, %v761_v11 }
  0xc7   : > { %971 = vst [vmem:[%s1607_s7 + $0x18] sm:$0xff] %v939_v12  ;;  %v711_v13 = vpop.f32.mrf.mxu2 }
  0xc8   : > { %v800_v14 = vpop.f32.mrf.mxu3 }
  0xc9   : > { %v801_v15 = vadd.f32 %v800_v14, %v711_v13  ;;  %v674_v16 = vpop.f32.mrf.mxu0 }
  0xca   : > { %v763_v17 = vpop.f32.mrf.mxu1 }
  0xcb   : > { %v955_v18 = vadd.f32 %v1600_v49, %v801_v15  ;;  %v764_v19 = vadd.f32 %v763_v17, %v674_v16 }
  0xcd   : > { %987 = vst [vmem:[%s1607_s7 + $0x98] sm:$0xff] %v955_v18  ;;  %v940_v20 = vadd.f32 %v1600_v49, %v764_v19 }
  0xcf   : > { %972 = vst [vmem:[%s1607_s7 + $0x20] sm:$0xff] %v940_v20  ;;  %v714_v21 = vpop.f32.mrf.mxu2 }
  0xd0   : > { %v803_v22 = vpop.f32.mrf.mxu3 }
  0xd1   : > { %v804_v23 = vadd.f32 %v803_v22, %v714_v21  ;;  %v676_v24 = vpop.f32.mrf.mxu0 }
  0xd2   : > { %v765_v25 = vpop.f32.mrf.mxu1 }
  0xd3   : > { %v956_v26 = vadd.f32 %v1600_v49, %v804_v23  ;;  %v766_v27 = vadd.f32 %v765_v25, %v676_v24 }
  0xd5   : > { %988 = vst [vmem:[%s1607_s7 + $0xa0] sm:$0xff] %v956_v26  ;;  %v941_v28 = vadd.f32 %v1600_v49, %v766_v27 }
  0xd7   : > { %973 = vst [vmem:[%s1607_s7 + $0x28] sm:$0xff] %v941_v28  ;;  %v716_v29 = vpop.f32.mrf.mxu2 }
  0xd8   : > { %v805_v30 = vpop.f32.mrf.mxu3 }
  0xd9   : > { %v806_v31 = vadd.f32 %v805_v30, %v716_v29  ;;  %v679_v32 = vpop.f32.mrf.mxu0 }
  0xda   : > { %v768_v33 = vpop.f32.mrf.mxu1 }
  0xdb   : > { %v957_v34 = vadd.f32 %v1600_v49, %v806_v31  ;;  %v769_v35 = vadd.f32 %v768_v33, %v679_v32 }
  0xdd   : > { %989 = vst [vmem:[%s1607_s7 + $0xa8] sm:$0xff] %v957_v34  ;;  %v942_v36 = vadd.f32 %v1600_v49, %v769_v35 }
  0xdf   : > { %974 = vst [vmem:[%s1607_s7 + $0x30] sm:$0xff] %v942_v36  ;;  %v719_v37 = vpop.f32.mrf.mxu2 }
  0xe0   : > { %v808_v38 = vpop.f32.mrf.mxu3 }
  0xe1   : > { %v809_v39 = vadd.f32 %v808_v38, %v719_v37  ;;  %v681_v40 = vpop.f32.mrf.mxu0 }
  0xe2   : > { %v770_v41 = vpop.f32.mrf.mxu1 }
  0xe3   : > { %v958_v42 = vadd.f32 %v1600_v49, %v809_v39  ;;  %v771_v43 = vadd.f32 %v770_v41, %v681_v40 }
  0xe5   : > { %990 = vst [vmem:[%s1607_s7 + $0xb0] sm:$0xff] %v958_v42  ;;  %v943_v44 = vadd.f32 %v1600_v49, %v771_v43 }
  0xe7   : > { %975 = vst [vmem:[%s1607_s7 + $0x38] sm:$0xff] %v943_v44  ;;  %v721_v45 = vpop.f32.mrf.mxu2 }
  0xe8   : > { %v810_v46 = vpop.f32.mrf.mxu3 }
  0xe9   : > { %v811_v47 = vadd.f32 %v810_v46, %v721_v45  ;;  %v684_v48 = vpop.f32.mrf.mxu0 }
  0xea   : > { %v773_v50 = vpop.f32.mrf.mxu1 }
  0xeb   : > { %v959_v51 = vadd.f32 %v1600_v49, %v811_v47  ;;  %v774_v52 = vadd.f32 %v773_v50, %v684_v48 }
  0xed   : > { %991 = vst [vmem:[%s1607_s7 + $0xb8] sm:$0xff] %v959_v51  ;;  %v944_v53 = vadd.f32 %v1600_v49, %v774_v52 }
  0xef   : > { %976 = vst [vmem:[%s1607_s7 + $0x40] sm:$0xff] %v944_v53  ;;  %v724_v54 = vpop.f32.mrf.mxu2 }
  0xf0   : > { %v813_v55 = vpop.f32.mrf.mxu3 }
  0xf1   : > { %v814_v56 = vadd.f32 %v813_v55, %v724_v54  ;;  %v686_v57 = vpop.f32.mrf.mxu0 }
  0xf2   : > { %v775_v58 = vpop.f32.mrf.mxu1 }
  0xf3   : > { %v960_v59 = vadd.f32 %v1600_v49, %v814_v56  ;;  %v776_v60 = vadd.f32 %v775_v58, %v686_v57 }
  0xf5   : > { %992 = vst [vmem:[%s1607_s7 + $0xc0] sm:$0xff] %v960_v59  ;;  %v945_v61 = vadd.f32 %v1600_v49, %v776_v60 }
  0xf7   : > { %977 = vst [vmem:[%s1607_s7 + $0x48] sm:$0xff] %v945_v61  ;;  %v726_v62 = vpop.f32.mrf.mxu2 }
  0xf8   : > { %v815_v63 = vpop.f32.mrf.mxu3 }
  0xf9   : > { %v816_v0 = vadd.f32 %v815_v63, %v726_v62  ;;  %v689_v1 = vpop.f32.mrf.mxu0 }
  0xfa   : > { %v778_v2 = vpop.f32.mrf.mxu1 }
  0xfb   : > { %v961_v3 = vadd.f32 %v1600_v49, %v816_v0  ;;  %v779_v4 = vadd.f32 %v778_v2, %v689_v1 }
  0xfd   : > { %993 = vst [vmem:[%s1607_s7 + $0xc8] sm:$0xff] %v961_v3  ;;  %v946_v5 = vadd.f32 %v1600_v49, %v779_v4 }
  0xff   : > { %978 = vst [vmem:[%s1607_s7 + $0x50] sm:$0xff] %v946_v5  ;;  %v729_v6 = vpop.f32.mrf.mxu2 }
 0x100   : > { %v818_v7 = vpop.f32.mrf.mxu3 }
 0x101   : > { %v819_v8 = vadd.f32 %v818_v7, %v729_v6  ;;  %v691_v9 = vpop.f32.mrf.mxu0 }
 0x102   : > { %v780_v10 = vpop.f32.mrf.mxu1 }
 0x103   : > { %v962_v11 = vadd.f32 %v1600_v49, %v819_v8  ;;  %v781_v12 = vadd.f32 %v780_v10, %v691_v9 }
 0x105   : > { %994 = vst [vmem:[%s1607_s7 + $0xd0] sm:$0xff] %v962_v11  ;;  %v947_v13 = vadd.f32 %v1600_v49, %v781_v12 }
 0x107   : > { %979 = vst [vmem:[%s1607_s7 + $0x58] sm:$0xff] %v947_v13  ;;  %v731_v14 = vpop.f32.mrf.mxu2 }
 0x108   : > { %v820_v15 = vpop.f32.mrf.mxu3 }
 0x109   : > { %v821_v16 = vadd.f32 %v820_v15, %v731_v14  ;;  %v694_v17 = vpop.f32.mrf.mxu0 }
 0x10a   : > { %v783_v18 = vpop.f32.mrf.mxu1 }
 0x10b   : > { %v963_v19 = vadd.f32 %v1600_v49, %v821_v16  ;;  %v784_v20 = vadd.f32 %v783_v18, %v694_v17 }
 0x10d   : > { %995 = vst [vmem:[%s1607_s7 + $0xd8] sm:$0xff] %v963_v19  ;;  %v948_v21 = vadd.f32 %v1600_v49, %v784_v20 }
 0x10f   : > { %980 = vst [vmem:[%s1607_s7 + $0x60] sm:$0xff] %v948_v21  ;;  %v734_v22 = vpop.f32.mrf.mxu2 }
 0x110   : > { %v823_v23 = vpop.f32.mrf.mxu3 }
 0x111   : > { %v824_v24 = vadd.f32 %v823_v23, %v734_v22  ;;  %v696_v25 = vpop.f32.mrf.mxu0 }
 0x112   : > { %v785_v26 = vpop.f32.mrf.mxu1 }
 0x113   : > { %v964_v27 = vadd.f32 %v1600_v49, %v824_v24  ;;  %v786_v28 = vadd.f32 %v785_v26, %v696_v25 }
 0x115   : > { %996 = vst [vmem:[%s1607_s7 + $0xe0] sm:$0xff] %v964_v27  ;;  %v949_v29 = vadd.f32 %v1600_v49, %v786_v28 }
 0x117   : > { %981 = vst [vmem:[%s1607_s7 + $0x68] sm:$0xff] %v949_v29  ;;  %v736_v30 = vpop.f32.mrf.mxu2 }
 0x118   : > { %v825_v31 = vpop.f32.mrf.mxu3 }
 0x119   : > { %v826_v32 = vadd.f32 %v825_v31, %v736_v30  ;;  %v699_v33 = vpop.f32.mrf.mxu0 }
 0x11a   : > { %v788_v34 = vpop.f32.mrf.mxu1 }
 0x11b   : > { %v965_v35 = vadd.f32 %v1600_v49, %v826_v32  ;;  %v789_v36 = vadd.f32 %v788_v34, %v699_v33 }
 0x11d   : > { %997 = vst [vmem:[%s1607_s7 + $0xe8] sm:$0xff] %v965_v35  ;;  %v950_v37 = vadd.f32 %v1600_v49, %v789_v36 }
 0x11f   : > { %982 = vst [vmem:[%s1607_s7 + $0x70] sm:$0xff] %v950_v37  ;;  %v739_v38 = vpop.f32.mrf.mxu2 }
 0x120   : > { %v828_v39 = vpop.f32.mrf.mxu3 }
 0x121   : > { %v829_v40 = vadd.f32 %v828_v39, %v739_v38  ;;  %v701_v41 = vpop.f32.mrf.mxu0 }
 0x122   : > { %v790_v42 = vpop.f32.mrf.mxu1 }
 0x123   : > { %v966_v43 = vadd.f32 %v1600_v49, %v829_v40  ;;  %v791_v44 = vadd.f32 %v790_v42, %v701_v41 }
 0x125   : > { %998 = vst [vmem:[%s1607_s7 + $0xf0] sm:$0xff] %v966_v43  ;;  %v951_v45 = vadd.f32 %v1600_v49, %v791_v44 }
 0x127   : > { %983 = vst [vmem:[%s1607_s7 + $0x78] sm:$0xff] %v951_v45  ;;  %v741_v46 = vpop.f32.mrf.mxu2 }
 0x128   : > { %v830_v47 = vpop.f32.mrf.mxu3 }
 0x129   : > { %v831_v48 = vadd.f32 %v830_v47, %v741_v46 }
 0x12b   : > { %v967_v50 = vadd.f32 %v1600_v49, %v831_v48 }
 0x12d   : > { %999 = vst [vmem:[%s1607_s7 + $0xf8] sm:$0xff] %v967_v50 }
 0x12e PF: > { %s13_s14 = sadd.s32 1, %s1432_s14   ;;  %s1686_s12 = smov %s1428_s13 }
 0x12f   : > { %p10_p5 = scmp.ge.s32.totalorder %s13_s14, 4   ;;  %s1687_s13 = smov %s1689_s15 }
 0x131   :  { %12 = sbr.rel (!%p10_p5) target bundleno = 2 (0x2), region = 76 }

// kernel: g128_forward.43
= control target key start
LH: loop header
LB: loop body
LE: loop exit
PB: predicated region body
PF: predicated region fallthrough
CT: control target
= control target key end

     0   :  { %s1262_s1 = inlined_call_operand.vmem [shape: bf16[384,128], index: 1, kind: input, shape index: {}]   ;;  %s1263_s0 = inlined_call_operand.vmem [shape: bf16[128,384], index: 0, kind: input, shape index: {}]   ;;  %s1264_s2 = inlined_call_operand.vmem [shape: f32[1,128], index: 2, kind: input, shape index: {}]   ;;  %s1265_s3 = inlined_call_operand.vmem [shape: f32[128,128], index: 3, kind: output, shape index: {}]  }
   0x1   :  { %v863_v0 = vld [vmem:[%s1262_s1 + $0x38] sm:$0xff]  ;;  %v862_v3 = vld [vmem:[%s1262_s1 + $0x30] sm:$0xff]  ;;  %v861_v6 = vld [vmem:[%s1262_s1 + $0x28] sm:$0xff] }
   0x2   :  { %v931_v1 = vld [vmem:[%s1262_s1 + $0x78] sm:$0xff]  ;;  %402 = vmatpush.bf16.msra.mxu0 %v863_v0  ;;  %880 = vmatpush.bf16.msra.mxu3 %v863_v0  ;;  %v946_v4 = vld [vmem:[%s1262_s1 + $0x70] sm:$0xff]  ;;  %v869_v7 = vld [vmem:[%s1262_s1 + $0x68] sm:$0xff] }
   0x3   :  { %v936_v2 = vld [vmem:[%s1262_s1 + $0xb8] sm:$0xff]  ;;  %451 = vmatpush.bf16.msra.mxu1 %v931_v1  ;;  %v951_v5 = vld [vmem:[%s1262_s1 + $0xb0] sm:$0xff]  ;;  %v964_v8 = vld [vmem:[%s1262_s1 + $0xa8] sm:$0xff] }
   0x4   :  { %500 = vmatpush.bf16.msra.mxu2 %v936_v2  ;;  %v860_v9 = vld [vmem:[%s1262_s1 + $0x20] sm:$0xff]  ;;  %v859_v12 = vld [vmem:[%s1262_s1 + $0x18] sm:$0xff]  ;;  %v858_v15 = vld [vmem:[%s1262_s1 + $0x10] sm:$0xff] }
   0x5   :  { %v868_v10 = vld [vmem:[%s1262_s1 + $0x60] sm:$0xff]  ;;  %v867_v13 = vld [vmem:[%s1262_s1 + $0x58] sm:$0xff]  ;;  %v866_v16 = vld [vmem:[%s1262_s1 + $0x50] sm:$0xff] }
   0x6   :  { %403 = vmatpush.bf16.msra.mxu0 %v862_v3  ;;  %881 = vmatpush.bf16.msra.mxu3 %v862_v3  ;;  %v976_v11 = vld [vmem:[%s1262_s1 + $0xa0] sm:$0xff]  ;;  %v988_v14 = vld [vmem:[%s1262_s1 + $0x98] sm:$0xff]  ;;  %v1000_v17 = vld [vmem:[%s1262_s1 + $0x90] sm:$0xff] }
   0x7   :  { %452 = vmatpush.bf16.msra.mxu1 %v946_v4  ;;  %v857_v18 = vld [vmem:[%s1262_s1 + $0x8] sm:$0xff]  ;;  %v856_v21 = vld [vmem:[%s1262_s1] sm:$0xff]  ;;  %v714_v26 = vld [vmem:[%s1263_s0 + $0x90] sm:$0xf] }
   0x8   :  { %501 = vmatpush.bf16.msra.mxu2 %v951_v5  ;;  %v865_v19 = vld [vmem:[%s1262_s1 + $0x48] sm:$0xff]  ;;  %v864_v22 = vld [vmem:[%s1262_s1 + $0x40] sm:$0xff]  ;;  %v851_v27 = vld [vmem:[%s1263_s0 + $0x98] sm:$0xf0] }
   0x9   :  { %v1012_v20 = vld [vmem:[%s1262_s1 + $0x88] sm:$0xff]  ;;  %v1023_v23 = vld [vmem:[%s1262_s1 + $0x80] sm:$0xff]  ;;  %v644_v29 = vld [vmem:[%s1263_s0 + $0xc] sm:$0xf0]  ;;  %v715_v33 = vor.u32 %v851_v27, %v714_v26 }
   0xa   :  { %404 = vmatpush.bf16.msra.mxu0 %v861_v6  ;;  %882 = vmatpush.bf16.msra.mxu3 %v861_v6  ;;  %v642_v24 = vld [vmem:[%s1263_s0] sm:$0xf]  ;;  %v833_v25 = vld [vmem:[%s1263_s0 + $0x8] sm:$0xf0]  ;;  %v832_v28 = vld [vmem:[%s1263_s0 + $0x4] sm:$0xf] }
   0xb   :  { %453 = vmatpush.bf16.msra.mxu1 %v869_v7  ;;  %v650_v30 = vld [vmem:[%s1263_s0 + $0x8] sm:$0xf]  ;;  %v834_v31 = vld [vmem:[%s1263_s0 + $0x10] sm:$0xf0]  ;;  %v643_v32 = vor.u32 %v833_v25, %v642_v24  ;;  %v647_v34 = vor.u32 %v832_v28, %v644_v29  ;;  %v654_v36 = vld [vmem:[%s1263_s0 + $0x18] sm:$0xf] }
   0xc   :  { %502 = vmatpush.bf16.msra.mxu2 %v964_v8  ;;  %v651_v35 = vor.u32 %v834_v31, %v650_v30  ;;  %v836_v37 = vld [vmem:[%s1263_s0 + $0x20] sm:$0xf0]  ;;  %v726_v38 = vld [vmem:[%s1263_s0 + $0xa8] sm:$0xf]  ;;  %v854_v39 = vld [vmem:[%s1263_s0 + $0xb0] sm:$0xf0] }
   0xd   :  { %v835_v40 = vld [vmem:[%s1263_s0 + $0x1c] sm:$0xf]  ;;  %v656_v41 = vld [vmem:[%s1263_s0 + $0x24] sm:$0xf0]  ;;  %v662_v42 = vld [vmem:[%s1263_s0 + $0x20] sm:$0xf]  ;;  %v655_v44 = vor.u32 %v836_v37, %v654_v36  ;;  %v727_v45 = vor.u32 %v854_v39, %v726_v38 }
   0xe   :  { %405 = vmatpush.bf16.msra.mxu0 %v860_v9  ;;  %883 = vmatpush.bf16.msra.mxu3 %v860_v9  ;;  %v837_v43 = vld [vmem:[%s1263_s0 + $0x28] sm:$0xf0]  ;;  %v659_v46 = vor.u32 %v835_v40, %v656_v41  ;;  %v666_v48 = vld [vmem:[%s1263_s0 + $0x30] sm:$0xf]  ;;  %v839_v49 = vld [vmem:[%s1263_s0 + $0x38] sm:$0xf0] }
   0xf   :  { %454 = vmatpush.bf16.msra.mxu1 %v868_v10  ;;  %v663_v47 = vor.u32 %v837_v43, %v662_v42  ;;  %v838_v50 = vld [vmem:[%s1263_s0 + $0x34] sm:$0xf]  ;;  %v716_v52 = vld [vmem:[%s1263_s0 + $0x9c] sm:$0xf0]  ;;  %v674_v54 = vld [vmem:[%s1263_s0 + $0x38] sm:$0xf]  ;;  %v667_v56 = vor.u32 %v839_v49, %v666_v48 }
  0x10   :  { %503 = vmatpush.bf16.msra.mxu2 %v976_v11  ;;  %v850_v51 = vld [vmem:[%s1263_s0 + $0x94] sm:$0xf]  ;;  %v668_v53 = vld [vmem:[%s1263_s0 + $0x3c] sm:$0xf0]  ;;  %v840_v55 = vld [vmem:[%s1263_s0 + $0x40] sm:$0xf0] }
  0x11   :  { %v719_v57 = vor.u32 %v850_v51, %v716_v52  ;;  %v671_v58 = vor.u32 %v838_v50, %v668_v53  ;;  %v675_v59 = vor.u32 %v840_v55, %v674_v54  ;;  %v678_v60 = vld [vmem:[%s1263_s0 + $0x48] sm:$0xf]  ;;  %v842_v61 = vld [vmem:[%s1263_s0 + $0x50] sm:$0xf0]  ;;  %v841_v62 = vld [vmem:[%s1263_s0 + $0x4c] sm:$0xf] }
  0x12   :  { %406 = vmatpush.bf16.msra.mxu0 %v859_v12  ;;  %884 = vmatpush.bf16.msra.mxu3 %v859_v12  ;;  %v853_v63 = vld [vmem:[%s1263_s0 + $0xac] sm:$0xf]  ;;  %v728_v0 = vld [vmem:[%s1263_s0 + $0xb4] sm:$0xf0]  ;;  %v843_v3 = vld [vmem:[%s1263_s0 + $0x58] sm:$0xf0] }
  0x13   :  { %455 = vmatpush.bf16.msra.mxu1 %v867_v13  ;;  %v845_v9 = vld [vmem:[%s1263_s0 + $0x68] sm:$0xf0]  ;;  %v852_v12 = vld [vmem:[%s1263_s0 + $0xa0] sm:$0xf0]  ;;  %v855_v24 = vld [vmem:[%s1263_s0 + $0xb8] sm:$0xf0] }
  0x14   :  { %504 = vmatpush.bf16.msra.mxu2 %v988_v14  ;;  %v704_v25 = vld [vmem:[%s1263_s0 + $0x84] sm:$0xf0]  ;;  %v710_v26 = vld [vmem:[%s1263_s0 + $0x80] sm:$0xf]  ;;  %v849_v27 = vld [vmem:[%s1263_s0 + $0x88] sm:$0xf0] }
  0x15   :  { %v711_v31 = vor.u32 %v849_v27, %v710_v26  ;;  %v1186_v36 = vld [vmem:[%s1264_s2] ss:$0 sm:$0xff] }
  0x16   :  { %407 = vmatpush.bf16.msra.mxu0 %v858_v15  ;;  %885 = vmatpush.bf16.msra.mxu3 %v858_v15  ;;  %v846_v15 = vld [vmem:[%s1263_s0 + $0x70] sm:$0xf0] }
  0x17   :  { %456 = vmatpush.bf16.msra.mxu1 %v866_v16 }
  0x18   :  { %505 = vmatpush.bf16.msra.mxu2 %v1000_v17 }
  0x1a   :  { %408 = vmatpush.bf16.msra.mxu0 %v857_v18  ;;  %886 = vmatpush.bf16.msra.mxu3 %v857_v18 }
  0x1b   :  { %457 = vmatpush.bf16.msra.mxu1 %v865_v19 }
  0x1c   :  { %506 = vmatpush.bf16.msra.mxu2 %v1012_v20 }
  0x1e   :  { %409 = vmatpush.bf16.msra.mxu0 %v856_v21  ;;  %887 = vmatpush.bf16.msra.mxu3 %v856_v21  ;;  %v848_v21 = vld [vmem:[%s1263_s0 + $0x80] sm:$0xf0] }
  0x1f   :  { %458 = vmatpush.bf16.msra.mxu1 %v864_v22 }
  0x20   :  { %507 = vmatpush.bf16.msra.mxu2 %v1023_v23 }
  0x21   :  { %410 = vmatmul.bf16.vlgmr.msra.gmra.mxu0 %v643_v32  ;;  %440 = vmatmul.bf16.vlgmr.msra.gmra.mxu3 %v715_v33 }
  0x22   :  { %888 = vmatpush.bf16.msrb.mxu3 %v931_v1  ;;  %459 = vmatmul.bf16.vlgmr.msra.gmra.mxu1 %v647_v34  ;;  %v680_v1 = vld [vmem:[%s1263_s0 + $0x54] sm:$0xf0] }
  0x23   :  { %508 = vmatmul.bf16.vlgmr.msra.gmra.mxu2 %v651_v35  ;;  %v683_v6 = vor.u32 %v841_v62, %v680_v1 }
  0x26   :  { %889 = vmatpush.bf16.msrb.mxu3 %v946_v4  ;;  %v679_v4 = vor.u32 %v842_v61, %v678_v60 }
  0x2a   :  { %890 = vmatpush.bf16.msrb.mxu3 %v869_v7 }
  0x2e   :  { %891 = vmatpush.bf16.msrb.mxu3 %v868_v10  ;;  %v844_v10 = vld [vmem:[%s1263_s0 + $0x64] sm:$0xf] }
  0x31   :  { %415 = vmatmul.bf16.gmra.mxu0 %v655_v44  ;;  %445 = vmatmul.bf16.gmra.mxu3 %v727_v45 }
  0x32   :  { %892 = vmatpush.bf16.msrb.mxu3 %v867_v13  ;;  %464 = vmatmul.bf16.gmra.mxu1 %v659_v46  ;;  %v692_v13 = vld [vmem:[%s1263_s0 + $0x6c] sm:$0xf0] }
  0x33   :  { %513 = vmatmul.bf16.gmra.mxu2 %v663_v47  ;;  %v695_v18 = vor.u32 %v844_v10, %v692_v13 }
  0x36   :  { %893 = vmatpush.bf16.msrb.mxu3 %v866_v16 }
  0x3a   :  { %894 = vmatpush.bf16.msrb.mxu3 %v865_v19 }
  0x3e   :  { %895 = vmatpush.bf16.msrb.mxu3 %v864_v22  ;;  %v847_v22 = vld [vmem:[%s1263_s0 + $0x7c] sm:$0xf] }
  0x3f   :  { %v707_v30 = vor.u32 %v847_v22, %v704_v25 }
  0x41   :  { %420 = vmatmul.bf16.gmra.mxu0 %v667_v56  ;;  %489 = vmatmul.bf16.vlgmr.msrb.gmra.mxu3 %v719_v57 }
  0x42   :  { %896 = vmatpush.bf16.msra.mxu3 %v936_v2  ;;  %469 = vmatmul.bf16.gmra.mxu1 %v671_v58  ;;  %v686_v2 = vld [vmem:[%s1263_s0 + $0x50] sm:$0xf] }
  0x43   :  { %518 = vmatmul.bf16.gmra.mxu2 %v675_v59  ;;  %v687_v7 = vor.u32 %v843_v3, %v686_v2 }
  0x46   :  { %897 = vmatpush.bf16.msra.mxu3 %v951_v5  ;;  %v731_v5 = vor.u32 %v853_v63, %v728_v0 }
  0x4a   :  { %898 = vmatpush.bf16.msra.mxu3 %v964_v8  ;;  %v690_v8 = vld [vmem:[%s1263_s0 + $0x60] sm:$0xf] }
  0x4b   :  { %v691_v16 = vor.u32 %v845_v9, %v690_v8 }
  0x4e   :  { %899 = vmatpush.bf16.msra.mxu3 %v976_v11  ;;  %v722_v11 = vld [vmem:[%s1263_s0 + $0x98] sm:$0xf] }
  0x51   :  { %425 = vmatmul.bf16.gmra.mxu0 %v679_v4  ;;  %494 = vmatmul.bf16.gmra.mxu3 %v731_v5 }
  0x52   :  { %900 = vmatpush.bf16.msra.mxu3 %v988_v14  ;;  %474 = vmatmul.bf16.gmra.mxu1 %v683_v6  ;;  %v698_v14 = vld [vmem:[%s1263_s0 + $0x68] sm:$0xf] }
  0x53   :  { %523 = vmatmul.bf16.gmra.mxu2 %v687_v7  ;;  %v699_v19 = vor.u32 %v846_v15, %v698_v14 }
  0x56   :  { %901 = vmatpush.bf16.msra.mxu3 %v1000_v17  ;;  %v723_v17 = vor.u32 %v852_v12, %v722_v11 }
  0x5a   :  { %902 = vmatpush.bf16.msra.mxu3 %v1012_v20  ;;  %v702_v20 = vld [vmem:[%s1263_s0 + $0x78] sm:$0xf] }
  0x5b   :  { %v703_v28 = vor.u32 %v848_v21, %v702_v20 }
  0x5e   :  { %903 = vmatpush.bf16.msra.mxu3 %v1023_v23  ;;  %v734_v23 = vld [vmem:[%s1263_s0 + $0xb0] sm:$0xf] }
  0x5f   :  { %v735_v29 = vor.u32 %v855_v24, %v734_v23 }
  0x61   :  { %430 = vmatmul.bf16.gmra.mxu0 %v691_v16  ;;  %538 = vmatmul.bf16.vlgmr.msra.gmra.mxu3 %v723_v17 }
  0x62   :  { %479 = vmatmul.bf16.gmra.mxu1 %v695_v18 }
  0x63   :  { %528 = vmatmul.bf16.gmra.mxu2 %v699_v19 }
  0x71   :  { %435 = vmatmul.bf16.gmra.mxu0 %v703_v28  ;;  %543 = vmatmul.bf16.gmra.mxu3 %v735_v29 }
  0x72   :  { %484 = vmatmul.bf16.gmra.mxu1 %v707_v30 }
  0x73   :  { %533 = vmatmul.bf16.gmra.mxu2 %v711_v31 }
  0x9e   :  { %v411_v32 = vpop.f32.mrf.mxu0 }
  0x9f   :  { %v460_v33 = vpop.f32.mrf.mxu1 }
  0xa0   :  { %v461_v34 = vadd.f32 %v460_v33, %v411_v32 }
  0xa4   :  { %v1181_v35 = vpop.f32.mrf.mxu3 }
  0xa6   :  { %v509_v37 = vpop.f32.mrf.mxu2  ;;  %v413_v39 = vpop.f32.mrf.mxu0 }
  0xa7   :  { %v510_v38 = vadd.f32 %v509_v37, %v461_v34  ;;  %v462_v40 = vpop.f32.mrf.mxu1 }
  0xa8   :  { %v463_v42 = vadd.f32 %v462_v40, %v413_v39 }
  0xa9   :  { %v604_v41 = vadd.f32 %v1186_v36, %v510_v38 }
  0xab   :  { %620 = vst [vmem:[%s1265_s3] sm:$0xff] %v604_v41 }
  0xac   :  { %v1192_v43 = vpop.f32.mrf.mxu3 }
  0xae   :  { %v511_v44 = vpop.f32.mrf.mxu2  ;;  %v416_v46 = vpop.f32.mrf.mxu0 }
  0xaf   :  { %v512_v45 = vadd.f32 %v511_v44, %v463_v42  ;;  %v465_v47 = vpop.f32.mrf.mxu1 }
  0xb0   :  { %v466_v49 = vadd.f32 %v465_v47, %v416_v46 }
  0xb1   :  { %v605_v48 = vadd.f32 %v1186_v36, %v512_v45 }
  0xb3   :  { %621 = vst [vmem:[%s1265_s3 + $0x8] sm:$0xff] %v605_v48 }
  0xb4   :  { %v1198_v50 = vpop.f32.mrf.mxu3 }
  0xb6   :  { %v514_v51 = vpop.f32.mrf.mxu2  ;;  %v418_v53 = vpop.f32.mrf.mxu0 }
  0xb7   :  { %v515_v52 = vadd.f32 %v514_v51, %v466_v49  ;;  %v467_v54 = vpop.f32.mrf.mxu1 }
  0xb8   :  { %v468_v56 = vadd.f32 %v467_v54, %v418_v53 }
  0xb9   :  { %v606_v55 = vadd.f32 %v1186_v36, %v515_v52 }
  0xbb   :  { %622 = vst [vmem:[%s1265_s3 + $0x10] sm:$0xff] %v606_v55 }
  0xbc   :  { %v1204_v57 = vpop.f32.mrf.mxu3 }
  0xbe   :  { %v516_v58 = vpop.f32.mrf.mxu2  ;;  %v421_v60 = vpop.f32.mrf.mxu0 }
  0xbf   :  { %v517_v59 = vadd.f32 %v516_v58, %v468_v56  ;;  %v470_v61 = vpop.f32.mrf.mxu1 }
  0xc0   :  { %v471_v63 = vadd.f32 %v470_v61, %v421_v60 }
  0xc1   :  { %v607_v62 = vadd.f32 %v1186_v36, %v517_v59 }
  0xc3   :  { %623 = vst [vmem:[%s1265_s3 + $0x18] sm:$0xff] %v607_v62 }
  0xc4   :  { %v490_v0 = vpop.f32.mrf.mxu3 }
  0xc5   :  { %v491_v28 = vadd.f32 %v490_v0, %v1181_v35 }
  0xc6   :  { %v519_v1 = vpop.f32.mrf.mxu2  ;;  %v423_v3 = vpop.f32.mrf.mxu0 }
  0xc7   :  { %v520_v2 = vadd.f32 %v519_v1, %v471_v63  ;;  %v472_v4 = vpop.f32.mrf.mxu1 }
  0xc8   :  { %v473_v6 = vadd.f32 %v472_v4, %v423_v3 }
  0xc9   :  { %v608_v5 = vadd.f32 %v1186_v36, %v520_v2 }
  0xcb   :  { %624 = vst [vmem:[%s1265_s3 + $0x20] sm:$0xff] %v608_v5 }
  0xcc   :  { %v492_v7 = vpop.f32.mrf.mxu3 }
  0xcd   :  { %v493_v35 = vadd.f32 %v492_v7, %v1192_v43 }
  0xce   :  { %v521_v8 = vpop.f32.mrf.mxu2  ;;  %v426_v10 = vpop.f32.mrf.mxu0 }
  0xcf   :  { %v522_v9 = vadd.f32 %v521_v8, %v473_v6  ;;  %v475_v11 = vpop.f32.mrf.mxu1 }
  0xd0   :  { %v476_v13 = vadd.f32 %v475_v11, %v426_v10 }
  0xd1   :  { %v609_v12 = vadd.f32 %v1186_v36, %v522_v9 }
  0xd3   :  { %625 = vst [vmem:[%s1265_s3 + $0x28] sm:$0xff] %v609_v12 }
  0xd4   :  { %v495_v14 = vpop.f32.mrf.mxu3 }
  0xd5   :  { %v496_v49 = vadd.f32 %v495_v14, %v1198_v50 }
  0xd6   :  { %v524_v15 = vpop.f32.mrf.mxu2  ;;  %v428_v17 = vpop.f32.mrf.mxu0 }
  0xd7   :  { %v525_v16 = vadd.f32 %v524_v15, %v476_v13  ;;  %v477_v18 = vpop.f32.mrf.mxu1 }
  0xd8   :  { %v478_v20 = vadd.f32 %v477_v18, %v428_v17 }
  0xd9   :  { %v610_v19 = vadd.f32 %v1186_v36, %v525_v16 }
  0xdb   :  { %626 = vst [vmem:[%s1265_s3 + $0x30] sm:$0xff] %v610_v19 }
  0xdc   :  { %v497_v21 = vpop.f32.mrf.mxu3 }
  0xdd   :  { %v498_v50 = vadd.f32 %v497_v21, %v1204_v57 }
  0xde   :  { %v526_v22 = vpop.f32.mrf.mxu2  ;;  %v431_v24 = vpop.f32.mrf.mxu0 }
  0xdf   :  { %v527_v23 = vadd.f32 %v526_v22, %v478_v20  ;;  %v480_v25 = vpop.f32.mrf.mxu1 }
  0xe0   :  { %v481_v27 = vadd.f32 %v480_v25, %v431_v24 }
  0xe1   :  { %v611_v26 = vadd.f32 %v1186_v36, %v527_v23 }
  0xe3   :  { %627 = vst [vmem:[%s1265_s3 + $0x38] sm:$0xff] %v611_v26 }
  0xe4   :  { %v539_v29 = vpop.f32.mrf.mxu3 }
  0xe5   :  { %v540_v31 = vadd.f32 %v539_v29, %v491_v28 }
  0xe6   :  { %v529_v30 = vpop.f32.mrf.mxu2  ;;  %v433_v33 = vpop.f32.mrf.mxu0 }
  0xe7   :  { %v530_v32 = vadd.f32 %v529_v30, %v481_v27  ;;  %v616_v34 = vadd.f32 %v1186_v36, %v540_v31  ;;  %v482_v37 = vpop.f32.mrf.mxu1 }
  0xe8   :  { %v483_v39 = vadd.f32 %v482_v37, %v433_v33 }
  0xe9   :  { %v612_v38 = vadd.f32 %v1186_v36, %v530_v32  ;;  %632 = vst [vmem:[%s1265_s3 + $0x60] sm:$0xff] %v616_v34 }
  0xeb   :  { %628 = vst [vmem:[%s1265_s3 + $0x40] sm:$0xff] %v612_v38 }
  0xec   :  { %v541_v40 = vpop.f32.mrf.mxu3 }
  0xed   :  { %v542_v42 = vadd.f32 %v541_v40, %v493_v35 }
  0xee   :  { %v531_v41 = vpop.f32.mrf.mxu2  ;;  %v436_v46 = vpop.f32.mrf.mxu0 }
  0xef   :  { %v532_v44 = vadd.f32 %v531_v41, %v483_v39  ;;  %v617_v45 = vadd.f32 %v1186_v36, %v542_v42  ;;  %v485_v47 = vpop.f32.mrf.mxu1 }
  0xf0   :  { %v486_v43 = vadd.f32 %v485_v47, %v436_v46 }
  0xf1   :  { %v613_v48 = vadd.f32 %v1186_v36, %v532_v44  ;;  %633 = vst [vmem:[%s1265_s3 + $0x68] sm:$0xff] %v617_v45 }
  0xf3   :  { %629 = vst [vmem:[%s1265_s3 + $0x48] sm:$0xff] %v613_v48 }
  0xf4   :  { %v544_v51 = vpop.f32.mrf.mxu3 }
  0xf5   :  { %v545_v53 = vadd.f32 %v544_v51, %v496_v49 }
  0xf6   :  { %v534_v52 = vpop.f32.mrf.mxu2  ;;  %v438_v58 = vpop.f32.mrf.mxu0 }
  0xf7   :  { %v535_v54 = vadd.f32 %v534_v52, %v486_v43  ;;  %v618_v55 = vadd.f32 %v1186_v36, %v545_v53  ;;  %v487_v59 = vpop.f32.mrf.mxu1 }
  0xf8   :  { %v488_v60 = vadd.f32 %v487_v59, %v438_v58 }
  0xf9   :  { %v614_v56 = vadd.f32 %v1186_v36, %v535_v54  ;;  %634 = vst [vmem:[%s1265_s3 + $0x70] sm:$0xff] %v618_v55 }
  0xfb   :  { %630 = vst [vmem:[%s1265_s3 + $0x50] sm:$0xff] %v614_v56 }
  0xfc   :  { %v546_v61 = vpop.f32.mrf.mxu3 }
  0xfd   :  { %v547_v63 = vadd.f32 %v546_v61, %v498_v50 }
  0xfe   :  { %v536_v62 = vpop.f32.mrf.mxu2 }
  0xff   :  { %v537_v0 = vadd.f32 %v536_v62, %v488_v60  ;;  %v619_v1 = vadd.f32 %v1186_v36, %v547_v63 }
 0x101   :  { %v615_v2 = vadd.f32 %v1186_v36, %v537_v0  ;;  %635 = vst [vmem:[%s1265_s3 + $0x78] sm:$0xff] %v619_v1 }
 0x103   :  { %631 = vst [vmem:[%s1265_s3 + $0x58] sm:$0xff] %v615_v2 }

// kernel: g128_forward.44
= control target key start
LH: loop header
LB: loop body
LE: loop exit
PB: predicated region body
PF: predicated region fallthrough
CT: control target
= control target key end

     0   :  { %s418_s12 = smov 0   ;;  %s472_s0 = inlined_call_operand.vmem [shape: f32[2,64,64], index: 0, kind: input, shape index: {}]   ;;  %s473_s1 = inlined_call_operand.vmem [shape: f32[1,64], index: 1, kind: input, shape index: {}]   ;;  %s474_s2 = inlined_call_operand.vmem [shape: f32[1,64], index: 2, kind: input, shape index: {}]   ;;  %s475_s3 = inlined_call_operand.vmem [shape: f32[2,64,64], index: 3, kind: output, shape index: {}]  }
   0x1 LB: > { %s361_s13 = sadd.s32 4294967295, %s395_s12   ;;  %p365_p0 = scmp.ge.s32.totalorder %s395_s12, 1  ;;  %s395_s12 = sphi %s418_s12, %s13_s12  }
   0x2   : > { %p137_p1 = scmp.lt.s32.totalorder %s395_s12, 3 }
   0x4   : > { %p138_p2 = pnand %p365_p0, %p137_p1 }
   0x5   : > { %p161_p3 = scmp.lt.s32.totalorder (!%p138_p2), %s361_s13, 1 }
   0x6   : > { %141 = sbr.rel (%p138_p2) target bundleno = 113 (0x71), region = 32 }
   0xb   : > { %s477_s13 = smov (!%p161_p3, %s361_s13), 1  ;;  %vm179_vm0 = vcmask 523264   ;;  %v397_v3 = vmov 64.0  }
   0xc   : > { %s372_s14 = sshll.u32 %s477_s13, 6  ;;  %385 = vrcp.f32 %v397_v3 }
   0xd   : > { %s165_s17 = scalar_lea.vmem %s472_s0, %s372_s14  ;;  %s170_s24 = scalar_lea.vmem %s475_s3, %s372_s14 }
   0xe   : > { %v171_v0 = vld [vmem:[%s165_s17] sm:$0xff]  ;;  %v172_v1 = vld [vmem:[%s165_s17 + $0x8] sm:$0xff]  ;;  %v173_v2 = vld [vmem:[%s165_s17 + $0x10] sm:$0xff] }
   0xf   : > { %v174_v4 = vld [vmem:[%s165_s17 + $0x18] sm:$0xff]  ;;  %v180_v5 = vsel %vm179_vm0, %v171_v0, 0.0  ;;  %v181_v6 = vsel %vm179_vm0, %v172_v1, 0.0  ;;  %v183_v7 = vsel %vm179_vm0, %v173_v2, 0.0  ;;  %v175_v8 = vld [vmem:[%s165_s17 + $0x20] sm:$0xff]  ;;  %v176_v11 = vld [vmem:[%s165_s17 + $0x28] sm:$0xff] }
  0x10   : > { %v182_v9 = vadd.f32 %v181_v6, %v180_v5  ;;  %v185_v10 = vsel %vm179_vm0, %v174_v4, 0.0  ;;  %v187_v13 = vsel %vm179_vm0, %v175_v8, 0.0  ;;  %v177_v15 = vld [vmem:[%s165_s17 + $0x30] sm:$0xff]  ;;  %v189_v17 = vsel %vm179_vm0, %v176_v11, 0.0  ;;  %v178_v18 = vld [vmem:[%s165_s17 + $0x38] sm:$0xff] }
  0x11   : > { %v191_v20 = vsel %vm179_vm0, %v177_v15, 0.0  ;;  %v193_v23 = vsel %vm179_vm0, %v178_v18, 0.0 }
  0x12   : > { %v184_v12 = vadd.f32 %v183_v7, %v182_v9  ;;  %v386_v14 = vpop.eup %385 }
  0x13   : > { %v202_v21 = vmul.f32 64.0, %v386_v14  ;;  %vm206_vm1 = vweird.f32 %v386_v14 }
  0x14   : > { %v186_v16 = vadd.f32 %v185_v10, %v184_v12 }
  0x15   : > { %v203_v25 = vsub.f32 1.0, %v202_v21  ;;  %v384_v21 = vld [vmem:[%s474_s2] ss:$0 sm:$0xff] }
  0x16   : > { %v188_v19 = vadd.f32 %v187_v13, %v186_v16 }
  0x17   : > { %v204_v28 = vmul.f32 %v386_v14, %v203_v25 }
  0x18   : > { %v190_v22 = vadd.f32 %v189_v17, %v188_v19 }
  0x19   : > { %v205_v31 = vadd.f32 %v386_v14, %v204_v28 }
  0x1a   : > { %v192_v24 = vadd.f32 %v191_v20, %v190_v22 }
  0x1b   : > { %v207_v34 = vsel %vm206_vm1, %v386_v14, %v205_v31 }
  0x1c   : > { %v194_v26 = vadd.f32 %v193_v23, %v192_v24 }
  0x1e   : > { %v195_v27 = vrot.slane %v194_v26, 4 }
  0x20   : > { %v196_v29 = vadd.f32 %v195_v27, %v194_v26 }
  0x22   : > { %v197_v30 = vrot.slane %v196_v29, 2 }
  0x24   : > { %v198_v32 = vadd.f32 %v197_v30, %v196_v29 }
  0x26   : > { %v199_v33 = vrot.slane %v198_v32, 1 }
  0x28   : > { %v200_v35 = vadd.f32 %v199_v33, %v198_v32 }
  0x2a   : > { %v208_v36 = vmul.f32 %v207_v34, %v200_v35 }
  0x2c   : > { %v209_v37 = vsub.f32 %v171_v0, %v208_v36  ;;  %v210_v38 = vsub.f32 %v172_v1, %v208_v36  ;;  %v211_v39 = vsub.f32 %v173_v2, %v208_v36  ;;  %v212_v40 = vsub.f32 %v174_v4, %v208_v36 }
  0x2d   : > { %v213_v41 = vsub.f32 %v175_v8, %v208_v36  ;;  %v214_v42 = vsub.f32 %v176_v11, %v208_v36  ;;  %v215_v47 = vsub.f32 %v177_v15, %v208_v36  ;;  %v216_v53 = vsub.f32 %v178_v18, %v208_v36  ;;  %v383_v18 = vld [vmem:[%s473_s1] ss:$0 sm:$0xff] }
  0x2e   : > { %v217_v43 = vmul.f32 %v209_v37, %v209_v37  ;;  %v218_v44 = vmul.f32 %v210_v38, %v210_v38  ;;  %v219_v45 = vmul.f32 %v211_v39, %v211_v39  ;;  %v220_v46 = vmul.f32 %v212_v40, %v212_v40 }
  0x2f   : > { %v221_v48 = vmul.f32 %v213_v41, %v213_v41  ;;  %v222_v54 = vmul.f32 %v214_v42, %v214_v42  ;;  %v223_v57 = vmul.f32 %v215_v47, %v215_v47  ;;  %v224_v60 = vmul.f32 %v216_v53, %v216_v53 }
  0x30   : > { %v225_v49 = vsel %vm179_vm0, %v217_v43, 0.0  ;;  %v226_v50 = vsel %vm179_vm0, %v218_v44, 0.0  ;;  %v228_v51 = vsel %vm179_vm0, %v219_v45, 0.0  ;;  %v230_v55 = vsel %vm179_vm0, %v220_v46, 0.0 }
  0x31   : > { %v227_v52 = vadd.f32 %v226_v50, %v225_v49  ;;  %v232_v58 = vsel %vm179_vm0, %v221_v48, 0.0  ;;  %v234_v61 = vsel %vm179_vm0, %v222_v54, 0.0  ;;  %v236_v63 = vsel %vm179_vm0, %v223_v57, 0.0 }
  0x32   : > { %v238_v1 = vsel %vm179_vm0, %v224_v60, 0.0 }
  0x33   : > { %v229_v56 = vadd.f32 %v228_v51, %v227_v52 }
  0x35   : > { %v231_v59 = vadd.f32 %v230_v55, %v229_v56 }
  0x37   : > { %v233_v62 = vadd.f32 %v232_v58, %v231_v59 }
  0x39   : > { %v235_v0 = vadd.f32 %v234_v61, %v233_v62 }
  0x3b   : > { %v237_v2 = vadd.f32 %v236_v63, %v235_v0 }
  0x3d   : > { %v239_v3 = vadd.f32 %v238_v1, %v237_v2 }
  0x3f   : > { %v240_v4 = vrot.slane %v239_v3, 4 }
  0x41   : > { %v241_v5 = vadd.f32 %v240_v4, %v239_v3 }
  0x43   : > { %v242_v6 = vrot.slane %v241_v5, 2 }
  0x45   : > { %v243_v7 = vadd.f32 %v242_v6, %v241_v5 }
  0x47   : > { %v244_v8 = vrot.slane %v243_v7, 1 }
  0x49   : > { %v245_v9 = vadd.f32 %v244_v8, %v243_v7 }
  0x4b   : > { %v246_v10 = vmul.f32 %v245_v9, %v207_v34 }
  0x4d   : > { %v247_v11 = vadd.f32 1e-05, %v246_v10 }
  0x4f   : > { %387 = vrsqrt.f32 %v247_v11  ;;  %vm254_vm2 = vweird.f32 %v247_v11 }
  0x55   : > { %v388_v12 = vpop.eup %387 }
  0x56   : > { %v249_v13 = vmul.f32 %v388_v12, %v247_v11  ;;  %vm255_vm3 = vweird.f32 %v388_v12 }
  0x57   : > { %vm256_vm4 = vmor %vm254_vm2, %vm255_vm3 }
  0x58   : > { %v250_v14 = vmul.f32 %v388_v12, %v249_v13 }
  0x5a   : > { %v251_v15 = vmul.f32 0.5, %v250_v14 }
  0x5c   : > { %v252_v16 = vsub.f32 1.5, %v251_v15 }
  0x5e   : > { %v253_v17 = vmul.f32 %v388_v12, %v252_v16 }
  0x60   : > { %v257_v19 = vsel %vm256_vm4, %v388_v12, %v253_v17 }
  0x61   : > { %v258_v20 = vmul.f32 %v257_v19, %v209_v37  ;;  %v259_v22 = vmul.f32 %v257_v19, %v210_v38  ;;  %v260_v23 = vmul.f32 %v257_v19, %v211_v39  ;;  %v261_v24 = vmul.f32 %v257_v19, %v212_v40 }
  0x62   : > { %v262_v25 = vmul.f32 %v257_v19, %v213_v41  ;;  %v263_v26 = vmul.f32 %v257_v19, %v214_v42  ;;  %v264_v27 = vmul.f32 %v257_v19, %v215_v47  ;;  %v265_v28 = vmul.f32 %v257_v19, %v216_v53 }
  0x63   : > { %v270_v29 = vmul.f32 %v383_v18, %v258_v20  ;;  %v271_v30 = vmul.f32 %v383_v18, %v259_v22  ;;  %v272_v31 = vmul.f32 %v383_v18, %v260_v23  ;;  %v273_v32 = vmul.f32 %v383_v18, %v261_v24 }
  0x64   : > { %v274_v33 = vmul.f32 %v383_v18, %v262_v25  ;;  %v275_v34 = vmul.f32 %v383_v18, %v263_v26  ;;  %v276_v35 = vmul.f32 %v383_v18, %v264_v27  ;;  %v277_v36 = vmul.f32 %v383_v18, %v265_v28 }
  0x65   : > { %v282_v37 = vadd.f32 %v384_v21, %v270_v29  ;;  %v283_v43 = vadd.f32 %v384_v21, %v271_v30  ;;  %v284_v44 = vadd.f32 %v384_v21, %v272_v31  ;;  %v285_v45 = vadd.f32 %v384_v21, %v273_v32 }
  0x66   : > { %v286_v38 = vadd.f32 %v384_v21, %v274_v33  ;;  %v287_v39 = vadd.f32 %v384_v21, %v275_v34  ;;  %v288_v46 = vadd.f32 %v384_v21, %v276_v35  ;;  %v289_v48 = vadd.f32 %v384_v21, %v277_v36 }
  0x67   : > { %v290_v40 = vmax.f32 %v282_v37, 0.0  ;;  %v291_v41 = vmax.f32 %v283_v43, 0.0  ;;  %v292_v42 = vmax.f32 %v284_v44, 0.0  ;;  %v293_v47 = vmax.f32 %v285_v45, 0.0 }
  0x68   : > { %v294_v49 = vmax.f32 %v286_v38, 0.0  ;;  %v295_v50 = vmax.f32 %v287_v39, 0.0  ;;  %v296_v51 = vmax.f32 %v288_v46, 0.0  ;;  %v297_v52 = vmax.f32 %v289_v48, 0.0 }
  0x69   : > { %298 = vst.msk [vmem:[%s170_s24] sm:$0xff] %vm179_vm0, %v290_v40 }
  0x6a   : > { %299 = vst.msk [vmem:[%s170_s24 + $0x8] sm:$0xff] %vm179_vm0, %v291_v41 }
  0x6b   : > { %300 = vst.msk [vmem:[%s170_s24 + $0x10] sm:$0xff] %vm179_vm0, %v292_v42 }
  0x6c   : > { %301 = vst.msk [vmem:[%s170_s24 + $0x18] sm:$0xff] %vm179_vm0, %v293_v47 }
  0x6d   : > { %302 = vst.msk [vmem:[%s170_s24 + $0x20] sm:$0xff] %vm179_vm0, %v294_v49 }
  0x6e   : > { %303 = vst.msk [vmem:[%s170_s24 + $0x28] sm:$0xff] %vm179_vm0, %v295_v50 }
  0x6f   : > { %304 = vst.msk [vmem:[%s170_s24 + $0x30] sm:$0xff] %vm179_vm0, %v296_v51 }
  0x70   : > { %305 = vst.msk [vmem:[%s170_s24 + $0x38] sm:$0xff] %vm179_vm0, %v297_v52 }
  0x71 PF: > { %s13_s12 = sadd.s32 1, %s395_s12  }
  0x72   : > { %p10_p4 = scmp.ge.s32.totalorder %s13_s12, 4  }
  0x74   :  { %12 = sbr.rel (!%p10_p4) target bundleno = 1 (0x1), region = 62 }

// kernel: g128_forward.46
= control target key start
LH: loop header
LB: loop body
LE: loop exit
PB: predicated region body
PF: predicated region fallthrough
CT: control target
= control target key end

     0   :  { %s341_s12 = smov 0   ;;  %s371_s0 = inlined_call_operand.vmem [shape: f32[2,16,128], index: 0, kind: input, shape index: {}]   ;;  %s372_s1 = inlined_call_operand.vmem [shape: f32[1,128], index: 1, kind: input, shape index: {}]   ;;  %s373_s2 = inlined_call_operand.vmem [shape: f32[1,128], index: 2, kind: input, shape index: {}]   ;;  %s374_s3 = inlined_call_operand.vmem [shape: f32[2,16,128], index: 3, kind: output, shape index: {}]  }
   0x1 LB: > { %s284_s13 = sadd.s32 4294967295, %s318_s12   ;;  %p288_p0 = scmp.ge.s32.totalorder %s318_s12, 1  ;;  %s318_s12 = sphi %s341_s12, %s13_s12  }
   0x2   : > { %p137_p1 = scmp.lt.s32.totalorder %s318_s12, 3 }
   0x4   : > { %p138_p2 = pnand %p288_p0, %p137_p1 }
   0x5   : > { %p161_p3 = scmp.lt.s32.totalorder (!%p138_p2), %s284_s13, 1 }
   0x6   : > { %141 = sbr.rel (%p138_p2) target bundleno = 81 (0x51), region = 32 }
   0xb   : > { %v320_v0 = vmov 16.0   ;;  %s376_s13 = smov (!%p161_p3, %s284_s13), 1  ;;  %v306_v36 = vld [vmem:[%s372_s1] ss:$0 sm:$0xff] }
   0xc   : > { %308 = vrcp.f32 %v320_v0  ;;  %s295_s14 = sshll.u32 %s376_s13, 4  ;;  %v307_v39 = vld [vmem:[%s373_s2] ss:$0 sm:$0xff] }
   0xd   : > { %s165_s17 = scalar_lea.vmem %s371_s0, %s295_s14  ;;  %s170_s24 = scalar_lea.vmem %s374_s3, %s295_s14 }
   0xe   : > { %v171_v1 = vld [vmem:[%s165_s17] sm:$0xff]  ;;  %v172_v2 = vld [vmem:[%s165_s17 + $0x8] sm:$0xff] }
   0xf   : > { %v173_v4 = vadd.f32 %v172_v2, %v171_v1 }
  0x11   : > { %v174_v6 = vrot.slane %v173_v4, 4 }
  0x12   : > { %v309_v3 = vpop.eup %308 }
  0x13   : > { %v181_v5 = vmul.f32 16.0, %v309_v3  ;;  %v175_v8 = vadd.f32 %v174_v6, %v173_v4  ;;  %vm185_vm0 = vweird.f32 %v309_v3 }
  0x15   : > { %v182_v7 = vsub.f32 1.0, %v181_v5  ;;  %v176_v10 = vrot.slane %v175_v8, 2 }
  0x17   : > { %v183_v9 = vmul.f32 %v309_v3, %v182_v7  ;;  %v177_v12 = vadd.f32 %v176_v10, %v175_v8 }
  0x19   : > { %v184_v11 = vadd.f32 %v309_v3, %v183_v9  ;;  %v178_v13 = vrot.slane %v177_v12, 1 }
  0x1b   : > { %v186_v14 = vsel %vm185_vm0, %v309_v3, %v184_v11  ;;  %v179_v15 = vadd.f32 %v178_v13, %v177_v12 }
  0x1d   : > { %v187_v16 = vmul.f32 %v186_v14, %v179_v15 }
  0x1f   : > { %v188_v17 = vsub.f32 %v171_v1, %v187_v16  ;;  %v189_v18 = vsub.f32 %v172_v2, %v187_v16 }
  0x21   : > { %v190_v19 = vmul.f32 %v188_v17, %v188_v17  ;;  %v191_v20 = vmul.f32 %v189_v18, %v189_v18 }
  0x23   : > { %v192_v21 = vadd.f32 %v191_v20, %v190_v19 }
  0x25   : > { %v193_v22 = vrot.slane %v192_v21, 4 }
  0x27   : > { %v194_v23 = vadd.f32 %v193_v22, %v192_v21 }
  0x29   : > { %v195_v24 = vrot.slane %v194_v23, 2 }
  0x2b   : > { %v196_v25 = vadd.f32 %v195_v24, %v194_v23 }
  0x2d   : > { %v197_v26 = vrot.slane %v196_v25, 1 }
  0x2f   : > { %v198_v27 = vadd.f32 %v197_v26, %v196_v25 }
  0x31   : > { %v199_v28 = vmul.f32 %v198_v27, %v186_v14 }
  0x33   : > { %v200_v29 = vadd.f32 1e-05, %v199_v28 }
  0x35   : > { %310 = vrsqrt.f32 %v200_v29  ;;  %vm207_vm1 = vweird.f32 %v200_v29 }
  0x3b   : > { %v311_v30 = vpop.eup %310 }
  0x3c   : > { %v202_v31 = vmul.f32 %v311_v30, %v200_v29  ;;  %vm208_vm2 = vweird.f32 %v311_v30 }
  0x3d   : > { %vm209_vm3 = vmor %vm207_vm1, %vm208_vm2 }
  0x3e   : > { %v203_v32 = vmul.f32 %v311_v30, %v202_v31 }
  0x40   : > { %v204_v33 = vmul.f32 0.5, %v203_v32 }
  0x42   : > { %v205_v34 = vsub.f32 1.5, %v204_v33 }
  0x44   : > { %v206_v35 = vmul.f32 %v311_v30, %v205_v34 }
  0x46   : > { %v210_v37 = vsel %vm209_vm3, %v311_v30, %v206_v35 }
  0x47   : > { %v211_v38 = vmul.f32 %v210_v37, %v188_v17  ;;  %v212_v40 = vmul.f32 %v210_v37, %v189_v18 }
  0x49   : > { %v217_v41 = vmul.f32 %v306_v36, %v211_v38  ;;  %v218_v42 = vmul.f32 %v306_v36, %v212_v40 }
  0x4b   : > { %v223_v43 = vadd.f32 %v307_v39, %v217_v41  ;;  %v224_v44 = vadd.f32 %v307_v39, %v218_v42 }
  0x4d   : > { %v225_v45 = vmax.f32 %v223_v43, 0.0  ;;  %v226_v46 = vmax.f32 %v224_v44, 0.0 }
  0x4f   : > { %227 = vst [vmem:[%s170_s24] sm:$0xff] %v225_v45 }
  0x50   : > { %228 = vst [vmem:[%s170_s24 + $0x8] sm:$0xff] %v226_v46 }
  0x51 PF: > { %s13_s12 = sadd.s32 1, %s318_s12  }
  0x52   : > { %p10_p4 = scmp.ge.s32.totalorder %s13_s12, 4  }
  0x54   :  { %12 = sbr.rel (!%p10_p4) target bundleno = 1 (0x1), region = 62 }

// kernel: g128_forward.45
= control target key start
LH: loop header
LB: loop body
LE: loop exit
PB: predicated region body
PF: predicated region fallthrough
CT: control target
= control target key end

     0   :  { %s1010_s1 = inlined_call_operand.vmem [shape: bf16[640,128], index: 1, kind: input, shape index: {}]   ;;  %s1011_s0 = inlined_call_operand.vmem [shape: bf16[32,640], index: 0, kind: input, shape index: {}]   ;;  %s1012_s2 = inlined_call_operand.vmem [shape: f32[1,128], index: 2, kind: input, shape index: {}]   ;;  %s1013_s3 = inlined_call_operand.vmem [shape: f32[32,128], index: 3, kind: output, shape index: {}]  }
   0x1   :  { %v753_v0 = vld [vmem:[%s1010_s1 + $0x38] sm:$0xff]  ;;  %v752_v4 = vld [vmem:[%s1010_s1 + $0x30] sm:$0xff]  ;;  %v751_v8 = vld [vmem:[%s1010_s1 + $0x28] sm:$0xff] }
   0x2   :  { %v761_v1 = vld [vmem:[%s1010_s1 + $0x78] sm:$0xff]  ;;  %410 = vmatpush.bf16.msra.mxu0 %v753_v0  ;;  %v760_v5 = vld [vmem:[%s1010_s1 + $0x70] sm:$0xff]  ;;  %v759_v9 = vld [vmem:[%s1010_s1 + $0x68] sm:$0xff] }
   0x3   :  { %v769_v2 = vld [vmem:[%s1010_s1 + $0xb8] sm:$0xff]  ;;  %429 = vmatpush.bf16.msra.mxu1 %v761_v1  ;;  %v768_v6 = vld [vmem:[%s1010_s1 + $0xb0] sm:$0xff]  ;;  %v767_v10 = vld [vmem:[%s1010_s1 + $0xa8] sm:$0xff] }
   0x4   :  { %v777_v3 = vld [vmem:[%s1010_s1 + $0xf8] sm:$0xff]  ;;  %448 = vmatpush.bf16.msra.mxu2 %v769_v2  ;;  %v776_v7 = vld [vmem:[%s1010_s1 + $0xf0] sm:$0xff]  ;;  %v775_v11 = vld [vmem:[%s1010_s1 + $0xe8] sm:$0xff] }
   0x5   :  { %467 = vmatpush.bf16.msra.mxu3 %v777_v3  ;;  %v750_v12 = vld [vmem:[%s1010_s1 + $0x20] sm:$0xff]  ;;  %v749_v16 = vld [vmem:[%s1010_s1 + $0x18] sm:$0xff]  ;;  %v748_v20 = vld [vmem:[%s1010_s1 + $0x10] sm:$0xff] }
   0x6   :  { %411 = vmatpush.bf16.msra.mxu0 %v752_v4  ;;  %v758_v13 = vld [vmem:[%s1010_s1 + $0x60] sm:$0xff]  ;;  %v757_v17 = vld [vmem:[%s1010_s1 + $0x58] sm:$0xff]  ;;  %v756_v21 = vld [vmem:[%s1010_s1 + $0x50] sm:$0xff] }
   0x7   :  { %430 = vmatpush.bf16.msra.mxu1 %v760_v5  ;;  %v766_v14 = vld [vmem:[%s1010_s1 + $0xa0] sm:$0xff]  ;;  %v765_v18 = vld [vmem:[%s1010_s1 + $0x98] sm:$0xff]  ;;  %v764_v22 = vld [vmem:[%s1010_s1 + $0x90] sm:$0xff] }
   0x8   :  { %449 = vmatpush.bf16.msra.mxu2 %v768_v6  ;;  %v774_v15 = vld [vmem:[%s1010_s1 + $0xe0] sm:$0xff]  ;;  %v773_v19 = vld [vmem:[%s1010_s1 + $0xd8] sm:$0xff]  ;;  %v772_v23 = vld [vmem:[%s1010_s1 + $0xd0] sm:$0xff] }
   0x9   :  { %468 = vmatpush.bf16.msra.mxu3 %v776_v7  ;;  %v747_v24 = vld [vmem:[%s1010_s1 + $0x8] sm:$0xff]  ;;  %v746_v28 = vld [vmem:[%s1010_s1] sm:$0xff]  ;;  %v738_v33 = vld [vmem:[%s1011_s0 + $0x10] sm:$0xf0] }
   0xa   :  { %412 = vmatpush.bf16.msra.mxu0 %v751_v8  ;;  %v755_v25 = vld [vmem:[%s1010_s1 + $0x48] sm:$0xff]  ;;  %v754_v29 = vld [vmem:[%s1010_s1 + $0x40] sm:$0xff]  ;;  %v540_v35 = vld [vmem:[%s1011_s0 + $0x14] sm:$0xf0] }
   0xb   :  { %431 = vmatpush.bf16.msra.mxu1 %v759_v9  ;;  %v763_v26 = vld [vmem:[%s1010_s1 + $0x88] sm:$0xff]  ;;  %v762_v30 = vld [vmem:[%s1010_s1 + $0x80] sm:$0xff]  ;;  %v739_v37 = vld [vmem:[%s1011_s0 + $0x18] sm:$0xf0] }
   0xc   :  { %450 = vmatpush.bf16.msra.mxu2 %v767_v10  ;;  %v771_v27 = vld [vmem:[%s1010_s1 + $0xc8] sm:$0xff]  ;;  %v770_v31 = vld [vmem:[%s1010_s1 + $0xc0] sm:$0xff]  ;;  %v785_v40 = vld [vmem:[%s1010_s1 + $0x138] sm:$0xff] }
   0xd   :  { %469 = vmatpush.bf16.msra.mxu3 %v775_v11  ;;  %v538_v32 = vld [vmem:[%s1011_s0] sm:$0xf]  ;;  %v736_v34 = vld [vmem:[%s1011_s0 + $0x4] sm:$0xf]  ;;  %v546_v36 = vld [vmem:[%s1011_s0 + $0x8] sm:$0xf] }
   0xe   :  { %413 = vmatpush.bf16.msra.mxu0 %v750_v12  ;;  %v737_v38 = vld [vmem:[%s1011_s0 + $0xc] sm:$0xf]  ;;  %v548_v39 = vld [vmem:[%s1011_s0 + $0x1c] sm:$0xf0]  ;;  %v539_v41 = vor.u32 %v738_v33, %v538_v32  ;;  %v543_v42 = vor.u32 %v736_v34, %v540_v35  ;;  %v547_v43 = vor.u32 %v739_v37, %v546_v36  ;;  %v784_v45 = vld [vmem:[%s1010_s1 + $0x130] sm:$0xff] }
   0xf   :  { %432 = vmatpush.bf16.msra.mxu1 %v758_v13  ;;  %v551_v44 = vor.u32 %v737_v38, %v548_v39  ;;  %v783_v46 = vld [vmem:[%s1010_s1 + $0x128] sm:$0xff]  ;;  %v782_v47 = vld [vmem:[%s1010_s1 + $0x120] sm:$0xff]  ;;  %v743_v49 = vld [vmem:[%s1011_s0 + $0x38] sm:$0xf0] }
  0x10   :  { %451 = vmatpush.bf16.msra.mxu2 %v766_v14  ;;  %v558_v48 = vld [vmem:[%s1011_s0 + $0x28] sm:$0xf]  ;;  %v741_v50 = vld [vmem:[%s1011_s0 + $0x2c] sm:$0xf]  ;;  %v560_v51 = vld [vmem:[%s1011_s0 + $0x3c] sm:$0xf0] }
  0x11   :  { %470 = vmatpush.bf16.msra.mxu3 %v774_v15  ;;  %v566_v52 = vld [vmem:[%s1011_s0 + $0x30] sm:$0xf]  ;;  %v744_v53 = vld [vmem:[%s1011_s0 + $0x40] sm:$0xf0]  ;;  %v742_v54 = vld [vmem:[%s1011_s0 + $0x34] sm:$0xf]  ;;  %v559_v57 = vor.u32 %v743_v49, %v558_v48  ;;  %v563_v58 = vor.u32 %v741_v50, %v560_v51 }
  0x12   :  { %414 = vmatpush.bf16.msra.mxu0 %v749_v16  ;;  %v568_v55 = vld [vmem:[%s1011_s0 + $0x44] sm:$0xf0]  ;;  %v781_v56 = vld [vmem:[%s1010_s1 + $0x118] sm:$0xff]  ;;  %v567_v59 = vor.u32 %v744_v53, %v566_v52  ;;  %v780_v61 = vld [vmem:[%s1010_s1 + $0x110] sm:$0xff] }
  0x13   :  { %433 = vmatpush.bf16.msra.mxu1 %v757_v17  ;;  %v571_v60 = vor.u32 %v742_v54, %v568_v55  ;;  %v779_v62 = vld [vmem:[%s1010_s1 + $0x108] sm:$0xff]  ;;  %v778_v63 = vld [vmem:[%s1010_s1 + $0x100] sm:$0xff]  ;;  %v554_v0 = vld [vmem:[%s1011_s0 + $0x10] sm:$0xf] }
  0x14   :  { %452 = vmatpush.bf16.msra.mxu2 %v765_v18  ;;  %v740_v1 = vld [vmem:[%s1011_s0 + $0x20] sm:$0xf0]  ;;  %v574_v2 = vld [vmem:[%s1011_s0 + $0x38] sm:$0xf]  ;;  %v745_v3 = vld [vmem:[%s1011_s0 + $0x48] sm:$0xf0] }
  0x15   :  { %471 = vmatpush.bf16.msra.mxu3 %v773_v19  ;;  %v555_v4 = vor.u32 %v740_v1, %v554_v0  ;;  %v575_v5 = vor.u32 %v745_v3, %v574_v2 }
  0x16   :  { %415 = vmatpush.bf16.msra.mxu0 %v748_v20 }
  0x17   :  { %434 = vmatpush.bf16.msra.mxu1 %v756_v21 }
  0x18   :  { %453 = vmatpush.bf16.msra.mxu2 %v764_v22 }
  0x19   :  { %472 = vmatpush.bf16.msra.mxu3 %v772_v23 }
  0x1a   :  { %416 = vmatpush.bf16.msra.mxu0 %v747_v24 }
  0x1b   :  { %435 = vmatpush.bf16.msra.mxu1 %v755_v25 }
  0x1c   :  { %454 = vmatpush.bf16.msra.mxu2 %v763_v26 }
  0x1d   :  { %473 = vmatpush.bf16.msra.mxu3 %v771_v27  ;;  %v794_v27 = vld [vmem:[%s1012_s2] ss:$0 sm:$0xff] }
  0x1e   :  { %417 = vmatpush.bf16.msra.mxu0 %v746_v28 }
  0x1f   :  { %436 = vmatpush.bf16.msra.mxu1 %v754_v29 }
  0x20   :  { %455 = vmatpush.bf16.msra.mxu2 %v762_v30 }
  0x21   :  { %474 = vmatpush.bf16.msra.mxu3 %v770_v31  ;;  %418 = vmatmul.bf16.vlgmr.msra.gmra.mxu0 %v539_v41 }
  0x22   :  { %486 = vmatpush.bf16.msrb.mxu0 %v785_v40  ;;  %437 = vmatmul.bf16.vlgmr.msra.gmra.mxu1 %v543_v42 }
  0x23   :  { %786 = vmatpush.bf16.msrb.mxu1 %v785_v40  ;;  %456 = vmatmul.bf16.vlgmr.msra.gmra.mxu2 %v547_v43 }
  0x24   :  { %475 = vmatmul.bf16.vlgmr.msra.gmra.mxu3 %v551_v44 }
  0x26   :  { %487 = vmatpush.bf16.msrb.mxu0 %v784_v45 }
  0x27   :  { %787 = vmatpush.bf16.msrb.mxu1 %v784_v45 }
  0x2a   :  { %488 = vmatpush.bf16.msrb.mxu0 %v783_v46 }
  0x2b   :  { %788 = vmatpush.bf16.msrb.mxu1 %v783_v46 }
  0x2e   :  { %489 = vmatpush.bf16.msrb.mxu0 %v782_v47 }
  0x2f   :  { %789 = vmatpush.bf16.msrb.mxu1 %v782_v47 }
  0x31   :  { %423 = vmatmul.bf16.gmra.mxu0 %v559_v57 }
  0x32   :  { %490 = vmatpush.bf16.msrb.mxu0 %v781_v56  ;;  %442 = vmatmul.bf16.gmra.mxu1 %v563_v58 }
  0x33   :  { %790 = vmatpush.bf16.msrb.mxu1 %v781_v56  ;;  %461 = vmatmul.bf16.gmra.mxu2 %v567_v59 }
  0x34   :  { %480 = vmatmul.bf16.gmra.mxu3 %v571_v60 }
  0x36   :  { %491 = vmatpush.bf16.msrb.mxu0 %v780_v61 }
  0x37   :  { %791 = vmatpush.bf16.msrb.mxu1 %v780_v61 }
  0x3a   :  { %492 = vmatpush.bf16.msrb.mxu0 %v779_v62 }
  0x3b   :  { %792 = vmatpush.bf16.msrb.mxu1 %v779_v62 }
  0x3e   :  { %493 = vmatpush.bf16.msrb.mxu0 %v778_v63 }
  0x3f   :  { %793 = vmatpush.bf16.msrb.mxu1 %v778_v63 }
  0x41   :  { %494 = vmatmul.bf16.vlgmr.msrb.gmra.mxu0 %v555_v4 }
  0x42   :  { %499 = vmatmul.bf16.vlgmr.msrb.gmra.mxu1 %v575_v5 }
  0x9e   :  { %v419_v6 = vpop.f32.mrf.mxu0 }
  0x9f   :  { %v438_v7 = vpop.f32.mrf.mxu1 }
  0xa0   :  { %v439_v19 = vadd.f32 %v438_v7, %v419_v6 }
  0xa6   :  { %v457_v8 = vpop.f32.mrf.mxu2  ;;  %v421_v10 = vpop.f32.mrf.mxu0 }
  0xa7   :  { %v476_v9 = vpop.f32.mrf.mxu3  ;;  %v440_v11 = vpop.f32.mrf.mxu1  ;;  %v458_v21 = vadd.f32 %v457_v8, %v439_v19 }
  0xa8   :  { %v441_v30 = vadd.f32 %v440_v11, %v421_v10 }
  0xa9   :  { %v477_v24 = vadd.f32 %v476_v9, %v458_v21 }
  0xae   :  { %v459_v12 = vpop.f32.mrf.mxu2  ;;  %v424_v13 = vpop.f32.mrf.mxu0 }
  0xaf   :  { %v443_v14 = vpop.f32.mrf.mxu1  ;;  %v478_v15 = vpop.f32.mrf.mxu3  ;;  %v460_v34 = vadd.f32 %v459_v12, %v441_v30 }
  0xb0   :  { %v444_v20 = vadd.f32 %v443_v14, %v424_v13 }
  0xb1   :  { %v479_v39 = vadd.f32 %v478_v15, %v460_v34 }
  0xb6   :  { %v462_v16 = vpop.f32.mrf.mxu2  ;;  %v426_v17 = vpop.f32.mrf.mxu0 }
  0xb7   :  { %v445_v18 = vpop.f32.mrf.mxu1  ;;  %v463_v22 = vadd.f32 %v462_v16, %v444_v20  ;;  %v481_v23 = vpop.f32.mrf.mxu3 }
  0xb8   :  { %v446_v31 = vadd.f32 %v445_v18, %v426_v17 }
  0xb9   :  { %v482_v25 = vadd.f32 %v481_v23, %v463_v22 }
  0xbe   :  { %v464_v26 = vpop.f32.mrf.mxu2  ;;  %v495_v28 = vpop.f32.mrf.mxu0 }
  0xbf   :  { %v500_v29 = vpop.f32.mrf.mxu1  ;;  %v496_v32 = vadd.f32 %v495_v28, %v477_v24  ;;  %v465_v35 = vadd.f32 %v464_v26, %v446_v31  ;;  %v483_v38 = vpop.f32.mrf.mxu3 }
  0xc0   :  { %v501_v33 = vadd.f32 %v500_v29, %v482_v25 }
  0xc1   :  { %v524_v36 = vadd.f32 %v794_v27, %v496_v32  ;;  %v484_v40 = vadd.f32 %v483_v38, %v465_v35 }
  0xc2   :  { %v526_v37 = vadd.f32 %v794_v27, %v501_v33 }
  0xc3   :  { %528 = vst [vmem:[%s1013_s3] sm:$0xff] %v524_v36 }
  0xc4   :  { %530 = vst [vmem:[%s1013_s3 + $0x10] sm:$0xff] %v526_v37 }
  0xc6   :  { %v497_v41 = vpop.f32.mrf.mxu0 }
  0xc7   :  { %v502_v42 = vpop.f32.mrf.mxu1  ;;  %v498_v43 = vadd.f32 %v497_v41, %v479_v39 }
  0xc8   :  { %v503_v44 = vadd.f32 %v502_v42, %v484_v40 }
  0xc9   :  { %v525_v45 = vadd.f32 %v794_v27, %v498_v43 }
  0xca   :  { %v527_v46 = vadd.f32 %v794_v27, %v503_v44 }
  0xcb   :  { %529 = vst [vmem:[%s1013_s3 + $0x8] sm:$0xff] %v525_v45 }
  0xcc   :  { %531 = vst [vmem:[%s1013_s3 + $0x18] sm:$0xff] %v527_v46 }

// kernel: g128_forward.50
= control target key start
LH: loop header
LB: loop body
LE: loop exit
PB: predicated region body
PF: predicated region fallthrough
CT: control target
= control target key end

     0   :  { %s412_s15 = smov 0   ;;  %s443_s0 = inlined_call_operand.vmem [shape: f32[2,16,128], index: 0, kind: input, shape index: {}]   ;;  %s444_s1 = inlined_call_operand.vmem [shape: f32[1,128], index: 1, kind: input, shape index: {}]   ;;  %s445_s2 = inlined_call_operand.vmem [shape: f32[1,128], index: 2, kind: input, shape index: {}]   ;;  %s446_s3 = inlined_call_operand.vmem [shape: f32[2,16,128], index: 3, kind: input, shape index: {}]   ;;  %s447_s4 = inlined_call_operand.vmem [shape: f32[2,16,128], index: 4, kind: output, shape index: {}]  }
   0x1 LB: > { %s347_s16 = sadd.s32 4294967295, %s384_s15   ;;  %p351_p0 = scmp.ge.s32.totalorder %s384_s15, 1  ;;  %s384_s15 = sphi %s412_s15, %s14_s15  }
   0x2   : > { %p172_p1 = scmp.lt.s32.totalorder %s384_s15, 3 }
   0x4   : > { %p173_p2 = pnand %p351_p0, %p172_p1 }
   0x5   : > { %p203_p3 = scmp.lt.s32.totalorder (!%p173_p2), %s347_s16, 1 }
   0x6   : > { %176 = sbr.rel (%p173_p2) target bundleno = 83 (0x53), region = 36 }
   0xb   : > { %v386_v0 = vmov 16.0   ;;  %s449_s16 = smov (!%p203_p3, %s347_s16), 1  ;;  %v372_v36 = vld [vmem:[%s444_s1] ss:$0 sm:$0xff] }
   0xc   : > { %374 = vrcp.f32 %v386_v0  ;;  %s420_s17 = sshll.u32 %s449_s16, 4  ;;  %v373_v39 = vld [vmem:[%s445_s2] ss:$0 sm:$0xff] }
   0xd   : > { %s207_s20 = scalar_lea.vmem %s443_s0, %s420_s17  ;;  %s212_s25 = scalar_lea.vmem %s446_s3, %s420_s17 }
   0xe   : > { %v218_v1 = vld [vmem:[%s207_s20] sm:$0xff]  ;;  %v219_v2 = vld [vmem:[%s207_s20 + $0x8] sm:$0xff]  ;;  %s217_s30 = scalar_lea.vmem %s447_s4, %s420_s17 }
   0xf   : > { %v220_v4 = vadd.f32 %v219_v2, %v218_v1  ;;  %v272_v43 = vld [vmem:[%s212_s25] sm:$0xff]  ;;  %v273_v44 = vld [vmem:[%s212_s25 + $0x8] sm:$0xff] }
  0x11   : > { %v221_v6 = vrot.slane %v220_v4, 4 }
  0x12   : > { %v375_v3 = vpop.eup %374 }
  0x13   : > { %v228_v5 = vmul.f32 16.0, %v375_v3  ;;  %v222_v8 = vadd.f32 %v221_v6, %v220_v4  ;;  %vm232_vm0 = vweird.f32 %v375_v3 }
  0x15   : > { %v229_v7 = vsub.f32 1.0, %v228_v5  ;;  %v223_v10 = vrot.slane %v222_v8, 2 }
  0x17   : > { %v230_v9 = vmul.f32 %v375_v3, %v229_v7  ;;  %v224_v12 = vadd.f32 %v223_v10, %v222_v8 }
  0x19   : > { %v231_v11 = vadd.f32 %v375_v3, %v230_v9  ;;  %v225_v13 = vrot.slane %v224_v12, 1 }
  0x1b   : > { %v233_v14 = vsel %vm232_vm0, %v375_v3, %v231_v11  ;;  %v226_v15 = vadd.f32 %v225_v13, %v224_v12 }
  0x1d   : > { %v234_v16 = vmul.f32 %v233_v14, %v226_v15 }
  0x1f   : > { %v235_v17 = vsub.f32 %v218_v1, %v234_v16  ;;  %v236_v18 = vsub.f32 %v219_v2, %v234_v16 }
  0x21   : > { %v237_v19 = vmul.f32 %v235_v17, %v235_v17  ;;  %v238_v20 = vmul.f32 %v236_v18, %v236_v18 }
  0x23   : > { %v239_v21 = vadd.f32 %v238_v20, %v237_v19 }
  0x25   : > { %v240_v22 = vrot.slane %v239_v21, 4 }
  0x27   : > { %v241_v23 = vadd.f32 %v240_v22, %v239_v21 }
  0x29   : > { %v242_v24 = vrot.slane %v241_v23, 2 }
  0x2b   : > { %v243_v25 = vadd.f32 %v242_v24, %v241_v23 }
  0x2d   : > { %v244_v26 = vrot.slane %v243_v25, 1 }
  0x2f   : > { %v245_v27 = vadd.f32 %v244_v26, %v243_v25 }
  0x31   : > { %v246_v28 = vmul.f32 %v245_v27, %v233_v14 }
  0x33   : > { %v247_v29 = vadd.f32 1e-05, %v246_v28 }
  0x35   : > { %376 = vrsqrt.f32 %v247_v29  ;;  %vm254_vm1 = vweird.f32 %v247_v29 }
  0x3b   : > { %v377_v30 = vpop.eup %376 }
  0x3c   : > { %v249_v31 = vmul.f32 %v377_v30, %v247_v29  ;;  %vm255_vm2 = vweird.f32 %v377_v30 }
  0x3d   : > { %vm256_vm3 = vmor %vm254_vm1, %vm255_vm2 }
  0x3e   : > { %v250_v32 = vmul.f32 %v377_v30, %v249_v31 }
  0x40   : > { %v251_v33 = vmul.f32 0.5, %v250_v32 }
  0x42   : > { %v252_v34 = vsub.f32 1.5, %v251_v33 }
  0x44   : > { %v253_v35 = vmul.f32 %v377_v30, %v252_v34 }
  0x46   : > { %v257_v37 = vsel %vm256_vm3, %v377_v30, %v253_v35 }
  0x47   : > { %v258_v38 = vmul.f32 %v257_v37, %v235_v17  ;;  %v259_v40 = vmul.f32 %v257_v37, %v236_v18 }
  0x49   : > { %v264_v41 = vmul.f32 %v372_v36, %v258_v38  ;;  %v265_v42 = vmul.f32 %v372_v36, %v259_v40 }
  0x4b   : > { %v270_v45 = vadd.f32 %v373_v39, %v264_v41  ;;  %v271_v46 = vadd.f32 %v373_v39, %v265_v42 }
  0x4d   : > { %v274_v47 = vadd.f32 %v272_v43, %v270_v45  ;;  %v275_v48 = vadd.f32 %v273_v44, %v271_v46 }
  0x4f   : > { %v276_v49 = vmax.f32 %v274_v47, 0.0  ;;  %v277_v50 = vmax.f32 %v275_v48, 0.0 }
  0x51   : > { %278 = vst [vmem:[%s217_s30] sm:$0xff] %v276_v49 }
  0x52   : > { %279 = vst [vmem:[%s217_s30 + $0x8] sm:$0xff] %v277_v50 }
  0x53 PF: > { %s14_s15 = sadd.s32 1, %s384_s15  }
  0x54   : > { %p11_p4 = scmp.ge.s32.totalorder %s14_s15, 4  }
  0x56   :  { %13 = sbr.rel (!%p11_p4) target bundleno = 1 (0x1), region = 69 }

// kernel: g128_forward.47
= control target key start
LH: loop header
LB: loop body
LE: loop exit
PB: predicated region body
PF: predicated region fallthrough
CT: control target
= control target key end

     0   :  { %s1734_s1 = inlined_call_operand.vmem [shape: bf16[1152,128], index: 1, kind: input, shape index: {}]   ;;  %s1735_s0 = inlined_call_operand.vmem [shape: bf16[32,1152], index: 0, kind: input, shape index: {}]   ;;  %s1736_s2 = inlined_call_operand.vmem [shape: f32[1,128], index: 2, kind: input, shape index: {}]   ;;  %s1737_s3 = inlined_call_operand.vmem [shape: f32[32,128], index: 3, kind: output, shape index: {}]  }
   0x1   :  { %v1301_v0 = vld [vmem:[%s1734_s1 + $0x38] sm:$0xff]  ;;  %v1300_v4 = vld [vmem:[%s1734_s1 + $0x30] sm:$0xff]  ;;  %v1299_v8 = vld [vmem:[%s1734_s1 + $0x28] sm:$0xff] }
   0x2   :  { %v1309_v1 = vld [vmem:[%s1734_s1 + $0x78] sm:$0xff]  ;;  %714 = vmatpush.bf16.msra.mxu0 %v1301_v0  ;;  %v1308_v5 = vld [vmem:[%s1734_s1 + $0x70] sm:$0xff]  ;;  %v1307_v9 = vld [vmem:[%s1734_s1 + $0x68] sm:$0xff] }
   0x3   :  { %v1317_v2 = vld [vmem:[%s1734_s1 + $0xb8] sm:$0xff]  ;;  %733 = vmatpush.bf16.msra.mxu1 %v1309_v1  ;;  %v1316_v6 = vld [vmem:[%s1734_s1 + $0xb0] sm:$0xff]  ;;  %v1315_v10 = vld [vmem:[%s1734_s1 + $0xa8] sm:$0xff] }
   0x4   :  { %v1325_v3 = vld [vmem:[%s1734_s1 + $0xf8] sm:$0xff]  ;;  %752 = vmatpush.bf16.msra.mxu2 %v1317_v2  ;;  %v1324_v7 = vld [vmem:[%s1734_s1 + $0xf0] sm:$0xff]  ;;  %v1323_v11 = vld [vmem:[%s1734_s1 + $0xe8] sm:$0xff] }
   0x5   :  { %771 = vmatpush.bf16.msra.mxu3 %v1325_v3  ;;  %v1298_v12 = vld [vmem:[%s1734_s1 + $0x20] sm:$0xff]  ;;  %v1297_v16 = vld [vmem:[%s1734_s1 + $0x18] sm:$0xff]  ;;  %v1296_v20 = vld [vmem:[%s1734_s1 + $0x10] sm:$0xff] }
   0x6   :  { %715 = vmatpush.bf16.msra.mxu0 %v1300_v4  ;;  %v1306_v13 = vld [vmem:[%s1734_s1 + $0x60] sm:$0xff]  ;;  %v1305_v17 = vld [vmem:[%s1734_s1 + $0x58] sm:$0xff]  ;;  %v1304_v21 = vld [vmem:[%s1734_s1 + $0x50] sm:$0xff] }
   0x7   :  { %734 = vmatpush.bf16.msra.mxu1 %v1308_v5  ;;  %v1314_v14 = vld [vmem:[%s1734_s1 + $0xa0] sm:$0xff]  ;;  %v1313_v18 = vld [vmem:[%s1734_s1 + $0x98] sm:$0xff]  ;;  %v1312_v22 = vld [vmem:[%s1734_s1 + $0x90] sm:$0xff] }
   0x8   :  { %753 = vmatpush.bf16.msra.mxu2 %v1316_v6  ;;  %v1322_v15 = vld [vmem:[%s1734_s1 + $0xe0] sm:$0xff]  ;;  %v1321_v19 = vld [vmem:[%s1734_s1 + $0xd8] sm:$0xff]  ;;  %v1320_v23 = vld [vmem:[%s1734_s1 + $0xd0] sm:$0xff] }
   0x9   :  { %772 = vmatpush.bf16.msra.mxu3 %v1324_v7  ;;  %v1295_v24 = vld [vmem:[%s1734_s1 + $0x8] sm:$0xff]  ;;  %v1294_v28 = vld [vmem:[%s1734_s1] sm:$0xff]  ;;  %v928_v39 = vld [vmem:[%s1735_s0 + $0x2c] sm:$0xf0] }
   0xa   :  { %716 = vmatpush.bf16.msra.mxu0 %v1299_v8  ;;  %v1303_v25 = vld [vmem:[%s1734_s1 + $0x48] sm:$0xff]  ;;  %v1302_v29 = vld [vmem:[%s1734_s1 + $0x40] sm:$0xff]  ;;  %v1333_v40 = vld [vmem:[%s1734_s1 + $0x138] sm:$0xff] }
   0xb   :  { %735 = vmatpush.bf16.msra.mxu1 %v1307_v9  ;;  %v1311_v26 = vld [vmem:[%s1734_s1 + $0x88] sm:$0xff]  ;;  %v1310_v30 = vld [vmem:[%s1734_s1 + $0x80] sm:$0xff]  ;;  %v1341_v41 = vld [vmem:[%s1734_s1 + $0x178] sm:$0xff] }
   0xc   :  { %754 = vmatpush.bf16.msra.mxu2 %v1315_v10  ;;  %v1319_v27 = vld [vmem:[%s1734_s1 + $0xc8] sm:$0xff]  ;;  %v1318_v31 = vld [vmem:[%s1734_s1 + $0xc0] sm:$0xff]  ;;  %v1349_v46 = vld [vmem:[%s1734_s1 + $0x1b8] sm:$0xff] }
   0xd   :  { %773 = vmatpush.bf16.msra.mxu3 %v1323_v11  ;;  %v918_v32 = vld [vmem:[%s1735_s0] sm:$0xf]  ;;  %v1280_v33 = vld [vmem:[%s1735_s0 + $0x20] sm:$0xf0]  ;;  %v920_v35 = vld [vmem:[%s1735_s0 + $0x24] sm:$0xf0] }
   0xe   :  { %717 = vmatpush.bf16.msra.mxu0 %v1298_v12  ;;  %v1276_v34 = vld [vmem:[%s1735_s0 + $0x4] sm:$0xf]  ;;  %v926_v36 = vld [vmem:[%s1735_s0 + $0x8] sm:$0xf]  ;;  %v1281_v37 = vld [vmem:[%s1735_s0 + $0x28] sm:$0xf0]  ;;  %v919_v42 = vor.u32 %v1280_v33, %v918_v32 }
   0xf   :  { %736 = vmatpush.bf16.msra.mxu1 %v1306_v13  ;;  %v1277_v38 = vld [vmem:[%s1735_s0 + $0xc] sm:$0xf]  ;;  %v923_v43 = vor.u32 %v1276_v34, %v920_v35  ;;  %v927_v44 = vor.u32 %v1281_v37, %v926_v36  ;;  %v1357_v47 = vld [vmem:[%s1734_s1 + $0x1f8] sm:$0xff]  ;;  %v1332_v48 = vld [vmem:[%s1734_s1 + $0x130] sm:$0xff] }
  0x10   :  { %755 = vmatpush.bf16.msra.mxu2 %v1314_v14  ;;  %v931_v45 = vor.u32 %v1277_v38, %v928_v39  ;;  %v1340_v49 = vld [vmem:[%s1734_s1 + $0x170] sm:$0xff]  ;;  %v1331_v52 = vld [vmem:[%s1734_s1 + $0x128] sm:$0xff]  ;;  %v1330_v56 = vld [vmem:[%s1734_s1 + $0x120] sm:$0xff] }
  0x11   :  { %774 = vmatpush.bf16.msra.mxu3 %v1322_v15  ;;  %v1348_v50 = vld [vmem:[%s1734_s1 + $0x1b0] sm:$0xff]  ;;  %v1339_v53 = vld [vmem:[%s1734_s1 + $0x168] sm:$0xff]  ;;  %v1338_v57 = vld [vmem:[%s1734_s1 + $0x160] sm:$0xff] }
  0x12   :  { %718 = vmatpush.bf16.msra.mxu0 %v1297_v16  ;;  %v1356_v51 = vld [vmem:[%s1734_s1 + $0x1f0] sm:$0xff]  ;;  %v1347_v54 = vld [vmem:[%s1734_s1 + $0x1a8] sm:$0xff]  ;;  %v1346_v58 = vld [vmem:[%s1734_s1 + $0x1a0] sm:$0xff] }
  0x13   :  { %737 = vmatpush.bf16.msra.mxu1 %v1305_v17  ;;  %v1355_v55 = vld [vmem:[%s1734_s1 + $0x1e8] sm:$0xff]  ;;  %v1354_v59 = vld [vmem:[%s1734_s1 + $0x1e0] sm:$0xff]  ;;  %v956_v63 = vld [vmem:[%s1735_s0 + $0x6c] sm:$0xf0] }
  0x14   :  { %756 = vmatpush.bf16.msra.mxu2 %v1313_v18  ;;  %v954_v60 = vld [vmem:[%s1735_s0 + $0x48] sm:$0xf]  ;;  %v1289_v61 = vld [vmem:[%s1735_s0 + $0x68] sm:$0xf0]  ;;  %v962_v0 = vld [vmem:[%s1735_s0 + $0x50] sm:$0xf] }
  0x15   :  { %775 = vmatpush.bf16.msra.mxu3 %v1321_v19  ;;  %v1285_v62 = vld [vmem:[%s1735_s0 + $0x4c] sm:$0xf]  ;;  %v1290_v1 = vld [vmem:[%s1735_s0 + $0x70] sm:$0xf0]  ;;  %v964_v3 = vld [vmem:[%s1735_s0 + $0x74] sm:$0xf0]  ;;  %v955_v6 = vor.u32 %v1289_v61, %v954_v60 }
  0x16   :  { %719 = vmatpush.bf16.msra.mxu0 %v1296_v20  ;;  %v1286_v2 = vld [vmem:[%s1735_s0 + $0x54] sm:$0xf]  ;;  %v1329_v4 = vld [vmem:[%s1734_s1 + $0x118] sm:$0xff]  ;;  %v959_v7 = vor.u32 %v1285_v62, %v956_v63  ;;  %v963_v8 = vor.u32 %v1290_v1, %v962_v0  ;;  %v1327_v16 = vld [vmem:[%s1734_s1 + $0x108] sm:$0xff] }
  0x17   :  { %738 = vmatpush.bf16.msra.mxu1 %v1304_v21  ;;  %v1337_v5 = vld [vmem:[%s1734_s1 + $0x158] sm:$0xff]  ;;  %v967_v9 = vor.u32 %v1286_v2, %v964_v3  ;;  %v1328_v12 = vld [vmem:[%s1734_s1 + $0x110] sm:$0xff]  ;;  %v1335_v17 = vld [vmem:[%s1734_s1 + $0x148] sm:$0xff] }
  0x18   :  { %757 = vmatpush.bf16.msra.mxu2 %v1312_v22  ;;  %v1345_v10 = vld [vmem:[%s1734_s1 + $0x198] sm:$0xff]  ;;  %v1336_v13 = vld [vmem:[%s1734_s1 + $0x150] sm:$0xff]  ;;  %v1343_v18 = vld [vmem:[%s1734_s1 + $0x188] sm:$0xff] }
  0x19   :  { %776 = vmatpush.bf16.msra.mxu3 %v1320_v23  ;;  %v1353_v11 = vld [vmem:[%s1734_s1 + $0x1d8] sm:$0xff]  ;;  %v1344_v14 = vld [vmem:[%s1734_s1 + $0x190] sm:$0xff]  ;;  %v1351_v19 = vld [vmem:[%s1734_s1 + $0x1c8] sm:$0xff] }
  0x1a   :  { %720 = vmatpush.bf16.msra.mxu0 %v1295_v24  ;;  %v1352_v15 = vld [vmem:[%s1734_s1 + $0x1d0] sm:$0xff]  ;;  %v1326_v20 = vld [vmem:[%s1734_s1 + $0x100] sm:$0xff]  ;;  %v1363_v38 = vld [vmem:[%s1734_s1 + $0x228] sm:$0xff] }
  0x1b   :  { %739 = vmatpush.bf16.msra.mxu1 %v1303_v25  ;;  %v1334_v21 = vld [vmem:[%s1734_s1 + $0x140] sm:$0xff]  ;;  %v934_v24 = vld [vmem:[%s1735_s0 + $0x10] sm:$0xf]  ;;  %v1282_v25 = vld [vmem:[%s1735_s0 + $0x30] sm:$0xf0] }
  0x1c   :  { %758 = vmatpush.bf16.msra.mxu2 %v1311_v26  ;;  %v1342_v22 = vld [vmem:[%s1734_s1 + $0x180] sm:$0xff]  ;;  %v1365_v26 = vld [vmem:[%s1734_s1 + $0x238] sm:$0xff]  ;;  %v935_v33 = vor.u32 %v1282_v25, %v934_v24  ;;  %v1364_v37 = vld [vmem:[%s1734_s1 + $0x230] sm:$0xff] }
  0x1d   :  { %777 = vmatpush.bf16.msra.mxu3 %v1319_v27  ;;  %v1350_v23 = vld [vmem:[%s1734_s1 + $0x1c0] sm:$0xff]  ;;  %v1278_v27 = vld [vmem:[%s1735_s0 + $0x14] sm:$0xf] }
  0x1e   :  { %721 = vmatpush.bf16.msra.mxu0 %v1294_v28  ;;  %v936_v28 = vld [vmem:[%s1735_s0 + $0x34] sm:$0xf0]  ;;  %v944_v32 = vld [vmem:[%s1735_s0 + $0x3c] sm:$0xf0] }
  0x1f   :  { %740 = vmatpush.bf16.msra.mxu1 %v1302_v29  ;;  %v942_v29 = vld [vmem:[%s1735_s0 + $0x18] sm:$0xf]  ;;  %v939_v34 = vor.u32 %v1278_v27, %v936_v28  ;;  %v1362_v39 = vld [vmem:[%s1734_s1 + $0x220] sm:$0xff] }
  0x20   :  { %759 = vmatpush.bf16.msra.mxu2 %v1310_v30  ;;  %v1283_v30 = vld [vmem:[%s1735_s0 + $0x38] sm:$0xf0] }
  0x21   :  { %778 = vmatpush.bf16.msra.mxu3 %v1318_v31  ;;  %722 = vmatmul.bf16.vlgmr.msra.gmra.mxu0 %v919_v42  ;;  %v1279_v31 = vld [vmem:[%s1735_s0 + $0x1c] sm:$0xf]  ;;  %v943_v35 = vor.u32 %v1283_v30, %v942_v29 }
  0x22   :  { %790 = vmatpush.bf16.msrb.mxu0 %v1333_v40  ;;  %741 = vmatmul.bf16.vlgmr.msra.gmra.mxu1 %v923_v43  ;;  %v947_v36 = vor.u32 %v1279_v31, %v944_v32  ;;  %v970_v40 = vld [vmem:[%s1735_s0 + $0x58] sm:$0xf]  ;;  %v1287_v42 = vld [vmem:[%s1735_s0 + $0x5c] sm:$0xf]  ;;  %v972_v43 = vld [vmem:[%s1735_s0 + $0x7c] sm:$0xf0] }
  0x23   :  { %809 = vmatpush.bf16.msrb.mxu1 %v1341_v41  ;;  %760 = vmatmul.bf16.vlgmr.msra.gmra.mxu2 %v927_v44  ;;  %v1291_v41 = vld [vmem:[%s1735_s0 + $0x78] sm:$0xf0]  ;;  %v978_v44 = vld [vmem:[%s1735_s0 + $0x60] sm:$0xf] }
  0x24   :  { %779 = vmatmul.bf16.vlgmr.msra.gmra.mxu3 %v931_v45  ;;  %828 = vmatpush.bf16.msrb.mxu2 %v1349_v46  ;;  %v1292_v45 = vld [vmem:[%s1735_s0 + $0x80] sm:$0xf0] }
  0x25   :  { %847 = vmatpush.bf16.msrb.mxu3 %v1357_v47  ;;  %v1288_v46 = vld [vmem:[%s1735_s0 + $0x64] sm:$0xf]  ;;  %v980_v47 = vld [vmem:[%s1735_s0 + $0x84] sm:$0xf0] }
  0x26   :  { %791 = vmatpush.bf16.msrb.mxu0 %v1332_v48  ;;  %v1361_v48 = vld [vmem:[%s1734_s1 + $0x218] sm:$0xff] }
  0x27   :  { %810 = vmatpush.bf16.msrb.mxu1 %v1340_v49  ;;  %v971_v49 = vor.u32 %v1291_v41, %v970_v40 }
  0x28   :  { %829 = vmatpush.bf16.msrb.mxu2 %v1348_v50  ;;  %v975_v50 = vor.u32 %v1287_v42, %v972_v43 }
  0x29   :  { %848 = vmatpush.bf16.msrb.mxu3 %v1356_v51  ;;  %v979_v51 = vor.u32 %v1292_v45, %v978_v44 }
  0x2a   :  { %792 = vmatpush.bf16.msrb.mxu0 %v1331_v52  ;;  %v983_v52 = vor.u32 %v1288_v46, %v980_v47 }
  0x2b   :  { %811 = vmatpush.bf16.msrb.mxu1 %v1339_v53  ;;  %v1360_v53 = vld [vmem:[%s1734_s1 + $0x210] sm:$0xff] }
  0x2c   :  { %830 = vmatpush.bf16.msrb.mxu2 %v1347_v54  ;;  %v1359_v54 = vld [vmem:[%s1734_s1 + $0x208] sm:$0xff] }
  0x2d   :  { %849 = vmatpush.bf16.msrb.mxu3 %v1355_v55  ;;  %v1358_v55 = vld [vmem:[%s1734_s1 + $0x200] sm:$0xff] }
  0x2e   :  { %793 = vmatpush.bf16.msrb.mxu0 %v1330_v56  ;;  %v950_v56 = vld [vmem:[%s1735_s0 + $0x20] sm:$0xf] }
  0x2f   :  { %812 = vmatpush.bf16.msrb.mxu1 %v1338_v57  ;;  %v1284_v57 = vld [vmem:[%s1735_s0 + $0x40] sm:$0xf0] }
  0x30   :  { %831 = vmatpush.bf16.msrb.mxu2 %v1346_v58  ;;  %v986_v58 = vld [vmem:[%s1735_s0 + $0x68] sm:$0xf]  ;;  %v951_v60 = vor.u32 %v1284_v57, %v950_v56 }
  0x31   :  { %850 = vmatpush.bf16.msrb.mxu3 %v1354_v59  ;;  %727 = vmatmul.bf16.gmra.mxu0 %v955_v6  ;;  %v1293_v59 = vld [vmem:[%s1735_s0 + $0x88] sm:$0xf0] }
  0x32   :  { %794 = vmatpush.bf16.msrb.mxu0 %v1329_v4  ;;  %746 = vmatmul.bf16.gmra.mxu1 %v959_v7  ;;  %v987_v61 = vor.u32 %v1293_v59, %v986_v58 }
  0x33   :  { %813 = vmatpush.bf16.msrb.mxu1 %v1337_v5  ;;  %765 = vmatmul.bf16.gmra.mxu2 %v963_v8 }
  0x34   :  { %784 = vmatmul.bf16.gmra.mxu3 %v967_v9  ;;  %832 = vmatpush.bf16.msrb.mxu2 %v1345_v10 }
  0x35   :  { %851 = vmatpush.bf16.msrb.mxu3 %v1353_v11 }
  0x36   :  { %795 = vmatpush.bf16.msrb.mxu0 %v1328_v12 }
  0x37   :  { %814 = vmatpush.bf16.msrb.mxu1 %v1336_v13 }
  0x38   :  { %833 = vmatpush.bf16.msrb.mxu2 %v1344_v14 }
  0x39   :  { %852 = vmatpush.bf16.msrb.mxu3 %v1352_v15 }
  0x3a   :  { %796 = vmatpush.bf16.msrb.mxu0 %v1327_v16 }
  0x3b   :  { %815 = vmatpush.bf16.msrb.mxu1 %v1335_v17 }
  0x3c   :  { %834 = vmatpush.bf16.msrb.mxu2 %v1343_v18 }
  0x3d   :  { %853 = vmatpush.bf16.msrb.mxu3 %v1351_v19 }
  0x3e   :  { %797 = vmatpush.bf16.msrb.mxu0 %v1326_v20 }
  0x3f   :  { %816 = vmatpush.bf16.msrb.mxu1 %v1334_v21 }
  0x40   :  { %835 = vmatpush.bf16.msrb.mxu2 %v1342_v22 }
  0x41   :  { %854 = vmatpush.bf16.msrb.mxu3 %v1350_v23  ;;  %798 = vmatmul.bf16.vlgmr.msrb.gmra.mxu0 %v935_v33 }
  0x42   :  { %866 = vmatpush.bf16.msra.mxu0 %v1365_v26  ;;  %817 = vmatmul.bf16.vlgmr.msrb.gmra.mxu1 %v939_v34 }
  0x43   :  { %1366 = vmatpush.bf16.msra.mxu1 %v1365_v26  ;;  %836 = vmatmul.bf16.vlgmr.msrb.gmra.mxu2 %v943_v35 }
  0x44   :  { %855 = vmatmul.bf16.vlgmr.msrb.gmra.mxu3 %v947_v36 }
  0x46   :  { %867 = vmatpush.bf16.msra.mxu0 %v1364_v37 }
  0x47   :  { %1367 = vmatpush.bf16.msra.mxu1 %v1364_v37 }
  0x4a   :  { %868 = vmatpush.bf16.msra.mxu0 %v1363_v38 }
  0x4b   :  { %1368 = vmatpush.bf16.msra.mxu1 %v1363_v38 }
  0x4e   :  { %869 = vmatpush.bf16.msra.mxu0 %v1362_v39 }
  0x4f   :  { %1369 = vmatpush.bf16.msra.mxu1 %v1362_v39 }
  0x51   :  { %803 = vmatmul.bf16.gmra.mxu0 %v971_v49 }
  0x52   :  { %870 = vmatpush.bf16.msra.mxu0 %v1361_v48  ;;  %822 = vmatmul.bf16.gmra.mxu1 %v975_v50 }
  0x53   :  { %1370 = vmatpush.bf16.msra.mxu1 %v1361_v48  ;;  %841 = vmatmul.bf16.gmra.mxu2 %v979_v51  ;;  %v1374_v51 = vld [vmem:[%s1736_s2] ss:$0 sm:$0xff] }
  0x54   :  { %860 = vmatmul.bf16.gmra.mxu3 %v983_v52 }
  0x56   :  { %871 = vmatpush.bf16.msra.mxu0 %v1360_v53 }
  0x57   :  { %1371 = vmatpush.bf16.msra.mxu1 %v1360_v53 }
  0x5a   :  { %872 = vmatpush.bf16.msra.mxu0 %v1359_v54 }
  0x5b   :  { %1372 = vmatpush.bf16.msra.mxu1 %v1359_v54 }
  0x5e   :  { %873 = vmatpush.bf16.msra.mxu0 %v1358_v55 }
  0x5f   :  { %1373 = vmatpush.bf16.msra.mxu1 %v1358_v55 }
  0x61   :  { %874 = vmatmul.bf16.vlgmr.msra.gmra.mxu0 %v951_v60 }
  0x62   :  { %879 = vmatmul.bf16.vlgmr.msra.gmra.mxu1 %v987_v61 }
  0x9e   :  { %v723_v62 = vpop.f32.mrf.mxu0 }
  0x9f   :  { %v742_v63 = vpop.f32.mrf.mxu1 }
  0xa0   :  { %v743_v20 = vadd.f32 %v742_v63, %v723_v62 }
  0xa6   :  { %v761_v0 = vpop.f32.mrf.mxu2  ;;  %v725_v2 = vpop.f32.mrf.mxu0 }
  0xa7   :  { %v780_v1 = vpop.f32.mrf.mxu3  ;;  %v744_v3 = vpop.f32.mrf.mxu1  ;;  %v762_v22 = vadd.f32 %v761_v0, %v743_v20 }
  0xa8   :  { %v745_v30 = vadd.f32 %v744_v3, %v725_v2 }
  0xa9   :  { %v781_v28 = vadd.f32 %v780_v1, %v762_v22 }
  0xae   :  { %v763_v4 = vpop.f32.mrf.mxu2  ;;  %v728_v6 = vpop.f32.mrf.mxu0 }
  0xaf   :  { %v782_v5 = vpop.f32.mrf.mxu3  ;;  %v747_v7 = vpop.f32.mrf.mxu1  ;;  %v764_v34 = vadd.f32 %v763_v4, %v745_v30 }
  0xb0   :  { %v748_v21 = vadd.f32 %v747_v7, %v728_v6 }
  0xb1   :  { %v783_v41 = vadd.f32 %v782_v5, %v764_v34 }
  0xb6   :  { %v766_v8 = vpop.f32.mrf.mxu2  ;;  %v730_v10 = vpop.f32.mrf.mxu0 }
  0xb7   :  { %v785_v9 = vpop.f32.mrf.mxu3  ;;  %v749_v11 = vpop.f32.mrf.mxu1  ;;  %v767_v23 = vadd.f32 %v766_v8, %v748_v21 }
  0xb8   :  { %v750_v31 = vadd.f32 %v749_v11, %v730_v10 }
  0xb9   :  { %v786_v29 = vadd.f32 %v785_v9, %v767_v23 }
  0xbe   :  { %v768_v12 = vpop.f32.mrf.mxu2  ;;  %v799_v14 = vpop.f32.mrf.mxu0 }
  0xbf   :  { %v787_v13 = vpop.f32.mrf.mxu3  ;;  %v818_v15 = vpop.f32.mrf.mxu1  ;;  %v800_v32 = vadd.f32 %v799_v14, %v781_v28  ;;  %v769_v35 = vadd.f32 %v768_v12, %v750_v31 }
  0xc1   :  { %v819_v39 = vadd.f32 %v818_v15, %v800_v32  ;;  %v788_v42 = vadd.f32 %v787_v13, %v769_v35 }
  0xc6   :  { %v837_v16 = vpop.f32.mrf.mxu2  ;;  %v801_v18 = vpop.f32.mrf.mxu0 }
  0xc7   :  { %v856_v17 = vpop.f32.mrf.mxu3  ;;  %v820_v19 = vpop.f32.mrf.mxu1  ;;  %v838_v43 = vadd.f32 %v837_v16, %v819_v39  ;;  %v802_v46 = vadd.f32 %v801_v18, %v783_v41 }
  0xc9   :  { %v857_v48 = vadd.f32 %v856_v17, %v838_v43  ;;  %v821_v54 = vadd.f32 %v820_v19, %v802_v46 }
  0xce   :  { %v839_v24 = vpop.f32.mrf.mxu2  ;;  %v804_v25 = vpop.f32.mrf.mxu0 }
  0xcf   :  { %v823_v26 = vpop.f32.mrf.mxu1  ;;  %v858_v27 = vpop.f32.mrf.mxu3  ;;  %v805_v33 = vadd.f32 %v804_v25, %v786_v29  ;;  %v840_v58 = vadd.f32 %v839_v24, %v821_v54 }
  0xd1   :  { %v824_v40 = vadd.f32 %v823_v26, %v805_v33  ;;  %v859_v63 = vadd.f32 %v858_v27, %v840_v58 }
  0xd6   :  { %v842_v36 = vpop.f32.mrf.mxu2  ;;  %v806_v37 = vpop.f32.mrf.mxu0 }
  0xd7   :  { %v825_v38 = vpop.f32.mrf.mxu1  ;;  %v843_v44 = vadd.f32 %v842_v36, %v824_v40  ;;  %v861_v45 = vpop.f32.mrf.mxu3  ;;  %v807_v47 = vadd.f32 %v806_v37, %v788_v42 }
  0xd9   :  { %v862_v49 = vadd.f32 %v861_v45, %v843_v44  ;;  %v826_v55 = vadd.f32 %v825_v38, %v807_v47 }
  0xde   :  { %v844_v50 = vpop.f32.mrf.mxu2  ;;  %v875_v52 = vpop.f32.mrf.mxu0 }
  0xdf   :  { %v880_v53 = vpop.f32.mrf.mxu1  ;;  %v876_v56 = vadd.f32 %v875_v52, %v857_v48  ;;  %v845_v59 = vadd.f32 %v844_v50, %v826_v55  ;;  %v863_v62 = vpop.f32.mrf.mxu3 }
  0xe0   :  { %v881_v57 = vadd.f32 %v880_v53, %v862_v49 }
  0xe1   :  { %v904_v60 = vadd.f32 %v1374_v51, %v876_v56  ;;  %v864_v0 = vadd.f32 %v863_v62, %v845_v59 }
  0xe2   :  { %v906_v61 = vadd.f32 %v1374_v51, %v881_v57 }
  0xe3   :  { %908 = vst [vmem:[%s1737_s3] sm:$0xff] %v904_v60 }
  0xe4   :  { %910 = vst [vmem:[%s1737_s3 + $0x10] sm:$0xff] %v906_v61 }
  0xe6   :  { %v877_v1 = vpop.f32.mrf.mxu0 }
  0xe7   :  { %v882_v2 = vpop.f32.mrf.mxu1  ;;  %v878_v3 = vadd.f32 %v877_v1, %v859_v63 }
  0xe8   :  { %v883_v4 = vadd.f32 %v882_v2, %v864_v0 }
  0xe9   :  { %v905_v5 = vadd.f32 %v1374_v51, %v878_v3 }
  0xea   :  { %v907_v6 = vadd.f32 %v1374_v51, %v883_v4 }
  0xeb   :  { %909 = vst [vmem:[%s1737_s3 + $0x8] sm:$0xff] %v905_v5 }
  0xec   :  { %911 = vst [vmem:[%s1737_s3 + $0x18] sm:$0xff] %v907_v6 }

// kernel: g128_forward.72
= control target key start
LH: loop header
LB: loop body
LE: loop exit
PB: predicated region body
PF: predicated region fallthrough
CT: control target
= control target key end

     0   :  { %s471_s1 = inlined_call_operand.vmem [shape: bf16[256,128], index: 1, kind: input, shape index: {}]   ;;  %s472_s0 = inlined_call_operand.vmem [shape: bf16[32,256], index: 0, kind: input, shape index: {}]   ;;  %s473_s2 = inlined_call_operand.vmem [shape: f32[1,128], index: 2, kind: input, shape index: {}]   ;;  %s474_s3 = inlined_call_operand.vmem [shape: f32[32,128], index: 3, kind: output, shape index: {}]  }
   0x1   :  { %v338_v0 = vld [vmem:[%s471_s1 + $0x38] sm:$0xff]  ;;  %v337_v2 = vld [vmem:[%s471_s1 + $0x30] sm:$0xff]  ;;  %v336_v4 = vld [vmem:[%s471_s1 + $0x28] sm:$0xff] }
   0x2   :  { %v346_v1 = vld [vmem:[%s471_s1 + $0x78] sm:$0xff]  ;;  %178 = vmatpush.bf16.msra.mxu0 %v338_v0  ;;  %347 = vmatpush.bf16.msra.mxu2 %v338_v0  ;;  %v345_v3 = vld [vmem:[%s471_s1 + $0x70] sm:$0xff]  ;;  %v344_v5 = vld [vmem:[%s471_s1 + $0x68] sm:$0xff] }
   0x3   :  { %197 = vmatpush.bf16.msra.mxu1 %v346_v1  ;;  %355 = vmatpush.bf16.msra.mxu3 %v346_v1  ;;  %v335_v6 = vld [vmem:[%s471_s1 + $0x20] sm:$0xff]  ;;  %v334_v8 = vld [vmem:[%s471_s1 + $0x18] sm:$0xff]  ;;  %v333_v10 = vld [vmem:[%s471_s1 + $0x10] sm:$0xff] }
   0x4   :  { %v343_v7 = vld [vmem:[%s471_s1 + $0x60] sm:$0xff]  ;;  %v342_v9 = vld [vmem:[%s471_s1 + $0x58] sm:$0xff]  ;;  %v341_v11 = vld [vmem:[%s471_s1 + $0x50] sm:$0xff] }
   0x5   :  { %v332_v12 = vld [vmem:[%s471_s1 + $0x8] sm:$0xff]  ;;  %v331_v14 = vld [vmem:[%s471_s1] sm:$0xff]  ;;  %v257_v18 = vld [vmem:[%s472_s0 + $0x10] sm:$0xf] }
   0x6   :  { %179 = vmatpush.bf16.msra.mxu0 %v337_v2  ;;  %348 = vmatpush.bf16.msra.mxu2 %v337_v2  ;;  %v340_v13 = vld [vmem:[%s471_s1 + $0x48] sm:$0xff]  ;;  %v339_v15 = vld [vmem:[%s471_s1 + $0x40] sm:$0xff]  ;;  %v330_v19 = vld [vmem:[%s472_s0 + $0x14] sm:$0xf0] }
   0x7   :  { %198 = vmatpush.bf16.msra.mxu1 %v345_v3  ;;  %356 = vmatpush.bf16.msra.mxu3 %v345_v3  ;;  %v249_v16 = vld [vmem:[%s472_s0] sm:$0xf]  ;;  %v328_v17 = vld [vmem:[%s472_s0 + $0x4] sm:$0xf0]  ;;  %v327_v20 = vld [vmem:[%s472_s0 + $0x4] sm:$0xf]  ;;  %v258_v25 = vor.u32 %v330_v19, %v257_v18 }
   0x8   :  { %v251_v21 = vld [vmem:[%s472_s0 + $0x8] sm:$0xf0]  ;;  %v329_v22 = vld [vmem:[%s472_s0 + $0x14] sm:$0xf]  ;;  %v259_v23 = vld [vmem:[%s472_s0 + $0x18] sm:$0xf0]  ;;  %v250_v24 = vor.u32 %v328_v17, %v249_v16 }
   0x9   :  { %v254_v26 = vor.u32 %v327_v20, %v251_v21  ;;  %v262_v27 = vor.u32 %v329_v22, %v259_v23  ;;  %v363_v29 = vld [vmem:[%s473_s2] ss:$0 sm:$0xff] }
   0xa   :  { %180 = vmatpush.bf16.msra.mxu0 %v336_v4  ;;  %349 = vmatpush.bf16.msra.mxu2 %v336_v4 }
   0xb   :  { %199 = vmatpush.bf16.msra.mxu1 %v344_v5  ;;  %357 = vmatpush.bf16.msra.mxu3 %v344_v5 }
   0xe   :  { %181 = vmatpush.bf16.msra.mxu0 %v335_v6  ;;  %350 = vmatpush.bf16.msra.mxu2 %v335_v6 }
   0xf   :  { %200 = vmatpush.bf16.msra.mxu1 %v343_v7  ;;  %358 = vmatpush.bf16.msra.mxu3 %v343_v7 }
  0x12   :  { %182 = vmatpush.bf16.msra.mxu0 %v334_v8  ;;  %351 = vmatpush.bf16.msra.mxu2 %v334_v8 }
  0x13   :  { %201 = vmatpush.bf16.msra.mxu1 %v342_v9  ;;  %359 = vmatpush.bf16.msra.mxu3 %v342_v9 }
  0x16   :  { %183 = vmatpush.bf16.msra.mxu0 %v333_v10  ;;  %352 = vmatpush.bf16.msra.mxu2 %v333_v10 }
  0x17   :  { %202 = vmatpush.bf16.msra.mxu1 %v341_v11  ;;  %360 = vmatpush.bf16.msra.mxu3 %v341_v11 }
  0x1a   :  { %184 = vmatpush.bf16.msra.mxu0 %v332_v12  ;;  %353 = vmatpush.bf16.msra.mxu2 %v332_v12 }
  0x1b   :  { %203 = vmatpush.bf16.msra.mxu1 %v340_v13  ;;  %361 = vmatpush.bf16.msra.mxu3 %v340_v13 }
  0x1e   :  { %185 = vmatpush.bf16.msra.mxu0 %v331_v14  ;;  %354 = vmatpush.bf16.msra.mxu2 %v331_v14 }
  0x1f   :  { %204 = vmatpush.bf16.msra.mxu1 %v339_v15  ;;  %362 = vmatpush.bf16.msra.mxu3 %v339_v15 }
  0x21   :  { %186 = vmatmul.bf16.vlgmr.msra.gmra.mxu0 %v250_v24  ;;  %191 = vmatmul.bf16.vlgmr.msra.gmra.mxu2 %v258_v25 }
  0x22   :  { %205 = vmatmul.bf16.vlgmr.msra.gmra.mxu1 %v254_v26  ;;  %210 = vmatmul.bf16.vlgmr.msra.gmra.mxu3 %v262_v27 }
  0x9e   :  { %v187_v28 = vpop.f32.mrf.mxu0 }
  0x9f   :  { %v206_v30 = vpop.f32.mrf.mxu1 }
  0xa0   :  { %v207_v31 = vadd.f32 %v206_v30, %v187_v28 }
  0xa2   :  { %v235_v32 = vadd.f32 %v363_v29, %v207_v31 }
  0xa4   :  { %239 = vst [vmem:[%s474_s3] sm:$0xff] %v235_v32  ;;  %v192_v33 = vpop.f32.mrf.mxu2 }
  0xa5   :  { %v211_v34 = vpop.f32.mrf.mxu3 }
  0xa6   :  { %v212_v35 = vadd.f32 %v211_v34, %v192_v33  ;;  %v189_v36 = vpop.f32.mrf.mxu0 }
  0xa7   :  { %v208_v37 = vpop.f32.mrf.mxu1 }
  0xa8   :  { %v237_v38 = vadd.f32 %v363_v29, %v212_v35  ;;  %v209_v39 = vadd.f32 %v208_v37, %v189_v36 }
  0xaa   :  { %241 = vst [vmem:[%s474_s3 + $0x10] sm:$0xff] %v237_v38  ;;  %v236_v40 = vadd.f32 %v363_v29, %v209_v39 }
  0xac   :  { %240 = vst [vmem:[%s474_s3 + $0x8] sm:$0xff] %v236_v40  ;;  %v194_v41 = vpop.f32.mrf.mxu2 }
  0xad   :  { %v213_v42 = vpop.f32.mrf.mxu3 }
  0xae   :  { %v214_v43 = vadd.f32 %v213_v42, %v194_v41 }
  0xb0   :  { %v238_v44 = vadd.f32 %v363_v29, %v214_v43 }
  0xb2   :  { %242 = vst [vmem:[%s474_s3 + $0x18] sm:$0xff] %v238_v44 }

// kernel: g128_forward.71
= control target key start
LH: loop header
LB: loop body
LE: loop exit
PB: predicated region body
PF: predicated region fallthrough
CT: control target
= control target key end

     0   :  { %s280_s1 = inlined_call_operand.vmem [shape: bf16[128,128], index: 1, kind: input, shape index: {}]   ;;  %s281_s2 = inlined_call_operand.vmem [shape: f32[1,128], index: 2, kind: input, shape index: {}]   ;;  %s282_s0 = inlined_call_operand.vmem [shape: bf16[32,128], index: 0, kind: input, shape index: {}]   ;;  %s283_s3 = inlined_call_operand.vmem [shape: f32[32,128], index: 3, kind: output, shape index: {}]  }
   0x1   :  { %v205_v0 = vld [vmem:[%s280_s1 + $0x38] sm:$0xff]  ;;  %v204_v1 = vld [vmem:[%s280_s1 + $0x30] sm:$0xff]  ;;  %v203_v2 = vld [vmem:[%s280_s1 + $0x28] sm:$0xff] }
   0x2   :  { %106 = vmatpush.bf16.msra.mxu0 %v205_v0  ;;  %206 = vmatpush.bf16.msra.mxu1 %v205_v0  ;;  %v202_v3 = vld [vmem:[%s280_s1 + $0x20] sm:$0xff]  ;;  %v201_v4 = vld [vmem:[%s280_s1 + $0x18] sm:$0xff]  ;;  %v200_v5 = vld [vmem:[%s280_s1 + $0x10] sm:$0xff] }
   0x3   :  { %v199_v6 = vld [vmem:[%s280_s1 + $0x8] sm:$0xff]  ;;  %v198_v7 = vld [vmem:[%s280_s1] sm:$0xff] }
   0x4   :  { %v196_v8 = vld [vmem:[%s282_s0] sm:$0xff]  ;;  %v197_v9 = vld [vmem:[%s282_s0 + $0x8] sm:$0xff] }
   0x5   :  { %v214_v10 = vld [vmem:[%s281_s2] ss:$0 sm:$0xff] }
   0x6   :  { %107 = vmatpush.bf16.msra.mxu0 %v204_v1  ;;  %207 = vmatpush.bf16.msra.mxu1 %v204_v1 }
   0xa   :  { %108 = vmatpush.bf16.msra.mxu0 %v203_v2  ;;  %208 = vmatpush.bf16.msra.mxu1 %v203_v2 }
   0xe   :  { %109 = vmatpush.bf16.msra.mxu0 %v202_v3  ;;  %209 = vmatpush.bf16.msra.mxu1 %v202_v3 }
  0x12   :  { %110 = vmatpush.bf16.msra.mxu0 %v201_v4  ;;  %210 = vmatpush.bf16.msra.mxu1 %v201_v4 }
  0x16   :  { %111 = vmatpush.bf16.msra.mxu0 %v200_v5  ;;  %211 = vmatpush.bf16.msra.mxu1 %v200_v5 }
  0x1a   :  { %112 = vmatpush.bf16.msra.mxu0 %v199_v6  ;;  %212 = vmatpush.bf16.msra.mxu1 %v199_v6 }
  0x1e   :  { %113 = vmatpush.bf16.msra.mxu0 %v198_v7  ;;  %213 = vmatpush.bf16.msra.mxu1 %v198_v7 }
  0x21   :  { %114 = vmatmul.bf16.vlgmr.msra.gmra.mxu0 %v196_v8  ;;  %119 = vmatmul.bf16.vlgmr.msra.gmra.mxu1 %v197_v9 }
  0x9e   :  { %v115_v11 = vpop.f32.mrf.mxu0  ;;  %v120_v12 = vpop.f32.mrf.mxu1 }
  0x9f   :  { %v144_v13 = vadd.f32 %v214_v10, %v115_v11  ;;  %v146_v14 = vadd.f32 %v214_v10, %v120_v12 }
  0xa1   :  { %148 = vst [vmem:[%s283_s3] sm:$0xff] %v144_v13 }
  0xa2   :  { %150 = vst [vmem:[%s283_s3 + $0x10] sm:$0xff] %v146_v14 }
  0xa6   :  { %v117_v15 = vpop.f32.mrf.mxu0  ;;  %v122_v16 = vpop.f32.mrf.mxu1 }
  0xa7   :  { %v145_v17 = vadd.f32 %v214_v10, %v117_v15  ;;  %v147_v18 = vadd.f32 %v214_v10, %v122_v16 }
  0xa9   :  { %149 = vst [vmem:[%s283_s3 + $0x8] sm:$0xff] %v145_v17 }
  0xaa   :  { %151 = vst [vmem:[%s283_s3 + $0x18] sm:$0xff] %v147_v18 }

// kernel: g128_forward.74
= control target key start
LH: loop header
LB: loop body
LE: loop exit
PB: predicated region body
PF: predicated region fallthrough
CT: control target
= control target key end

     0   :  { %s817_s1 = inlined_call_operand.vmem [shape: bf16[512,128], index: 1, kind: input, shape index: {}]   ;;  %s818_s0 = inlined_call_operand.vmem [shape: bf16[32,512], index: 0, kind: input, shape index: {}]   ;;  %s819_s2 = inlined_call_operand.vmem [shape: f32[1,128], index: 2, kind: input, shape index: {}]   ;;  %s820_s3 = inlined_call_operand.vmem [shape: f32[32,128], index: 3, kind: output, shape index: {}]  }
   0x1   :  { %v612_v0 = vld [vmem:[%s817_s1 + $0x38] sm:$0xff]  ;;  %v611_v4 = vld [vmem:[%s817_s1 + $0x30] sm:$0xff]  ;;  %v610_v8 = vld [vmem:[%s817_s1 + $0x28] sm:$0xff] }
   0x2   :  { %v620_v1 = vld [vmem:[%s817_s1 + $0x78] sm:$0xff]  ;;  %330 = vmatpush.bf16.msra.mxu0 %v612_v0  ;;  %v619_v5 = vld [vmem:[%s817_s1 + $0x70] sm:$0xff]  ;;  %v618_v9 = vld [vmem:[%s817_s1 + $0x68] sm:$0xff] }
   0x3   :  { %v628_v2 = vld [vmem:[%s817_s1 + $0xb8] sm:$0xff]  ;;  %349 = vmatpush.bf16.msra.mxu1 %v620_v1  ;;  %v627_v6 = vld [vmem:[%s817_s1 + $0xb0] sm:$0xff]  ;;  %v626_v10 = vld [vmem:[%s817_s1 + $0xa8] sm:$0xff] }
   0x4   :  { %v636_v3 = vld [vmem:[%s817_s1 + $0xf8] sm:$0xff]  ;;  %368 = vmatpush.bf16.msra.mxu2 %v628_v2  ;;  %v635_v7 = vld [vmem:[%s817_s1 + $0xf0] sm:$0xff]  ;;  %v634_v11 = vld [vmem:[%s817_s1 + $0xe8] sm:$0xff] }
   0x5   :  { %387 = vmatpush.bf16.msra.mxu3 %v636_v3  ;;  %v609_v12 = vld [vmem:[%s817_s1 + $0x20] sm:$0xff]  ;;  %v608_v16 = vld [vmem:[%s817_s1 + $0x18] sm:$0xff]  ;;  %v607_v20 = vld [vmem:[%s817_s1 + $0x10] sm:$0xff] }
   0x6   :  { %331 = vmatpush.bf16.msra.mxu0 %v611_v4  ;;  %v617_v13 = vld [vmem:[%s817_s1 + $0x60] sm:$0xff]  ;;  %v616_v17 = vld [vmem:[%s817_s1 + $0x58] sm:$0xff]  ;;  %v615_v21 = vld [vmem:[%s817_s1 + $0x50] sm:$0xff] }
   0x7   :  { %350 = vmatpush.bf16.msra.mxu1 %v619_v5  ;;  %v625_v14 = vld [vmem:[%s817_s1 + $0xa0] sm:$0xff]  ;;  %v624_v18 = vld [vmem:[%s817_s1 + $0x98] sm:$0xff]  ;;  %v623_v22 = vld [vmem:[%s817_s1 + $0x90] sm:$0xff] }
   0x8   :  { %369 = vmatpush.bf16.msra.mxu2 %v627_v6  ;;  %v633_v15 = vld [vmem:[%s817_s1 + $0xe0] sm:$0xff]  ;;  %v632_v19 = vld [vmem:[%s817_s1 + $0xd8] sm:$0xff]  ;;  %v631_v23 = vld [vmem:[%s817_s1 + $0xd0] sm:$0xff] }
   0x9   :  { %388 = vmatpush.bf16.msra.mxu3 %v635_v7  ;;  %v606_v24 = vld [vmem:[%s817_s1 + $0x8] sm:$0xff]  ;;  %v605_v28 = vld [vmem:[%s817_s1] sm:$0xff]  ;;  %v599_v33 = vld [vmem:[%s818_s0 + $0xc] sm:$0xf0] }
   0xa   :  { %332 = vmatpush.bf16.msra.mxu0 %v610_v8  ;;  %v614_v25 = vld [vmem:[%s817_s1 + $0x48] sm:$0xff]  ;;  %v613_v29 = vld [vmem:[%s817_s1 + $0x40] sm:$0xff]  ;;  %v441_v35 = vld [vmem:[%s818_s0 + $0x10] sm:$0xf0] }
   0xb   :  { %351 = vmatpush.bf16.msra.mxu1 %v618_v9  ;;  %v622_v26 = vld [vmem:[%s817_s1 + $0x88] sm:$0xff]  ;;  %v621_v30 = vld [vmem:[%s817_s1 + $0x80] sm:$0xff]  ;;  %v600_v37 = vld [vmem:[%s818_s0 + $0x14] sm:$0xf0] }
   0xc   :  { %370 = vmatpush.bf16.msra.mxu2 %v626_v10  ;;  %v630_v27 = vld [vmem:[%s817_s1 + $0xc8] sm:$0xff]  ;;  %v629_v31 = vld [vmem:[%s817_s1 + $0xc0] sm:$0xff]  ;;  %v449_v39 = vld [vmem:[%s818_s0 + $0x18] sm:$0xf0] }
   0xd   :  { %389 = vmatpush.bf16.msra.mxu3 %v634_v11  ;;  %v439_v32 = vld [vmem:[%s818_s0] sm:$0xf]  ;;  %v597_v34 = vld [vmem:[%s818_s0 + $0x4] sm:$0xf]  ;;  %v447_v36 = vld [vmem:[%s818_s0 + $0x8] sm:$0xf] }
   0xe   :  { %333 = vmatpush.bf16.msra.mxu0 %v609_v12  ;;  %v598_v38 = vld [vmem:[%s818_s0 + $0xc] sm:$0xf]  ;;  %v440_v40 = vor.u32 %v599_v33, %v439_v32  ;;  %v444_v41 = vor.u32 %v597_v34, %v441_v35  ;;  %v448_v42 = vor.u32 %v600_v37, %v447_v36  ;;  %v455_v44 = vld [vmem:[%s818_s0 + $0x20] sm:$0xf]  ;;  %v603_v45 = vld [vmem:[%s818_s0 + $0x2c] sm:$0xf0] }
   0xf   :  { %352 = vmatpush.bf16.msra.mxu1 %v617_v13  ;;  %v452_v43 = vor.u32 %v598_v38, %v449_v39  ;;  %v601_v46 = vld [vmem:[%s818_s0 + $0x24] sm:$0xf]  ;;  %v457_v47 = vld [vmem:[%s818_s0 + $0x30] sm:$0xf0]  ;;  %v463_v48 = vld [vmem:[%s818_s0 + $0x28] sm:$0xf]  ;;  %v456_v52 = vor.u32 %v603_v45, %v455_v44 }
  0x10   :  { %371 = vmatpush.bf16.msra.mxu2 %v625_v14  ;;  %v604_v49 = vld [vmem:[%s818_s0 + $0x34] sm:$0xf0]  ;;  %v602_v50 = vld [vmem:[%s818_s0 + $0x2c] sm:$0xf]  ;;  %v465_v51 = vld [vmem:[%s818_s0 + $0x38] sm:$0xf0]  ;;  %v460_v53 = vor.u32 %v601_v46, %v457_v47 }
  0x11   :  { %390 = vmatpush.bf16.msra.mxu3 %v633_v15  ;;  %v464_v54 = vor.u32 %v604_v49, %v463_v48  ;;  %v468_v55 = vor.u32 %v602_v50, %v465_v51  ;;  %v637_v62 = vld [vmem:[%s819_s2] ss:$0 sm:$0xff] }
  0x12   :  { %334 = vmatpush.bf16.msra.mxu0 %v608_v16 }
  0x13   :  { %353 = vmatpush.bf16.msra.mxu1 %v616_v17 }
  0x14   :  { %372 = vmatpush.bf16.msra.mxu2 %v624_v18 }
  0x15   :  { %391 = vmatpush.bf16.msra.mxu3 %v632_v19 }
  0x16   :  { %335 = vmatpush.bf16.msra.mxu0 %v607_v20 }
  0x17   :  { %354 = vmatpush.bf16.msra.mxu1 %v615_v21 }
  0x18   :  { %373 = vmatpush.bf16.msra.mxu2 %v623_v22 }
  0x19   :  { %392 = vmatpush.bf16.msra.mxu3 %v631_v23 }
  0x1a   :  { %336 = vmatpush.bf16.msra.mxu0 %v606_v24 }
  0x1b   :  { %355 = vmatpush.bf16.msra.mxu1 %v614_v25 }
  0x1c   :  { %374 = vmatpush.bf16.msra.mxu2 %v622_v26 }
  0x1d   :  { %393 = vmatpush.bf16.msra.mxu3 %v630_v27 }
  0x1e   :  { %337 = vmatpush.bf16.msra.mxu0 %v605_v28 }
  0x1f   :  { %356 = vmatpush.bf16.msra.mxu1 %v613_v29 }
  0x20   :  { %375 = vmatpush.bf16.msra.mxu2 %v621_v30 }
  0x21   :  { %394 = vmatpush.bf16.msra.mxu3 %v629_v31  ;;  %338 = vmatmul.bf16.vlgmr.msra.gmra.mxu0 %v440_v40 }
  0x22   :  { %357 = vmatmul.bf16.vlgmr.msra.gmra.mxu1 %v444_v41 }
  0x23   :  { %376 = vmatmul.bf16.vlgmr.msra.gmra.mxu2 %v448_v42 }
  0x24   :  { %395 = vmatmul.bf16.vlgmr.msra.gmra.mxu3 %v452_v43 }
  0x31   :  { %343 = vmatmul.bf16.gmra.mxu0 %v456_v52 }
  0x32   :  { %362 = vmatmul.bf16.gmra.mxu1 %v460_v53 }
  0x33   :  { %381 = vmatmul.bf16.gmra.mxu2 %v464_v54 }
  0x34   :  { %400 = vmatmul.bf16.gmra.mxu3 %v468_v55 }
  0x9e   :  { %v339_v56 = vpop.f32.mrf.mxu0 }
  0x9f   :  { %v358_v57 = vpop.f32.mrf.mxu1 }
  0xa0   :  { %v359_v58 = vadd.f32 %v358_v57, %v339_v56 }
  0xa6   :  { %v377_v59 = vpop.f32.mrf.mxu2  ;;  %v341_v63 = vpop.f32.mrf.mxu0 }
  0xa7   :  { %v396_v60 = vpop.f32.mrf.mxu3  ;;  %v378_v61 = vadd.f32 %v377_v59, %v359_v58  ;;  %v360_v0 = vpop.f32.mrf.mxu1 }
  0xa8   :  { %v361_v3 = vadd.f32 %v360_v0, %v341_v63 }
  0xa9   :  { %v397_v1 = vadd.f32 %v396_v60, %v378_v61 }
  0xab   :  { %v425_v2 = vadd.f32 %v637_v62, %v397_v1 }
  0xad   :  { %429 = vst [vmem:[%s820_s3] sm:$0xff] %v425_v2 }
  0xae   :  { %v379_v4 = vpop.f32.mrf.mxu2  ;;  %v344_v7 = vpop.f32.mrf.mxu0 }
  0xaf   :  { %v398_v5 = vpop.f32.mrf.mxu3  ;;  %v380_v6 = vadd.f32 %v379_v4, %v361_v3  ;;  %v363_v8 = vpop.f32.mrf.mxu1 }
  0xb0   :  { %v364_v11 = vadd.f32 %v363_v8, %v344_v7 }
  0xb1   :  { %v399_v9 = vadd.f32 %v398_v5, %v380_v6 }
  0xb3   :  { %v426_v10 = vadd.f32 %v637_v62, %v399_v9 }
  0xb5   :  { %430 = vst [vmem:[%s820_s3 + $0x8] sm:$0xff] %v426_v10 }
  0xb6   :  { %v382_v12 = vpop.f32.mrf.mxu2  ;;  %v346_v16 = vpop.f32.mrf.mxu0 }
  0xb7   :  { %v401_v13 = vpop.f32.mrf.mxu3  ;;  %v383_v14 = vadd.f32 %v382_v12, %v364_v11  ;;  %v365_v17 = vpop.f32.mrf.mxu1 }
  0xb8   :  { %v366_v19 = vadd.f32 %v365_v17, %v346_v16 }
  0xb9   :  { %v402_v15 = vadd.f32 %v401_v13, %v383_v14 }
  0xbb   :  { %v427_v18 = vadd.f32 %v637_v62, %v402_v15 }
  0xbd   :  { %431 = vst [vmem:[%s820_s3 + $0x10] sm:$0xff] %v427_v18 }
  0xbe   :  { %v384_v20 = vpop.f32.mrf.mxu2 }
  0xbf   :  { %v385_v21 = vadd.f32 %v384_v20, %v366_v19  ;;  %v403_v22 = vpop.f32.mrf.mxu3 }
  0xc1   :  { %v404_v23 = vadd.f32 %v403_v22, %v385_v21 }
  0xc3   :  { %v428_v24 = vadd.f32 %v637_v62, %v404_v23 }
  0xc5   :  { %432 = vst [vmem:[%s820_s3 + $0x18] sm:$0xff] %v428_v24 }

// kernel: g128_forward.76
= control target key start
LH: loop header
LB: loop body
LE: loop exit
PB: predicated region body
PF: predicated region fallthrough
CT: control target
= control target key end

     0   :  { %s542_s1 = inlined_call_operand.vmem [shape: bf16[128,128], index: 1, kind: input, shape index: {}]   ;;  %s543_s2 = inlined_call_operand.vmem [shape: f32[1,128], index: 2, kind: input, shape index: {}]   ;;  %s544_s0 = inlined_call_operand.vmem [shape: bf16[128,128], index: 0, kind: input, shape index: {}]   ;;  %s545_s3 = inlined_call_operand.vmem [shape: f32[128,128], index: 3, kind: output, shape index: {}]  }
   0x1   :  { %v397_v0 = vld [vmem:[%s542_s1 + $0x38] sm:$0xff]  ;;  %v396_v1 = vld [vmem:[%s542_s1 + $0x30] sm:$0xff]  ;;  %v395_v2 = vld [vmem:[%s542_s1 + $0x28] sm:$0xff] }
   0x2   :  { %178 = vmatpush.bf16.msra.mxu0 %v397_v0  ;;  %398 = vmatpush.bf16.msra.mxu1 %v397_v0  ;;  %v394_v3 = vld [vmem:[%s542_s1 + $0x20] sm:$0xff]  ;;  %v393_v4 = vld [vmem:[%s542_s1 + $0x18] sm:$0xff]  ;;  %v392_v5 = vld [vmem:[%s542_s1 + $0x10] sm:$0xff] }
   0x3   :  { %399 = vmatpush.bf16.msra.mxu2 %v397_v0  ;;  %400 = vmatpush.bf16.msra.mxu3 %v397_v0  ;;  %v391_v6 = vld [vmem:[%s542_s1 + $0x8] sm:$0xff]  ;;  %v390_v7 = vld [vmem:[%s542_s1] sm:$0xff]  ;;  %v384_v9 = vld [vmem:[%s544_s0 + $0x10] sm:$0xff] }
   0x4   :  { %v382_v8 = vld [vmem:[%s544_s0] sm:$0xff]  ;;  %v388_v11 = vld [vmem:[%s544_s0 + $0x30] sm:$0xff]  ;;  %v383_v12 = vld [vmem:[%s544_s0 + $0x8] sm:$0xff] }
   0x5   :  { %v386_v10 = vld [vmem:[%s544_s0 + $0x20] sm:$0xff]  ;;  %v385_v13 = vld [vmem:[%s544_s0 + $0x18] sm:$0xff]  ;;  %v387_v14 = vld [vmem:[%s544_s0 + $0x28] sm:$0xff] }
   0x6   :  { %179 = vmatpush.bf16.msra.mxu0 %v396_v1  ;;  %401 = vmatpush.bf16.msra.mxu1 %v396_v1  ;;  %v389_v15 = vld [vmem:[%s544_s0 + $0x38] sm:$0xff]  ;;  %v422_v16 = vld [vmem:[%s543_s2] ss:$0 sm:$0xff] }
   0x7   :  { %402 = vmatpush.bf16.msra.mxu2 %v396_v1  ;;  %403 = vmatpush.bf16.msra.mxu3 %v396_v1 }
   0xa   :  { %180 = vmatpush.bf16.msra.mxu0 %v395_v2  ;;  %404 = vmatpush.bf16.msra.mxu1 %v395_v2 }
   0xb   :  { %405 = vmatpush.bf16.msra.mxu2 %v395_v2  ;;  %406 = vmatpush.bf16.msra.mxu3 %v395_v2 }
   0xe   :  { %181 = vmatpush.bf16.msra.mxu0 %v394_v3  ;;  %407 = vmatpush.bf16.msra.mxu1 %v394_v3 }
   0xf   :  { %408 = vmatpush.bf16.msra.mxu2 %v394_v3  ;;  %409 = vmatpush.bf16.msra.mxu3 %v394_v3 }
  0x12   :  { %182 = vmatpush.bf16.msra.mxu0 %v393_v4  ;;  %410 = vmatpush.bf16.msra.mxu1 %v393_v4 }
  0x13   :  { %411 = vmatpush.bf16.msra.mxu2 %v393_v4  ;;  %412 = vmatpush.bf16.msra.mxu3 %v393_v4 }
  0x16   :  { %183 = vmatpush.bf16.msra.mxu0 %v392_v5  ;;  %413 = vmatpush.bf16.msra.mxu1 %v392_v5 }
  0x17   :  { %414 = vmatpush.bf16.msra.mxu2 %v392_v5  ;;  %415 = vmatpush.bf16.msra.mxu3 %v392_v5 }
  0x1a   :  { %184 = vmatpush.bf16.msra.mxu0 %v391_v6  ;;  %416 = vmatpush.bf16.msra.mxu1 %v391_v6 }
  0x1b   :  { %417 = vmatpush.bf16.msra.mxu2 %v391_v6  ;;  %418 = vmatpush.bf16.msra.mxu3 %v391_v6 }
  0x1e   :  { %185 = vmatpush.bf16.msra.mxu0 %v390_v7  ;;  %419 = vmatpush.bf16.msra.mxu1 %v390_v7 }
  0x1f   :  { %420 = vmatpush.bf16.msra.mxu2 %v390_v7  ;;  %421 = vmatpush.bf16.msra.mxu3 %v390_v7 }
  0x21   :  { %186 = vmatmul.bf16.vlgmr.msra.gmra.mxu0 %v382_v8  ;;  %196 = vmatmul.bf16.vlgmr.msra.gmra.mxu1 %v384_v9 }
  0x22   :  { %206 = vmatmul.bf16.vlgmr.msra.gmra.mxu2 %v386_v10  ;;  %216 = vmatmul.bf16.vlgmr.msra.gmra.mxu3 %v388_v11 }
  0x31   :  { %191 = vmatmul.bf16.gmra.mxu0 %v383_v12  ;;  %201 = vmatmul.bf16.gmra.mxu1 %v385_v13 }
  0x32   :  { %211 = vmatmul.bf16.gmra.mxu2 %v387_v14  ;;  %221 = vmatmul.bf16.gmra.mxu3 %v389_v15 }
  0x9e   :  { %v187_v17 = vpop.f32.mrf.mxu0  ;;  %v197_v18 = vpop.f32.mrf.mxu1 }
  0x9f   :  { %v282_v19 = vadd.f32 %v422_v16, %v187_v17  ;;  %v286_v20 = vadd.f32 %v422_v16, %v197_v18 }
  0xa1   :  { %298 = vst [vmem:[%s545_s3] sm:$0xff] %v282_v19 }
  0xa2   :  { %302 = vst [vmem:[%s545_s3 + $0x20] sm:$0xff] %v286_v20 }
  0xa5   :  { %v207_v21 = vpop.f32.mrf.mxu2  ;;  %v217_v22 = vpop.f32.mrf.mxu3 }
  0xa6   :  { %v290_v23 = vadd.f32 %v422_v16, %v207_v21  ;;  %v294_v24 = vadd.f32 %v422_v16, %v217_v22  ;;  %v189_v25 = vpop.f32.mrf.mxu0  ;;  %v199_v26 = vpop.f32.mrf.mxu1 }
  0xa7   :  { %v283_v27 = vadd.f32 %v422_v16, %v189_v25  ;;  %v287_v28 = vadd.f32 %v422_v16, %v199_v26 }
  0xa8   :  { %306 = vst [vmem:[%s545_s3 + $0x40] sm:$0xff] %v290_v23 }
  0xa9   :  { %310 = vst [vmem:[%s545_s3 + $0x60] sm:$0xff] %v294_v24 }
  0xaa   :  { %299 = vst [vmem:[%s545_s3 + $0x8] sm:$0xff] %v283_v27 }
  0xab   :  { %303 = vst [vmem:[%s545_s3 + $0x28] sm:$0xff] %v287_v28 }
  0xad   :  { %v209_v29 = vpop.f32.mrf.mxu2  ;;  %v219_v30 = vpop.f32.mrf.mxu3 }
  0xae   :  { %v291_v31 = vadd.f32 %v422_v16, %v209_v29  ;;  %v295_v32 = vadd.f32 %v422_v16, %v219_v30  ;;  %v192_v33 = vpop.f32.mrf.mxu0  ;;  %v202_v34 = vpop.f32.mrf.mxu1 }
  0xaf   :  { %v284_v35 = vadd.f32 %v422_v16, %v192_v33  ;;  %v288_v36 = vadd.f32 %v422_v16, %v202_v34 }
  0xb0   :  { %307 = vst [vmem:[%s545_s3 + $0x48] sm:$0xff] %v291_v31 }
  0xb1   :  { %311 = vst [vmem:[%s545_s3 + $0x68] sm:$0xff] %v295_v32 }
  0xb2   :  { %300 = vst [vmem:[%s545_s3 + $0x10] sm:$0xff] %v284_v35 }
  0xb3   :  { %304 = vst [vmem:[%s545_s3 + $0x30] sm:$0xff] %v288_v36 }
  0xb5   :  { %v212_v37 = vpop.f32.mrf.mxu2  ;;  %v222_v38 = vpop.f32.mrf.mxu3 }
  0xb6   :  { %v292_v39 = vadd.f32 %v422_v16, %v212_v37  ;;  %v296_v40 = vadd.f32 %v422_v16, %v222_v38  ;;  %v194_v41 = vpop.f32.mrf.mxu0  ;;  %v204_v42 = vpop.f32.mrf.mxu1 }
  0xb7   :  { %v285_v43 = vadd.f32 %v422_v16, %v194_v41  ;;  %v289_v44 = vadd.f32 %v422_v16, %v204_v42 }
  0xb8   :  { %308 = vst [vmem:[%s545_s3 + $0x50] sm:$0xff] %v292_v39 }
  0xb9   :  { %312 = vst [vmem:[%s545_s3 + $0x70] sm:$0xff] %v296_v40 }
  0xba   :  { %301 = vst [vmem:[%s545_s3 + $0x18] sm:$0xff] %v285_v43 }
  0xbb   :  { %305 = vst [vmem:[%s545_s3 + $0x38] sm:$0xff] %v289_v44 }
  0xbd   :  { %v214_v45 = vpop.f32.mrf.mxu2  ;;  %v224_v46 = vpop.f32.mrf.mxu3 }
  0xbe   :  { %v293_v47 = vadd.f32 %v422_v16, %v214_v45  ;;  %v297_v48 = vadd.f32 %v422_v16, %v224_v46 }
  0xc0   :  { %309 = vst [vmem:[%s545_s3 + $0x58] sm:$0xff] %v293_v47 }
  0xc1   :  { %313 = vst [vmem:[%s545_s3 + $0x78] sm:$0xff] %v297_v48 }

// kernel: g128_forward.79
= control target key start
LH: loop header
LB: loop body
LE: loop exit
PB: predicated region body
PF: predicated region fallthrough
CT: control target
= control target key end

     0   :  { %s873_s1 = inlined_call_operand.vmem [shape: bf16[256,128], index: 1, kind: input, shape index: {}]   ;;  %s874_s0 = inlined_call_operand.vmem [shape: bf16[128,256], index: 0, kind: input, shape index: {}]   ;;  %s875_s2 = inlined_call_operand.vmem [shape: f32[1,128], index: 2, kind: input, shape index: {}]   ;;  %s876_s3 = inlined_call_operand.vmem [shape: f32[128,128], index: 3, kind: output, shape index: {}]  }
   0x1   :  { %v614_v0 = vld [vmem:[%s873_s1 + $0x38] sm:$0xff]  ;;  %v613_v2 = vld [vmem:[%s873_s1 + $0x30] sm:$0xff]  ;;  %v612_v4 = vld [vmem:[%s873_s1 + $0x28] sm:$0xff] }
   0x2   :  { %v622_v1 = vld [vmem:[%s873_s1 + $0x78] sm:$0xff]  ;;  %274 = vmatpush.bf16.msra.mxu0 %v614_v0  ;;  %623 = vmatpush.bf16.msra.mxu2 %v614_v0  ;;  %v621_v3 = vld [vmem:[%s873_s1 + $0x70] sm:$0xff]  ;;  %v620_v5 = vld [vmem:[%s873_s1 + $0x68] sm:$0xff] }
   0x3   :  { %323 = vmatpush.bf16.msra.mxu1 %v622_v1  ;;  %631 = vmatpush.bf16.msra.mxu3 %v622_v1  ;;  %v611_v6 = vld [vmem:[%s873_s1 + $0x20] sm:$0xff]  ;;  %v610_v8 = vld [vmem:[%s873_s1 + $0x18] sm:$0xff]  ;;  %v609_v10 = vld [vmem:[%s873_s1 + $0x10] sm:$0xff] }
   0x4   :  { %v619_v7 = vld [vmem:[%s873_s1 + $0x60] sm:$0xff]  ;;  %v618_v9 = vld [vmem:[%s873_s1 + $0x58] sm:$0xff]  ;;  %v617_v11 = vld [vmem:[%s873_s1 + $0x50] sm:$0xff] }
   0x5   :  { %v608_v12 = vld [vmem:[%s873_s1 + $0x8] sm:$0xff]  ;;  %v607_v14 = vld [vmem:[%s873_s1] sm:$0xff]  ;;  %v473_v28 = vld [vmem:[%s874_s0 + $0x10] sm:$0xf] }
   0x6   :  { %275 = vmatpush.bf16.msra.mxu0 %v613_v2  ;;  %624 = vmatpush.bf16.msra.mxu2 %v613_v2  ;;  %v616_v13 = vld [vmem:[%s873_s1 + $0x48] sm:$0xff]  ;;  %v615_v15 = vld [vmem:[%s873_s1 + $0x40] sm:$0xff]  ;;  %v594_v29 = vld [vmem:[%s874_s0 + $0x14] sm:$0xf0] }
   0x7   :  { %324 = vmatpush.bf16.msra.mxu1 %v621_v3  ;;  %632 = vmatpush.bf16.msra.mxu3 %v621_v3  ;;  %v465_v16 = vld [vmem:[%s874_s0] sm:$0xf]  ;;  %v592_v17 = vld [vmem:[%s874_s0 + $0x4] sm:$0xf0]  ;;  %v591_v20 = vld [vmem:[%s874_s0 + $0x4] sm:$0xf]  ;;  %v474_v36 = vor.u32 %v594_v29, %v473_v28 }
   0x8   :  { %v497_v18 = vld [vmem:[%s874_s0 + $0x40] sm:$0xf]  ;;  %v600_v19 = vld [vmem:[%s874_s0 + $0x44] sm:$0xf0]  ;;  %v467_v21 = vld [vmem:[%s874_s0 + $0x8] sm:$0xf0]  ;;  %v466_v24 = vor.u32 %v592_v17, %v465_v16 }
   0x9   :  { %v599_v22 = vld [vmem:[%s874_s0 + $0x44] sm:$0xf]  ;;  %v499_v23 = vld [vmem:[%s874_s0 + $0x48] sm:$0xf0]  ;;  %v498_v25 = vor.u32 %v600_v19, %v497_v18  ;;  %v470_v26 = vor.u32 %v591_v20, %v467_v21  ;;  %v505_v30 = vld [vmem:[%s874_s0 + $0x50] sm:$0xf] }
   0xa   :  { %276 = vmatpush.bf16.msra.mxu0 %v612_v4  ;;  %625 = vmatpush.bf16.msra.mxu2 %v612_v4  ;;  %v502_v27 = vor.u32 %v599_v22, %v499_v23  ;;  %v602_v31 = vld [vmem:[%s874_s0 + $0x54] sm:$0xf0]  ;;  %v593_v32 = vld [vmem:[%s874_s0 + $0x14] sm:$0xf]  ;;  %v475_v33 = vld [vmem:[%s874_s0 + $0x18] sm:$0xf0] }
   0xb   :  { %325 = vmatpush.bf16.msra.mxu1 %v620_v5  ;;  %633 = vmatpush.bf16.msra.mxu3 %v620_v5  ;;  %v601_v34 = vld [vmem:[%s874_s0 + $0x54] sm:$0xf]  ;;  %v507_v35 = vld [vmem:[%s874_s0 + $0x58] sm:$0xf0]  ;;  %v506_v37 = vor.u32 %v602_v31, %v505_v30  ;;  %v478_v38 = vor.u32 %v593_v32, %v475_v33  ;;  %v481_v40 = vld [vmem:[%s874_s0 + $0x20] sm:$0xf] }
   0xc   :  { %v510_v39 = vor.u32 %v601_v34, %v507_v35  ;;  %v596_v41 = vld [vmem:[%s874_s0 + $0x24] sm:$0xf0]  ;;  %v513_v42 = vld [vmem:[%s874_s0 + $0x60] sm:$0xf]  ;;  %v595_v44 = vld [vmem:[%s874_s0 + $0x24] sm:$0xf] }
   0xd   :  { %v604_v43 = vld [vmem:[%s874_s0 + $0x64] sm:$0xf0]  ;;  %v483_v45 = vld [vmem:[%s874_s0 + $0x28] sm:$0xf0]  ;;  %v603_v46 = vld [vmem:[%s874_s0 + $0x64] sm:$0xf]  ;;  %v482_v48 = vor.u32 %v596_v41, %v481_v40 }
   0xe   :  { %277 = vmatpush.bf16.msra.mxu0 %v611_v6  ;;  %626 = vmatpush.bf16.msra.mxu2 %v611_v6  ;;  %v515_v47 = vld [vmem:[%s874_s0 + $0x68] sm:$0xf0]  ;;  %v514_v49 = vor.u32 %v604_v43, %v513_v42  ;;  %v486_v50 = vor.u32 %v595_v44, %v483_v45  ;;  %v489_v52 = vld [vmem:[%s874_s0 + $0x30] sm:$0xf]  ;;  %v598_v53 = vld [vmem:[%s874_s0 + $0x34] sm:$0xf0] }
   0xf   :  { %326 = vmatpush.bf16.msra.mxu1 %v619_v7  ;;  %634 = vmatpush.bf16.msra.mxu3 %v619_v7  ;;  %v518_v51 = vor.u32 %v603_v46, %v515_v47  ;;  %v521_v54 = vld [vmem:[%s874_s0 + $0x70] sm:$0xf]  ;;  %v606_v55 = vld [vmem:[%s874_s0 + $0x74] sm:$0xf0]  ;;  %v597_v56 = vld [vmem:[%s874_s0 + $0x34] sm:$0xf]  ;;  %v490_v60 = vor.u32 %v598_v53, %v489_v52 }
  0x10   :  { %v491_v57 = vld [vmem:[%s874_s0 + $0x38] sm:$0xf0]  ;;  %v605_v58 = vld [vmem:[%s874_s0 + $0x74] sm:$0xf]  ;;  %v522_v61 = vor.u32 %v606_v55, %v521_v54  ;;  %v807_v1 = vld [vmem:[%s875_s2] ss:$0 sm:$0xff] }
  0x11   :  { %v523_v59 = vld [vmem:[%s874_s0 + $0x78] sm:$0xf0]  ;;  %v494_v62 = vor.u32 %v597_v56, %v491_v57 }
  0x12   :  { %278 = vmatpush.bf16.msra.mxu0 %v610_v8  ;;  %627 = vmatpush.bf16.msra.mxu2 %v610_v8  ;;  %v526_v63 = vor.u32 %v605_v58, %v523_v59 }
  0x13   :  { %327 = vmatpush.bf16.msra.mxu1 %v618_v9  ;;  %635 = vmatpush.bf16.msra.mxu3 %v618_v9 }
  0x16   :  { %279 = vmatpush.bf16.msra.mxu0 %v609_v10  ;;  %628 = vmatpush.bf16.msra.mxu2 %v609_v10 }
  0x17   :  { %328 = vmatpush.bf16.msra.mxu1 %v617_v11  ;;  %636 = vmatpush.bf16.msra.mxu3 %v617_v11 }
  0x1a   :  { %280 = vmatpush.bf16.msra.mxu0 %v608_v12  ;;  %629 = vmatpush.bf16.msra.mxu2 %v608_v12 }
  0x1b   :  { %329 = vmatpush.bf16.msra.mxu1 %v616_v13  ;;  %637 = vmatpush.bf16.msra.mxu3 %v616_v13 }
  0x1e   :  { %281 = vmatpush.bf16.msra.mxu0 %v607_v14  ;;  %630 = vmatpush.bf16.msra.mxu2 %v607_v14 }
  0x1f   :  { %330 = vmatpush.bf16.msra.mxu1 %v615_v15  ;;  %638 = vmatpush.bf16.msra.mxu3 %v615_v15 }
  0x21   :  { %282 = vmatmul.bf16.vlgmr.msra.gmra.mxu0 %v466_v24  ;;  %302 = vmatmul.bf16.vlgmr.msra.gmra.mxu2 %v498_v25 }
  0x22   :  { %331 = vmatmul.bf16.vlgmr.msra.gmra.mxu1 %v470_v26  ;;  %351 = vmatmul.bf16.vlgmr.msra.gmra.mxu3 %v502_v27 }
  0x31   :  { %287 = vmatmul.bf16.gmra.mxu0 %v474_v36  ;;  %307 = vmatmul.bf16.gmra.mxu2 %v506_v37 }
  0x32   :  { %336 = vmatmul.bf16.gmra.mxu1 %v478_v38  ;;  %356 = vmatmul.bf16.gmra.mxu3 %v510_v39 }
  0x41   :  { %292 = vmatmul.bf16.gmra.mxu0 %v482_v48  ;;  %312 = vmatmul.bf16.gmra.mxu2 %v514_v49 }
  0x42   :  { %341 = vmatmul.bf16.gmra.mxu1 %v486_v50  ;;  %361 = vmatmul.bf16.gmra.mxu3 %v518_v51 }
  0x51   :  { %297 = vmatmul.bf16.gmra.mxu0 %v490_v60  ;;  %317 = vmatmul.bf16.gmra.mxu2 %v522_v61 }
  0x52   :  { %346 = vmatmul.bf16.gmra.mxu1 %v494_v62  ;;  %366 = vmatmul.bf16.gmra.mxu3 %v526_v63 }
  0x9e   :  { %v283_v0 = vpop.f32.mrf.mxu0 }
  0x9f   :  { %v332_v2 = vpop.f32.mrf.mxu1 }
  0xa0   :  { %v333_v3 = vadd.f32 %v332_v2, %v283_v0 }
  0xa2   :  { %v427_v4 = vadd.f32 %v807_v1, %v333_v3 }
  0xa4   :  { %443 = vst [vmem:[%s876_s3] sm:$0xff] %v427_v4  ;;  %v303_v5 = vpop.f32.mrf.mxu2 }
  0xa5   :  { %v352_v6 = vpop.f32.mrf.mxu3 }
  0xa6   :  { %v353_v7 = vadd.f32 %v352_v6, %v303_v5  ;;  %v285_v8 = vpop.f32.mrf.mxu0 }
  0xa7   :  { %v334_v9 = vpop.f32.mrf.mxu1 }
  0xa8   :  { %v435_v10 = vadd.f32 %v807_v1, %v353_v7  ;;  %v335_v11 = vadd.f32 %v334_v9, %v285_v8 }
  0xaa   :  { %451 = vst [vmem:[%s876_s3 + $0x40] sm:$0xff] %v435_v10  ;;  %v428_v12 = vadd.f32 %v807_v1, %v335_v11 }
  0xac   :  { %444 = vst [vmem:[%s876_s3 + $0x8] sm:$0xff] %v428_v12  ;;  %v305_v13 = vpop.f32.mrf.mxu2 }
  0xad   :  { %v354_v14 = vpop.f32.mrf.mxu3 }
  0xae   :  { %v355_v15 = vadd.f32 %v354_v14, %v305_v13  ;;  %v288_v16 = vpop.f32.mrf.mxu0 }
  0xaf   :  { %v337_v17 = vpop.f32.mrf.mxu1 }
  0xb0   :  { %v436_v18 = vadd.f32 %v807_v1, %v355_v15  ;;  %v338_v19 = vadd.f32 %v337_v17, %v288_v16 }
  0xb2   :  { %452 = vst [vmem:[%s876_s3 + $0x48] sm:$0xff] %v436_v18  ;;  %v429_v20 = vadd.f32 %v807_v1, %v338_v19 }
  0xb4   :  { %445 = vst [vmem:[%s876_s3 + $0x10] sm:$0xff] %v429_v20  ;;  %v308_v21 = vpop.f32.mrf.mxu2 }
  0xb5   :  { %v357_v22 = vpop.f32.mrf.mxu3 }
  0xb6   :  { %v358_v23 = vadd.f32 %v357_v22, %v308_v21  ;;  %v290_v24 = vpop.f32.mrf.mxu0 }
  0xb7   :  { %v339_v25 = vpop.f32.mrf.mxu1 }
  0xb8   :  { %v437_v26 = vadd.f32 %v807_v1, %v358_v23  ;;  %v340_v27 = vadd.f32 %v339_v25, %v290_v24 }
  0xba   :  { %453 = vst [vmem:[%s876_s3 + $0x50] sm:$0xff] %v437_v26  ;;  %v430_v28 = vadd.f32 %v807_v1, %v340_v27 }
  0xbc   :  { %446 = vst [vmem:[%s876_s3 + $0x18] sm:$0xff] %v430_v28  ;;  %v310_v29 = vpop.f32.mrf.mxu2 }
  0xbd   :  { %v359_v30 = vpop.f32.mrf.mxu3 }
  0xbe   :  { %v360_v31 = vadd.f32 %v359_v30, %v310_v29  ;;  %v293_v32 = vpop.f32.mrf.mxu0 }
  0xbf   :  { %v342_v33 = vpop.f32.mrf.mxu1 }
  0xc0   :  { %v438_v34 = vadd.f32 %v807_v1, %v360_v31  ;;  %v343_v35 = vadd.f32 %v342_v33, %v293_v32 }
  0xc2   :  { %454 = vst [vmem:[%s876_s3 + $0x58] sm:$0xff] %v438_v34  ;;  %v431_v36 = vadd.f32 %v807_v1, %v343_v35 }
  0xc4   :  { %447 = vst [vmem:[%s876_s3 + $0x20] sm:$0xff] %v431_v36  ;;  %v313_v37 = vpop.f32.mrf.mxu2 }
  0xc5   :  { %v362_v38 = vpop.f32.mrf.mxu3 }
  0xc6   :  { %v363_v39 = vadd.f32 %v362_v38, %v313_v37  ;;  %v295_v40 = vpop.f32.mrf.mxu0 }
  0xc7   :  { %v344_v41 = vpop.f32.mrf.mxu1 }
  0xc8   :  { %v439_v42 = vadd.f32 %v807_v1, %v363_v39  ;;  %v345_v43 = vadd.f32 %v344_v41, %v295_v40 }
  0xca   :  { %455 = vst [vmem:[%s876_s3 + $0x60] sm:$0xff] %v439_v42  ;;  %v432_v44 = vadd.f32 %v807_v1, %v345_v43 }
  0xcc   :  { %448 = vst [vmem:[%s876_s3 + $0x28] sm:$0xff] %v432_v44  ;;  %v315_v45 = vpop.f32.mrf.mxu2 }
  0xcd   :  { %v364_v46 = vpop.f32.mrf.mxu3 }
  0xce   :  { %v365_v47 = vadd.f32 %v364_v46, %v315_v45  ;;  %v298_v48 = vpop.f32.mrf.mxu0 }
  0xcf   :  { %v347_v49 = vpop.f32.mrf.mxu1 }
  0xd0   :  { %v440_v50 = vadd.f32 %v807_v1, %v365_v47  ;;  %v348_v51 = vadd.f32 %v347_v49, %v298_v48 }
  0xd2   :  { %456 = vst [vmem:[%s876_s3 + $0x68] sm:$0xff] %v440_v50  ;;  %v433_v52 = vadd.f32 %v807_v1, %v348_v51 }
  0xd4   :  { %449 = vst [vmem:[%s876_s3 + $0x30] sm:$0xff] %v433_v52  ;;  %v318_v53 = vpop.f32.mrf.mxu2 }
  0xd5   :  { %v367_v54 = vpop.f32.mrf.mxu3 }
  0xd6   :  { %v368_v55 = vadd.f32 %v367_v54, %v318_v53  ;;  %v300_v56 = vpop.f32.mrf.mxu0 }
  0xd7   :  { %v349_v57 = vpop.f32.mrf.mxu1 }
  0xd8   :  { %v441_v58 = vadd.f32 %v807_v1, %v368_v55  ;;  %v350_v59 = vadd.f32 %v349_v57, %v300_v56 }
  0xda   :  { %457 = vst [vmem:[%s876_s3 + $0x70] sm:$0xff] %v441_v58  ;;  %v434_v60 = vadd.f32 %v807_v1, %v350_v59 }
  0xdc   :  { %450 = vst [vmem:[%s876_s3 + $0x38] sm:$0xff] %v434_v60  ;;  %v320_v61 = vpop.f32.mrf.mxu2 }
  0xdd   :  { %v369_v62 = vpop.f32.mrf.mxu3 }
  0xde   :  { %v370_v63 = vadd.f32 %v369_v62, %v320_v61 }
  0xe0   :  { %v442_v0 = vadd.f32 %v807_v1, %v370_v63 }
  0xe2   :  { %458 = vst [vmem:[%s876_s3 + $0x78] sm:$0xff] %v442_v0 }

// kernel: g128_forward.81
= control target key start
LH: loop header
LB: loop body
LE: loop exit
PB: predicated region body
PF: predicated region fallthrough
CT: control target
= control target key end

     0   :  { %s5648_s12 = smov 0   ;;  %s5650_s13 = smov 0   ;;  %s6777_s0 = inlined_call_operand.vmem [shape: bf16[512,1664], index: 0, kind: input, shape index: {}]   ;;  %s6778_s1 = inlined_call_operand.vmem [shape: bf16[1664,128], index: 1, kind: input, shape index: {}]   ;;  %s6779_s2 = inlined_call_operand.vmem [shape: f32[1,128], index: 2, kind: input, shape index: {}]   ;;  %s6780_s3 = inlined_call_operand.vmem [shape: f32[512,128], index: 3, kind: output, shape index: {}]  }
   0x1   :  { %s5652_s14 = smov 0  }
   0x2 LB: > { %s32_s15 = sadd.s32 1, %s5622_s13  ;;  %p3923_p0 = scmp.ge.s32.totalorder %s5626_s14, 1  ;;  %s5626_s14 = sphi %s5652_s14, %s13_s14   ;;  %s5622_s13 = sphi %s5650_s13, %s6782_s13   ;;  %s5618_s12 = sphi %s5648_s12, %s6781_s12  }
   0x3   : > { %p34_p1 = scmp.ge.s32.totalorder %s32_s15, 2  ;;  %p191_p2 = scmp.lt.s32.totalorder %s5626_s14, 3 }
   0x5   : > { %s6784_s15 = smov (%p34_p1, %s32_s15), 0  ;;  %p192_p3 = pnand %p3923_p0, %p191_p2 }
   0x6   : > { %s3924_s22 = sshll.u32 (!%p192_p3), %s5618_s12, 5 }
   0x7   : > { %195 = sbr.rel (%p192_p3) target bundleno = 1016 (0x3f8), region = 32  ;;  %p236_p4 = scmp.lt.s32.totalorder (!%p192_p3), %s3924_s22, 63 }
   0xc   : > { %v5393_v0 = vld [vmem:[%s6778_s1 + $0x38] sm:$0xff]  ;;  %v5392_v1 = vld [vmem:[%s6778_s1 + $0x30] sm:$0xff]  ;;  %v5391_v2 = vld [vmem:[%s6778_s1 + $0x28] sm:$0xff]  ;;  %s6786_s22 = smov (!%p236_p4, %s3924_s22), 63 }
   0xd   : > { %5490 = vmatpush.bf16.msra.mxu1 %v5393_v0  ;;  %5491 = vmatpush.bf16.msra.mxu2 %v5393_v0  ;;  %v5390_v3 = vld [vmem:[%s6778_s1 + $0x20] sm:$0xff]  ;;  %v5389_v4 = vld [vmem:[%s6778_s1 + $0x18] sm:$0xff]  ;;  %v5388_v5 = vld [vmem:[%s6778_s1 + $0x10] sm:$0xff]  ;;  %s5514_s29 = smul.u32 52, %s6786_s22  ;;  %s3927_s5 = sshll.u32 %s6786_s22, 3 }
   0xe   : > { %5492 = vmatpush.bf16.msra.mxu3 %v5393_v0  ;;  %2447 = vmatpush.bf16.msra.mxu0 %v5393_v0  ;;  %v5387_v6 = vld [vmem:[%s6778_s1 + $0x8] sm:$0xff]  ;;  %v5386_v7 = vld [vmem:[%s6778_s1] sm:$0xff]  ;;  %v5409_v16 = vld [vmem:[%s6778_s1 + $0xb8] sm:$0xff]  ;;  %s6625_s9 = scalar_lea.vmem %s6780_s3, %s3927_s5 }
   0xf   : > { %s5696_s7 = scalar_lea.vmem %s6777_s0, %s5514_s29  ;;  %v5417_v17 = vld [vmem:[%s6778_s1 + $0xf8] sm:$0xff]  ;;  %v5408_v24 = vld [vmem:[%s6778_s1 + $0xb0] sm:$0xff]  ;;  %v5407_v28 = vld [vmem:[%s6778_s1 + $0xa8] sm:$0xff] }
  0x10   : > { %v4138_v8 = vld [vmem:[%s5696_s7 + $0x1a0] sm:$0xf]  ;;  %v5236_v9 = vld [vmem:[%s5696_s7 + $0x1d0] sm:$0xf0]  ;;  %v5401_v22 = vld [vmem:[%s6778_s1 + $0x78] sm:$0xff] }
  0x11   : > { %5493 = vmatpush.bf16.msra.mxu1 %v5392_v1  ;;  %5494 = vmatpush.bf16.msra.mxu2 %v5392_v1  ;;  %v4346_v10 = vld [vmem:[%s5696_s7 + $0x340] sm:$0xf]  ;;  %v5288_v11 = vld [vmem:[%s5696_s7 + $0x370] sm:$0xf0]  ;;  %v4139_v18 = vor.u32 %v5236_v9, %v4138_v8  ;;  %v5425_v23 = vld [vmem:[%s6778_s1 + $0x138] sm:$0xff] }
  0x12   : > { %5495 = vmatpush.bf16.msra.mxu3 %v5392_v1  ;;  %2448 = vmatpush.bf16.msra.mxu0 %v5392_v1  ;;  %v4554_v12 = vld [vmem:[%s5696_s7 + $0x4e0] sm:$0xf]  ;;  %v5340_v13 = vld [vmem:[%s5696_s7 + $0x510] sm:$0xf0]  ;;  %v4347_v19 = vor.u32 %v5288_v11, %v4346_v10  ;;  %v5415_v29 = vld [vmem:[%s6778_s1 + $0xe8] sm:$0xff] }
  0x13   : > { %v3930_v14 = vld [vmem:[%s5696_s7] sm:$0xf]  ;;  %v5184_v15 = vld [vmem:[%s5696_s7 + $0x30] sm:$0xf0]  ;;  %v4555_v20 = vor.u32 %v5340_v13, %v4554_v12  ;;  %v5399_v30 = vld [vmem:[%s6778_s1 + $0x68] sm:$0xff] }
  0x14   : > { %v3931_v21 = vor.u32 %v5184_v15, %v3930_v14  ;;  %v5416_v25 = vld [vmem:[%s6778_s1 + $0xf0] sm:$0xff]  ;;  %v5423_v31 = vld [vmem:[%s6778_s1 + $0x128] sm:$0xff]  ;;  %v5406_v33 = vld [vmem:[%s6778_s1 + $0xa0] sm:$0xff] }
  0x15   : > { %5496 = vmatpush.bf16.msra.mxu1 %v5391_v2  ;;  %5497 = vmatpush.bf16.msra.mxu2 %v5391_v2  ;;  %v5400_v26 = vld [vmem:[%s6778_s1 + $0x70] sm:$0xff]  ;;  %v4190_v32 = vld [vmem:[%s5696_s7 + $0x208] sm:$0xf]  ;;  %v5414_v34 = vld [vmem:[%s6778_s1 + $0xe0] sm:$0xff] }
  0x16   : > { %5498 = vmatpush.bf16.msra.mxu3 %v5391_v2  ;;  %2449 = vmatpush.bf16.msra.mxu0 %v5391_v2  ;;  %v5424_v27 = vld [vmem:[%s6778_s1 + $0x130] sm:$0xff]  ;;  %v5249_v35 = vld [vmem:[%s5696_s7 + $0x238] sm:$0xf0]  ;;  %v4398_v36 = vld [vmem:[%s5696_s7 + $0x3a8] sm:$0xf] }
  0x17   : > { %v5301_v37 = vld [vmem:[%s5696_s7 + $0x3d8] sm:$0xf0]  ;;  %v4606_v38 = vld [vmem:[%s5696_s7 + $0x548] sm:$0xf]  ;;  %v5398_v42 = vld [vmem:[%s6778_s1 + $0x60] sm:$0xff]  ;;  %v4191_v46 = vor.u32 %v5249_v35, %v4190_v32 }
  0x18   : > { %v5353_v39 = vld [vmem:[%s5696_s7 + $0x578] sm:$0xf0]  ;;  %v3982_v40 = vld [vmem:[%s5696_s7 + $0x68] sm:$0xf]  ;;  %v5422_v43 = vld [vmem:[%s6778_s1 + $0x120] sm:$0xff]  ;;  %v4399_v47 = vor.u32 %v5301_v37, %v4398_v36 }
  0x19   : > { %5499 = vmatpush.bf16.msra.mxu1 %v5390_v3  ;;  %5500 = vmatpush.bf16.msra.mxu2 %v5390_v3  ;;  %v5197_v41 = vld [vmem:[%s5696_s7 + $0x98] sm:$0xf0]  ;;  %v4607_v48 = vor.u32 %v5353_v39, %v4606_v38  ;;  %v5404_v52 = vld [vmem:[%s6778_s1 + $0x90] sm:$0xff]  ;;  %v5403_v56 = vld [vmem:[%s6778_s1 + $0x88] sm:$0xff] }
  0x1a   : > { %5501 = vmatpush.bf16.msra.mxu3 %v5390_v3  ;;  %2450 = vmatpush.bf16.msra.mxu0 %v5390_v3  ;;  %v5405_v44 = vld [vmem:[%s6778_s1 + $0x98] sm:$0xff]  ;;  %v3983_v49 = vor.u32 %v5197_v41, %v3982_v40  ;;  %v5412_v53 = vld [vmem:[%s6778_s1 + $0xd0] sm:$0xff]  ;;  %v5411_v57 = vld [vmem:[%s6778_s1 + $0xc8] sm:$0xff] }
  0x1b   : > { %v5413_v45 = vld [vmem:[%s6778_s1 + $0xd8] sm:$0xff]  ;;  %v5396_v54 = vld [vmem:[%s6778_s1 + $0x50] sm:$0xff]  ;;  %v5395_v58 = vld [vmem:[%s6778_s1 + $0x48] sm:$0xff] }
  0x1c   : > { %v5397_v50 = vld [vmem:[%s6778_s1 + $0x58] sm:$0xff]  ;;  %v5420_v55 = vld [vmem:[%s6778_s1 + $0x110] sm:$0xff]  ;;  %v5419_v59 = vld [vmem:[%s6778_s1 + $0x108] sm:$0xff] }
  0x1d   : > { %5502 = vmatpush.bf16.msra.mxu1 %v5389_v4  ;;  %5503 = vmatpush.bf16.msra.mxu2 %v5389_v4  ;;  %v5421_v51 = vld [vmem:[%s6778_s1 + $0x118] sm:$0xff]  ;;  %v4242_v60 = vld [vmem:[%s5696_s7 + $0x270] sm:$0xf]  ;;  %v5402_v61 = vld [vmem:[%s6778_s1 + $0x80] sm:$0xff] }
  0x1e   : > { %5504 = vmatpush.bf16.msra.mxu3 %v5389_v4  ;;  %2451 = vmatpush.bf16.msra.mxu0 %v5389_v4  ;;  %v5410_v62 = vld [vmem:[%s6778_s1 + $0xc0] sm:$0xff]  ;;  %v4450_v0 = vld [vmem:[%s5696_s7 + $0x410] sm:$0xf]  ;;  %v5441_v12 = vld [vmem:[%s6778_s1 + $0x1b8] sm:$0xff] }
  0x1f   : > { %v5262_v63 = vld [vmem:[%s5696_s7 + $0x2a0] sm:$0xf0]  ;;  %v4658_v2 = vld [vmem:[%s5696_s7 + $0x5b0] sm:$0xf]  ;;  %v5449_v13 = vld [vmem:[%s6778_s1 + $0x1f8] sm:$0xff] }
  0x20   : > { %v5314_v1 = vld [vmem:[%s5696_s7 + $0x440] sm:$0xf0]  ;;  %v4034_v4 = vld [vmem:[%s5696_s7 + $0xd0] sm:$0xf]  ;;  %v4243_v8 = vor.u32 %v5262_v63, %v4242_v60  ;;  %v5433_v14 = vld [vmem:[%s6778_s1 + $0x178] sm:$0xff] }
  0x21   : > { %5505 = vmatpush.bf16.msra.mxu1 %v5388_v5  ;;  %5506 = vmatpush.bf16.msra.mxu2 %v5388_v5  ;;  %v5366_v3 = vld [vmem:[%s5696_s7 + $0x5e0] sm:$0xf0]  ;;  %v4451_v9 = vor.u32 %v5314_v1, %v4450_v0  ;;  %v5457_v15 = vld [vmem:[%s6778_s1 + $0x238] sm:$0xff]  ;;  %v5179_v32 = vld [vmem:[%s5696_s7 + $0xc] sm:$0xf] }
  0x22   : > { %5507 = vmatpush.bf16.msra.mxu3 %v5388_v5  ;;  %2452 = vmatpush.bf16.msra.mxu0 %v5388_v5  ;;  %v5210_v5 = vld [vmem:[%s5696_s7 + $0x100] sm:$0xf0]  ;;  %v4659_v10 = vor.u32 %v5366_v3, %v4658_v2  ;;  %v5440_v40 = vld [vmem:[%s6778_s1 + $0x1b0] sm:$0xff]  ;;  %v5205_v60 = vld [vmem:[%s5696_s7 + $0xdc] sm:$0xf] }
  0x23   : > { %v4035_v11 = vor.u32 %v5210_v5, %v4034_v4  ;;  %v5186_v35 = vld [vmem:[%s5696_s7 + $0x40] sm:$0xf0]  ;;  %v5448_v41 = vld [vmem:[%s6778_s1 + $0x1f0] sm:$0xff]  ;;  %v5439_v4 = vld [vmem:[%s6778_s1 + $0x1a8] sm:$0xff] }
  0x24   : > { %v5212_v63 = vld [vmem:[%s5696_s7 + $0x110] sm:$0xf0]  ;;  %v5447_v5 = vld [vmem:[%s6778_s1 + $0x1e8] sm:$0xff] }
  0x25   : > { %5508 = vmatpush.bf16.msra.mxu1 %v5387_v6  ;;  %5509 = vmatpush.bf16.msra.mxu2 %v5387_v6 }
  0x26   : > { %5510 = vmatpush.bf16.msra.mxu3 %v5387_v6  ;;  %2453 = vmatpush.bf16.msra.mxu0 %v5387_v6  ;;  %v5394_v6 = vld [vmem:[%s6778_s1 + $0x40] sm:$0xff] }
  0x29   : > { %5511 = vmatpush.bf16.msra.mxu1 %v5386_v7  ;;  %5512 = vmatpush.bf16.msra.mxu2 %v5386_v7 }
  0x2a   : > { %5513 = vmatpush.bf16.msra.mxu3 %v5386_v7  ;;  %2454 = vmatpush.bf16.msra.mxu0 %v5386_v7  ;;  %v5418_v7 = vld [vmem:[%s6778_s1 + $0x100] sm:$0xff] }
  0x2c   : > { %2475 = vmatmul.bf16.vlgmr.msra.gmra.mxu1 %v4139_v18  ;;  %2495 = vmatmul.bf16.vlgmr.msra.gmra.mxu2 %v4347_v19  ;;  %v4502_v18 = vld [vmem:[%s5696_s7 + $0x478] sm:$0xf]  ;;  %v5327_v19 = vld [vmem:[%s5696_s7 + $0x4a8] sm:$0xf0] }
  0x2d   : > { %2625 = vmatpush.bf16.msrb.mxu2 %v5409_v16  ;;  %2515 = vmatmul.bf16.vlgmr.msra.gmra.mxu3 %v4555_v20  ;;  %v4294_v16 = vld [vmem:[%s5696_s7 + $0x2d8] sm:$0xf] }
  0x2e   : > { %2714 = vmatpush.bf16.msrb.mxu3 %v5417_v17  ;;  %2455 = vmatmul.bf16.vlgmr.msra.gmra.mxu0 %v3931_v21  ;;  %v5275_v17 = vld [vmem:[%s5696_s7 + $0x308] sm:$0xf0]  ;;  %v4710_v20 = vld [vmem:[%s5696_s7 + $0x618] sm:$0xf] }
  0x2f   : > { %2536 = vmatpush.bf16.msrb.mxu1 %v5401_v22  ;;  %2803 = vmatpush.bf16.msrb.mxu0 %v5425_v23  ;;  %v5379_v21 = vld [vmem:[%s5696_s7 + $0x648] sm:$0xf0]  ;;  %v4086_v22 = vld [vmem:[%s5696_s7 + $0x138] sm:$0xf] }
  0x30   : > { %v5223_v23 = vld [vmem:[%s5696_s7 + $0x168] sm:$0xf0] }
  0x31   : > { %2626 = vmatpush.bf16.msrb.mxu2 %v5408_v24  ;;  %v4295_v24 = vor.u32 %v5275_v17, %v4294_v16 }
  0x32   : > { %2715 = vmatpush.bf16.msrb.mxu3 %v5416_v25  ;;  %v4503_v25 = vor.u32 %v5327_v19, %v4502_v18 }
  0x33   : > { %2537 = vmatpush.bf16.msrb.mxu1 %v5400_v26  ;;  %2804 = vmatpush.bf16.msrb.mxu0 %v5424_v27  ;;  %v4711_v26 = vor.u32 %v5379_v21, %v4710_v20  ;;  %v4087_v27 = vor.u32 %v5223_v23, %v4086_v22  ;;  %v5230_v20 = vld [vmem:[%s5696_s7 + $0x1a4] sm:$0xf]  ;;  %v4140_v21 = vld [vmem:[%s5696_s7 + $0x1d4] sm:$0xf0]  ;;  %v4146_v22 = vld [vmem:[%s5696_s7 + $0x1a8] sm:$0xf] }
  0x34   : > { %v5237_v23 = vld [vmem:[%s5696_s7 + $0x1d8] sm:$0xf0] }
  0x35   : > { %2627 = vmatpush.bf16.msrb.mxu2 %v5407_v28  ;;  %v5178_v28 = vld [vmem:[%s5696_s7 + $0x4] sm:$0xf] }
  0x36   : > { %2716 = vmatpush.bf16.msrb.mxu3 %v5415_v29  ;;  %v3932_v29 = vld [vmem:[%s5696_s7 + $0x34] sm:$0xf0] }
  0x37   : > { %2538 = vmatpush.bf16.msrb.mxu1 %v5399_v30  ;;  %2805 = vmatpush.bf16.msrb.mxu0 %v5423_v31  ;;  %v3938_v30 = vld [vmem:[%s5696_s7 + $0x8] sm:$0xf]  ;;  %v5185_v31 = vld [vmem:[%s5696_s7 + $0x38] sm:$0xf0]  ;;  %v3935_v36 = vor.u32 %v5178_v28, %v3932_v29  ;;  %v4143_v28 = vor.u32 %v5230_v20, %v4140_v21  ;;  %v4147_v29 = vor.u32 %v5237_v23, %v4146_v22  ;;  %v4296_v23 = vld [vmem:[%s5696_s7 + $0x30c] sm:$0xf0] }
  0x38   : > { %v3939_v37 = vor.u32 %v5185_v31, %v3938_v30  ;;  %v5429_v20 = vld [vmem:[%s6778_s1 + $0x158] sm:$0xff] }
  0x39   : > { %2628 = vmatpush.bf16.msrb.mxu2 %v5406_v33  ;;  %v3940_v33 = vld [vmem:[%s5696_s7 + $0x3c] sm:$0xf0]  ;;  %v5453_v21 = vld [vmem:[%s6778_s1 + $0x218] sm:$0xff] }
  0x3a   : > { %2717 = vmatpush.bf16.msrb.mxu3 %v5414_v34  ;;  %v3946_v34 = vld [vmem:[%s5696_s7 + $0x10] sm:$0xf]  ;;  %v3943_v38 = vor.u32 %v5179_v32, %v3940_v33  ;;  %v5269_v22 = vld [vmem:[%s5696_s7 + $0x2dc] sm:$0xf] }
  0x3b   : > { %2539 = vmatpush.bf16.msrb.mxu1 %v5398_v42  ;;  %2806 = vmatpush.bf16.msrb.mxu0 %v5422_v43  ;;  %v3947_v39 = vor.u32 %v5186_v35, %v3946_v34  ;;  %v5432_v42 = vld [vmem:[%s6778_s1 + $0x170] sm:$0xff]  ;;  %v5438_v34 = vld [vmem:[%s6778_s1 + $0x1a0] sm:$0xff] }
  0x3c   : > { %2480 = vmatmul.bf16.gmra.mxu1 %v4191_v46  ;;  %2500 = vmatmul.bf16.gmra.mxu2 %v4399_v47  ;;  %v5456_v43 = vld [vmem:[%s6778_s1 + $0x230] sm:$0xff]  ;;  %v5198_v47 = vld [vmem:[%s5696_s7 + $0xa0] sm:$0xf0] }
  0x3d   : > { %2629 = vmatpush.bf16.msrb.mxu2 %v5405_v44  ;;  %2520 = vmatmul.bf16.gmra.mxu3 %v4607_v48  ;;  %v5191_v44 = vld [vmem:[%s5696_s7 + $0x6c] sm:$0xf]  ;;  %v3990_v46 = vld [vmem:[%s5696_s7 + $0x70] sm:$0xf]  ;;  %v5192_v48 = vld [vmem:[%s5696_s7 + $0x74] sm:$0xf] }
  0x3e   : > { %2718 = vmatpush.bf16.msrb.mxu3 %v5413_v45  ;;  %2460 = vmatmul.bf16.gmra.mxu0 %v3983_v49  ;;  %v3984_v45 = vld [vmem:[%s5696_s7 + $0x9c] sm:$0xf0]  ;;  %v3992_v49 = vld [vmem:[%s5696_s7 + $0xa4] sm:$0xf0] }
  0x3f   : > { %2540 = vmatpush.bf16.msrb.mxu1 %v5397_v50  ;;  %2807 = vmatpush.bf16.msrb.mxu0 %v5421_v51  ;;  %v3998_v50 = vld [vmem:[%s5696_s7 + $0x78] sm:$0xf]  ;;  %v5199_v51 = vld [vmem:[%s5696_s7 + $0xa8] sm:$0xf0]  ;;  %v5446_v35 = vld [vmem:[%s6778_s1 + $0x1e0] sm:$0xff] }
  0x41   : > { %2630 = vmatpush.bf16.msrb.mxu2 %v5404_v52  ;;  %v3987_v52 = vor.u32 %v5191_v44, %v3984_v45  ;;  %v4198_v44 = vld [vmem:[%s5696_s7 + $0x210] sm:$0xf]  ;;  %v5250_v45 = vld [vmem:[%s5696_s7 + $0x240] sm:$0xf0] }
  0x42   : > { %2719 = vmatpush.bf16.msrb.mxu3 %v5412_v53  ;;  %v3991_v53 = vor.u32 %v5198_v47, %v3990_v46  ;;  %v5244_v46 = vld [vmem:[%s5696_s7 + $0x214] sm:$0xf]  ;;  %v4200_v47 = vld [vmem:[%s5696_s7 + $0x244] sm:$0xf0] }
  0x43   : > { %2541 = vmatpush.bf16.msrb.mxu1 %v5396_v54  ;;  %2808 = vmatpush.bf16.msrb.mxu0 %v5420_v55  ;;  %v3995_v54 = vor.u32 %v5192_v48, %v3992_v49  ;;  %v3999_v55 = vor.u32 %v5199_v51, %v3998_v50  ;;  %v4206_v48 = vld [vmem:[%s5696_s7 + $0x218] sm:$0xf]  ;;  %v5251_v49 = vld [vmem:[%s5696_s7 + $0x248] sm:$0xf0] }
  0x45   : > { %2631 = vmatpush.bf16.msrb.mxu2 %v5403_v56  ;;  %v5204_v56 = vld [vmem:[%s5696_s7 + $0xd4] sm:$0xf] }
  0x46   : > { %2720 = vmatpush.bf16.msrb.mxu3 %v5411_v57  ;;  %v4036_v57 = vld [vmem:[%s5696_s7 + $0x104] sm:$0xf0] }
  0x47   : > { %2542 = vmatpush.bf16.msrb.mxu1 %v5395_v58  ;;  %2809 = vmatpush.bf16.msrb.mxu0 %v5419_v59  ;;  %v4042_v58 = vld [vmem:[%s5696_s7 + $0xd8] sm:$0xf]  ;;  %v5211_v59 = vld [vmem:[%s5696_s7 + $0x108] sm:$0xf0]  ;;  %v4039_v0 = vor.u32 %v5204_v56, %v4036_v57  ;;  %v4207_v56 = vor.u32 %v5251_v49, %v4206_v48  ;;  %v5282_v48 = vld [vmem:[%s5696_s7 + $0x344] sm:$0xf] }
  0x48   : > { %v4043_v1 = vor.u32 %v5211_v59, %v4042_v58  ;;  %v4348_v49 = vld [vmem:[%s5696_s7 + $0x374] sm:$0xf0] }
  0x49   : > { %2632 = vmatpush.bf16.msrb.mxu2 %v5402_v61  ;;  %v4044_v61 = vld [vmem:[%s5696_s7 + $0x10c] sm:$0xf0] }
  0x4a   : > { %2721 = vmatpush.bf16.msrb.mxu3 %v5410_v62  ;;  %v4050_v62 = vld [vmem:[%s5696_s7 + $0xe0] sm:$0xf]  ;;  %v4047_v2 = vor.u32 %v5205_v60, %v4044_v61 }
  0x4b   : > { %2543 = vmatpush.bf16.msrb.mxu1 %v5394_v6  ;;  %2810 = vmatpush.bf16.msrb.mxu0 %v5418_v7  ;;  %v4051_v3 = vor.u32 %v5212_v63, %v4050_v62  ;;  %v5431_v6 = vld [vmem:[%s6778_s1 + $0x168] sm:$0xff]  ;;  %v5256_v62 = vld [vmem:[%s5696_s7 + $0x274] sm:$0xf] }
  0x4c   : > { %2485 = vmatmul.bf16.gmra.mxu1 %v4243_v8  ;;  %2505 = vmatmul.bf16.gmra.mxu2 %v4451_v9  ;;  %v5455_v7 = vld [vmem:[%s6778_s1 + $0x228] sm:$0xff]  ;;  %v5217_v8 = vld [vmem:[%s5696_s7 + $0x13c] sm:$0xf]  ;;  %v4088_v9 = vld [vmem:[%s5696_s7 + $0x16c] sm:$0xf0] }
  0x4d   : > { %2525 = vmatmul.bf16.gmra.mxu3 %v4659_v10  ;;  %2981 = vmatpush.bf16.msra.mxu2 %v5441_v12  ;;  %v4094_v10 = vld [vmem:[%s5696_s7 + $0x140] sm:$0xf]  ;;  %v5218_v12 = vld [vmem:[%s5696_s7 + $0x144] sm:$0xf]  ;;  %v4091_v16 = vor.u32 %v5217_v8, %v4088_v9  ;;  %v4244_v63 = vld [vmem:[%s5696_s7 + $0x2a4] sm:$0xf0] }
  0x4e   : > { %2465 = vmatmul.bf16.gmra.mxu0 %v4035_v11  ;;  %3070 = vmatpush.bf16.msra.mxu3 %v5449_v13  ;;  %v5224_v11 = vld [vmem:[%s5696_s7 + $0x170] sm:$0xf0]  ;;  %v4096_v13 = vld [vmem:[%s5696_s7 + $0x174] sm:$0xf0]  ;;  %v4247_v8 = vor.u32 %v5256_v62, %v4244_v63  ;;  %v4362_v62 = vld [vmem:[%s5696_s7 + $0x350] sm:$0xf] }
  0x4f   : > { %2892 = vmatpush.bf16.msra.mxu1 %v5433_v14  ;;  %3159 = vmatpush.bf16.msra.mxu0 %v5457_v15  ;;  %v4102_v14 = vld [vmem:[%s5696_s7 + $0x148] sm:$0xf]  ;;  %v5225_v15 = vld [vmem:[%s5696_s7 + $0x178] sm:$0xf0]  ;;  %v4095_v17 = vor.u32 %v5224_v11, %v4094_v10  ;;  %v4099_v18 = vor.u32 %v5218_v12, %v4096_v13  ;;  %v5290_v63 = vld [vmem:[%s5696_s7 + $0x380] sm:$0xf0] }
  0x50   : > { %v4103_v19 = vor.u32 %v5225_v15, %v4102_v14  ;;  %v5437_v14 = vld [vmem:[%s6778_s1 + $0x198] sm:$0xff] }
  0x51   : > { %2982 = vmatpush.bf16.msra.mxu2 %v5440_v40  ;;  %v5445_v15 = vld [vmem:[%s6778_s1 + $0x1d8] sm:$0xff] }
  0x52   : > { %3071 = vmatpush.bf16.msra.mxu3 %v5448_v41  ;;  %v5454_v41 = vld [vmem:[%s6778_s1 + $0x220] sm:$0xff] }
  0x53   : > { %2893 = vmatpush.bf16.msra.mxu1 %v5432_v42  ;;  %3160 = vmatpush.bf16.msra.mxu0 %v5456_v43  ;;  %v5243_v42 = vld [vmem:[%s5696_s7 + $0x20c] sm:$0xf]  ;;  %v4192_v43 = vld [vmem:[%s5696_s7 + $0x23c] sm:$0xf0] }
  0x55   : > { %2983 = vmatpush.bf16.msra.mxu2 %v5439_v4  ;;  %v4258_v4 = vld [vmem:[%s5696_s7 + $0x280] sm:$0xf] }
  0x56   : > { %3072 = vmatpush.bf16.msra.mxu3 %v5447_v5  ;;  %v5264_v5 = vld [vmem:[%s5696_s7 + $0x2b0] sm:$0xf0] }
  0x57   : > { %2894 = vmatpush.bf16.msra.mxu1 %v5431_v6  ;;  %3161 = vmatpush.bf16.msra.mxu0 %v5455_v7  ;;  %v4259_v12 = vor.u32 %v5264_v5, %v4258_v4 }
  0x59   : > { %2984 = vmatpush.bf16.msra.mxu2 %v5438_v34  ;;  %v4299_v34 = vor.u32 %v5269_v22, %v4296_v23 }
  0x5a   : > { %3073 = vmatpush.bf16.msra.mxu3 %v5446_v35 }
  0x5b   : > { %3162 = vmatpush.bf16.msra.mxu0 %v5454_v41 }
  0x5c   : > { %2490 = vmatmul.bf16.gmra.mxu1 %v4295_v24  ;;  %2510 = vmatmul.bf16.gmra.mxu2 %v4503_v25  ;;  %v5231_v24 = vld [vmem:[%s5696_s7 + $0x1ac] sm:$0xf]  ;;  %v4148_v25 = vld [vmem:[%s5696_s7 + $0x1dc] sm:$0xf0] }
  0x5d   : > { %2530 = vmatmul.bf16.gmra.mxu3 %v4711_v26  ;;  %v4154_v26 = vld [vmem:[%s5696_s7 + $0x1b0] sm:$0xf]  ;;  %v4151_v31 = vor.u32 %v5231_v24, %v4148_v25  ;;  %2985 = vmatpush.bf16.msra.mxu2 %v5437_v14  ;;  %v4302_v24 = vld [vmem:[%s5696_s7 + $0x2e0] sm:$0xf]  ;;  %v5276_v25 = vld [vmem:[%s5696_s7 + $0x310] sm:$0xf0] }
  0x5e   : > { %2470 = vmatmul.bf16.gmra.mxu0 %v4087_v27  ;;  %v5238_v27 = vld [vmem:[%s5696_s7 + $0x1e0] sm:$0xf0]  ;;  %3074 = vmatpush.bf16.msra.mxu3 %v5445_v15  ;;  %v4303_v35 = vor.u32 %v5276_v25, %v4302_v24  ;;  %v5444_v14 = vld [vmem:[%s6778_s1 + $0x1d0] sm:$0xff] }
  0x5f   : > { %v4155_v32 = vor.u32 %v5238_v27, %v4154_v26  ;;  %3163 = vmatpush.bf16.msra.mxu0 %v5453_v21  ;;  %v5270_v26 = vld [vmem:[%s5696_s7 + $0x2e4] sm:$0xf]  ;;  %v4304_v27 = vld [vmem:[%s5696_s7 + $0x314] sm:$0xf0]  ;;  %v5428_v25 = vld [vmem:[%s6778_s1 + $0x150] sm:$0xff] }
  0x60   : > { %v4307_v41 = vor.u32 %v5270_v26, %v4304_v27  ;;  %v5452_v26 = vld [vmem:[%s6778_s1 + $0x210] sm:$0xff]  ;;  %v5295_v27 = vld [vmem:[%s5696_s7 + $0x3ac] sm:$0xf] }
  0x62   : > { %3075 = vmatpush.bf16.msra.mxu3 %v5444_v14 }
  0x63   : > { %3164 = vmatpush.bf16.msra.mxu0 %v5452_v26  ;;  %v4460_v26 = vld [vmem:[%s5696_s7 + $0x44c] sm:$0xf0] }
  0x6c   : > { %2544 = vmatmul.bf16.vlgmr.msrb.gmra.mxu1 %v3935_v36  ;;  %2633 = vmatmul.bf16.vlgmr.msrb.gmra.mxu2 %v3939_v37 }
  0x6d   : > { %2722 = vmatmul.bf16.vlgmr.msrb.gmra.mxu3 %v3943_v38  ;;  %v5430_v38 = vld [vmem:[%s6778_s1 + $0x160] sm:$0xff] }
  0x6e   : > { %2811 = vmatmul.bf16.vlgmr.msrb.gmra.mxu0 %v3947_v39  ;;  %2895 = vmatpush.bf16.msra.mxu1 %v5430_v38 }
  0x72   : > { %2896 = vmatpush.bf16.msra.mxu1 %v5429_v20 }
  0x76   : > { %2897 = vmatpush.bf16.msra.mxu1 %v5428_v25  ;;  %v5309_v25 = vld [vmem:[%s5696_s7 + $0x41c] sm:$0xf] }
  0x7c   : > { %2549 = vmatmul.bf16.gmra.mxu1 %v3987_v52  ;;  %2638 = vmatmul.bf16.gmra.mxu2 %v3991_v53  ;;  %v4195_v52 = vor.u32 %v5243_v42, %v4192_v43  ;;  %v4199_v53 = vor.u32 %v5250_v45, %v4198_v44 }
  0x7d   : > { %2727 = vmatmul.bf16.gmra.mxu3 %v3995_v54 }
  0x7e   : > { %2816 = vmatmul.bf16.gmra.mxu0 %v3999_v55  ;;  %v4203_v55 = vor.u32 %v5244_v46, %v4200_v47 }
  0x8c   : > { %2554 = vmatmul.bf16.gmra.mxu1 %v4039_v0  ;;  %2643 = vmatmul.bf16.gmra.mxu2 %v4043_v1  ;;  %v4250_v0 = vld [vmem:[%s5696_s7 + $0x278] sm:$0xf]  ;;  %v5263_v1 = vld [vmem:[%s5696_s7 + $0x2a8] sm:$0xf0] }
  0x8d   : > { %2732 = vmatmul.bf16.gmra.mxu3 %v4047_v2  ;;  %v5257_v2 = vld [vmem:[%s5696_s7 + $0x27c] sm:$0xf]  ;;  %v4251_v9 = vor.u32 %v5263_v1, %v4250_v0 }
  0x8e   : > { %2821 = vmatmul.bf16.gmra.mxu0 %v4051_v3  ;;  %v4252_v3 = vld [vmem:[%s5696_s7 + $0x2ac] sm:$0xf0] }
  0x8f   : > { %v4255_v11 = vor.u32 %v5257_v2, %v4252_v3  ;;  %v4351_v2 = vor.u32 %v5282_v48, %v4348_v49  ;;  %v5303_v48 = vld [vmem:[%s5696_s7 + $0x3e8] sm:$0xf0] }
  0x9c   : > { %2559 = vmatmul.bf16.gmra.mxu1 %v4091_v16  ;;  %2648 = vmatmul.bf16.gmra.mxu2 %v4095_v17 }
  0x9d   : > { %2737 = vmatmul.bf16.gmra.mxu3 %v4099_v18 }
  0x9e   : > { %2826 = vmatmul.bf16.gmra.mxu0 %v4103_v19 }
  0xa9   : > { %v5905_v30 = vpop.f32.mrf.mxu1 }
  0xab   : > { %v5907_v33 = vpop.f32.mrf.mxu0 }
  0xac   : > { %2564 = vmatmul.bf16.gmra.mxu1 %v4143_v28  ;;  %2653 = vmatmul.bf16.gmra.mxu2 %v4147_v29  ;;  %v4310_v28 = vld [vmem:[%s5696_s7 + $0x2e8] sm:$0xf]  ;;  %v5277_v29 = vld [vmem:[%s5696_s7 + $0x318] sm:$0xf0] }
  0xad   : > { %2742 = vmatmul.bf16.gmra.mxu3 %v4151_v31  ;;  %v4311_v42 = vor.u32 %v5277_v29, %v4310_v28  ;;  %v4400_v28 = vld [vmem:[%s5696_s7 + $0x3dc] sm:$0xf0] }
  0xae   : > { %2831 = vmatmul.bf16.gmra.mxu0 %v4155_v32 }
  0xaf   : > { %v5915_v36 = vpop.f32.mrf.mxu2 }
  0xb0   : > { %v5917_v37 = vpop.f32.mrf.mxu3 }
  0xb1   : > { %v5922_v39 = vpop.f32.mrf.mxu1 }
  0xb3   : > { %v5924_v40 = vpop.f32.mrf.mxu0 }
  0xb7   : > { %v5937_v50 = vpop.f32.mrf.mxu2 }
  0xb8   : > { %v5939_v51 = vpop.f32.mrf.mxu3 }
  0xb9   : > { %v5941_v54 = vpop.f32.mrf.mxu1 }
  0xbb   : > { %v5943_v57 = vpop.f32.mrf.mxu0 }
  0xbc   : > { %2569 = vmatmul.bf16.gmra.mxu1 %v4195_v52  ;;  %2658 = vmatmul.bf16.gmra.mxu2 %v4199_v53  ;;  %v4354_v52 = vld [vmem:[%s5696_s7 + $0x348] sm:$0xf]  ;;  %v5289_v53 = vld [vmem:[%s5696_s7 + $0x378] sm:$0xf0] }
  0xbd   : > { %2747 = vmatmul.bf16.gmra.mxu3 %v4203_v55  ;;  %v5283_v55 = vld [vmem:[%s5696_s7 + $0x34c] sm:$0xf]  ;;  %v4355_v3 = vor.u32 %v5289_v53, %v4354_v52 }
  0xbe   : > { %2836 = vmatmul.bf16.gmra.mxu0 %v4207_v56  ;;  %v4356_v56 = vld [vmem:[%s5696_s7 + $0x37c] sm:$0xf0] }
  0xbf   : > { %v5945_v58 = vpop.f32.mrf.mxu2  ;;  %v4359_v5 = vor.u32 %v5283_v55, %v4356_v56  ;;  %v4403_v55 = vor.u32 %v5295_v27, %v4400_v28  ;;  %v4466_v27 = vld [vmem:[%s5696_s7 + $0x420] sm:$0xf]  ;;  %v5316_v28 = vld [vmem:[%s5696_s7 + $0x450] sm:$0xf0] }
  0xc0   : > { %v5947_v59 = vpop.f32.mrf.mxu3 }
  0xc1   : > { %v5949_v60 = vpop.f32.mrf.mxu1 }
  0xc3   : > { %v5951_v61 = vpop.f32.mrf.mxu0 }
  0xc7   : > { %v5961_v6 = vpop.f32.mrf.mxu2 }
  0xc8   : > { %v5963_v7 = vpop.f32.mrf.mxu3 }
  0xc9   : > { %v5965_v10 = vpop.f32.mrf.mxu1 }
  0xcb   : > { %v5967_v13 = vpop.f32.mrf.mxu0 }
  0xcc   : > { %2574 = vmatmul.bf16.gmra.mxu1 %v4247_v8  ;;  %2663 = vmatmul.bf16.gmra.mxu2 %v4251_v9  ;;  %v4363_v8 = vor.u32 %v5290_v63, %v4362_v62 }
  0xcd   : > { %2752 = vmatmul.bf16.gmra.mxu3 %v4255_v11 }
  0xce   : > { %2841 = vmatmul.bf16.gmra.mxu0 %v4259_v12  ;;  %v5436_v12 = vld [vmem:[%s6778_s1 + $0x190] sm:$0xff] }
  0xcf   : > { %v5975_v16 = vpop.f32.mrf.mxu2  ;;  %2986 = vmatpush.bf16.msra.mxu2 %v5436_v12 }
  0xd0   : > { %v5977_v17 = vpop.f32.mrf.mxu3 }
  0xd1   : > { %v5979_v18 = vpop.f32.mrf.mxu1 }
  0xd3   : > { %v5981_v19 = vpop.f32.mrf.mxu0 }
  0xd7   : > { %v5997_v31 = vpop.f32.mrf.mxu2 }
  0xd8   : > { %v5999_v32 = vpop.f32.mrf.mxu3 }
  0xd9   : > { %v6001_v38 = vpop.f32.mrf.mxu1 }
  0xdb   : > { %v6003_v43 = vpop.f32.mrf.mxu0 }
  0xdc   : > { %2579 = vmatmul.bf16.gmra.mxu1 %v4299_v34  ;;  %2668 = vmatmul.bf16.gmra.mxu2 %v4303_v35  ;;  %v4406_v34 = vld [vmem:[%s5696_s7 + $0x3b0] sm:$0xf]  ;;  %v5302_v35 = vld [vmem:[%s5696_s7 + $0x3e0] sm:$0xf0] }
  0xdd   : > { %2757 = vmatmul.bf16.gmra.mxu3 %v4307_v41  ;;  %v5296_v41 = vld [vmem:[%s5696_s7 + $0x3b4] sm:$0xf]  ;;  %v4407_v56 = vor.u32 %v5302_v35, %v4406_v34 }
  0xde   : > { %2846 = vmatmul.bf16.gmra.mxu0 %v4311_v42  ;;  %v4408_v42 = vld [vmem:[%s5696_s7 + $0x3e4] sm:$0xf0] }
  0xdf   : > { %v6005_v44 = vpop.f32.mrf.mxu2  ;;  %v4411_v63 = vor.u32 %v5296_v41, %v4408_v42 }
  0xe0   : > { %v6007_v45 = vpop.f32.mrf.mxu3 }
  0xe1   : > { %v6009_v46 = vpop.f32.mrf.mxu1 }
  0xe3   : > { %v6011_v47 = vpop.f32.mrf.mxu0 }
  0xe7   : > { %v6021_v0 = vpop.f32.mrf.mxu2 }
  0xe8   : > { %v6023_v1 = vpop.f32.mrf.mxu3 }
  0xe9   : > { %v2545_v4 = vpop.f32.mrf.mxu1 }
  0xea   : > { %v2546_v9 = vadd.f32 %v2545_v4, %v5907_v33 }
  0xeb   : > { %v2812_v11 = vpop.f32.mrf.mxu0 }
  0xec   : > { %2584 = vmatmul.bf16.gmra.mxu1 %v4351_v2  ;;  %2673 = vmatmul.bf16.gmra.mxu2 %v4355_v3 }
  0xed   : > { %2762 = vmatmul.bf16.gmra.mxu3 %v4359_v5 }
  0xee   : > { %2851 = vmatmul.bf16.gmra.mxu0 %v4363_v8 }
  0xef   : > { %v2634_v15 = vpop.f32.mrf.mxu2 }
  0xf0   : > { %v2635_v33 = vadd.f32 %v2634_v15, %v2546_v9  ;;  %v2723_v20 = vpop.f32.mrf.mxu3 }
  0xf1   : > { %v2547_v21 = vpop.f32.mrf.mxu1 }
  0xf2   : > { %v2724_v22 = vadd.f32 %v2723_v20, %v2635_v33  ;;  %v2548_v23 = vadd.f32 %v2547_v21, %v5924_v40  ;;  %v4414_v40 = vld [vmem:[%s5696_s7 + $0x3b8] sm:$0xf]  ;;  %v5308_v20 = vld [vmem:[%s5696_s7 + $0x414] sm:$0xf]  ;;  %v4452_v21 = vld [vmem:[%s5696_s7 + $0x444] sm:$0xf0] }
  0xf3   : > { %v2814_v24 = vpop.f32.mrf.mxu0  ;;  %v4415_v2 = vor.u32 %v5303_v48, %v4414_v40  ;;  %v4455_v42 = vor.u32 %v5308_v20, %v4452_v21  ;;  %v4510_v20 = vld [vmem:[%s5696_s7 + $0x480] sm:$0xf]  ;;  %v5328_v21 = vld [vmem:[%s5696_s7 + $0x4b0] sm:$0xf0] }
  0xf4   : > { %v6041_v29 = vadd.f32 %v2812_v11, %v2724_v22 }
  0xf7   : > { %v2636_v49 = vpop.f32.mrf.mxu2 }
  0xf8   : > { %v2637_v52 = vadd.f32 %v2636_v49, %v2548_v23  ;;  %v2725_v53 = vpop.f32.mrf.mxu3  ;;  %v4458_v23 = vld [vmem:[%s5696_s7 + $0x418] sm:$0xf]  ;;  %v4463_v49 = vor.u32 %v5309_v25, %v4460_v26  ;;  %v5329_v25 = vld [vmem:[%s5696_s7 + $0x4b8] sm:$0xf0] }
  0xf9   : > { %v2550_v62 = vpop.f32.mrf.mxu1 }
  0xfa   : > { %v2726_v3 = vadd.f32 %v2725_v53, %v2637_v52  ;;  %v2551_v4 = vadd.f32 %v2550_v62, %v5943_v57  ;;  %v4467_v52 = vor.u32 %v5316_v28, %v4466_v27  ;;  %v5435_v62 = vld [vmem:[%s6778_s1 + $0x188] sm:$0xff] }
  0xfb   : > { %v2817_v5 = vpop.f32.mrf.mxu0  ;;  %2987 = vmatpush.bf16.msra.mxu2 %v5435_v62 }
  0xfc   : > { %2589 = vmatmul.bf16.gmra.mxu1 %v4403_v55  ;;  %2678 = vmatmul.bf16.gmra.mxu2 %v4407_v56  ;;  %v6050_v8 = vadd.f32 %v2814_v24, %v2726_v3  ;;  %v5315_v24 = vld [vmem:[%s5696_s7 + $0x448] sm:$0xf0] }
  0xfd   : > { %2767 = vmatmul.bf16.gmra.mxu3 %v4411_v63  ;;  %v4459_v40 = vor.u32 %v5315_v24, %v4458_v23  ;;  %v5443_v63 = vld [vmem:[%s6778_s1 + $0x1c8] sm:$0xff]  ;;  %v5322_v23 = vld [vmem:[%s5696_s7 + $0x484] sm:$0xf]  ;;  %v4512_v24 = vld [vmem:[%s5696_s7 + $0x4b4] sm:$0xf0] }
  0xfe   : > { %2856 = vmatmul.bf16.gmra.mxu0 %v4415_v2  ;;  %3076 = vmatpush.bf16.msra.mxu3 %v5443_v63 }
  0xff   : > { %v2639_v9 = vpop.f32.mrf.mxu2 }
 0x100   : > { %v2640_v11 = vadd.f32 %v2639_v9, %v2551_v4  ;;  %v2728_v12 = vpop.f32.mrf.mxu3 }
 0x101   : > { %v2552_v14 = vpop.f32.mrf.mxu1 }
 0x102   : > { %v2729_v15 = vadd.f32 %v2728_v12, %v2640_v11  ;;  %v2553_v57 = vadd.f32 %v2552_v14, %v5951_v61  ;;  %v5427_v12 = vld [vmem:[%s6778_s1 + $0x148] sm:$0xff] }
 0x103   : > { %v2819_v33 = vpop.f32.mrf.mxu0  ;;  %v5451_v14 = vld [vmem:[%s6778_s1 + $0x208] sm:$0xff]  ;;  %2898 = vmatpush.bf16.msra.mxu1 %v5427_v12 }
 0x104   : > { %v6055_v22 = vadd.f32 %v2817_v5, %v2729_v15  ;;  %v5321_v15 = vld [vmem:[%s5696_s7 + $0x47c] sm:$0xf]  ;;  %3165 = vmatpush.bf16.msra.mxu0 %v5451_v14  ;;  %v5335_v12 = vld [vmem:[%s5696_s7 + $0x4ec] sm:$0xf]  ;;  %v4564_v14 = vld [vmem:[%s5696_s7 + $0x51c] sm:$0xf0] }
 0x107   : > { %v2641_v34 = vpop.f32.mrf.mxu2 }
 0x108   : > { %v2642_v35 = vadd.f32 %v2641_v34, %v2553_v57  ;;  %v2730_v41 = vpop.f32.mrf.mxu3  ;;  %v4504_v57 = vld [vmem:[%s5696_s7 + $0x4ac] sm:$0xf0] }
 0x109   : > { %v2555_v48 = vpop.f32.mrf.mxu1  ;;  %v4507_v34 = vor.u32 %v5321_v15, %v4504_v57  ;;  %v4570_v15 = vld [vmem:[%s5696_s7 + $0x4f0] sm:$0xf]  ;;  %v5342_v57 = vld [vmem:[%s5696_s7 + $0x520] sm:$0xf0] }
 0x10a   : > { %v2731_v61 = vadd.f32 %v2730_v41, %v2642_v35  ;;  %v2556_v53 = vadd.f32 %v2555_v48, %v5967_v13  ;;  %v4511_v35 = vor.u32 %v5328_v21, %v4510_v20 }
 0x10b   : > { %v2822_v55 = vpop.f32.mrf.mxu0 }
 0x10c   : > { %2594 = vmatmul.bf16.gmra.mxu1 %v4455_v42  ;;  %2683 = vmatmul.bf16.gmra.mxu2 %v4459_v40  ;;  %v6064_v56 = vadd.f32 %v2819_v33, %v2731_v61  ;;  %v4515_v42 = vor.u32 %v5322_v23, %v4512_v24 }
 0x10d   : > { %2772 = vmatmul.bf16.gmra.mxu3 %v4463_v49 }
 0x10e   : > { %2861 = vmatmul.bf16.gmra.mxu0 %v4467_v52 }
 0x10f   : > { %v2644_v2 = vpop.f32.mrf.mxu2 }
 0x110   : > { %v2645_v13 = vadd.f32 %v2644_v2, %v2556_v53  ;;  %v2733_v3 = vpop.f32.mrf.mxu3 }
 0x111   : > { %v2557_v4 = vpop.f32.mrf.mxu1 }
 0x112   : > { %v2734_v5 = vadd.f32 %v2733_v3, %v2645_v13  ;;  %v2558_v9 = vadd.f32 %v2557_v4, %v5981_v19  ;;  %v4518_v19 = vld [vmem:[%s5696_s7 + $0x488] sm:$0xf]  ;;  %v5334_v3 = vld [vmem:[%s5696_s7 + $0x4e4] sm:$0xf]  ;;  %v4556_v4 = vld [vmem:[%s5696_s7 + $0x514] sm:$0xf0] }
 0x113   : > { %v2824_v11 = vpop.f32.mrf.mxu0  ;;  %v4519_v40 = vor.u32 %v5329_v25, %v4518_v19  ;;  %v4559_v24 = vor.u32 %v5334_v3, %v4556_v4  ;;  %v5354_v3 = vld [vmem:[%s5696_s7 + $0x580] sm:$0xf0]  ;;  %v5348_v4 = vld [vmem:[%s5696_s7 + $0x554] sm:$0xf] }
 0x114   : > { %v6081_v33 = vadd.f32 %v2822_v55, %v2734_v5 }
 0x117   : > { %v2646_v26 = vpop.f32.mrf.mxu2 }
 0x118   : > { %v2647_v27 = vadd.f32 %v2646_v26, %v2558_v9  ;;  %v2735_v28 = vpop.f32.mrf.mxu3  ;;  %v4562_v9 = vld [vmem:[%s5696_s7 + $0x4e8] sm:$0xf]  ;;  %v4567_v26 = vor.u32 %v5335_v12, %v4564_v14  ;;  %v4622_v12 = vld [vmem:[%s5696_s7 + $0x558] sm:$0xf]  ;;  %v5355_v14 = vld [vmem:[%s5696_s7 + $0x588] sm:$0xf0] }
 0x119   : > { %v2560_v41 = vpop.f32.mrf.mxu1 }
 0x11a   : > { %v2736_v48 = vadd.f32 %v2735_v28, %v2647_v27  ;;  %v2561_v49 = vadd.f32 %v2560_v41, %v6003_v43  ;;  %v4571_v27 = vor.u32 %v5342_v57, %v4570_v15  ;;  %v5442_v41 = vld [vmem:[%s6778_s1 + $0x1c0] sm:$0xff] }
 0x11b   : > { %v2827_v52 = vpop.f32.mrf.mxu0  ;;  %3077 = vmatpush.bf16.msra.mxu3 %v5442_v41 }
 0x11c   : > { %2599 = vmatmul.bf16.gmra.mxu1 %v4507_v34  ;;  %2688 = vmatmul.bf16.gmra.mxu2 %v4511_v35  ;;  %v6090_v61 = vadd.f32 %v2824_v11, %v2736_v48  ;;  %v5341_v11 = vld [vmem:[%s5696_s7 + $0x518] sm:$0xf0]  ;;  %v5434_v35 = vld [vmem:[%s6778_s1 + $0x180] sm:$0xff] }
 0x11d   : > { %2777 = vmatmul.bf16.gmra.mxu3 %v4515_v42  ;;  %v4563_v19 = vor.u32 %v5341_v11, %v4562_v9  ;;  %2988 = vmatpush.bf16.msra.mxu2 %v5434_v35  ;;  %v4616_v11 = vld [vmem:[%s5696_s7 + $0x584] sm:$0xf0] }
 0x11e   : > { %2866 = vmatmul.bf16.gmra.mxu0 %v4519_v40 }
 0x11f   : > { %v2649_v53 = vpop.f32.mrf.mxu2 }
 0x120   : > { %v2650_v55 = vadd.f32 %v2649_v53, %v2561_v49  ;;  %v2738_v62 = vpop.f32.mrf.mxu3 }
 0x121   : > { %v2562_v63 = vpop.f32.mrf.mxu1 }
 0x122   : > { %v2739_v2 = vadd.f32 %v2738_v62, %v2650_v55  ;;  %v2563_v43 = vadd.f32 %v2562_v63, %v6011_v47  ;;  %v5426_v62 = vld [vmem:[%s6778_s1 + $0x140] sm:$0xff]  ;;  %v5347_v63 = vld [vmem:[%s5696_s7 + $0x54c] sm:$0xf] }
 0x123   : > { %v2829_v13 = vpop.f32.mrf.mxu0  ;;  %2899 = vmatpush.bf16.msra.mxu1 %v5426_v62  ;;  %v4666_v62 = vld [vmem:[%s5696_s7 + $0x5b8] sm:$0xf] }
 0x124   : > { %v6095_v5 = vadd.f32 %v2827_v52, %v2739_v2  ;;  %v4608_v2 = vld [vmem:[%s5696_s7 + $0x57c] sm:$0xf0] }
 0x127   : > { %v2651_v20 = vpop.f32.mrf.mxu2 }
 0x128   : > { %v2652_v21 = vadd.f32 %v2651_v20, %v2563_v43  ;;  %v2740_v23 = vpop.f32.mrf.mxu3 }
 0x129   : > { %v2565_v25 = vpop.f32.mrf.mxu1 }
 0x12a   : > { %v2741_v47 = vadd.f32 %v2740_v23, %v2652_v21  ;;  %v2566_v42 = vadd.f32 %v2565_v25, %v5905_v30  ;;  %v5450_v30 = vld [vmem:[%s6778_s1 + $0x200] sm:$0xff]  ;;  %v4611_v21 = vor.u32 %v5347_v63, %v4608_v2  ;;  %v4623_v25 = vor.u32 %v5355_v14, %v4622_v12  ;;  %v4668_v2 = vld [vmem:[%s5696_s7 + $0x5ec] sm:$0xf0] }
 0x12b   : > { %v2832_v28 = vpop.f32.mrf.mxu0  ;;  %3166 = vmatpush.bf16.msra.mxu0 %v5450_v30  ;;  %v5361_v30 = vld [vmem:[%s5696_s7 + $0x5bc] sm:$0xf] }
 0x12c   : > { %2604 = vmatmul.bf16.gmra.mxu1 %v4559_v24  ;;  %2693 = vmatmul.bf16.gmra.mxu2 %v4563_v19  ;;  %v6103_v34 = vadd.f32 %v2829_v13, %v2741_v47  ;;  %v4614_v13 = vld [vmem:[%s5696_s7 + $0x550] sm:$0xf]  ;;  %v4619_v19 = vor.u32 %v5348_v4, %v4616_v11 }
 0x12d   : > { %2782 = vmatmul.bf16.gmra.mxu3 %v4567_v26  ;;  %v4615_v23 = vor.u32 %v5354_v3, %v4614_v13  ;;  %v4674_v13 = vld [vmem:[%s5696_s7 + $0x5c0] sm:$0xf]  ;;  %v5368_v3 = vld [vmem:[%s5696_s7 + $0x5f0] sm:$0xf0] }
 0x12e   : > { %2871 = vmatmul.bf16.gmra.mxu0 %v4571_v27 }
 0x12f   : > { %v2654_v40 = vpop.f32.mrf.mxu2 }
 0x130   : > { %v2655_v48 = vadd.f32 %v2654_v40, %v2566_v42  ;;  %v2743_v49 = vpop.f32.mrf.mxu3 }
 0x131   : > { %v2567_v52 = vpop.f32.mrf.mxu1 }
 0x132   : > { %v2744_v53 = vadd.f32 %v2743_v49, %v2655_v48  ;;  %v2568_v9 = vadd.f32 %v2567_v52, %v5922_v39  ;;  %v5360_v49 = vld [vmem:[%s5696_s7 + $0x5b4] sm:$0xf]  ;;  %v4660_v52 = vld [vmem:[%s5696_s7 + $0x5e4] sm:$0xf0] }
 0x133   : > { %v2834_v55 = vpop.f32.mrf.mxu0  ;;  %v4663_v11 = vor.u32 %v5360_v49, %v4660_v52  ;;  %v4718_v49 = vld [vmem:[%s5696_s7 + $0x620] sm:$0xf]  ;;  %v5380_v52 = vld [vmem:[%s5696_s7 + $0x650] sm:$0xf0] }
 0x134   : > { %v6120_v43 = vadd.f32 %v2832_v28, %v2744_v53 }
 0x137   : > { %v2656_v15 = vpop.f32.mrf.mxu2 }
 0x138   : > { %v2657_v57 = vadd.f32 %v2656_v15, %v2568_v9  ;;  %v2745_v20 = vpop.f32.mrf.mxu3  ;;  %v4671_v15 = vor.u32 %v5361_v30, %v4668_v2  ;;  %v4720_v30 = vld [vmem:[%s5696_s7 + $0x654] sm:$0xf0]  ;;  %v5381_v2 = vld [vmem:[%s5696_s7 + $0x658] sm:$0xf0] }
 0x139   : > { %v2570_v24 = vpop.f32.mrf.mxu1 }
 0x13a   : > { %v2746_v26 = vadd.f32 %v2745_v20, %v2657_v57  ;;  %v2571_v47 = vadd.f32 %v2570_v24, %v5941_v54  ;;  %v4675_v57 = vor.u32 %v5368_v3, %v4674_v13  ;;  %v5481_v24 = vld [vmem:[%s6778_s1 + $0x2f8] sm:$0xff] }
 0x13b   : > { %v2837_v27 = vpop.f32.mrf.mxu0  ;;  %3426 = vmatpush.bf16.msrb.mxu3 %v5481_v24 }
 0x13c   : > { %2609 = vmatmul.bf16.gmra.mxu1 %v4611_v21  ;;  %2698 = vmatmul.bf16.gmra.mxu2 %v4615_v23  ;;  %v6129_v39 = vadd.f32 %v2834_v55, %v2746_v26  ;;  %v5367_v55 = vld [vmem:[%s5696_s7 + $0x5e8] sm:$0xf0] }
 0x13d   : > { %2787 = vmatmul.bf16.gmra.mxu3 %v4619_v19  ;;  %v4667_v12 = vor.u32 %v5367_v55, %v4666_v62  ;;  %v5374_v62 = vld [vmem:[%s5696_s7 + $0x624] sm:$0xf] }
 0x13e   : > { %2876 = vmatmul.bf16.gmra.mxu0 %v4623_v25 }
 0x13f   : > { %v2659_v28 = vpop.f32.mrf.mxu2 }
 0x140   : > { %v2660_v35 = vadd.f32 %v2659_v28, %v2571_v47  ;;  %v2748_v41 = vpop.f32.mrf.mxu3 }
 0x141   : > { %v2572_v42 = vpop.f32.mrf.mxu1 }
 0x142   : > { %v2749_v40 = vadd.f32 %v2748_v41, %v2660_v35  ;;  %v2573_v63 = vadd.f32 %v2572_v42, %v5949_v60  ;;  %v5473_v60 = vld [vmem:[%s6778_s1 + $0x2b8] sm:$0xff] }
 0x143   : > { %v2839_v48 = vpop.f32.mrf.mxu0  ;;  %3337 = vmatpush.bf16.msrb.mxu2 %v5473_v60  ;;  %v5465_v41 = vld [vmem:[%s6778_s1 + $0x278] sm:$0xff] }
 0x144   : > { %v6134_v53 = vadd.f32 %v2837_v27, %v2749_v40  ;;  %v5373_v42 = vld [vmem:[%s5696_s7 + $0x61c] sm:$0xf]  ;;  %v4712_v40 = vld [vmem:[%s5696_s7 + $0x64c] sm:$0xf0]  ;;  %3248 = vmatpush.bf16.msrb.mxu1 %v5465_v41  ;;  %v3954_v41 = vld [vmem:[%s5696_s7 + $0x18] sm:$0xf] }
 0x147   : > { %v2661_v54 = vpop.f32.mrf.mxu2 }
 0x148   : > { %v2662_v4 = vadd.f32 %v2661_v54, %v2573_v63  ;;  %v2750_v9 = vpop.f32.mrf.mxu3  ;;  %v4726_v63 = vld [vmem:[%s5696_s7 + $0x628] sm:$0xf] }
 0x149   : > { %v2575_v14 = vpop.f32.mrf.mxu1 }
 0x14a   : > { %v2751_v20 = vadd.f32 %v2750_v9, %v2662_v4  ;;  %v2576_v19 = vadd.f32 %v2575_v14, %v5965_v10  ;;  %v5489_v10 = vld [vmem:[%s6778_s1 + $0x338] sm:$0xff]  ;;  %v4715_v4 = vor.u32 %v5373_v42, %v4712_v40  ;;  %v4719_v9 = vor.u32 %v5380_v52, %v4718_v49  ;;  %v3956_v40 = vld [vmem:[%s5696_s7 + $0x4c] sm:$0xf0]  ;;  %v3962_v49 = vld [vmem:[%s5696_s7 + $0x20] sm:$0xf] }
 0x14b   : > { %v2842_v21 = vpop.f32.mrf.mxu0  ;;  %3515 = vmatpush.bf16.msrb.mxu0 %v5489_v10  ;;  %v4727_v14 = vor.u32 %v5381_v2, %v4726_v63  ;;  %v5181_v10 = vld [vmem:[%s5696_s7 + $0x1c] sm:$0xf]  ;;  %v5188_v52 = vld [vmem:[%s5696_s7 + $0x50] sm:$0xf0] }
 0x14c   : > { %2614 = vmatmul.bf16.gmra.mxu1 %v4663_v11  ;;  %2703 = vmatmul.bf16.gmra.mxu2 %v4667_v12  ;;  %v6143_v23 = vadd.f32 %v2839_v48, %v2751_v20  ;;  %v4723_v12 = vor.u32 %v5374_v62, %v4720_v30 }
 0x14d   : > { %2792 = vmatmul.bf16.gmra.mxu3 %v4671_v15 }
 0x14e   : > { %2881 = vmatmul.bf16.gmra.mxu0 %v4675_v57 }
 0x14f   : > { %v2664_v25 = vpop.f32.mrf.mxu2 }
 0x150   : > { %v2665_v26 = vadd.f32 %v2664_v25, %v2576_v19  ;;  %v2753_v27 = vpop.f32.mrf.mxu3 }
 0x151   : > { %v2577_v47 = vpop.f32.mrf.mxu1 }
 0x152   : > { %v2754_v28 = vadd.f32 %v2753_v27, %v2665_v26  ;;  %v2578_v55 = vadd.f32 %v2577_v47, %v5979_v18  ;;  %v5180_v27 = vld [vmem:[%s5696_s7 + $0x14] sm:$0xf]  ;;  %v3948_v47 = vld [vmem:[%s5696_s7 + $0x44] sm:$0xf0] }
 0x153   : > { %v2844_v35 = vpop.f32.mrf.mxu0  ;;  %v3951_v30 = vor.u32 %v5180_v27, %v3948_v47  ;;  %v4006_v27 = vld [vmem:[%s5696_s7 + $0x80] sm:$0xf]  ;;  %v5200_v47 = vld [vmem:[%s5696_s7 + $0xb0] sm:$0xf0] }
 0x154   : > { %v6160_v48 = vadd.f32 %v2842_v21, %v2754_v28 }
 0x157   : > { %v2666_v13 = vpop.f32.mrf.mxu2 }
 0x158   : > { %v2667_v3 = vadd.f32 %v2666_v13, %v2578_v55  ;;  %v2755_v54 = vpop.f32.mrf.mxu3  ;;  %v3959_v13 = vor.u32 %v5181_v10, %v3956_v40  ;;  %v4008_v10 = vld [vmem:[%s5696_s7 + $0xb4] sm:$0xf0]  ;;  %v5201_v40 = vld [vmem:[%s5696_s7 + $0xb8] sm:$0xf0] }
 0x159   : > { %v2580_v11 = vpop.f32.mrf.mxu1 }
 0x15a   : > { %v2756_v15 = vadd.f32 %v2755_v54, %v2667_v3  ;;  %v2581_v20 = vadd.f32 %v2580_v11, %v6001_v38  ;;  %v3963_v3 = vor.u32 %v5188_v52, %v3962_v49  ;;  %v5480_v11 = vld [vmem:[%s6778_s1 + $0x2f0] sm:$0xff] }
 0x15b   : > { %v2847_v57 = vpop.f32.mrf.mxu0  ;;  %3427 = vmatpush.bf16.msrb.mxu3 %v5480_v11 }
 0x15c   : > { %2619 = vmatmul.bf16.gmra.mxu1 %v4715_v4  ;;  %2708 = vmatmul.bf16.gmra.mxu2 %v4719_v9  ;;  %v6169_v18 = vadd.f32 %v2844_v35, %v2756_v15  ;;  %v5187_v35 = vld [vmem:[%s5696_s7 + $0x48] sm:$0xf0] }
 0x15d   : > { %2797 = vmatmul.bf16.gmra.mxu3 %v4723_v12  ;;  %v3955_v63 = vor.u32 %v5187_v35, %v3954_v41  ;;  %v5194_v41 = vld [vmem:[%s5696_s7 + $0x84] sm:$0xf] }
 0x15e   : > { %2886 = vmatmul.bf16.gmra.mxu0 %v4727_v14 }
 0x15f   : > { %v2669_v21 = vpop.f32.mrf.mxu2 }
 0x160   : > { %v2670_v60 = vadd.f32 %v2669_v21, %v2581_v20  ;;  %v2758_v24 = vpop.f32.mrf.mxu3 }
 0x161   : > { %v2582_v19 = vpop.f32.mrf.mxu1 }
 0x162   : > { %v2759_v25 = vadd.f32 %v2758_v24, %v2670_v60  ;;  %v2583_v42 = vadd.f32 %v2582_v19, %v6009_v46  ;;  %v5472_v46 = vld [vmem:[%s6778_s1 + $0x2b0] sm:$0xff]  ;;  %v5193_v19 = vld [vmem:[%s5696_s7 + $0x7c] sm:$0xf] }
 0x163   : > { %v2849_v26 = vpop.f32.mrf.mxu0  ;;  %3338 = vmatpush.bf16.msrb.mxu2 %v5472_v46  ;;  %v5464_v24 = vld [vmem:[%s6778_s1 + $0x270] sm:$0xff] }
 0x164   : > { %v6174_v28 = vadd.f32 %v2847_v57, %v2759_v25  ;;  %v4000_v25 = vld [vmem:[%s5696_s7 + $0xac] sm:$0xf0]  ;;  %3249 = vmatpush.bf16.msrb.mxu1 %v5464_v24  ;;  %v4058_v24 = vld [vmem:[%s5696_s7 + $0xe8] sm:$0xf] }
 0x167   : > { %v2671_v38 = vpop.f32.mrf.mxu2 }
 0x168   : > { %v2672_v62 = vadd.f32 %v2671_v38, %v2583_v42  ;;  %v2760_v55 = vpop.f32.mrf.mxu3  ;;  %v4014_v42 = vld [vmem:[%s5696_s7 + $0x88] sm:$0xf] }
 0x169   : > { %v2585_v2 = vpop.f32.mrf.mxu1 }
 0x16a   : > { %v2761_v54 = vadd.f32 %v2760_v55, %v2672_v62  ;;  %v2586_v12 = vadd.f32 %v2585_v2, %v5915_v36  ;;  %v5488_v36 = vld [vmem:[%s6778_s1 + $0x330] sm:$0xff]  ;;  %v4003_v62 = vor.u32 %v5193_v19, %v4000_v25  ;;  %v4007_v55 = vor.u32 %v5200_v47, %v4006_v27  ;;  %v4060_v25 = vld [vmem:[%s5696_s7 + $0x11c] sm:$0xf0]  ;;  %v5214_v47 = vld [vmem:[%s5696_s7 + $0x120] sm:$0xf0] }
 0x16b   : > { %v2852_v4 = vpop.f32.mrf.mxu0  ;;  %3516 = vmatpush.bf16.msrb.mxu0 %v5488_v36  ;;  %v4015_v2 = vor.u32 %v5201_v40, %v4014_v42  ;;  %v5207_v36 = vld [vmem:[%s5696_s7 + $0xec] sm:$0xf]  ;;  %v4066_v27 = vld [vmem:[%s5696_s7 + $0xf0] sm:$0xf] }
 0x16c   : > { %2900 = vmatmul.bf16.vlgmr.msra.gmra.mxu1 %v3951_v30  ;;  %2989 = vmatmul.bf16.vlgmr.msra.gmra.mxu2 %v3955_v63  ;;  %v6183_v9 = vadd.f32 %v2849_v26, %v2761_v54  ;;  %v4011_v63 = vor.u32 %v5194_v41, %v4008_v10 }
 0x16d   : > { %3078 = vmatmul.bf16.vlgmr.msra.gmra.mxu3 %v3959_v13 }
 0x16e   : > { %3167 = vmatmul.bf16.vlgmr.msra.gmra.mxu0 %v3963_v3 }
 0x16f   : > { %v2674_v14 = vpop.f32.mrf.mxu2 }
 0x170   : > { %v2675_v15 = vadd.f32 %v2674_v14, %v2586_v12  ;;  %v2763_v57 = vpop.f32.mrf.mxu3 }
 0x171   : > { %v2587_v20 = vpop.f32.mrf.mxu1 }
 0x172   : > { %v2764_v21 = vadd.f32 %v2763_v57, %v2675_v15  ;;  %v2588_v35 = vadd.f32 %v2587_v20, %v5937_v50  ;;  %v5206_v57 = vld [vmem:[%s5696_s7 + $0xe4] sm:$0xf]  ;;  %v4052_v20 = vld [vmem:[%s5696_s7 + $0x114] sm:$0xf0] }
 0x173   : > { %v2854_v60 = vpop.f32.mrf.mxu0  ;;  %v4055_v10 = vor.u32 %v5206_v57, %v4052_v20  ;;  %v4110_v57 = vld [vmem:[%s5696_s7 + $0x150] sm:$0xf]  ;;  %v5226_v20 = vld [vmem:[%s5696_s7 + $0x180] sm:$0xf0] }
 0x174   : > { %v6200_v26 = vadd.f32 %v2852_v4, %v2764_v21 }
 0x177   : > { %v2676_v49 = vpop.f32.mrf.mxu2 }
 0x178   : > { %v2677_v52 = vadd.f32 %v2676_v49, %v2588_v35  ;;  %v2765_v38 = vpop.f32.mrf.mxu3  ;;  %v4063_v49 = vor.u32 %v5207_v36, %v4060_v25  ;;  %v4112_v36 = vld [vmem:[%s5696_s7 + $0x184] sm:$0xf0]  ;;  %v5227_v25 = vld [vmem:[%s5696_s7 + $0x188] sm:$0xf0] }
 0x179   : > { %v2590_v30 = vpop.f32.mrf.mxu1 }
 0x17a   : > { %v2766_v13 = vadd.f32 %v2765_v38, %v2677_v52  ;;  %v2591_v54 = vadd.f32 %v2590_v30, %v5945_v58  ;;  %v4067_v52 = vor.u32 %v5214_v47, %v4066_v27  ;;  %v5479_v30 = vld [vmem:[%s6778_s1 + $0x2e8] sm:$0xff] }
 0x17b   : > { %v2857_v3 = vpop.f32.mrf.mxu0  ;;  %3428 = vmatpush.bf16.msrb.mxu3 %v5479_v30 }
 0x17c   : > { %2905 = vmatmul.bf16.gmra.mxu1 %v4003_v62  ;;  %2994 = vmatmul.bf16.gmra.mxu2 %v4007_v55  ;;  %v6209_v50 = vadd.f32 %v2854_v60, %v2766_v13  ;;  %v5213_v60 = vld [vmem:[%s5696_s7 + $0x118] sm:$0xf0] }
 0x17d   : > { %3083 = vmatmul.bf16.gmra.mxu3 %v4011_v63  ;;  %v4059_v42 = vor.u32 %v5213_v60, %v4058_v24  ;;  %v5220_v24 = vld [vmem:[%s5696_s7 + $0x154] sm:$0xf] }
 0x17e   : > { %3172 = vmatmul.bf16.gmra.mxu0 %v4015_v2 }
 0x17f   : > { %v2679_v4 = vpop.f32.mrf.mxu2 }
 0x180   : > { %v2680_v46 = vadd.f32 %v2679_v4, %v2591_v54  ;;  %v2768_v11 = vpop.f32.mrf.mxu3 }
 0x181   : > { %v2592_v12 = vpop.f32.mrf.mxu1 }
 0x182   : > { %v2769_v14 = vadd.f32 %v2768_v11, %v2680_v46  ;;  %v2593_v19 = vadd.f32 %v2592_v12, %v5961_v6  ;;  %v5471_v6 = vld [vmem:[%s6778_s1 + $0x2a8] sm:$0xff] }
 0x183   : > { %v2859_v15 = vpop.f32.mrf.mxu0  ;;  %3339 = vmatpush.bf16.msrb.mxu2 %v5471_v6  ;;  %v5463_v11 = vld [vmem:[%s6778_s1 + $0x268] sm:$0xff] }
 0x184   : > { %v6214_v21 = vadd.f32 %v2857_v3, %v2769_v14  ;;  %v5219_v12 = vld [vmem:[%s5696_s7 + $0x14c] sm:$0xf]  ;;  %v4104_v14 = vld [vmem:[%s5696_s7 + $0x17c] sm:$0xf0]  ;;  %3250 = vmatpush.bf16.msrb.mxu1 %v5463_v11  ;;  %v4162_v11 = vld [vmem:[%s5696_s7 + $0x1b8] sm:$0xf] }
 0x187   : > { %v2681_v58 = vpop.f32.mrf.mxu2 }
 0x188   : > { %v2682_v41 = vadd.f32 %v2681_v58, %v2593_v19  ;;  %v2770_v35 = vpop.f32.mrf.mxu3  ;;  %v4118_v19 = vld [vmem:[%s5696_s7 + $0x158] sm:$0xf] }
 0x189   : > { %v2595_v40 = vpop.f32.mrf.mxu1 }
 0x18a   : > { %v2771_v38 = vadd.f32 %v2770_v35, %v2682_v41  ;;  %v2596_v63 = vadd.f32 %v2595_v40, %v5975_v16  ;;  %v5487_v16 = vld [vmem:[%s6778_s1 + $0x328] sm:$0xff]  ;;  %v4107_v41 = vor.u32 %v5219_v12, %v4104_v14  ;;  %v4111_v35 = vor.u32 %v5226_v20, %v4110_v57  ;;  %v4164_v14 = vld [vmem:[%s5696_s7 + $0x1ec] sm:$0xf0]  ;;  %v4170_v57 = vld [vmem:[%s5696_s7 + $0x1c0] sm:$0xf] }
 0x18b   : > { %v2862_v62 = vpop.f32.mrf.mxu0  ;;  %3517 = vmatpush.bf16.msrb.mxu0 %v5487_v16  ;;  %v4119_v40 = vor.u32 %v5227_v25, %v4118_v19  ;;  %v5233_v16 = vld [vmem:[%s5696_s7 + $0x1bc] sm:$0xf]  ;;  %v5240_v20 = vld [vmem:[%s5696_s7 + $0x1f0] sm:$0xf0] }
 0x18c   : > { %2910 = vmatmul.bf16.gmra.mxu1 %v4055_v10  ;;  %2999 = vmatmul.bf16.gmra.mxu2 %v4059_v42  ;;  %v6223_v55 = vadd.f32 %v2859_v15, %v2771_v38  ;;  %v4115_v42 = vor.u32 %v5220_v24, %v4112_v36 }
 0x18d   : > { %3088 = vmatmul.bf16.gmra.mxu3 %v4063_v49 }
 0x18e   : > { %3177 = vmatmul.bf16.gmra.mxu0 %v4067_v52 }
 0x18f   : > { %v2684_v2 = vpop.f32.mrf.mxu2 }
 0x190   : > { %v2685_v13 = vadd.f32 %v2684_v2, %v2596_v63  ;;  %v2773_v3 = vpop.f32.mrf.mxu3 }
 0x191   : > { %v2597_v54 = vpop.f32.mrf.mxu1 }
 0x192   : > { %v2774_v4 = vadd.f32 %v2773_v3, %v2685_v13  ;;  %v2598_v60 = vadd.f32 %v2597_v54, %v5997_v31  ;;  %v5232_v3 = vld [vmem:[%s5696_s7 + $0x1b4] sm:$0xf]  ;;  %v4156_v54 = vld [vmem:[%s5696_s7 + $0x1e4] sm:$0xf0] }
 0x193   : > { %v2864_v46 = vpop.f32.mrf.mxu0  ;;  %v4159_v36 = vor.u32 %v5232_v3, %v4156_v54  ;;  %v4214_v3 = vld [vmem:[%s5696_s7 + $0x220] sm:$0xf]  ;;  %v5252_v54 = vld [vmem:[%s5696_s7 + $0x250] sm:$0xf0] }
 0x194   : > { %v6240_v15 = vadd.f32 %v2862_v62, %v2774_v4 }
 0x197   : > { %v2686_v27 = vpop.f32.mrf.mxu2 }
 0x198   : > { %v2687_v47 = vadd.f32 %v2686_v27, %v2598_v60  ;;  %v2775_v58 = vpop.f32.mrf.mxu3  ;;  %v4167_v27 = vor.u32 %v5233_v16, %v4164_v14  ;;  %v4216_v16 = vld [vmem:[%s5696_s7 + $0x254] sm:$0xf0]  ;;  %v5253_v14 = vld [vmem:[%s5696_s7 + $0x258] sm:$0xf0] }
 0x199   : > { %v2600_v10 = vpop.f32.mrf.mxu1 }
 0x19a   : > { %v2776_v49 = vadd.f32 %v2775_v58, %v2687_v47  ;;  %v2601_v38 = vadd.f32 %v2600_v10, %v6005_v44  ;;  %v4171_v47 = vor.u32 %v5240_v20, %v4170_v57  ;;  %v5478_v10 = vld [vmem:[%s6778_s1 + $0x2e0] sm:$0xff] }
 0x19b   : > { %v2867_v52 = vpop.f32.mrf.mxu0  ;;  %3429 = vmatpush.bf16.msrb.mxu3 %v5478_v10 }
 0x19c   : > { %2915 = vmatmul.bf16.gmra.mxu1 %v4107_v41  ;;  %3004 = vmatmul.bf16.gmra.mxu2 %v4111_v35  ;;  %v6249_v31 = vadd.f32 %v2864_v46, %v2776_v49  ;;  %v5239_v46 = vld [vmem:[%s5696_s7 + $0x1e8] sm:$0xf0] }
 0x19d   : > { %3093 = vmatmul.bf16.gmra.mxu3 %v4115_v42  ;;  %v4163_v19 = vor.u32 %v5239_v46, %v4162_v11  ;;  %v5246_v11 = vld [vmem:[%s5696_s7 + $0x224] sm:$0xf] }
 0x19e   : > { %3182 = vmatmul.bf16.gmra.mxu0 %v4119_v40 }
 0x19f   : > { %v2689_v62 = vpop.f32.mrf.mxu2 }
 0x1a0   : > { %v2690_v6 = vadd.f32 %v2689_v62, %v2601_v38  ;;  %v2778_v30 = vpop.f32.mrf.mxu3 }
 0x1a1   : > { %v2602_v63 = vpop.f32.mrf.mxu1 }
 0x1a2   : > { %v2779_v2 = vadd.f32 %v2778_v30, %v2690_v6  ;;  %v2603_v12 = vadd.f32 %v2602_v63, %v6021_v0  ;;  %v5470_v0 = vld [vmem:[%s6778_s1 + $0x2a0] sm:$0xff]  ;;  %v5245_v63 = vld [vmem:[%s5696_s7 + $0x21c] sm:$0xf] }
 0x1a3   : > { %v2869_v13 = vpop.f32.mrf.mxu0  ;;  %3340 = vmatpush.bf16.msrb.mxu2 %v5470_v0  ;;  %v5462_v30 = vld [vmem:[%s6778_s1 + $0x260] sm:$0xff] }
 0x1a4   : > { %v6254_v4 = vadd.f32 %v2867_v52, %v2779_v2  ;;  %v4208_v2 = vld [vmem:[%s5696_s7 + $0x24c] sm:$0xf0]  ;;  %3251 = vmatpush.bf16.msrb.mxu1 %v5462_v30  ;;  %v4266_v30 = vld [vmem:[%s5696_s7 + $0x288] sm:$0xf] }
 0x1a7   : > { %v2691_v44 = vpop.f32.mrf.mxu2 }
 0x1a8   : > { %v2692_v24 = vadd.f32 %v2691_v44, %v2603_v12  ;;  %v2780_v60 = vpop.f32.mrf.mxu3  ;;  %v4222_v12 = vld [vmem:[%s5696_s7 + $0x228] sm:$0xf] }
 0x1a9   : > { %v2605_v25 = vpop.f32.mrf.mxu1 }
 0x1aa   : > { %v2781_v58 = vadd.f32 %v2780_v60, %v2692_v24  ;;  %v2606_v42 = vadd.f32 %v2605_v25, %v5917_v37  ;;  %v5486_v37 = vld [vmem:[%s6778_s1 + $0x320] sm:$0xff]  ;;  %v4211_v24 = vor.u32 %v5245_v63, %v4208_v2  ;;  %v4215_v60 = vor.u32 %v5252_v54, %v4214_v3  ;;  %v4274_v3 = vld [vmem:[%s5696_s7 + $0x290] sm:$0xf] }
 0x1ab   : > { %v2872_v41 = vpop.f32.mrf.mxu0  ;;  %3518 = vmatpush.bf16.msrb.mxu0 %v5486_v37  ;;  %v4223_v25 = vor.u32 %v5253_v14, %v4222_v12  ;;  %v5259_v37 = vld [vmem:[%s5696_s7 + $0x28c] sm:$0xf]  ;;  %v4268_v2 = vld [vmem:[%s5696_s7 + $0x2bc] sm:$0xf0]  ;;  %v5266_v54 = vld [vmem:[%s5696_s7 + $0x2c0] sm:$0xf0] }
 0x1ac   : > { %2920 = vmatmul.bf16.gmra.mxu1 %v4159_v36  ;;  %3009 = vmatmul.bf16.gmra.mxu2 %v4163_v19  ;;  %v6263_v35 = vadd.f32 %v2869_v13, %v2781_v58  ;;  %v4219_v19 = vor.u32 %v5246_v11, %v4216_v16 }
 0x1ad   : > { %3098 = vmatmul.bf16.gmra.mxu3 %v4167_v27 }
 0x1ae   : > { %3187 = vmatmul.bf16.gmra.mxu0 %v4171_v47 }
 0x1af   : > { %v2694_v40 = vpop.f32.mrf.mxu2 }
 0x1b0   : > { %v2695_v49 = vadd.f32 %v2694_v40, %v2606_v42  ;;  %v2783_v52 = vpop.f32.mrf.mxu3 }
 0x1b1   : > { %v2607_v38 = vpop.f32.mrf.mxu1 }
 0x1b2   : > { %v2784_v62 = vadd.f32 %v2783_v52, %v2695_v49  ;;  %v2608_v46 = vadd.f32 %v2607_v38, %v5939_v51  ;;  %v5258_v52 = vld [vmem:[%s5696_s7 + $0x284] sm:$0xf]  ;;  %v4260_v38 = vld [vmem:[%s5696_s7 + $0x2b4] sm:$0xf0] }
 0x1b3   : > { %v2874_v6 = vpop.f32.mrf.mxu0  ;;  %v4263_v16 = vor.u32 %v5258_v52, %v4260_v38  ;;  %v4318_v52 = vld [vmem:[%s5696_s7 + $0x2f0] sm:$0xf]  ;;  %v5278_v38 = vld [vmem:[%s5696_s7 + $0x320] sm:$0xf0] }
 0x1b4   : > { %v6280_v13 = vadd.f32 %v2872_v41, %v2784_v62 }
 0x1b7   : > { %v2696_v57 = vpop.f32.mrf.mxu2 }
 0x1b8   : > { %v2697_v20 = vadd.f32 %v2696_v57, %v2608_v46  ;;  %v2785_v44 = vpop.f32.mrf.mxu3  ;;  %v4271_v57 = vor.u32 %v5259_v37, %v4268_v2  ;;  %v4320_v37 = vld [vmem:[%s5696_s7 + $0x324] sm:$0xf0]  ;;  %v5279_v2 = vld [vmem:[%s5696_s7 + $0x328] sm:$0xf0] }
 0x1b9   : > { %v2610_v36 = vpop.f32.mrf.mxu1 }
 0x1ba   : > { %v2786_v27 = vadd.f32 %v2785_v44, %v2697_v20  ;;  %v2611_v58 = vadd.f32 %v2610_v36, %v5947_v59  ;;  %v4275_v20 = vor.u32 %v5266_v54, %v4274_v3  ;;  %v5477_v36 = vld [vmem:[%s6778_s1 + $0x2d8] sm:$0xff] }
 0x1bb   : > { %v2877_v47 = vpop.f32.mrf.mxu0  ;;  %3430 = vmatpush.bf16.msrb.mxu3 %v5477_v36 }
 0x1bc   : > { %2925 = vmatmul.bf16.gmra.mxu1 %v4211_v24  ;;  %3014 = vmatmul.bf16.gmra.mxu2 %v4215_v60  ;;  %v6289_v51 = vadd.f32 %v2874_v6, %v2786_v27  ;;  %v5265_v6 = vld [vmem:[%s5696_s7 + $0x2b8] sm:$0xf0] }
 0x1bd   : > { %3103 = vmatmul.bf16.gmra.mxu3 %v4219_v19  ;;  %v4267_v12 = vor.u32 %v5265_v6, %v4266_v30  ;;  %v5272_v30 = vld [vmem:[%s5696_s7 + $0x2f4] sm:$0xf] }
 0x1be   : > { %3192 = vmatmul.bf16.gmra.mxu0 %v4223_v25 }
 0x1bf   : > { %v2699_v41 = vpop.f32.mrf.mxu2 }
 0x1c0   : > { %v2700_v0 = vadd.f32 %v2699_v41, %v2611_v58  ;;  %v2788_v10 = vpop.f32.mrf.mxu3 }
 0x1c1   : > { %v2612_v42 = vpop.f32.mrf.mxu1 }
 0x1c2   : > { %v2789_v40 = vadd.f32 %v2788_v10, %v2700_v0  ;;  %v2613_v63 = vadd.f32 %v2612_v42, %v5963_v7  ;;  %v5469_v7 = vld [vmem:[%s6778_s1 + $0x298] sm:$0xff]  ;;  %v5271_v42 = vld [vmem:[%s5696_s7 + $0x2ec] sm:$0xf] }
 0x1c3   : > { %v2879_v49 = vpop.f32.mrf.mxu0  ;;  %3341 = vmatpush.bf16.msrb.mxu2 %v5469_v7  ;;  %v5461_v10 = vld [vmem:[%s6778_s1 + $0x258] sm:$0xff] }
 0x1c4   : > { %v6294_v62 = vadd.f32 %v2877_v47, %v2789_v40  ;;  %v4312_v40 = vld [vmem:[%s5696_s7 + $0x31c] sm:$0xf0]  ;;  %3252 = vmatpush.bf16.msrb.mxu1 %v5461_v10  ;;  %v4370_v10 = vld [vmem:[%s5696_s7 + $0x358] sm:$0xf] }
 0x1c7   : > { %v2701_v59 = vpop.f32.mrf.mxu2 }
 0x1c8   : > { %v2702_v11 = vadd.f32 %v2701_v59, %v2613_v63  ;;  %v2790_v46 = vpop.f32.mrf.mxu3  ;;  %v4326_v63 = vld [vmem:[%s5696_s7 + $0x2f8] sm:$0xf] }
 0x1c9   : > { %v2615_v14 = vpop.f32.mrf.mxu1 }
 0x1ca   : > { %v2791_v44 = vadd.f32 %v2790_v46, %v2702_v11  ;;  %v2616_v19 = vadd.f32 %v2615_v14, %v5977_v17  ;;  %v5485_v17 = vld [vmem:[%s6778_s1 + $0x318] sm:$0xff]  ;;  %v4315_v11 = vor.u32 %v5271_v42, %v4312_v40  ;;  %v4319_v46 = vor.u32 %v5278_v38, %v4318_v52  ;;  %v4372_v40 = vld [vmem:[%s5696_s7 + $0x38c] sm:$0xf0]  ;;  %v4378_v52 = vld [vmem:[%s5696_s7 + $0x360] sm:$0xf] }
 0x1cb   : > { %v2882_v24 = vpop.f32.mrf.mxu0  ;;  %3519 = vmatpush.bf16.msrb.mxu0 %v5485_v17  ;;  %v4327_v14 = vor.u32 %v5279_v2, %v4326_v63  ;;  %v5285_v17 = vld [vmem:[%s5696_s7 + $0x35c] sm:$0xf]  ;;  %v5292_v38 = vld [vmem:[%s5696_s7 + $0x390] sm:$0xf0] }
 0x1cc   : > { %2930 = vmatmul.bf16.gmra.mxu1 %v4263_v16  ;;  %3019 = vmatmul.bf16.gmra.mxu2 %v4267_v12  ;;  %v6303_v60 = vadd.f32 %v2879_v49, %v2791_v44  ;;  %v4323_v12 = vor.u32 %v5272_v30, %v4320_v37 }
 0x1cd   : > { %3108 = vmatmul.bf16.gmra.mxu3 %v4271_v57 }
 0x1ce   : > { %3197 = vmatmul.bf16.gmra.mxu0 %v4275_v20 }
 0x1cf   : > { %v2704_v25 = vpop.f32.mrf.mxu2 }
 0x1d0   : > { %v2705_v27 = vadd.f32 %v2704_v25, %v2616_v19  ;;  %v2793_v47 = vpop.f32.mrf.mxu3 }
 0x1d1   : > { %v2617_v58 = vpop.f32.mrf.mxu1 }
 0x1d2   : > { %v2794_v41 = vadd.f32 %v2793_v47, %v2705_v27  ;;  %v2618_v6 = vadd.f32 %v2617_v58, %v5999_v32  ;;  %v5284_v47 = vld [vmem:[%s5696_s7 + $0x354] sm:$0xf]  ;;  %v4364_v58 = vld [vmem:[%s5696_s7 + $0x384] sm:$0xf0] }
 0x1d3   : > { %v2884_v0 = vpop.f32.mrf.mxu0  ;;  %v4367_v37 = vor.u32 %v5284_v47, %v4364_v58  ;;  %v4422_v58 = vld [vmem:[%s5696_s7 + $0x3c0] sm:$0xf] }
 0x1d4   : > { %v6320_v49 = vadd.f32 %v2882_v24, %v2794_v41 }
 0x1d7   : > { %v2706_v3 = vpop.f32.mrf.mxu2 }
 0x1d8   : > { %v2707_v54 = vadd.f32 %v2706_v3, %v2618_v6  ;;  %v2795_v59 = vpop.f32.mrf.mxu3  ;;  %v4375_v3 = vor.u32 %v5285_v17, %v4372_v40  ;;  %v4424_v17 = vld [vmem:[%s5696_s7 + $0x3f4] sm:$0xf0] }
 0x1d9   : > { %v2620_v16 = vpop.f32.mrf.mxu1 }
 0x1da   : > { %v2796_v57 = vadd.f32 %v2795_v59, %v2707_v54  ;;  %v2621_v44 = vadd.f32 %v2620_v16, %v6007_v45  ;;  %v4379_v54 = vor.u32 %v5292_v38, %v4378_v52 }
 0x1db   : > { %v2887_v20 = vpop.f32.mrf.mxu0 }
 0x1dc   : > { %2935 = vmatmul.bf16.gmra.mxu1 %v4315_v11  ;;  %3024 = vmatmul.bf16.gmra.mxu2 %v4319_v46  ;;  %v6329_v32 = vadd.f32 %v2884_v0, %v2796_v57  ;;  %v5291_v0 = vld [vmem:[%s5696_s7 + $0x388] sm:$0xf0] }
 0x1dd   : > { %3113 = vmatmul.bf16.gmra.mxu3 %v4323_v12  ;;  %v4371_v63 = vor.u32 %v5291_v0, %v4370_v10  ;;  %v5476_v12 = vld [vmem:[%s6778_s1 + $0x2d0] sm:$0xff]  ;;  %v5298_v0 = vld [vmem:[%s5696_s7 + $0x3c4] sm:$0xf] }
 0x1de   : > { %3202 = vmatmul.bf16.gmra.mxu0 %v4327_v14  ;;  %3431 = vmatpush.bf16.msrb.mxu3 %v5476_v12  ;;  %v5304_v10 = vld [vmem:[%s5696_s7 + $0x3f0] sm:$0xf0] }
 0x1df   : > { %v2709_v24 = vpop.f32.mrf.mxu2 }
 0x1e0   : > { %v2710_v7 = vadd.f32 %v2709_v24, %v2621_v44  ;;  %v2798_v36 = vpop.f32.mrf.mxu3 }
 0x1e1   : > { %v2622_v19 = vpop.f32.mrf.mxu1 }
 0x1e2   : > { %v2799_v25 = vadd.f32 %v2798_v36, %v2710_v7  ;;  %v2623_v42 = vadd.f32 %v2622_v19, %v6023_v1  ;;  %v5468_v1 = vld [vmem:[%s6778_s1 + $0x290] sm:$0xff] }
 0x1e3   : > { %v2889_v27 = vpop.f32.mrf.mxu0  ;;  %3342 = vmatpush.bf16.msrb.mxu2 %v5468_v1  ;;  %v5460_v36 = vld [vmem:[%s6778_s1 + $0x250] sm:$0xff] }
 0x1e4   : > { %v6334_v41 = vadd.f32 %v2887_v20, %v2799_v25  ;;  %v5484_v19 = vld [vmem:[%s6778_s1 + $0x310] sm:$0xff]  ;;  %v5297_v25 = vld [vmem:[%s5696_s7 + $0x3bc] sm:$0xf]  ;;  %3253 = vmatpush.bf16.msrb.mxu1 %v5460_v36  ;;  %v5311_v36 = vld [vmem:[%s5696_s7 + $0x42c] sm:$0xf] }
 0x1e5   : > { %3520 = vmatpush.bf16.msrb.mxu0 %v5484_v19  ;;  %v4476_v19 = vld [vmem:[%s5696_s7 + $0x45c] sm:$0xf0] }
 0x1e7   : > { %v2711_v45 = vpop.f32.mrf.mxu2 }
 0x1e8   : > { %v2712_v30 = vadd.f32 %v2711_v45, %v2623_v42  ;;  %v2800_v6 = vpop.f32.mrf.mxu3  ;;  %v5305_v42 = vld [vmem:[%s5696_s7 + $0x3f8] sm:$0xf0] }
 0x1e9   : > { %v2901_v2 = vpop.f32.mrf.mxu1 }
 0x1ea   : > { %v2801_v59 = vadd.f32 %v2800_v6, %v2712_v30  ;;  %v2902_v11 = vadd.f32 %v2901_v2, %v6041_v29  ;;  %v4423_v30 = vor.u32 %v5304_v10, %v4422_v58 }
 0x1eb   : > { %v3168_v46 = vpop.f32.mrf.mxu0 }
 0x1ec   : > { %2940 = vmatmul.bf16.gmra.mxu1 %v4367_v37  ;;  %3029 = vmatmul.bf16.gmra.mxu2 %v4371_v63  ;;  %v6344_v16 = vadd.f32 %v2889_v27, %v2801_v59  ;;  %v4416_v27 = vld [vmem:[%s5696_s7 + $0x3ec] sm:$0xf0]  ;;  %v4427_v37 = vor.u32 %v5298_v0, %v4424_v17 }
 0x1ed   : > { %3118 = vmatmul.bf16.gmra.mxu3 %v4375_v3  ;;  %v4419_v45 = vor.u32 %v5297_v25, %v4416_v27  ;;  %v4482_v25 = vld [vmem:[%s5696_s7 + $0x430] sm:$0xf]  ;;  %v5318_v27 = vld [vmem:[%s5696_s7 + $0x460] sm:$0xf0] }
 0x1ee   : > { %3207 = vmatmul.bf16.gmra.mxu0 %v4379_v54 }
 0x1ef   : > { %v2990_v14 = vpop.f32.mrf.mxu2 }
 0x1f0   : > { %v2991_v29 = vadd.f32 %v2990_v14, %v2902_v11  ;;  %v3079_v57 = vpop.f32.mrf.mxu3 }
 0x1f1   : > { %v2903_v20 = vpop.f32.mrf.mxu1 }
 0x1f2   : > { %v3080_v44 = vadd.f32 %v3079_v57, %v2991_v29  ;;  %v2904_v24 = vadd.f32 %v2903_v20, %v6050_v8  ;;  %v4430_v8 = vld [vmem:[%s5696_s7 + $0x3c8] sm:$0xf]  ;;  %v5310_v57 = vld [vmem:[%s5696_s7 + $0x424] sm:$0xf]  ;;  %v4468_v20 = vld [vmem:[%s5696_s7 + $0x454] sm:$0xf0] }
 0x1f3   : > { %v3170_v7 = vpop.f32.mrf.mxu0  ;;  %v4431_v63 = vor.u32 %v5305_v42, %v4430_v8  ;;  %v4471_v17 = vor.u32 %v5310_v57, %v4468_v20  ;;  %v4526_v57 = vld [vmem:[%s5696_s7 + $0x490] sm:$0xf]  ;;  %v5330_v20 = vld [vmem:[%s5696_s7 + $0x4c0] sm:$0xf0] }
 0x1f4   : > { %v6361_v47 = vadd.f32 %v3168_v46, %v3080_v44 }
 0x1f7   : > { %v2992_v40 = vpop.f32.mrf.mxu2 }
 0x1f8   : > { %v2993_v52 = vadd.f32 %v2992_v40, %v2904_v24  ;;  %v3081_v38 = vpop.f32.mrf.mxu3  ;;  %v4474_v24 = vld [vmem:[%s5696_s7 + $0x428] sm:$0xf]  ;;  %v4479_v40 = vor.u32 %v5311_v36, %v4476_v19  ;;  %v5331_v36 = vld [vmem:[%s5696_s7 + $0x4c8] sm:$0xf0] }
 0x1f9   : > { %v2906_v6 = vpop.f32.mrf.mxu1 }
 0x1fa   : > { %v3082_v2 = vadd.f32 %v3081_v38, %v2993_v52  ;;  %v2907_v3 = vadd.f32 %v2906_v6, %v6055_v22  ;;  %v4483_v52 = vor.u32 %v5318_v27, %v4482_v25  ;;  %v5467_v6 = vld [vmem:[%s6778_s1 + $0x288] sm:$0xff] }
 0x1fb   : > { %v3173_v54 = vpop.f32.mrf.mxu0  ;;  %3343 = vmatpush.bf16.msrb.mxu2 %v5467_v6 }
 0x1fc   : > { %2945 = vmatmul.bf16.gmra.mxu1 %v4419_v45  ;;  %3034 = vmatmul.bf16.gmra.mxu2 %v4423_v30  ;;  %v6370_v59 = vadd.f32 %v3170_v7, %v3082_v2  ;;  %v5317_v7 = vld [vmem:[%s5696_s7 + $0x458] sm:$0xf0] }
 0x1fd   : > { %3123 = vmatmul.bf16.gmra.mxu3 %v4427_v37  ;;  %v4475_v8 = vor.u32 %v5317_v7, %v4474_v24  ;;  %v5475_v37 = vld [vmem:[%s6778_s1 + $0x2c8] sm:$0xff]  ;;  %v5324_v24 = vld [vmem:[%s5696_s7 + $0x494] sm:$0xf] }
 0x1fe   : > { %3212 = vmatmul.bf16.gmra.mxu0 %v4431_v63  ;;  %3432 = vmatpush.bf16.msrb.mxu3 %v5475_v37  ;;  %v4528_v7 = vld [vmem:[%s5696_s7 + $0x4c4] sm:$0xf0] }
 0x1ff   : > { %v2995_v11 = vpop.f32.mrf.mxu2 }
 0x200   : > { %v2996_v46 = vadd.f32 %v2995_v11, %v2907_v3  ;;  %v3084_v1 = vpop.f32.mrf.mxu3 }
 0x201   : > { %v2908_v12 = vpop.f32.mrf.mxu1 }
 0x202   : > { %v3085_v14 = vadd.f32 %v3084_v1, %v2996_v46  ;;  %v2909_v22 = vadd.f32 %v2908_v12, %v6064_v56  ;;  %v5459_v1 = vld [vmem:[%s6778_s1 + $0x248] sm:$0xff] }
 0x203   : > { %v3175_v29 = vpop.f32.mrf.mxu0  ;;  %v5483_v12 = vld [vmem:[%s6778_s1 + $0x308] sm:$0xff]  ;;  %3254 = vmatpush.bf16.msrb.mxu1 %v5459_v1  ;;  %v5337_v1 = vld [vmem:[%s5696_s7 + $0x4fc] sm:$0xf] }
 0x204   : > { %v6375_v44 = vadd.f32 %v3173_v54, %v3085_v14  ;;  %v5323_v14 = vld [vmem:[%s5696_s7 + $0x48c] sm:$0xf]  ;;  %3521 = vmatpush.bf16.msrb.mxu0 %v5483_v12  ;;  %v4580_v12 = vld [vmem:[%s5696_s7 + $0x52c] sm:$0xf0] }
 0x207   : > { %v2997_v58 = vpop.f32.mrf.mxu2 }
 0x208   : > { %v2998_v10 = vadd.f32 %v2997_v58, %v2909_v22  ;;  %v3086_v0 = vpop.f32.mrf.mxu3  ;;  %v4520_v22 = vld [vmem:[%s5696_s7 + $0x4bc] sm:$0xf0] }
 0x209   : > { %v2911_v42 = vpop.f32.mrf.mxu1  ;;  %v4523_v58 = vor.u32 %v5323_v14, %v4520_v22  ;;  %v4586_v14 = vld [vmem:[%s5696_s7 + $0x500] sm:$0xf]  ;;  %v5344_v22 = vld [vmem:[%s5696_s7 + $0x530] sm:$0xf0] }
 0x20a   : > { %v3087_v56 = vadd.f32 %v3086_v0, %v2998_v10  ;;  %v2912_v38 = vadd.f32 %v2911_v42, %v6081_v33  ;;  %v4527_v10 = vor.u32 %v5330_v20, %v4526_v57 }
 0x20b   : > { %v3178_v45 = vpop.f32.mrf.mxu0 }
 0x20c   : > { %2950 = vmatmul.bf16.gmra.mxu1 %v4471_v17  ;;  %3039 = vmatmul.bf16.gmra.mxu2 %v4475_v8  ;;  %v6384_v30 = vadd.f32 %v3175_v29, %v3087_v56  ;;  %v4531_v17 = vor.u32 %v5324_v24, %v4528_v7 }
 0x20d   : > { %3128 = vmatmul.bf16.gmra.mxu3 %v4479_v40 }
 0x20e   : > { %3217 = vmatmul.bf16.gmra.mxu0 %v4483_v52 }
 0x20f   : > { %v3000_v63 = vpop.f32.mrf.mxu2 }
 0x210   : > { %v3001_v33 = vadd.f32 %v3000_v63, %v2912_v38  ;;  %v3089_v2 = vpop.f32.mrf.mxu3 }
 0x211   : > { %v2913_v3 = vpop.f32.mrf.mxu1 }
 0x212   : > { %v3090_v54 = vadd.f32 %v3089_v2, %v3001_v33  ;;  %v2914_v11 = vadd.f32 %v2913_v3, %v6090_v61  ;;  %v4534_v61 = vld [vmem:[%s5696_s7 + $0x498] sm:$0xf]  ;;  %v5336_v2 = vld [vmem:[%s5696_s7 + $0x4f4] sm:$0xf]  ;;  %v4572_v3 = vld [vmem:[%s5696_s7 + $0x524] sm:$0xf0] }
 0x213   : > { %v3180_v46 = vpop.f32.mrf.mxu0  ;;  %v4535_v8 = vor.u32 %v5331_v36, %v4534_v61  ;;  %v4575_v7 = vor.u32 %v5336_v2, %v4572_v3  ;;  %v4630_v2 = vld [vmem:[%s5696_s7 + $0x560] sm:$0xf]  ;;  %v5356_v3 = vld [vmem:[%s5696_s7 + $0x590] sm:$0xf0] }
 0x214   : > { %v6401_v29 = vadd.f32 %v3178_v45, %v3090_v54 }
 0x217   : > { %v3002_v19 = vpop.f32.mrf.mxu2 }
 0x218   : > { %v3003_v25 = vadd.f32 %v3002_v19, %v2914_v11  ;;  %v3091_v27 = vpop.f32.mrf.mxu3  ;;  %v4578_v11 = vld [vmem:[%s5696_s7 + $0x4f8] sm:$0xf]  ;;  %v4583_v19 = vor.u32 %v5337_v1, %v4580_v12  ;;  %v5357_v1 = vld [vmem:[%s5696_s7 + $0x598] sm:$0xf0] }
 0x219   : > { %v2916_v0 = vpop.f32.mrf.mxu1 }
 0x21a   : > { %v3092_v42 = vadd.f32 %v3091_v27, %v3003_v25  ;;  %v2917_v40 = vadd.f32 %v2916_v0, %v6095_v5  ;;  %v4587_v25 = vor.u32 %v5344_v22, %v4586_v14  ;;  %v5466_v0 = vld [vmem:[%s6778_s1 + $0x280] sm:$0xff] }
 0x21b   : > { %v3183_v52 = vpop.f32.mrf.mxu0  ;;  %3344 = vmatpush.bf16.msrb.mxu2 %v5466_v0 }
 0x21c   : > { %2955 = vmatmul.bf16.gmra.mxu1 %v4523_v58  ;;  %3044 = vmatmul.bf16.gmra.mxu2 %v4527_v10  ;;  %v6410_v56 = vadd.f32 %v3180_v46, %v3092_v42  ;;  %v5343_v46 = vld [vmem:[%s5696_s7 + $0x528] sm:$0xf0] }
 0x21d   : > { %3133 = vmatmul.bf16.gmra.mxu3 %v4531_v17  ;;  %v4579_v61 = vor.u32 %v5343_v46, %v4578_v11  ;;  %v5474_v17 = vld [vmem:[%s6778_s1 + $0x2c0] sm:$0xff]  ;;  %v4632_v46 = vld [vmem:[%s5696_s7 + $0x594] sm:$0xf0] }
 0x21e   : > { %3222 = vmatmul.bf16.gmra.mxu0 %v4535_v8  ;;  %3433 = vmatpush.bf16.msrb.mxu3 %v5474_v17  ;;  %v5350_v11 = vld [vmem:[%s5696_s7 + $0x564] sm:$0xf] }
 0x21f   : > { %v3005_v38 = vpop.f32.mrf.mxu2 }
 0x220   : > { %v3006_v45 = vadd.f32 %v3005_v38, %v2917_v40  ;;  %v3094_v6 = vpop.f32.mrf.mxu3 }
 0x221   : > { %v2918_v37 = vpop.f32.mrf.mxu1 }
 0x222   : > { %v3095_v63 = vadd.f32 %v3094_v6, %v3006_v45  ;;  %v2919_v5 = vadd.f32 %v2918_v37, %v6103_v34  ;;  %v5458_v6 = vld [vmem:[%s6778_s1 + $0x240] sm:$0xff] }
 0x223   : > { %v3185_v33 = vpop.f32.mrf.mxu0  ;;  %v5482_v37 = vld [vmem:[%s6778_s1 + $0x300] sm:$0xff]  ;;  %3255 = vmatpush.bf16.msrb.mxu1 %v5458_v6  ;;  %v5363_v6 = vld [vmem:[%s5696_s7 + $0x5cc] sm:$0xf] }
 0x224   : > { %v6415_v54 = vadd.f32 %v3183_v52, %v3095_v63  ;;  %v5349_v63 = vld [vmem:[%s5696_s7 + $0x55c] sm:$0xf]  ;;  %3522 = vmatpush.bf16.msrb.mxu0 %v5482_v37  ;;  %v4684_v37 = vld [vmem:[%s5696_s7 + $0x5fc] sm:$0xf0] }
 0x227   : > { %v3007_v57 = vpop.f32.mrf.mxu2 }
 0x228   : > { %v3008_v20 = vadd.f32 %v3007_v57, %v2919_v5  ;;  %v3096_v24 = vpop.f32.mrf.mxu3  ;;  %v4624_v5 = vld [vmem:[%s5696_s7 + $0x58c] sm:$0xf0] }
 0x229   : > { %v2921_v36 = vpop.f32.mrf.mxu1  ;;  %v4627_v57 = vor.u32 %v5349_v63, %v4624_v5  ;;  %v4690_v63 = vld [vmem:[%s5696_s7 + $0x5d0] sm:$0xf]  ;;  %v5370_v5 = vld [vmem:[%s5696_s7 + $0x600] sm:$0xf0] }
 0x22a   : > { %v3097_v34 = vadd.f32 %v3096_v24, %v3008_v20  ;;  %v2922_v27 = vadd.f32 %v2921_v36, %v6120_v43  ;;  %v4631_v20 = vor.u32 %v5356_v3, %v4630_v2 }
 0x22b   : > { %v3188_v58 = vpop.f32.mrf.mxu0 }
 0x22c   : > { %2960 = vmatmul.bf16.gmra.mxu1 %v4575_v7  ;;  %3049 = vmatmul.bf16.gmra.mxu2 %v4579_v61  ;;  %v6424_v10 = vadd.f32 %v3185_v33, %v3097_v34  ;;  %v4635_v7 = vor.u32 %v5350_v11, %v4632_v46 }
 0x22d   : > { %3138 = vmatmul.bf16.gmra.mxu3 %v4583_v19 }
 0x22e   : > { %3227 = vmatmul.bf16.gmra.mxu0 %v4587_v25 }
 0x22f   : > { %v3010_v8 = vpop.f32.mrf.mxu2 }
 0x230   : > { %v3011_v43 = vadd.f32 %v3010_v8, %v2922_v27  ;;  %v3099_v42 = vpop.f32.mrf.mxu3 }
 0x231   : > { %v2923_v40 = vpop.f32.mrf.mxu1 }
 0x232   : > { %v3100_v52 = vadd.f32 %v3099_v42, %v3011_v43  ;;  %v2924_v38 = vadd.f32 %v2923_v40, %v6129_v39  ;;  %v4638_v39 = vld [vmem:[%s5696_s7 + $0x568] sm:$0xf]  ;;  %v5362_v42 = vld [vmem:[%s5696_s7 + $0x5c4] sm:$0xf]  ;;  %v4676_v40 = vld [vmem:[%s5696_s7 + $0x5f4] sm:$0xf0] }
 0x233   : > { %v3190_v45 = vpop.f32.mrf.mxu0  ;;  %v4639_v61 = vor.u32 %v5357_v1, %v4638_v39  ;;  %v4679_v46 = vor.u32 %v5362_v42, %v4676_v40  ;;  %v4742_v42 = vld [vmem:[%s5696_s7 + $0x638] sm:$0xf]  ;;  %v5383_v40 = vld [vmem:[%s5696_s7 + $0x668] sm:$0xf0] }
 0x234   : > { %v6441_v33 = vadd.f32 %v3188_v58, %v3100_v52 }
 0x237   : > { %v3012_v12 = vpop.f32.mrf.mxu2 }
 0x238   : > { %v3013_v14 = vadd.f32 %v3012_v12, %v2924_v38  ;;  %v3101_v22 = vpop.f32.mrf.mxu3  ;;  %v4682_v38 = vld [vmem:[%s5696_s7 + $0x5c8] sm:$0xf]  ;;  %v4687_v12 = vor.u32 %v5363_v6, %v4684_v37 }
 0x239   : > { %v2926_v24 = vpop.f32.mrf.mxu1 }
 0x23a   : > { %v3102_v36 = vadd.f32 %v3101_v22, %v3013_v14  ;;  %v2927_v19 = vadd.f32 %v2926_v24, %v6134_v53  ;;  %v4691_v14 = vor.u32 %v5370_v5, %v4690_v63 }
 0x23b   : > { %v3193_v25 = vpop.f32.mrf.mxu0 }
 0x23c   : > { %2965 = vmatmul.bf16.gmra.mxu1 %v4627_v57  ;;  %3054 = vmatmul.bf16.gmra.mxu2 %v4631_v20  ;;  %v6450_v34 = vadd.f32 %v3190_v45, %v3102_v36  ;;  %v5369_v45 = vld [vmem:[%s5696_s7 + $0x5f8] sm:$0xf0] }
 0x23d   : > { %3143 = vmatmul.bf16.gmra.mxu3 %v4635_v7  ;;  %v4683_v39 = vor.u32 %v5369_v45, %v4682_v38 }
 0x23e   : > { %3232 = vmatmul.bf16.gmra.mxu0 %v4639_v61 }
 0x23f   : > { %v3015_v27 = vpop.f32.mrf.mxu2 }
 0x240   : > { %v3016_v58 = vadd.f32 %v3015_v27, %v2927_v19  ;;  %v3104_v0 = vpop.f32.mrf.mxu3  ;;  %v5375_v27 = vld [vmem:[%s5696_s7 + $0x62c] sm:$0xf] }
 0x241   : > { %v2928_v17 = vpop.f32.mrf.mxu1 }
 0x242   : > { %v3105_v8 = vadd.f32 %v3104_v0, %v3016_v58  ;;  %v2929_v53 = vadd.f32 %v2928_v17, %v6143_v23  ;;  %v4728_v58 = vld [vmem:[%s5696_s7 + $0x65c] sm:$0xf0]  ;;  %v4734_v17 = vld [vmem:[%s5696_s7 + $0x630] sm:$0xf] }
 0x243   : > { %v3195_v43 = vpop.f32.mrf.mxu0  ;;  %v4731_v37 = vor.u32 %v5375_v27, %v4728_v58  ;;  %v3978_v27 = vld [vmem:[%s5696_s7 + $0x30] sm:$0xf]  ;;  %v5190_v58 = vld [vmem:[%s5696_s7 + $0x60] sm:$0xf0] }
 0x244   : > { %v6455_v52 = vadd.f32 %v3193_v25, %v3105_v8  ;;  %v5382_v8 = vld [vmem:[%s5696_s7 + $0x660] sm:$0xf0] }
 0x245   : > { %v4735_v63 = vor.u32 %v5382_v8, %v4734_v17 }
 0x247   : > { %v3017_v2 = vpop.f32.mrf.mxu2 }
 0x248   : > { %v3018_v3 = vadd.f32 %v3017_v2, %v2929_v53  ;;  %v3106_v11 = vpop.f32.mrf.mxu3  ;;  %v5376_v53 = vld [vmem:[%s5696_s7 + $0x634] sm:$0xf] }
 0x249   : > { %v2931_v1 = vpop.f32.mrf.mxu1 }
 0x24a   : > { %v3107_v23 = vadd.f32 %v3106_v11, %v3018_v3  ;;  %v2932_v22 = vadd.f32 %v2931_v1, %v6160_v48  ;;  %v4743_v3 = vor.u32 %v5383_v40, %v4742_v42 }
 0x24b   : > { %v3198_v57 = vpop.f32.mrf.mxu0 }
 0x24c   : > { %2970 = vmatmul.bf16.gmra.mxu1 %v4679_v46  ;;  %3059 = vmatmul.bf16.gmra.mxu2 %v4683_v39  ;;  %v6464_v20 = vadd.f32 %v3195_v43, %v3107_v23  ;;  %v4736_v43 = vld [vmem:[%s5696_s7 + $0x664] sm:$0xf0] }
 0x24d   : > { %3148 = vmatmul.bf16.gmra.mxu3 %v4687_v12  ;;  %v4739_v2 = vor.u32 %v5376_v53, %v4736_v43 }
 0x24e   : > { %3237 = vmatmul.bf16.gmra.mxu0 %v4691_v14 }
 0x24f   : > { %v3020_v24 = vpop.f32.mrf.mxu2 }
 0x250   : > { %v3021_v7 = vadd.f32 %v3020_v24, %v2932_v22  ;;  %v3109_v61 = vpop.f32.mrf.mxu3  ;;  %v5182_v24 = vld [vmem:[%s5696_s7 + $0x24] sm:$0xf] }
 0x251   : > { %v2933_v36 = vpop.f32.mrf.mxu1 }
 0x252   : > { %v3110_v19 = vadd.f32 %v3109_v61, %v3021_v7  ;;  %v2934_v48 = vadd.f32 %v2933_v36, %v6169_v18  ;;  %v3964_v7 = vld [vmem:[%s5696_s7 + $0x54] sm:$0xf0]  ;;  %v3970_v36 = vld [vmem:[%s5696_s7 + $0x28] sm:$0xf] }
 0x253   : > { %v3200_v25 = vpop.f32.mrf.mxu0  ;;  %v3967_v43 = vor.u32 %v5182_v24, %v3964_v7  ;;  %v4030_v24 = vld [vmem:[%s5696_s7 + $0x98] sm:$0xf]  ;;  %v5203_v7 = vld [vmem:[%s5696_s7 + $0xc8] sm:$0xf0] }
 0x254   : > { %v6469_v0 = vadd.f32 %v3198_v57, %v3110_v19  ;;  %v5189_v19 = vld [vmem:[%s5696_s7 + $0x58] sm:$0xf0] }
 0x255   : > { %v3971_v42 = vor.u32 %v5189_v19, %v3970_v36 }
 0x257   : > { %v3022_v38 = vpop.f32.mrf.mxu2 }
 0x258   : > { %v3023_v45 = vadd.f32 %v3022_v38, %v2934_v48  ;;  %v3111_v6 = vpop.f32.mrf.mxu3  ;;  %v5183_v48 = vld [vmem:[%s5696_s7 + $0x2c] sm:$0xf] }
 0x259   : > { %v2936_v5 = vpop.f32.mrf.mxu1 }
 0x25a   : > { %v3112_v18 = vadd.f32 %v3111_v6, %v3023_v45  ;;  %v2937_v11 = vadd.f32 %v2936_v5, %v6174_v28  ;;  %v3979_v45 = vor.u32 %v5190_v58, %v3978_v27 }
 0x25b   : > { %v3203_v46 = vpop.f32.mrf.mxu0 }
 0x25c   : > { %2975 = vmatmul.bf16.gmra.mxu1 %v4731_v37  ;;  %3064 = vmatmul.bf16.gmra.mxu2 %v4735_v63  ;;  %v6478_v39 = vadd.f32 %v3200_v25, %v3112_v18  ;;  %v3972_v25 = vld [vmem:[%s5696_s7 + $0x5c] sm:$0xf0] }
 0x25d   : > { %3153 = vmatmul.bf16.gmra.mxu3 %v4739_v2  ;;  %v3975_v38 = vor.u32 %v5183_v48, %v3972_v25 }
 0x25e   : > { %3242 = vmatmul.bf16.gmra.mxu0 %v4743_v3 }
 0x25f   : > { %v3025_v1 = vpop.f32.mrf.mxu2 }
 0x260   : > { %v3026_v12 = vadd.f32 %v3025_v1, %v2937_v11  ;;  %v3114_v14 = vpop.f32.mrf.mxu3  ;;  %v5195_v1 = vld [vmem:[%s5696_s7 + $0x8c] sm:$0xf] }
 0x261   : > { %v2938_v23 = vpop.f32.mrf.mxu1 }
 0x262   : > { %v3115_v22 = vadd.f32 %v3114_v14, %v3026_v12  ;;  %v2939_v28 = vadd.f32 %v2938_v23, %v6183_v9  ;;  %v4016_v12 = vld [vmem:[%s5696_s7 + $0xbc] sm:$0xf0]  ;;  %v4022_v23 = vld [vmem:[%s5696_s7 + $0x90] sm:$0xf] }
 0x263   : > { %v3205_v57 = vpop.f32.mrf.mxu0  ;;  %v4019_v25 = vor.u32 %v5195_v1, %v4016_v12  ;;  %v4082_v1 = vld [vmem:[%s5696_s7 + $0x100] sm:$0xf]  ;;  %v5216_v12 = vld [vmem:[%s5696_s7 + $0x130] sm:$0xf0] }
 0x264   : > { %v6483_v61 = vadd.f32 %v3203_v46, %v3115_v22  ;;  %v5202_v22 = vld [vmem:[%s5696_s7 + $0xc0] sm:$0xf0] }
 0x265   : > { %v4023_v27 = vor.u32 %v5202_v22, %v4022_v23 }
 0x267   : > { %v3027_v17 = vpop.f32.mrf.mxu2 }
 0x268   : > { %v3028_v8 = vadd.f32 %v3027_v17, %v2939_v28  ;;  %v3116_v53 = vpop.f32.mrf.mxu3  ;;  %v5196_v28 = vld [vmem:[%s5696_s7 + $0x94] sm:$0xf] }
 0x269   : > { %v2941_v40 = vpop.f32.mrf.mxu1 }
 0x26a   : > { %v3117_v9 = vadd.f32 %v3116_v53, %v3028_v8  ;;  %v2942_v6 = vadd.f32 %v2941_v40, %v6200_v26  ;;  %v4031_v8 = vor.u32 %v5203_v7, %v4030_v24 }
 0x26b   : > { %v3208_v37 = vpop.f32.mrf.mxu0 }
 0x26c   : > { %3256 = vmatmul.bf16.vlgmr.msrb.gmra.mxu1 %v3967_v43  ;;  %3345 = vmatmul.bf16.vlgmr.msrb.gmra.mxu2 %v3971_v42  ;;  %v6492_v63 = vadd.f32 %v3205_v57, %v3117_v9  ;;  %v4024_v57 = vld [vmem:[%s5696_s7 + $0xc4] sm:$0xf0] }
 0x26d   : > { %3434 = vmatmul.bf16.vlgmr.msrb.gmra.mxu3 %v3975_v38  ;;  %v4027_v17 = vor.u32 %v5196_v28, %v4024_v57 }
 0x26e   : > { %3523 = vmatmul.bf16.vlgmr.msrb.gmra.mxu0 %v3979_v45 }
 0x26f   : > { %v3030_v5 = vpop.f32.mrf.mxu2 }
 0x270   : > { %v3031_v2 = vadd.f32 %v3030_v5, %v2942_v6  ;;  %v3119_v3 = vpop.f32.mrf.mxu3  ;;  %v5208_v5 = vld [vmem:[%s5696_s7 + $0xf4] sm:$0xf] }
 0x271   : > { %v2943_v18 = vpop.f32.mrf.mxu1 }
 0x272   : > { %v3120_v11 = vadd.f32 %v3119_v3, %v3031_v2  ;;  %v2944_v26 = vadd.f32 %v2943_v18, %v6209_v50  ;;  %v4068_v2 = vld [vmem:[%s5696_s7 + $0x124] sm:$0xf0]  ;;  %v4074_v18 = vld [vmem:[%s5696_s7 + $0xf8] sm:$0xf] }
 0x273   : > { %v3210_v46 = vpop.f32.mrf.mxu0  ;;  %v4071_v57 = vor.u32 %v5208_v5, %v4068_v2  ;;  %v4134_v5 = vld [vmem:[%s5696_s7 + $0x168] sm:$0xf]  ;;  %v5229_v2 = vld [vmem:[%s5696_s7 + $0x198] sm:$0xf0] }
 0x274   : > { %v6497_v14 = vadd.f32 %v3208_v37, %v3120_v11  ;;  %v5215_v11 = vld [vmem:[%s5696_s7 + $0x128] sm:$0xf0] }
 0x275   : > { %v4075_v24 = vor.u32 %v5215_v11, %v4074_v18 }
 0x277   : > { %v3032_v36 = vpop.f32.mrf.mxu2 }
 0x278   : > { %v3033_v19 = vadd.f32 %v3032_v36, %v2944_v26  ;;  %v3121_v48 = vpop.f32.mrf.mxu3  ;;  %v5209_v26 = vld [vmem:[%s5696_s7 + $0xfc] sm:$0xf] }
 0x279   : > { %v2946_v58 = vpop.f32.mrf.mxu1 }
 0x27a   : > { %v3122_v50 = vadd.f32 %v3121_v48, %v3033_v19  ;;  %v2947_v53 = vadd.f32 %v2946_v58, %v6214_v21  ;;  %v4083_v19 = vor.u32 %v5216_v12, %v4082_v1 }
 0x27b   : > { %v3213_v43 = vpop.f32.mrf.mxu0 }
 0x27c   : > { %3261 = vmatmul.bf16.gmra.mxu1 %v4019_v25  ;;  %3350 = vmatmul.bf16.gmra.mxu2 %v4023_v27  ;;  %v6506_v42 = vadd.f32 %v3210_v46, %v3122_v50  ;;  %v4076_v46 = vld [vmem:[%s5696_s7 + $0x12c] sm:$0xf0] }
 0x27d   : > { %3439 = vmatmul.bf16.gmra.mxu3 %v4027_v17  ;;  %v4079_v36 = vor.u32 %v5209_v26, %v4076_v46 }
 0x27e   : > { %3528 = vmatmul.bf16.gmra.mxu0 %v4031_v8 }
 0x27f   : > { %v3035_v40 = vpop.f32.mrf.mxu2 }
 0x280   : > { %v3036_v38 = vadd.f32 %v3035_v40, %v2947_v53  ;;  %v3124_v45 = vpop.f32.mrf.mxu3  ;;  %v5221_v40 = vld [vmem:[%s5696_s7 + $0x15c] sm:$0xf] }
 0x281   : > { %v2948_v9 = vpop.f32.mrf.mxu1 }
 0x282   : > { %v3125_v6 = vadd.f32 %v3124_v45, %v3036_v38  ;;  %v2949_v21 = vadd.f32 %v2948_v9, %v6223_v55  ;;  %v4120_v38 = vld [vmem:[%s5696_s7 + $0x18c] sm:$0xf0]  ;;  %v4126_v9 = vld [vmem:[%s5696_s7 + $0x160] sm:$0xf] }
 0x283   : > { %v3215_v37 = vpop.f32.mrf.mxu0  ;;  %v4123_v46 = vor.u32 %v5221_v40, %v4120_v38  ;;  %v4186_v40 = vld [vmem:[%s5696_s7 + $0x1d0] sm:$0xf]  ;;  %v5242_v38 = vld [vmem:[%s5696_s7 + $0x200] sm:$0xf0] }
 0x284   : > { %v6511_v3 = vadd.f32 %v3213_v43, %v3125_v6  ;;  %v5228_v6 = vld [vmem:[%s5696_s7 + $0x190] sm:$0xf0] }
 0x285   : > { %v4127_v1 = vor.u32 %v5228_v6, %v4126_v9 }
 0x287   : > { %v3037_v23 = vpop.f32.mrf.mxu2 }
 0x288   : > { %v3038_v22 = vadd.f32 %v3037_v23, %v2949_v21  ;;  %v3126_v28 = vpop.f32.mrf.mxu3  ;;  %v5222_v21 = vld [vmem:[%s5696_s7 + $0x164] sm:$0xf] }
 0x289   : > { %v2951_v7 = vpop.f32.mrf.mxu1 }
 0x28a   : > { %v3127_v55 = vadd.f32 %v3126_v28, %v3038_v22  ;;  %v2952_v48 = vadd.f32 %v2951_v7, %v6240_v15  ;;  %v4135_v22 = vor.u32 %v5229_v2, %v4134_v5 }
 0x28b   : > { %v3218_v25 = vpop.f32.mrf.mxu0 }
 0x28c   : > { %3266 = vmatmul.bf16.gmra.mxu1 %v4071_v57  ;;  %3355 = vmatmul.bf16.gmra.mxu2 %v4075_v24  ;;  %v6520_v27 = vadd.f32 %v3215_v37, %v3127_v55  ;;  %v4128_v37 = vld [vmem:[%s5696_s7 + $0x194] sm:$0xf0] }
 0x28d   : > { %3444 = vmatmul.bf16.gmra.mxu3 %v4079_v36  ;;  %v4131_v23 = vor.u32 %v5222_v21, %v4128_v37 }
 0x28e   : > { %3533 = vmatmul.bf16.gmra.mxu0 %v4083_v19 }
 0x28f   : > { %v3040_v58 = vpop.f32.mrf.mxu2 }
 0x290   : > { %v3041_v17 = vadd.f32 %v3040_v58, %v2952_v48  ;;  %v3129_v8 = vpop.f32.mrf.mxu3  ;;  %v5234_v58 = vld [vmem:[%s5696_s7 + $0x1c4] sm:$0xf] }
 0x291   : > { %v2953_v50 = vpop.f32.mrf.mxu1 }
 0x292   : > { %v3130_v53 = vadd.f32 %v3129_v8, %v3041_v17  ;;  %v2954_v15 = vadd.f32 %v2953_v50, %v6249_v31  ;;  %v4172_v17 = vld [vmem:[%s5696_s7 + $0x1f4] sm:$0xf0]  ;;  %v4178_v50 = vld [vmem:[%s5696_s7 + $0x1c8] sm:$0xf] }
 0x293   : > { %v3220_v43 = vpop.f32.mrf.mxu0  ;;  %v4175_v37 = vor.u32 %v5234_v58, %v4172_v17  ;;  %v4238_v58 = vld [vmem:[%s5696_s7 + $0x238] sm:$0xf]  ;;  %v5255_v17 = vld [vmem:[%s5696_s7 + $0x268] sm:$0xf0] }
 0x294   : > { %v6525_v45 = vadd.f32 %v3218_v25, %v3130_v53  ;;  %v5241_v53 = vld [vmem:[%s5696_s7 + $0x1f8] sm:$0xf0] }
 0x295   : > { %v4179_v5 = vor.u32 %v5241_v53, %v4178_v50 }
 0x297   : > { %v3042_v18 = vpop.f32.mrf.mxu2 }
 0x298   : > { %v3043_v11 = vadd.f32 %v3042_v18, %v2954_v15  ;;  %v3131_v26 = vpop.f32.mrf.mxu3  ;;  %v5235_v15 = vld [vmem:[%s5696_s7 + $0x1cc] sm:$0xf] }
 0x299   : > { %v2956_v12 = vpop.f32.mrf.mxu1 }
 0x29a   : > { %v3132_v31 = vadd.f32 %v3131_v26, %v3043_v11  ;;  %v2957_v28 = vadd.f32 %v2956_v12, %v6254_v4  ;;  %v4187_v11 = vor.u32 %v5242_v38, %v4186_v40 }
 0x29b   : > { %v3223_v57 = vpop.f32.mrf.mxu0 }
 0x29c   : > { %3271 = vmatmul.bf16.gmra.mxu1 %v4123_v46  ;;  %3360 = vmatmul.bf16.gmra.mxu2 %v4127_v1  ;;  %v6534_v24 = vadd.f32 %v3220_v43, %v3132_v31  ;;  %v4180_v43 = vld [vmem:[%s5696_s7 + $0x1fc] sm:$0xf0] }
 0x29d   : > { %3449 = vmatmul.bf16.gmra.mxu3 %v4131_v23  ;;  %v4183_v18 = vor.u32 %v5235_v15, %v4180_v43 }
 0x29e   : > { %3538 = vmatmul.bf16.gmra.mxu0 %v4135_v22 }
 0x29f   : > { %v3045_v7 = vpop.f32.mrf.mxu2 }
 0x2a0   : > { %v3046_v36 = vadd.f32 %v3045_v7, %v2957_v28  ;;  %v3134_v19 = vpop.f32.mrf.mxu3  ;;  %v5247_v7 = vld [vmem:[%s5696_s7 + $0x22c] sm:$0xf] }
 0x2a1   : > { %v2958_v55 = vpop.f32.mrf.mxu1 }
 0x2a2   : > { %v3135_v48 = vadd.f32 %v3134_v19, %v3046_v36  ;;  %v2959_v4 = vadd.f32 %v2958_v55, %v6263_v35  ;;  %v4224_v36 = vld [vmem:[%s5696_s7 + $0x25c] sm:$0xf0]  ;;  %v4230_v55 = vld [vmem:[%s5696_s7 + $0x230] sm:$0xf] }
 0x2a3   : > { %v3225_v25 = vpop.f32.mrf.mxu0  ;;  %v4227_v43 = vor.u32 %v5247_v7, %v4224_v36  ;;  %v4290_v7 = vld [vmem:[%s5696_s7 + $0x2a0] sm:$0xf]  ;;  %v5268_v36 = vld [vmem:[%s5696_s7 + $0x2d0] sm:$0xf0] }
 0x2a4   : > { %v6539_v8 = vadd.f32 %v3223_v57, %v3135_v48  ;;  %v5254_v48 = vld [vmem:[%s5696_s7 + $0x260] sm:$0xf0] }
 0x2a5   : > { %v4231_v40 = vor.u32 %v5254_v48, %v4230_v55 }
 0x2a7   : > { %v3047_v9 = vpop.f32.mrf.mxu2 }
 0x2a8   : > { %v3048_v6 = vadd.f32 %v3047_v9, %v2959_v4  ;;  %v3136_v21 = vpop.f32.mrf.mxu3  ;;  %v5248_v4 = vld [vmem:[%s5696_s7 + $0x234] sm:$0xf] }
 0x2a9   : > { %v2961_v2 = vpop.f32.mrf.mxu1 }
 0x2aa   : > { %v3137_v35 = vadd.f32 %v3136_v21, %v3048_v6  ;;  %v2962_v26 = vadd.f32 %v2961_v2, %v6280_v13  ;;  %v4239_v6 = vor.u32 %v5255_v17, %v4238_v58 }
 0x2ab   : > { %v3228_v46 = vpop.f32.mrf.mxu0 }
 0x2ac   : > { %3276 = vmatmul.bf16.gmra.mxu1 %v4175_v37  ;;  %3365 = vmatmul.bf16.gmra.mxu2 %v4179_v5  ;;  %v6548_v1 = vadd.f32 %v3225_v25, %v3137_v35  ;;  %v4232_v25 = vld [vmem:[%s5696_s7 + $0x264] sm:$0xf0] }
 0x2ad   : > { %3454 = vmatmul.bf16.gmra.mxu3 %v4183_v18  ;;  %v4235_v9 = vor.u32 %v5248_v4, %v4232_v25 }
 0x2ae   : > { %3543 = vmatmul.bf16.gmra.mxu0 %v4187_v11 }
 0x2af   : > { %v3050_v12 = vpop.f32.mrf.mxu2 }
 0x2b0   : > { %v3051_v23 = vadd.f32 %v3050_v12, %v2962_v26  ;;  %v3139_v22 = vpop.f32.mrf.mxu3  ;;  %v5260_v12 = vld [vmem:[%s5696_s7 + $0x294] sm:$0xf] }
 0x2b1   : > { %v2963_v31 = vpop.f32.mrf.mxu1 }
 0x2b2   : > { %v3140_v28 = vadd.f32 %v3139_v22, %v3051_v23  ;;  %v2964_v13 = vadd.f32 %v2963_v31, %v6289_v51  ;;  %v4276_v23 = vld [vmem:[%s5696_s7 + $0x2c4] sm:$0xf0]  ;;  %v4282_v31 = vld [vmem:[%s5696_s7 + $0x298] sm:$0xf] }
 0x2b3   : > { %v3230_v57 = vpop.f32.mrf.mxu0  ;;  %v4279_v25 = vor.u32 %v5260_v12, %v4276_v23  ;;  %v4342_v12 = vld [vmem:[%s5696_s7 + $0x308] sm:$0xf]  ;;  %v5281_v23 = vld [vmem:[%s5696_s7 + $0x338] sm:$0xf0] }
 0x2b4   : > { %v6553_v19 = vadd.f32 %v3228_v46, %v3140_v28  ;;  %v5267_v28 = vld [vmem:[%s5696_s7 + $0x2c8] sm:$0xf0] }
 0x2b5   : > { %v4283_v58 = vor.u32 %v5267_v28, %v4282_v31 }
 0x2b7   : > { %v3052_v50 = vpop.f32.mrf.mxu2 }
 0x2b8   : > { %v3053_v53 = vadd.f32 %v3052_v50, %v2964_v13  ;;  %v3141_v15 = vpop.f32.mrf.mxu3  ;;  %v5261_v13 = vld [vmem:[%s5696_s7 + $0x29c] sm:$0xf] }
 0x2b9   : > { %v2966_v38 = vpop.f32.mrf.mxu1 }
 0x2ba   : > { %v3142_v51 = vadd.f32 %v3141_v15, %v3053_v53  ;;  %v2967_v21 = vadd.f32 %v2966_v38, %v6294_v62  ;;  %v4291_v53 = vor.u32 %v5268_v36, %v4290_v7 }
 0x2bb   : > { %v3233_v37 = vpop.f32.mrf.mxu0 }
 0x2bc   : > { %3281 = vmatmul.bf16.gmra.mxu1 %v4227_v43  ;;  %3370 = vmatmul.bf16.gmra.mxu2 %v4231_v40  ;;  %v6562_v5 = vadd.f32 %v3230_v57, %v3142_v51  ;;  %v4284_v57 = vld [vmem:[%s5696_s7 + $0x2cc] sm:$0xf0] }
 0x2bd   : > { %3459 = vmatmul.bf16.gmra.mxu3 %v4235_v9  ;;  %v4287_v50 = vor.u32 %v5261_v13, %v4284_v57 }
 0x2be   : > { %3548 = vmatmul.bf16.gmra.mxu0 %v4239_v6 }
 0x2bf   : > { %v3055_v2 = vpop.f32.mrf.mxu2 }
 0x2c0   : > { %v3056_v18 = vadd.f32 %v3055_v2, %v2967_v21  ;;  %v3144_v11 = vpop.f32.mrf.mxu3  ;;  %v5273_v2 = vld [vmem:[%s5696_s7 + $0x2fc] sm:$0xf] }
 0x2c1   : > { %v2968_v35 = vpop.f32.mrf.mxu1 }
 0x2c2   : > { %v3145_v26 = vadd.f32 %v3144_v11, %v3056_v18  ;;  %v2969_v62 = vadd.f32 %v2968_v35, %v6303_v60  ;;  %v4328_v18 = vld [vmem:[%s5696_s7 + $0x32c] sm:$0xf0]  ;;  %v4334_v35 = vld [vmem:[%s5696_s7 + $0x300] sm:$0xf] }
 0x2c3   : > { %v3235_v46 = vpop.f32.mrf.mxu0  ;;  %v4331_v57 = vor.u32 %v5273_v2, %v4328_v18  ;;  %v4394_v2 = vld [vmem:[%s5696_s7 + $0x370] sm:$0xf]  ;;  %v5294_v18 = vld [vmem:[%s5696_s7 + $0x3a0] sm:$0xf0] }
 0x2c4   : > { %v6567_v22 = vadd.f32 %v3233_v37, %v3145_v26  ;;  %v5280_v26 = vld [vmem:[%s5696_s7 + $0x330] sm:$0xf0] }
 0x2c5   : > { %v4335_v7 = vor.u32 %v5280_v26, %v4334_v35 }
 0x2c7   : > { %v3057_v55 = vpop.f32.mrf.mxu2 }
 0x2c8   : > { %v3058_v48 = vadd.f32 %v3057_v55, %v2969_v62  ;;  %v3146_v4 = vpop.f32.mrf.mxu3  ;;  %v5274_v62 = vld [vmem:[%s5696_s7 + $0x304] sm:$0xf] }
 0x2c9   : > { %v2971_v17 = vpop.f32.mrf.mxu1 }
 0x2ca   : > { %v3147_v60 = vadd.f32 %v3146_v4, %v3058_v48  ;;  %v2972_v15 = vadd.f32 %v2971_v17, %v6320_v49  ;;  %v4343_v48 = vor.u32 %v5281_v23, %v4342_v12 }
 0x2cb   : > { %v3238_v43 = vpop.f32.mrf.mxu0 }
 0x2cc   : > { %3286 = vmatmul.bf16.gmra.mxu1 %v4279_v25  ;;  %3375 = vmatmul.bf16.gmra.mxu2 %v4283_v58  ;;  %v6576_v40 = vadd.f32 %v3235_v46, %v3147_v60  ;;  %v4336_v46 = vld [vmem:[%s5696_s7 + $0x334] sm:$0xf0] }
 0x2cd   : > { %3464 = vmatmul.bf16.gmra.mxu3 %v4287_v50  ;;  %v4339_v55 = vor.u32 %v5274_v62, %v4336_v46 }
 0x2ce   : > { %3553 = vmatmul.bf16.gmra.mxu0 %v4291_v53 }
 0x2cf   : > { %v3060_v38 = vpop.f32.mrf.mxu2 }
 0x2d0   : > { %v3061_v9 = vadd.f32 %v3060_v38, %v2972_v15  ;;  %v3149_v6 = vpop.f32.mrf.mxu3  ;;  %v5286_v38 = vld [vmem:[%s5696_s7 + $0x364] sm:$0xf] }
 0x2d1   : > { %v2973_v51 = vpop.f32.mrf.mxu1 }
 0x2d2   : > { %v3150_v21 = vadd.f32 %v3149_v6, %v3061_v9  ;;  %v2974_v49 = vadd.f32 %v2973_v51, %v6329_v32  ;;  %v4380_v9 = vld [vmem:[%s5696_s7 + $0x394] sm:$0xf0]  ;;  %v4386_v51 = vld [vmem:[%s5696_s7 + $0x368] sm:$0xf] }
 0x2d3   : > { %v3240_v37 = vpop.f32.mrf.mxu0  ;;  %v4383_v46 = vor.u32 %v5286_v38, %v4380_v9  ;;  %v4440_v9 = vld [vmem:[%s5696_s7 + $0x404] sm:$0xf0] }
 0x2d4   : > { %v6581_v11 = vadd.f32 %v3238_v43, %v3150_v21  ;;  %v5293_v21 = vld [vmem:[%s5696_s7 + $0x398] sm:$0xf0] }
 0x2d5   : > { %v4387_v12 = vor.u32 %v5293_v21, %v4386_v51  ;;  %v4446_v51 = vld [vmem:[%s5696_s7 + $0x3d8] sm:$0xf]  ;;  %v5307_v21 = vld [vmem:[%s5696_s7 + $0x408] sm:$0xf0] }
 0x2d7   : > { %v3062_v31 = vpop.f32.mrf.mxu2 }
 0x2d8   : > { %v3063_v28 = vadd.f32 %v3062_v31, %v2974_v49  ;;  %v3151_v13 = vpop.f32.mrf.mxu3  ;;  %v5287_v49 = vld [vmem:[%s5696_s7 + $0x36c] sm:$0xf] }
 0x2d9   : > { %v2976_v36 = vpop.f32.mrf.mxu1 }
 0x2da   : > { %v3152_v32 = vadd.f32 %v3151_v13, %v3063_v28  ;;  %v2977_v4 = vadd.f32 %v2976_v36, %v6334_v41  ;;  %v4395_v28 = vor.u32 %v5294_v18, %v4394_v2 }
 0x2db   : > { %v3243_v25 = vpop.f32.mrf.mxu0 }
 0x2dc   : > { %3291 = vmatmul.bf16.gmra.mxu1 %v4331_v57  ;;  %3380 = vmatmul.bf16.gmra.mxu2 %v4335_v7  ;;  %v6590_v58 = vadd.f32 %v3240_v37, %v3152_v32  ;;  %v4388_v37 = vld [vmem:[%s5696_s7 + $0x39c] sm:$0xf0] }
 0x2dd   : > { %3469 = vmatmul.bf16.gmra.mxu3 %v4339_v55  ;;  %v4391_v31 = vor.u32 %v5287_v49, %v4388_v37 }
 0x2de   : > { %3558 = vmatmul.bf16.gmra.mxu0 %v4343_v48 }
 0x2df   : > { %v3065_v17 = vpop.f32.mrf.mxu2 }
 0x2e0   : > { %v3066_v50 = vadd.f32 %v3065_v17, %v2977_v4  ;;  %v3154_v53 = vpop.f32.mrf.mxu3 }
 0x2e1   : > { %v2978_v60 = vpop.f32.mrf.mxu1 }
 0x2e2   : > { %v3155_v15 = vadd.f32 %v3154_v53, %v3066_v50  ;;  %v2979_v41 = vadd.f32 %v2978_v60, %v6344_v16  ;;  %v5299_v53 = vld [vmem:[%s5696_s7 + $0x3cc] sm:$0xf]  ;;  %v4432_v60 = vld [vmem:[%s5696_s7 + $0x3fc] sm:$0xf0] }
 0x2e3   : > { %v3245_v43 = vpop.f32.mrf.mxu0  ;;  %v4435_v18 = vor.u32 %v5299_v53, %v4432_v60  ;;  %v4490_v53 = vld [vmem:[%s5696_s7 + $0x438] sm:$0xf]  ;;  %v5319_v60 = vld [vmem:[%s5696_s7 + $0x468] sm:$0xf0] }
 0x2e4   : > { %v6595_v6 = vadd.f32 %v3243_v25, %v3155_v15  ;;  %v6609_v25 = vld [vmem:[%s6779_s2] ss:$0 sm:$0xff]  ;;  %v4438_v15 = vld [vmem:[%s5696_s7 + $0x3d0] sm:$0xf] }
 0x2e7   : > { %v3067_v35 = vpop.f32.mrf.mxu2 }
 0x2e8   : > { %v3068_v26 = vadd.f32 %v3067_v35, %v2979_v41  ;;  %v3156_v62 = vpop.f32.mrf.mxu3  ;;  %v5300_v41 = vld [vmem:[%s5696_s7 + $0x3d4] sm:$0xf] }
 0x2e9   : > { %v3257_v23 = vpop.f32.mrf.mxu1 }
 0x2ea   : > { %v3157_v16 = vadd.f32 %v3156_v62, %v3068_v26  ;;  %v3258_v7 = vadd.f32 %v3257_v23, %v6361_v47  ;;  %v5306_v47 = vld [vmem:[%s5696_s7 + $0x400] sm:$0xf0]  ;;  %v4443_v62 = vor.u32 %v5300_v41, %v4440_v9  ;;  %v5320_v9 = vld [vmem:[%s5696_s7 + $0x470] sm:$0xf0] }
 0x2eb   : > { %v3524_v13 = vpop.f32.mrf.mxu0  ;;  %v4439_v35 = vor.u32 %v5306_v47, %v4438_v15  ;;  %v5313_v15 = vld [vmem:[%s5696_s7 + $0x43c] sm:$0xf] }
 0x2ec   : > { %3296 = vmatmul.bf16.gmra.mxu1 %v4383_v46  ;;  %3385 = vmatmul.bf16.gmra.mxu2 %v4387_v12  ;;  %v6603_v57 = vadd.f32 %v3245_v43, %v3157_v16  ;;  %v4447_v46 = vor.u32 %v5307_v21, %v4446_v51 }
 0x2ed   : > { %3474 = vmatmul.bf16.gmra.mxu3 %v4391_v31 }
 0x2ee   : > { %3563 = vmatmul.bf16.gmra.mxu0 %v4395_v28 }
 0x2ef   : > { %v3346_v36 = vpop.f32.mrf.mxu2 }
 0x2f0   : > { %v3347_v55 = vadd.f32 %v3346_v36, %v3258_v7  ;;  %v3435_v48 = vpop.f32.mrf.mxu3 }
 0x2f1   : > { %v3259_v32 = vpop.f32.mrf.mxu1 }
 0x2f2   : > { %v3436_v4 = vadd.f32 %v3435_v48, %v3347_v55  ;;  %v3260_v38 = vadd.f32 %v3259_v32, %v6370_v59 }
 0x2f3   : > { %v3526_v17 = vpop.f32.mrf.mxu0 }
 0x2f4   : > { %v3525_v50 = vadd.f32 %v3524_v13, %v3436_v4 }
 0x2f6   : > { %v3707_v43 = vadd.f32 %v6609_v25, %v3525_v50  ;;  %v4484_v50 = vld [vmem:[%s5696_s7 + $0x464] sm:$0xf0] }
 0x2f7   : > { %v3348_v49 = vpop.f32.mrf.mxu2 }
 0x2f8   : > { %5540 = vtanh.f32 %v3707_v43  ;;  %v3349_v37 = vadd.f32 %v3348_v49, %v3260_v38  ;;  %v3437_v2 = vpop.f32.mrf.mxu3  ;;  %v4492_v43 = vld [vmem:[%s5696_s7 + $0x46c] sm:$0xf0]  ;;  %v4498_v38 = vld [vmem:[%s5696_s7 + $0x440] sm:$0xf] }
 0x2f9   : > { %v3262_v26 = vpop.f32.mrf.mxu1 }
 0x2fa   : > { %v3438_v12 = vadd.f32 %v3437_v2, %v3349_v37  ;;  %v3263_v16 = vadd.f32 %v3262_v26, %v6375_v44  ;;  %v4491_v2 = vor.u32 %v5319_v60, %v4490_v53  ;;  %v4499_v26 = vor.u32 %v5320_v9, %v4498_v38 }
 0x2fb   : > { %v3529_v23 = vpop.f32.mrf.mxu0 }
 0x2fc   : > { %v3527_v59 = vadd.f32 %v3526_v17, %v3438_v12  ;;  %3301 = vmatmul.bf16.gmra.mxu1 %v4435_v18  ;;  %3390 = vmatmul.bf16.gmra.mxu2 %v4439_v35  ;;  %v5312_v17 = vld [vmem:[%s5696_s7 + $0x434] sm:$0xf]  ;;  %v4495_v35 = vor.u32 %v5313_v15, %v4492_v43  ;;  %v4544_v15 = vld [vmem:[%s5696_s7 + $0x4d4] sm:$0xf0] }
 0x2fd   : > { %3479 = vmatmul.bf16.gmra.mxu3 %v4443_v62  ;;  %v4487_v37 = vor.u32 %v5312_v17, %v4484_v50  ;;  %v5332_v17 = vld [vmem:[%s5696_s7 + $0x4d0] sm:$0xf0]  ;;  %v5326_v50 = vld [vmem:[%s5696_s7 + $0x4a4] sm:$0xf] }
 0x2fe   : > { %3568 = vmatmul.bf16.gmra.mxu0 %v4447_v46  ;;  %v5541_v31 = vpop.eup %5540  ;;  %v3708_v28 = vadd.f32 %v6609_v25, %v3527_v59 }
 0x2ff   : > { %3771 = vst [vmem:[%s6625_s9] sm:$0xff] %v5541_v31  ;;  %v3351_v13 = vpop.f32.mrf.mxu2 }
 0x300   : > { %5542 = vtanh.f32 %v3708_v28  ;;  %v3352_v7 = vadd.f32 %v3351_v13, %v3263_v16  ;;  %v3440_v36 = vpop.f32.mrf.mxu3 }
 0x301   : > { %v3264_v55 = vpop.f32.mrf.mxu1 }
 0x302   : > { %v3441_v48 = vadd.f32 %v3440_v36, %v3352_v7  ;;  %v3265_v41 = vadd.f32 %v3264_v55, %v6384_v30 }
 0x303   : > { %v3531_v32 = vpop.f32.mrf.mxu0 }
 0x304   : > { %v3530_v4 = vadd.f32 %v3529_v23, %v3441_v48  ;;  %v5325_v48 = vld [vmem:[%s5696_s7 + $0x49c] sm:$0xf] }
 0x306   : > { %v5543_v47 = vpop.eup %5542  ;;  %v3709_v44 = vadd.f32 %v6609_v25, %v3530_v4  ;;  %v4542_v4 = vld [vmem:[%s5696_s7 + $0x4a0] sm:$0xf] }
 0x307   : > { %3772 = vst [vmem:[%s6625_s9 + $0x8] sm:$0xff] %v5543_v47  ;;  %v3353_v51 = vpop.f32.mrf.mxu2  ;;  %v4550_v47 = vld [vmem:[%s5696_s7 + $0x4a8] sm:$0xf] }
 0x308   : > { %5544 = vtanh.f32 %v3709_v44  ;;  %v3354_v21 = vadd.f32 %v3353_v51, %v3265_v41  ;;  %v3442_v49 = vpop.f32.mrf.mxu3  ;;  %v5333_v44 = vld [vmem:[%s5696_s7 + $0x4d8] sm:$0xf0]  ;;  %v4543_v51 = vor.u32 %v5332_v17, %v4542_v4  ;;  %v4596_v4 = vld [vmem:[%s5696_s7 + $0x53c] sm:$0xf0]  ;;  %v4602_v17 = vld [vmem:[%s5696_s7 + $0x510] sm:$0xf] }
 0x309   : > { %v3267_v18 = vpop.f32.mrf.mxu1 }
 0x30a   : > { %v3443_v62 = vadd.f32 %v3442_v49, %v3354_v21  ;;  %v3268_v59 = vadd.f32 %v3267_v18, %v6401_v29  ;;  %v4547_v49 = vor.u32 %v5326_v50, %v4544_v15  ;;  %v5346_v50 = vld [vmem:[%s5696_s7 + $0x540] sm:$0xf0] }
 0x30b   : > { %v3534_v46 = vpop.f32.mrf.mxu0 }
 0x30c   : > { %v3532_v12 = vadd.f32 %v3531_v32, %v3443_v62  ;;  %3306 = vmatmul.bf16.gmra.mxu1 %v4487_v37  ;;  %3395 = vmatmul.bf16.gmra.mxu2 %v4491_v2  ;;  %v4536_v32 = vld [vmem:[%s5696_s7 + $0x4cc] sm:$0xf0]  ;;  %v4551_v37 = vor.u32 %v5333_v44, %v4550_v47 }
 0x30d   : > { %3484 = vmatmul.bf16.gmra.mxu3 %v4495_v35  ;;  %v4539_v9 = vor.u32 %v5325_v48, %v4536_v32 }
 0x30e   : > { %3573 = vmatmul.bf16.gmra.mxu0 %v4499_v26  ;;  %v5545_v30 = vpop.eup %5544  ;;  %v3710_v23 = vadd.f32 %v6609_v25, %v3532_v12 }
 0x30f   : > { %3773 = vst [vmem:[%s6625_s9 + $0x10] sm:$0xff] %v5545_v30  ;;  %v3356_v31 = vpop.f32.mrf.mxu2 }
 0x310   : > { %5546 = vtanh.f32 %v3710_v23  ;;  %v3357_v28 = vadd.f32 %v3356_v31, %v3268_v59  ;;  %v3445_v16 = vpop.f32.mrf.mxu3 }
 0x311   : > { %v3269_v13 = vpop.f32.mrf.mxu1 }
 0x312   : > { %v3446_v7 = vadd.f32 %v3445_v16, %v3357_v28  ;;  %v3270_v60 = vadd.f32 %v3269_v13, %v6410_v56  ;;  %v5338_v16 = vld [vmem:[%s5696_s7 + $0x504] sm:$0xf]  ;;  %v4588_v13 = vld [vmem:[%s5696_s7 + $0x534] sm:$0xf0] }
 0x313   : > { %v3536_v36 = vpop.f32.mrf.mxu0  ;;  %v4591_v15 = vor.u32 %v5338_v16, %v4588_v13  ;;  %v4648_v16 = vld [vmem:[%s5696_s7 + $0x5a4] sm:$0xf0]  ;;  %v4654_v13 = vld [vmem:[%s5696_s7 + $0x578] sm:$0xf] }
 0x314   : > { %v3535_v55 = vadd.f32 %v3534_v46, %v3446_v7  ;;  %v4594_v7 = vld [vmem:[%s5696_s7 + $0x508] sm:$0xf] }
 0x316   : > { %v5547_v53 = vpop.eup %5546  ;;  %v3711_v29 = vadd.f32 %v6609_v25, %v3535_v55  ;;  %v5339_v55 = vld [vmem:[%s5696_s7 + $0x50c] sm:$0xf] }
 0x317   : > { %3774 = vst [vmem:[%s6625_s9 + $0x18] sm:$0xff] %v5547_v53  ;;  %v3358_v41 = vpop.f32.mrf.mxu2 }
 0x318   : > { %5548 = vtanh.f32 %v3711_v29  ;;  %v3359_v43 = vadd.f32 %v3358_v41, %v3270_v60  ;;  %v3447_v38 = vpop.f32.mrf.mxu3  ;;  %v4599_v41 = vor.u32 %v5339_v55, %v4596_v4 }
 0x319   : > { %v3272_v21 = vpop.f32.mrf.mxu1 }
 0x31a   : > { %v3448_v2 = vadd.f32 %v3447_v38, %v3359_v43  ;;  %v3273_v62 = vadd.f32 %v3272_v21, %v6415_v54  ;;  %v4603_v43 = vor.u32 %v5346_v50, %v4602_v17 }
 0x31b   : > { %v3539_v18 = vpop.f32.mrf.mxu0 }
 0x31c   : > { %v3537_v35 = vadd.f32 %v3536_v36, %v3448_v2  ;;  %3311 = vmatmul.bf16.gmra.mxu1 %v4539_v9  ;;  %3400 = vmatmul.bf16.gmra.mxu2 %v4543_v51  ;;  %v5345_v36 = vld [vmem:[%s5696_s7 + $0x538] sm:$0xf0] }
 0x31d   : > { %3489 = vmatmul.bf16.gmra.mxu3 %v4547_v49  ;;  %v4595_v47 = vor.u32 %v5345_v36, %v4594_v7  ;;  %v5359_v7 = vld [vmem:[%s5696_s7 + $0x5a8] sm:$0xf0] }
 0x31e   : > { %3578 = vmatmul.bf16.gmra.mxu0 %v4551_v37  ;;  %v5549_v56 = vpop.eup %5548  ;;  %v3712_v26 = vadd.f32 %v6609_v25, %v3537_v35  ;;  %v4655_v50 = vor.u32 %v5359_v7, %v4654_v13 }
 0x31f   : > { %3775 = vst [vmem:[%s6625_s9 + $0x20] sm:$0xff] %v5549_v56  ;;  %v3361_v46 = vpop.f32.mrf.mxu2 }
 0x320   : > { %5550 = vtanh.f32 %v3712_v26  ;;  %v3362_v12 = vadd.f32 %v3361_v46, %v3273_v62  ;;  %v3450_v30 = vpop.f32.mrf.mxu3  ;;  %v5351_v46 = vld [vmem:[%s5696_s7 + $0x56c] sm:$0xf] }
 0x321   : > { %v3274_v23 = vpop.f32.mrf.mxu1 }
 0x322   : > { %v3451_v59 = vadd.f32 %v3450_v30, %v3362_v12  ;;  %v3275_v32 = vadd.f32 %v3274_v23, %v6424_v10  ;;  %v4640_v12 = vld [vmem:[%s5696_s7 + $0x59c] sm:$0xf0]  ;;  %v4646_v30 = vld [vmem:[%s5696_s7 + $0x570] sm:$0xf]  ;;  %v5358_v23 = vld [vmem:[%s5696_s7 + $0x5a0] sm:$0xf0] }
 0x323   : > { %v3541_v31 = vpop.f32.mrf.mxu0 }
 0x324   : > { %v3540_v28 = vadd.f32 %v3539_v18, %v3451_v59  ;;  %v5352_v59 = vld [vmem:[%s5696_s7 + $0x574] sm:$0xf] }
 0x325   : > { %v4651_v17 = vor.u32 %v5352_v59, %v4648_v16 }
 0x326   : > { %v5551_v48 = vpop.eup %5550  ;;  %v3713_v54 = vadd.f32 %v6609_v25, %v3540_v28 }
 0x327   : > { %3776 = vst [vmem:[%s6625_s9 + $0x28] sm:$0xff] %v5551_v48  ;;  %v3363_v53 = vpop.f32.mrf.mxu2 }
 0x328   : > { %5552 = vtanh.f32 %v3713_v54  ;;  %v3364_v29 = vadd.f32 %v3363_v53, %v3275_v32  ;;  %v3452_v60 = vpop.f32.mrf.mxu3  ;;  %v4643_v54 = vor.u32 %v5351_v46, %v4640_v12  ;;  %v4647_v32 = vor.u32 %v5358_v23, %v4646_v30  ;;  %v5372_v46 = vld [vmem:[%s5696_s7 + $0x610] sm:$0xf0] }
 0x329   : > { %v3277_v44 = vpop.f32.mrf.mxu1 }
 0x32a   : > { %v3453_v38 = vadd.f32 %v3452_v60, %v3364_v29  ;;  %v3278_v49 = vadd.f32 %v3277_v44, %v6441_v33 }
 0x32b   : > { %v3544_v9 = vpop.f32.mrf.mxu0 }
 0x32c   : > { %v3542_v51 = vadd.f32 %v3541_v31, %v3453_v38  ;;  %3316 = vmatmul.bf16.gmra.mxu1 %v4591_v15  ;;  %3405 = vmatmul.bf16.gmra.mxu2 %v4595_v47 }
 0x32d   : > { %3494 = vmatmul.bf16.gmra.mxu3 %v4599_v41 }
 0x32e   : > { %3583 = vmatmul.bf16.gmra.mxu0 %v4603_v43  ;;  %v5553_v10 = vpop.eup %5552  ;;  %v3714_v21 = vadd.f32 %v6609_v25, %v3542_v51 }
 0x32f   : > { %3777 = vst [vmem:[%s6625_s9 + $0x30] sm:$0xff] %v5553_v10  ;;  %v3366_v37 = vpop.f32.mrf.mxu2 }
 0x330   : > { %5554 = vtanh.f32 %v3714_v21  ;;  %v3367_v2 = vadd.f32 %v3366_v37, %v3278_v49  ;;  %v3455_v18 = vpop.f32.mrf.mxu3  ;;  %v5364_v21 = vld [vmem:[%s5696_s7 + $0x5d4] sm:$0xf]  ;;  %v4692_v49 = vld [vmem:[%s5696_s7 + $0x604] sm:$0xf0]  ;;  %v4698_v37 = vld [vmem:[%s5696_s7 + $0x5d8] sm:$0xf] }
 0x331   : > { %v3279_v35 = vpop.f32.mrf.mxu1  ;;  %v4695_v59 = vor.u32 %v5364_v21, %v4692_v49 }
 0x332   : > { %v3456_v56 = vadd.f32 %v3455_v18, %v3367_v2  ;;  %v3280_v28 = vadd.f32 %v3279_v35, %v6450_v34  ;;  %v5371_v2 = vld [vmem:[%s5696_s7 + $0x608] sm:$0xf0]  ;;  %v5365_v18 = vld [vmem:[%s5696_s7 + $0x5dc] sm:$0xf] }
 0x333   : > { %v3546_v26 = vpop.f32.mrf.mxu0 }
 0x334   : > { %v3545_v62 = vadd.f32 %v3544_v9, %v3456_v56 }
 0x336   : > { %v5555_v31 = vpop.eup %5554  ;;  %v3715_v33 = vadd.f32 %v6609_v25, %v3545_v62  ;;  %v4706_v62 = vld [vmem:[%s5696_s7 + $0x5e0] sm:$0xf] }
 0x337   : > { %3778 = vst [vmem:[%s6625_s9 + $0x38] sm:$0xff] %v5555_v31  ;;  %v3368_v36 = vpop.f32.mrf.mxu2  ;;  %v4699_v31 = vor.u32 %v5371_v2, %v4698_v37  ;;  %v4707_v16 = vor.u32 %v5372_v46, %v4706_v62 }
 0x338   : > { %5556 = vtanh.f32 %v3715_v33  ;;  %v3369_v55 = vadd.f32 %v3368_v36, %v3280_v28  ;;  %v3457_v48 = vpop.f32.mrf.mxu3 }
 0x339   : > { %v3282_v4 = vpop.f32.mrf.mxu1 }
 0x33a   : > { %v3458_v53 = vadd.f32 %v3457_v48, %v3369_v55  ;;  %v3283_v47 = vadd.f32 %v3282_v4, %v6455_v52 }
 0x33b   : > { %v3549_v29 = vpop.f32.mrf.mxu0 }
 0x33c   : > { %v3547_v60 = vadd.f32 %v3546_v26, %v3458_v53  ;;  %3321 = vmatmul.bf16.gmra.mxu1 %v4643_v54  ;;  %3410 = vmatmul.bf16.gmra.mxu2 %v4647_v32  ;;  %v4700_v26 = vld [vmem:[%s5696_s7 + $0x60c] sm:$0xf0] }
 0x33d   : > { %3499 = vmatmul.bf16.gmra.mxu3 %v4651_v17  ;;  %v4703_v28 = vor.u32 %v5365_v18, %v4700_v26 }
 0x33e   : > { %3588 = vmatmul.bf16.gmra.mxu0 %v4655_v50  ;;  %v5557_v34 = vpop.eup %5556  ;;  %v3716_v15 = vadd.f32 %v6609_v25, %v3547_v60  ;;  %v5377_v60 = vld [vmem:[%s5696_s7 + $0x63c] sm:$0xf] }
 0x33f   : > { %3779 = vst [vmem:[%s6625_s9 + $0x40] sm:$0xff] %v5557_v34  ;;  %v3371_v44 = vpop.f32.mrf.mxu2  ;;  %v4744_v34 = vld [vmem:[%s5696_s7 + $0x66c] sm:$0xf0] }
 0x340   : > { %5558 = vtanh.f32 %v3716_v15  ;;  %v3372_v41 = vadd.f32 %v3371_v44, %v3283_v47  ;;  %v3460_v43 = vpop.f32.mrf.mxu3  ;;  %v4750_v15 = vld [vmem:[%s5696_s7 + $0x640] sm:$0xf]  ;;  %v5384_v47 = vld [vmem:[%s5696_s7 + $0x670] sm:$0xf0]  ;;  %v5378_v44 = vld [vmem:[%s5696_s7 + $0x644] sm:$0xf]  ;;  %v4747_v37 = vor.u32 %v5377_v60, %v4744_v34 }
 0x341   : > { %v3284_v38 = vpop.f32.mrf.mxu1  ;;  %v4751_v2 = vor.u32 %v5384_v47, %v4750_v15 }
 0x342   : > { %v3461_v9 = vadd.f32 %v3460_v43, %v3372_v41  ;;  %v3285_v56 = vadd.f32 %v3284_v38, %v6464_v20  ;;  %v4752_v38 = vld [vmem:[%s5696_s7 + $0x674] sm:$0xf0] }
 0x343   : > { %v3551_v51 = vpop.f32.mrf.mxu0 }
 0x344   : > { %v3550_v10 = vadd.f32 %v3549_v29, %v3461_v9  ;;  %v4758_v9 = vld [vmem:[%s5696_s7 + $0x648] sm:$0xf] }
 0x346   : > { %v5559_v35 = vpop.eup %5558  ;;  %v3717_v52 = vadd.f32 %v6609_v25, %v3550_v10 }
 0x347   : > { %3780 = vst [vmem:[%s6625_s9 + $0x48] sm:$0xff] %v5559_v35  ;;  %v3373_v12 = vpop.f32.mrf.mxu2  ;;  %v4755_v35 = vor.u32 %v5378_v44, %v4752_v38 }
 0x348   : > { %5560 = vtanh.f32 %v3717_v52  ;;  %v3374_v30 = vadd.f32 %v3373_v12, %v3285_v56  ;;  %v3462_v23 = vpop.f32.mrf.mxu3 }
 0x349   : > { %v3287_v33 = vpop.f32.mrf.mxu1 }
 0x34a   : > { %v3463_v13 = vadd.f32 %v3462_v23, %v3374_v30  ;;  %v3288_v48 = vadd.f32 %v3287_v33, %v6469_v0 }
 0x34b   : > { %v3554_v7 = vpop.f32.mrf.mxu0 }
 0x34c   : > { %v3552_v36 = vadd.f32 %v3551_v51, %v3463_v13  ;;  %3326 = vmatmul.bf16.gmra.mxu1 %v4695_v59  ;;  %3415 = vmatmul.bf16.gmra.mxu2 %v4699_v31  ;;  %v5385_v51 = vld [vmem:[%s5696_s7 + $0x678] sm:$0xf0] }
 0x34d   : > { %3504 = vmatmul.bf16.gmra.mxu3 %v4703_v28  ;;  %v4759_v52 = vor.u32 %v5385_v51, %v4758_v9 }
 0x34e   : > { %3593 = vmatmul.bf16.gmra.mxu0 %v4707_v16  ;;  %v5561_v20 = vpop.eup %5560  ;;  %v3718_v55 = vadd.f32 %v6609_v25, %v3552_v36 }
 0x34f   : > { %3781 = vst [vmem:[%s6625_s9 + $0x50] sm:$0xff] %v5561_v20  ;;  %v3376_v54 = vpop.f32.mrf.mxu2 }
 0x350   : > { %5562 = vtanh.f32 %v3718_v55  ;;  %v3377_v32 = vadd.f32 %v3376_v54, %v3288_v48  ;;  %v3465_v4 = vpop.f32.mrf.mxu3 }
 0x351   : > { %v3289_v17 = vpop.f32.mrf.mxu1 }
 0x352   : > { %v3466_v50 = vadd.f32 %v3465_v4, %v3377_v32  ;;  %v3290_v43 = vadd.f32 %v3289_v17, %v6478_v39 }
 0x353   : > { %v3556_v53 = vpop.f32.mrf.mxu0 }
 0x354   : > { %v3555_v29 = vadd.f32 %v3554_v7, %v3466_v50 }
 0x356   : > { %v5563_v41 = vpop.eup %5562  ;;  %v3719_v0 = vadd.f32 %v6609_v25, %v3555_v29 }
 0x357   : > { %3782 = vst [vmem:[%s6625_s9 + $0x58] sm:$0xff] %v5563_v41  ;;  %v3378_v10 = vpop.f32.mrf.mxu2 }
 0x358   : > { %5564 = vtanh.f32 %v3719_v0  ;;  %v3379_v21 = vadd.f32 %v3378_v10, %v3290_v43  ;;  %v3467_v49 = vpop.f32.mrf.mxu3 }
 0x359   : > { %v3292_v18 = vpop.f32.mrf.mxu1 }
 0x35a   : > { %v3468_v56 = vadd.f32 %v3467_v49, %v3379_v21  ;;  %v3293_v12 = vadd.f32 %v3292_v18, %v6483_v61 }
 0x35b   : > { %v3559_v26 = vpop.f32.mrf.mxu0 }
 0x35c   : > { %v3557_v62 = vadd.f32 %v3556_v53, %v3468_v56  ;;  %3331 = vmatmul.bf16.gmra.mxu1 %v4747_v37  ;;  %3420 = vmatmul.bf16.gmra.mxu2 %v4751_v2 }
 0x35d   : > { %3509 = vmatmul.bf16.gmra.mxu3 %v4755_v35 }
 0x35e   : > { %3598 = vmatmul.bf16.gmra.mxu0 %v4759_v52  ;;  %v5565_v39 = vpop.eup %5564  ;;  %v3720_v46 = vadd.f32 %v6609_v25, %v3557_v62 }
 0x35f   : > { %3783 = vst [vmem:[%s6625_s9 + $0x60] sm:$0xff] %v5565_v39  ;;  %v3381_v30 = vpop.f32.mrf.mxu2 }
 0x360   : > { %5566 = vtanh.f32 %v3720_v46  ;;  %v3382_v23 = vadd.f32 %v3381_v30, %v3293_v12  ;;  %v3470_v59 = vpop.f32.mrf.mxu3 }
 0x361   : > { %v3294_v31 = vpop.f32.mrf.mxu1 }
 0x362   : > { %v3471_v33 = vadd.f32 %v3470_v59, %v3382_v23  ;;  %v3295_v36 = vadd.f32 %v3294_v31, %v6492_v63 }
 0x363   : > { %v3561_v28 = vpop.f32.mrf.mxu0 }
 0x364   : > { %v3560_v16 = vadd.f32 %v3559_v26, %v3471_v33 }
 0x366   : > { %v5567_v13 = vpop.eup %5566  ;;  %v3721_v7 = vadd.f32 %v6609_v25, %v3560_v16 }
 0x367   : > { %3784 = vst [vmem:[%s6625_s9 + $0x68] sm:$0xff] %v5567_v13  ;;  %v3383_v20 = vpop.f32.mrf.mxu2 }
 0x368   : > { %5568 = vtanh.f32 %v3721_v7  ;;  %v3384_v55 = vadd.f32 %v3383_v20, %v3295_v36  ;;  %v3472_v61 = vpop.f32.mrf.mxu3 }
 0x369   : > { %v3297_v48 = vpop.f32.mrf.mxu1 }
 0x36a   : > { %v3473_v54 = vadd.f32 %v3472_v61, %v3384_v55  ;;  %v3298_v53 = vadd.f32 %v3297_v48, %v6497_v14 }
 0x36b   : > { %v3564_v32 = vpop.f32.mrf.mxu0 }
 0x36c   : > { %v3562_v4 = vadd.f32 %v3561_v28, %v3473_v54 }
 0x36e   : > { %v5569_v17 = vpop.eup %5568  ;;  %v3722_v50 = vadd.f32 %v6609_v25, %v3562_v4 }
 0x36f   : > { %3785 = vst [vmem:[%s6625_s9 + $0x70] sm:$0xff] %v5569_v17  ;;  %v3386_v29 = vpop.f32.mrf.mxu2 }
 0x370   : > { %5570 = vtanh.f32 %v3722_v50  ;;  %v3387_v60 = vadd.f32 %v3386_v29, %v3298_v53  ;;  %v3475_v63 = vpop.f32.mrf.mxu3 }
 0x371   : > { %v3299_v34 = vpop.f32.mrf.mxu1 }
 0x372   : > { %v3476_v15 = vadd.f32 %v3475_v63, %v3387_v60  ;;  %v3300_v43 = vadd.f32 %v3299_v34, %v6506_v42 }
 0x373   : > { %v3566_v47 = vpop.f32.mrf.mxu0 }
 0x374   : > { %v3565_v44 = vadd.f32 %v3564_v32, %v3476_v15 }
 0x376   : > { %v5571_v41 = vpop.eup %5570  ;;  %v3723_v0 = vadd.f32 %v6609_v25, %v3565_v44 }
 0x377   : > { %3786 = vst [vmem:[%s6625_s9 + $0x78] sm:$0xff] %v5571_v41  ;;  %v3388_v38 = vpop.f32.mrf.mxu2 }
 0x378   : > { %5572 = vtanh.f32 %v3723_v0  ;;  %v3389_v9 = vadd.f32 %v3388_v38, %v3300_v43  ;;  %v3477_v14 = vpop.f32.mrf.mxu3 }
 0x379   : > { %v3302_v51 = vpop.f32.mrf.mxu1 }
 0x37a   : > { %v3478_v10 = vadd.f32 %v3477_v14, %v3389_v9  ;;  %v3303_v18 = vadd.f32 %v3302_v51, %v6511_v3 }
 0x37b   : > { %v3569_v21 = vpop.f32.mrf.mxu0 }
 0x37c   : > { %v3567_v49 = vadd.f32 %v3566_v47, %v3478_v10 }
 0x37e   : > { %v5573_v37 = vpop.eup %5572  ;;  %v3724_v2 = vadd.f32 %v6609_v25, %v3567_v49 }
 0x37f   : > { %3787 = vst [vmem:[%s6625_s9 + $0x80] sm:$0xff] %v5573_v37  ;;  %v3391_v35 = vpop.f32.mrf.mxu2 }
 0x380   : > { %5574 = vtanh.f32 %v3724_v2  ;;  %v3392_v52 = vadd.f32 %v3391_v35, %v3303_v18  ;;  %v3480_v42 = vpop.f32.mrf.mxu3 }
 0x381   : > { %v3304_v56 = vpop.f32.mrf.mxu1 }
 0x382   : > { %v3481_v26 = vadd.f32 %v3480_v42, %v3392_v52  ;;  %v3305_v30 = vadd.f32 %v3304_v56, %v6520_v27 }
 0x383   : > { %v3571_v62 = vpop.f32.mrf.mxu0 }
 0x384   : > { %v3570_v39 = vadd.f32 %v3569_v21, %v3481_v26 }
 0x386   : > { %v5575_v46 = vpop.eup %5574  ;;  %v3725_v12 = vadd.f32 %v6609_v25, %v3570_v39 }
 0x387   : > { %3788 = vst [vmem:[%s6625_s9 + $0x88] sm:$0xff] %v5575_v46  ;;  %v3393_v23 = vpop.f32.mrf.mxu2 }
 0x388   : > { %5576 = vtanh.f32 %v3725_v12  ;;  %v3394_v59 = vadd.f32 %v3393_v23, %v3305_v30  ;;  %v3482_v3 = vpop.f32.mrf.mxu3 }
 0x389   : > { %v3307_v31 = vpop.f32.mrf.mxu1 }
 0x38a   : > { %v3483_v33 = vadd.f32 %v3482_v3, %v3394_v59  ;;  %v3308_v36 = vadd.f32 %v3307_v31, %v6525_v45 }
 0x38b   : > { %v3574_v28 = vpop.f32.mrf.mxu0 }
 0x38c   : > { %v3572_v16 = vadd.f32 %v3571_v62, %v3483_v33 }
 0x38e   : > { %v5577_v13 = vpop.eup %5576  ;;  %v3726_v7 = vadd.f32 %v6609_v25, %v3572_v16 }
 0x38f   : > { %3789 = vst [vmem:[%s6625_s9 + $0x90] sm:$0xff] %v5577_v13  ;;  %v3396_v20 = vpop.f32.mrf.mxu2 }
 0x390   : > { %5578 = vtanh.f32 %v3726_v7  ;;  %v3397_v55 = vadd.f32 %v3396_v20, %v3308_v36  ;;  %v3485_v27 = vpop.f32.mrf.mxu3 }
 0x391   : > { %v3309_v61 = vpop.f32.mrf.mxu1 }
 0x392   : > { %v3486_v48 = vadd.f32 %v3485_v27, %v3397_v55  ;;  %v3310_v50 = vadd.f32 %v3309_v61, %v6534_v24 }
 0x393   : > { %v3576_v54 = vpop.f32.mrf.mxu0 }
 0x394   : > { %v3575_v32 = vadd.f32 %v3574_v28, %v3486_v48 }
 0x396   : > { %v5579_v4 = vpop.eup %5578  ;;  %v3727_v17 = vadd.f32 %v6609_v25, %v3575_v32 }
 0x397   : > { %3790 = vst [vmem:[%s6625_s9 + $0x98] sm:$0xff] %v5579_v4  ;;  %v3398_v53 = vpop.f32.mrf.mxu2 }
 0x398   : > { %5580 = vtanh.f32 %v3727_v17  ;;  %v3399_v29 = vadd.f32 %v3398_v53, %v3310_v50  ;;  %v3487_v45 = vpop.f32.mrf.mxu3 }
 0x399   : > { %v3312_v60 = vpop.f32.mrf.mxu1 }
 0x39a   : > { %v3488_v63 = vadd.f32 %v3487_v45, %v3399_v29  ;;  %v3313_v41 = vadd.f32 %v3312_v60, %v6539_v8 }
 0x39b   : > { %v3579_v34 = vpop.f32.mrf.mxu0 }
 0x39c   : > { %v3577_v15 = vadd.f32 %v3576_v54, %v3488_v63 }
 0x39e   : > { %v5581_v47 = vpop.eup %5580  ;;  %v3728_v44 = vadd.f32 %v6609_v25, %v3577_v15 }
 0x39f   : > { %3791 = vst [vmem:[%s6625_s9 + $0xa0] sm:$0xff] %v5581_v47  ;;  %v3401_v0 = vpop.f32.mrf.mxu2 }
 0x3a0   : > { %5582 = vtanh.f32 %v3728_v44  ;;  %v3402_v43 = vadd.f32 %v3401_v0, %v3313_v41  ;;  %v3490_v24 = vpop.f32.mrf.mxu3 }
 0x3a1   : > { %v3314_v38 = vpop.f32.mrf.mxu1 }
 0x3a2   : > { %v3491_v9 = vadd.f32 %v3490_v24, %v3402_v43  ;;  %v3315_v49 = vadd.f32 %v3314_v38, %v6548_v1 }
 0x3a3   : > { %v3581_v14 = vpop.f32.mrf.mxu0 }
 0x3a4   : > { %v3580_v51 = vadd.f32 %v3579_v34, %v3491_v9 }
 0x3a6   : > { %v5583_v10 = vpop.eup %5582  ;;  %v3729_v21 = vadd.f32 %v6609_v25, %v3580_v51 }
 0x3a7   : > { %3792 = vst [vmem:[%s6625_s9 + $0xa8] sm:$0xff] %v5583_v10  ;;  %v3403_v37 = vpop.f32.mrf.mxu2 }
 0x3a8   : > { %5584 = vtanh.f32 %v3729_v21  ;;  %v3404_v2 = vadd.f32 %v3403_v37, %v3315_v49  ;;  %v3492_v8 = vpop.f32.mrf.mxu3 }
 0x3a9   : > { %v3317_v18 = vpop.f32.mrf.mxu1 }
 0x3aa   : > { %v3493_v35 = vadd.f32 %v3492_v8, %v3404_v2  ;;  %v3318_v62 = vadd.f32 %v3317_v18, %v6553_v19 }
 0x3ab   : > { %v3584_v52 = vpop.f32.mrf.mxu0 }
 0x3ac   : > { %v3582_v42 = vadd.f32 %v3581_v14, %v3493_v35 }
 0x3ae   : > { %v5585_v56 = vpop.eup %5584  ;;  %v3730_v26 = vadd.f32 %v6609_v25, %v3582_v42 }
 0x3af   : > { %3793 = vst [vmem:[%s6625_s9 + $0xb0] sm:$0xff] %v5585_v56  ;;  %v3406_v39 = vpop.f32.mrf.mxu2 }
 0x3b0   : > { %5586 = vtanh.f32 %v3730_v26  ;;  %v3407_v46 = vadd.f32 %v3406_v39, %v3318_v62  ;;  %v3495_v1 = vpop.f32.mrf.mxu3 }
 0x3b1   : > { %v3319_v12 = vpop.f32.mrf.mxu1 }
 0x3b2   : > { %v3496_v30 = vadd.f32 %v3495_v1, %v3407_v46  ;;  %v3320_v33 = vadd.f32 %v3319_v12, %v6562_v5 }
 0x3b3   : > { %v3586_v23 = vpop.f32.mrf.mxu0 }
 0x3b4   : > { %v3585_v59 = vadd.f32 %v3584_v52, %v3496_v30 }
 0x3b6   : > { %v5587_v3 = vpop.eup %5586  ;;  %v3731_v31 = vadd.f32 %v6609_v25, %v3585_v59 }
 0x3b7   : > { %3794 = vst [vmem:[%s6625_s9 + $0xb8] sm:$0xff] %v5587_v3  ;;  %v3408_v28 = vpop.f32.mrf.mxu2 }
 0x3b8   : > { %5588 = vtanh.f32 %v3731_v31  ;;  %v3409_v16 = vadd.f32 %v3408_v28, %v3320_v33  ;;  %v3497_v19 = vpop.f32.mrf.mxu3 }
 0x3b9   : > { %v3322_v13 = vpop.f32.mrf.mxu1 }
 0x3ba   : > { %v3498_v7 = vadd.f32 %v3497_v19, %v3409_v16  ;;  %v3323_v61 = vadd.f32 %v3322_v13, %v6567_v22 }
 0x3bb   : > { %v3589_v36 = vpop.f32.mrf.mxu0 }
 0x3bc   : > { %v3587_v20 = vadd.f32 %v3586_v23, %v3498_v7 }
 0x3be   : > { %v5589_v55 = vpop.eup %5588  ;;  %v3732_v27 = vadd.f32 %v6609_v25, %v3587_v20 }
 0x3bf   : > { %3795 = vst [vmem:[%s6625_s9 + $0xc0] sm:$0xff] %v5589_v55  ;;  %v3411_v48 = vpop.f32.mrf.mxu2 }
 0x3c0   : > { %5590 = vtanh.f32 %v3732_v27  ;;  %v3412_v54 = vadd.f32 %v3411_v48, %v3323_v61  ;;  %v3500_v5 = vpop.f32.mrf.mxu3 }
 0x3c1   : > { %v3324_v32 = vpop.f32.mrf.mxu1 }
 0x3c2   : > { %v3501_v4 = vadd.f32 %v3500_v5, %v3412_v54  ;;  %v3325_v45 = vadd.f32 %v3324_v32, %v6576_v40 }
 0x3c3   : > { %v3591_v17 = vpop.f32.mrf.mxu0 }
 0x3c4   : > { %v3590_v50 = vadd.f32 %v3589_v36, %v3501_v4 }
 0x3c6   : > { %v5591_v53 = vpop.eup %5590  ;;  %v3733_v29 = vadd.f32 %v6609_v25, %v3590_v50 }
 0x3c7   : > { %3796 = vst [vmem:[%s6625_s9 + $0xc8] sm:$0xff] %v5591_v53  ;;  %v3413_v60 = vpop.f32.mrf.mxu2 }
 0x3c8   : > { %5592 = vtanh.f32 %v3733_v29  ;;  %v3414_v63 = vadd.f32 %v3413_v60, %v3325_v45  ;;  %v3502_v22 = vpop.f32.mrf.mxu3 }
 0x3c9   : > { %v3327_v34 = vpop.f32.mrf.mxu1 }
 0x3ca   : > { %v3503_v15 = vadd.f32 %v3502_v22, %v3414_v63  ;;  %v3328_v43 = vadd.f32 %v3327_v34, %v6581_v11 }
 0x3cb   : > { %v3594_v44 = vpop.f32.mrf.mxu0 }
 0x3cc   : > { %v3592_v47 = vadd.f32 %v3591_v17, %v3503_v15 }
 0x3ce   : > { %v5593_v41 = vpop.eup %5592  ;;  %v3734_v0 = vadd.f32 %v6609_v25, %v3592_v47 }
 0x3cf   : > { %3797 = vst [vmem:[%s6625_s9 + $0xd0] sm:$0xff] %v5593_v41  ;;  %v3416_v24 = vpop.f32.mrf.mxu2 }
 0x3d0   : > { %5594 = vtanh.f32 %v3734_v0  ;;  %v3417_v38 = vadd.f32 %v3416_v24, %v3328_v43  ;;  %v3505_v40 = vpop.f32.mrf.mxu3 }
 0x3d1   : > { %v3329_v9 = vpop.f32.mrf.mxu1 }
 0x3d2   : > { %v3506_v14 = vadd.f32 %v3505_v40, %v3417_v38  ;;  %v3330_v49 = vadd.f32 %v3329_v9, %v6590_v58 }
 0x3d3   : > { %v3596_v37 = vpop.f32.mrf.mxu0 }
 0x3d4   : > { %v3595_v51 = vadd.f32 %v3594_v44, %v3506_v14 }
 0x3d6   : > { %v5595_v10 = vpop.eup %5594  ;;  %v3735_v21 = vadd.f32 %v6609_v25, %v3595_v51 }
 0x3d7   : > { %3798 = vst [vmem:[%s6625_s9 + $0xd8] sm:$0xff] %v5595_v10  ;;  %v3418_v2 = vpop.f32.mrf.mxu2 }
 0x3d8   : > { %5596 = vtanh.f32 %v3735_v21  ;;  %v3419_v8 = vadd.f32 %v3418_v2, %v3330_v49  ;;  %v3507_v11 = vpop.f32.mrf.mxu3 }
 0x3d9   : > { %v3332_v18 = vpop.f32.mrf.mxu1 }
 0x3da   : > { %v3508_v35 = vadd.f32 %v3507_v11, %v3419_v8  ;;  %v3333_v26 = vadd.f32 %v3332_v18, %v6595_v6 }
 0x3db   : > { %v3599_v46 = vpop.f32.mrf.mxu0 }
 0x3dc   : > { %v3597_v52 = vadd.f32 %v3596_v37, %v3508_v35 }
 0x3de   : > { %v5597_v42 = vpop.eup %5596  ;;  %v3736_v56 = vadd.f32 %v6609_v25, %v3597_v52 }
 0x3df   : > { %3799 = vst [vmem:[%s6625_s9 + $0xe0] sm:$0xff] %v5597_v42  ;;  %v3421_v62 = vpop.f32.mrf.mxu2 }
 0x3e0   : > { %5598 = vtanh.f32 %v3736_v56  ;;  %v3422_v39 = vadd.f32 %v3421_v62, %v3333_v26  ;;  %v3510_v58 = vpop.f32.mrf.mxu3 }
 0x3e1   : > { %v3334_v12 = vpop.f32.mrf.mxu1 }
 0x3e2   : > { %v3511_v1 = vadd.f32 %v3510_v58, %v3422_v39  ;;  %v3335_v3 = vadd.f32 %v3334_v12, %v6603_v57 }
 0x3e3   : > { %v3601_v16 = vpop.f32.mrf.mxu0 }
 0x3e4   : > { %v3600_v30 = vadd.f32 %v3599_v46, %v3511_v1 }
 0x3e6   : > { %v5599_v23 = vpop.eup %5598  ;;  %v3737_v59 = vadd.f32 %v6609_v25, %v3600_v30 }
 0x3e7   : > { %3800 = vst [vmem:[%s6625_s9 + $0xe8] sm:$0xff] %v5599_v23  ;;  %v3423_v31 = vpop.f32.mrf.mxu2 }
 0x3e8   : > { %5600 = vtanh.f32 %v3737_v59  ;;  %v3424_v6 = vadd.f32 %v3423_v31, %v3335_v3  ;;  %v3512_v33 = vpop.f32.mrf.mxu3 }
 0x3ea   : > { %v3513_v28 = vadd.f32 %v3512_v33, %v3424_v6 }
 0x3ec   : > { %v3602_v19 = vadd.f32 %v3601_v16, %v3513_v28 }
 0x3ee   : > { %v5601_v13 = vpop.eup %5600  ;;  %v3738_v7 = vadd.f32 %v6609_v25, %v3602_v19 }
 0x3ef   : > { %3801 = vst [vmem:[%s6625_s9 + $0xf0] sm:$0xff] %v5601_v13 }
 0x3f0   : > { %5602 = vtanh.f32 %v3738_v7 }
 0x3f6   : > { %v5603_v36 = vpop.eup %5602 }
 0x3f7   : > { %3802 = vst [vmem:[%s6625_s9 + $0xf8] sm:$0xff] %v5603_v36 }
 0x3f8 PF: > { %s13_s14 = sadd.s32 1, %s5626_s14   ;;  %s6781_s12 = smov %s5622_s13 }
 0x3f9   : > { %p10_p5 = scmp.ge.s32.totalorder %s13_s14, 4   ;;  %s6782_s13 = smov %s6784_s15 }
 0x3fb   :  { %12 = sbr.rel (!%p10_p5) target bundleno = 2 (0x2), region = 76 }

</bundles_post_ra>
